<compile_context>
chip_gen: v7x
topology: tpu7x:2x2x1
jax: 0.10.0
libtpu: 0.0.40
codegen_flags: <defaults>
</compile_context>

<pallas_src>
import functools

import jax
import jax.numpy as jnp
from jax import lax
from jax.experimental import pallas as pl
from jax.experimental.pallas import tpu as pltpu


# ----------------------------------------------------------------------------
# Config (deterministic, scaled-down channel counts vs. real ResNet50-FPN).
# ----------------------------------------------------------------------------
STEM_C, C2, C3, C4, C5 = 16, 16, 32, 64, 128
FPN_C = 32                      # real model uses 256
NUM_ANCHORS = 3                 # 3 aspect ratios per level
REP_SIZE = 128                  # real box head uses 1024
NUM_CLASSES = 91                # COCO, incl. background class 0
POOL = 7                        # RoI output resolution
TOPK = 8                        # proposals kept per image (no NMS, see TODO)

_LANE = 128                     # lane width (K/N padded to this, known-safe)
_SUBLANE = 16                   # bf16 sublane packing for the M dimension
_TM_MAX = 256                   # max rows per grid step


def _round_up(x, m):
    return (x + m - 1) // m * m


# ----------------------------------------------------------------------------
# Pallas kernel: single-K-step matmul with fused bias add + optional ReLU.
#   A: [tm, Kp] bf16, W: [Kp, Np] bf16 (full-K block), bias: [1, Np] f32.
#   Epilogue stays in f32 (v5e VPU has no bf16 path); output stored in the
#   requested dtype (bf16 for intermediate activations => half HBM traffic).
# ----------------------------------------------------------------------------
def _mm_bias_act_kernel(a_ref, w_ref, bias_ref, o_ref, *, relu):
    acc = jnp.dot(a_ref[...], w_ref[...], preferred_element_type=jnp.float32)
    out = acc + bias_ref[...]
    if relu:
        out = jnp.maximum(out, 0.0)
    o_ref[...] = out.astype(o_ref.dtype)


def pallas_matmul(a, layer, n_out, *, relu=False, out_dtype=jnp.bfloat16,
                  keep_padded=False):
    """act(a @ W + b).  a:[M,K]; layer['w']:[Kp,Np] bf16 (pre-padded);
    layer['b']:[1,Np] f32.  Returns [M, n_out] (or the padded [Mp, Np])."""
    w_p, b_p = layer["w"], layer["b"]
    M, K = a.shape
    Kp, Np = w_p.shape
    Mp = _round_up(M, _SUBLANE)
    if Mp <= _TM_MAX:
        tm = Mp                                   # single exact-size block
    else:
        tm = _TM_MAX                              # >=2 parallel blocks (v7x)
        Mp = _round_up(Mp, tm)
    a_p = jnp.pad(a.astype(jnp.bfloat16), ((0, Mp - M), (0, Kp - K)))

    out = pl.pallas_call(
        functools.partial(_mm_bias_act_kernel, relu=relu),
        out_shape=jax.ShapeDtypeStruct((Mp, Np), out_dtype),
        grid_spec=pltpu.PrefetchScalarGridSpec(
            num_scalar_prefetch=0,
            grid=(Mp // tm,),
            in_specs=[
                pl.BlockSpec((tm, Kp), lambda i: (i, 0)),   # A row-tile
                pl.BlockSpec((Kp, Np), lambda i: (0, 0)),   # full weight
                pl.BlockSpec((1, Np), lambda i: (0, 0)),    # bias row
            ],
            out_specs=pl.BlockSpec((tm, Np), lambda i: (i, 0)),
        ),
        compiler_params=pltpu.CompilerParams(
            dimension_semantics=("parallel",),
            vmem_limit_bytes=32 * 1024 * 1024),
    )(a_p, w_p, b_p)
    if keep_padded:
        return out
    return out[:M, :n_out]


# ----------------------------------------------------------------------------
# Convolution = im2col (bf16, in-jit) + Pallas matmul hot path.
# ----------------------------------------------------------------------------
def im2col(x, kh, kw, stride, pad):
    """x: [N,H,W,C] NHWC -> patches [N*Ho*Wo, kh*kw*C], plus (Ho, Wo)."""
    N, H, W, C = x.shape
    Ho = (H + 2 * pad - kh) // stride + 1
    Wo = (W + 2 * pad - kw) // stride + 1
    if kh == 1 and kw == 1 and stride == 1 and pad == 0:
        return x.reshape(N * H * W, C), Ho, Wo
    xp = jnp.pad(x, ((0, 0), (pad, pad), (pad, pad), (0, 0)))
    cols = []
    for i in range(kh):
        for j in range(kw):
            cols.append(xp[:, i:i + stride * (Ho - 1) + 1:stride,
                           j:j + stride * (Wo - 1) + 1:stride, :])
    # TODO(synk): im2col is still materialized in HBM (now bf16); folding the
    #             kh*kw taps into the kernel's K axis via manual strided DMA
    #             would remove the remaining activation-read blow-up.
    patches = jnp.concatenate(cols, axis=-1).reshape(N * Ho * Wo, kh * kw * C)
    return patches, Ho, Wo


def conv2d(x, layer, cout, *, kh, kw, stride=1, pad=0, relu=False):
    N = x.shape[0]
    patches, Ho, Wo = im2col(x, kh, kw, stride, pad)
    out = pallas_matmul(patches, layer, cout, relu=relu)
    return out.reshape(N, Ho, Wo, cout)


def maxpool_3x3_s2(x):
    return lax.reduce_window(x, jnp.array(-jnp.inf, x.dtype), lax.max,
                             (1, 3, 3, 1), (1, 2, 2, 1),
                             ((0, 0), (1, 1), (1, 1), (0, 0)))


def upsample2x(x):
    return jnp.repeat(jnp.repeat(x, 2, axis=1), 2, axis=2)


# ----------------------------------------------------------------------------
# Parameters (same raw shapes as before) + one-time packing for the kernel.
# ----------------------------------------------------------------------------
def init_params(key):
    shapes = {
        "stem_w": (7, 7, 3, STEM_C), "stem_b": (STEM_C,),
        "layer1_w": (3, 3, STEM_C, C2), "layer1_b": (C2,),
        "layer2_w": (3, 3, C2, C3), "layer2_b": (C3,),
        "layer3_w": (3, 3, C3, C4), "layer3_b": (C4,),
        "layer4_w": (3, 3, C4, C5), "layer4_b": (C5,),
        "lat2_w": (1, 1, C2, FPN_C), "lat2_b": (FPN_C,),
        "lat3_w": (1, 1, C3, FPN_C), "lat3_b": (FPN_C,),
        "lat4_w": (1, 1, C4, FPN_C), "lat4_b": (FPN_C,),
        "lat5_w": (1, 1, C5, FPN_C), "lat5_b": (FPN_C,),
        "out2_w": (3, 3, FPN_C, FPN_C), "out2_b": (FPN_C,),
        "out3_w": (3, 3, FPN_C, FPN_C), "out3_b": (FPN_C,),
        "out4_w": (3, 3, FPN_C, FPN_C), "out4_b": (FPN_C,),
        "out5_w": (3, 3, FPN_C, FPN_C), "out5_b": (FPN_C,),
        "rpn_conv_w": (3, 3, FPN_C, FPN_C), "rpn_conv_b": (FPN_C,),
        "rpn_cls_w": (1, 1, FPN_C, NUM_ANCHORS), "rpn_cls_b": (NUM_ANCHORS,),
        "rpn_box_w": (1, 1, FPN_C, 4 * NUM_ANCHORS), "rpn_box_b": (4 * NUM_ANCHORS,),
        "fc6_w": (POOL * POOL * FPN_C, REP_SIZE), "fc6_b": (REP_SIZE,),
        "fc7_w": (REP_SIZE, REP_SIZE), "fc7_b": (REP_SIZE,),
        "cls_w": (REP_SIZE, NUM_CLASSES), "cls_b": (NUM_CLASSES,),
        "box_w": (REP_SIZE, NUM_CLASSES * 4), "box_b": (NUM_CLASSES * 4,),
    }
    keys = jax.random.split(key, len(shapes))
    params = {}
    for k, (name, shp) in zip(keys, sorted(shapes.items())):
        params[name] = 0.05 * jax.random.normal(k, shp, dtype=jnp.float32)
    return params


def prepare_params(p):
    """Flatten conv weights to [K,N], pad K/N to 128, cast to bf16 and pre-fuse
    heads that share an input.  Done ONCE, outside the per-forward hot path."""
    def prep(wm, b):
        K, N = wm.shape
        Kp, Np = _round_up(K, _LANE), _round_up(N, _LANE)
        return {
            "w": jnp.pad(wm.astype(jnp.bfloat16), ((0, Kp - K), (0, Np - N))),
            "b": jnp.pad(b.astype(jnp.float32), (0, Np - N)).reshape(1, Np),
        }

    def prep_conv(name):
        w = p[name + "_w"]
        kh, kw, cin, cout = w.shape
        return prep(w.reshape(kh * kw * cin, cout), p[name + "_b"])

    prm = {}
    for name in ["stem", "layer1", "layer2", "layer3", "layer4",
                 "lat2", "lat3", "lat4", "lat5",
                 "out2", "out3", "out4", "out5", "rpn_conv"]:
        prm[name] = prep_conv(name)
    # fused RPN cls + box 1x1 head (shares the rpn_conv output).
    rpn_w = jnp.concatenate(
        [p["rpn_cls_w"].reshape(FPN_C, NUM_ANCHORS),
         p["rpn_box_w"].reshape(FPN_C, 4 * NUM_ANCHORS)], axis=1)
    rpn_b = jnp.concatenate([p["rpn_cls_b"], p["rpn_box_b"]])
    prm["rpn_head"] = prep(rpn_w, rpn_b)
    prm["fc6"] = prep(p["fc6_w"], p["fc6_b"])
    prm["fc7"] = prep(p["fc7_w"], p["fc7_b"])
    # fused FastRCNNPredictor (cls logits ++ box regression).
    pred_w = jnp.concatenate([p["cls_w"], p["box_w"]], axis=1)
    pred_b = jnp.concatenate([p["cls_b"], p["box_b"]])
    prm["predictor"] = prep(pred_w, pred_b)
    return prm


# ----------------------------------------------------------------------------
# Forward pass.
# ----------------------------------------------------------------------------
def faster_rcnn_forward(prm, x_nchw):
    N, _, H_img, W_img = x_nchw.shape
    x = jnp.transpose(x_nchw, (0, 2, 3, 1)).astype(jnp.float32)  # -> NHWC

    # GeneralizedRCNNTransform: normalize (resize skipped).
    # TODO(synk): image resizing to min_size=800 has no in-kernel equivalent.
    mean = jnp.array([0.485, 0.456, 0.406], jnp.float32)
    std = jnp.array([0.229, 0.224, 0.225], jnp.float32)
    x = ((x - mean) / std).astype(jnp.bfloat16)   # activations travel in bf16

    # ---- backbone (scaled-down ResNet; FrozenBatchNorm2d at default init is
    #      identity and is folded away). -----------------------------------
    # TODO(synk): full ResNet50 bottleneck stacks replaced by one conv/stage.
    s = conv2d(x, prm["stem"], STEM_C, kh=7, kw=7, stride=2, pad=3, relu=True)
    s = maxpool_3x3_s2(s)
    c2 = conv2d(s, prm["layer1"], C2, kh=3, kw=3, pad=1, relu=True)
    c3 = conv2d(c2, prm["layer2"], C3, kh=3, kw=3, stride=2, pad=1, relu=True)
    c4 = conv2d(c3, prm["layer3"], C4, kh=3, kw=3, stride=2, pad=1, relu=True)
    c5 = conv2d(c4, prm["layer4"], C5, kh=3, kw=3, stride=2, pad=1, relu=True)

    # ---- FPN --------------------------------------------------------------
    l2 = conv2d(c2, prm["lat2"], FPN_C, kh=1, kw=1)
    l3 = conv2d(c3, prm["lat3"], FPN_C, kh=1, kw=1)
    l4 = conv2d(c4, prm["lat4"], FPN_C, kh=1, kw=1)
    l5 = conv2d(c5, prm["lat5"], FPN_C, kh=1, kw=1)
    t5 = l5
    t4 = l4 + upsample2x(t5)
    t3 = l3 + upsample2x(t4)
    t2 = l2 + upsample2x(t3)
    p2 = conv2d(t2, prm["out2"], FPN_C, kh=3, kw=3, pad=1)
    p3 = conv2d(t3, prm["out3"], FPN_C, kh=3, kw=3, pad=1)
    p4 = conv2d(t4, prm["out4"], FPN_C, kh=3, kw=3, pad=1)
    p5 = conv2d(t5, prm["out5"], FPN_C, kh=3, kw=3, pad=1)
    pyramid = [p2, p3, p4, p5]

    # ---- RPN head: weights shared across levels -> all four levels fused
    #      into ONE 3x3-conv matmul + ONE cls/box matmul (concat along M).
    pats, metas = [], []
    for feat in pyramid:
        pt, ho, wo = im2col(feat, 3, 3, 1, 1)
        pats.append(pt)
        metas.append((ho, wo, pt.shape[0]))
    t_all = pallas_matmul(jnp.concatenate(pats, axis=0), prm["rpn_conv"],
                          FPN_C, relu=True, keep_padded=True)
    head_all = pallas_matmul(t_all, prm["rpn_head"], 5 * NUM_ANCHORS)
    objectness, rpn_deltas = [], []
    off = 0
    for ho, wo, m in metas:
        blk = head_all[off:off + m]
        off += m
        objectness.append(blk[:, :NUM_ANCHORS].reshape(N, ho, wo, NUM_ANCHORS))
        rpn_deltas.append(
            blk[:, NUM_ANCHORS:].reshape(N, ho, wo, 4 * NUM_ANCHORS))

    # ---- proposal selection on the finest level ----------------------------
    # TODO(synk): multi-level proposal pooling and per-level NMS have no clean
    #             Pallas equivalent; top-k objectness on P2 is used instead.
    obj2 = objectness[0].astype(jnp.float32)                 # [N,H2,W2,A]
    del2 = rpn_deltas[0].astype(jnp.float32).reshape(
        obj2.shape[:3] + (NUM_ANCHORS, 4))
    Nn, H2, W2, A = obj2.shape
    _, idx = lax.top_k(obj2.reshape(Nn, H2 * W2 * A), TOPK)
    a_i = idx % A
    x_i = (idx // A) % W2
    y_i = idx // (A * W2)
    deltas = jax.vmap(lambda bb, yy, xx, aa: bb[yy, xx, aa])(del2, y_i, x_i, a_i)

    stride2 = H_img // H2
    ratios = jnp.array([0.5, 1.0, 2.0], jnp.float32)
    anchor_size = 32.0
    aw = (anchor_size / jnp.sqrt(ratios))[a_i]
    ah = (anchor_size * jnp.sqrt(ratios))[a_i]
    acx = (x_i.astype(jnp.float32) + 0.5) * stride2
    acy = (y_i.astype(jnp.float32) + 0.5) * stride2
    dx, dy = deltas[..., 0], deltas[..., 1]
    dw = jnp.clip(deltas[..., 2], -4, 4)
    dh = jnp.clip(deltas[..., 3], -4, 4)
    pcx, pcy = acx + dx * aw, acy + dy * ah
    pw, ph = aw * jnp.exp(dw), ah * jnp.exp(dh)
    proposals = jnp.clip(
        jnp.stack([pcx - pw / 2, pcy - ph / 2, pcx + pw / 2, pcy + ph / 2], -1),
        0.0, float(H_img))                                   # [N,TOPK,4]

    # ---- RoI feature extraction (nearest-neighbour crop on P2) -------------
    # TODO(synk): bilinear RoIAlign sampling not implemented; nearest crops are
    #             centred on the top-k feature cells (not the decoded boxes).
    def _crop_one(feat, yy, xx):
        ry = jnp.clip(yy - POOL // 2 + jnp.arange(POOL), 0, feat.shape[0] - 1)
        rx = jnp.clip(xx - POOL // 2 + jnp.arange(POOL), 0, feat.shape[1] - 1)
        return feat[ry][:, rx]                               # [7,7,C]

    crops = jax.vmap(
        lambda f, ys, xs: jax.vmap(lambda yy, xx: _crop_one(f, yy, xx))(ys, xs)
    )(p2, y_i, x_i)                                          # [N,TOPK,7,7,C]

    # ---- TwoMLPHead + fused FastRCNNPredictor (Pallas matmuls) --------------
    flat = crops.reshape(Nn * TOPK, POOL * POOL * FPN_C)
    h = pallas_matmul(flat, prm["fc6"], REP_SIZE, relu=True)
    h = pallas_matmul(h, prm["fc7"], REP_SIZE, relu=True)
    pred = pallas_matmul(h, prm["predictor"], 5 * NUM_CLASSES,
                         out_dtype=jnp.float32)
    cls_logits = pred[:, :NUM_CLASSES].reshape(Nn, TOPK, NUM_CLASSES)
    box_deltas = pred[:, NUM_CLASSES:].reshape(Nn, TOPK, NUM_CLASSES * 4)

    # TODO(synk): final per-class box decoding, score thresholding and NMS
    #             (RoIHeads.postprocess_detections) are omitted.
    probs = jax.nn.softmax(cls_logits, axis=-1)[..., 1:]     # drop background
    det_scores = probs.max(-1)
    det_labels = probs.argmax(-1) + 1
    return {
        "boxes": proposals,
        "scores": det_scores,
        "labels": det_labels,
        "cls_logits": cls_logits,
        "box_deltas": box_deltas,
        "rpn_objectness_p2": obj2,
    }


# ----------------------------------------------------------------------------
if __name__ == "__main__":
    key = jax.random.PRNGKey(0)
    k_param, k_x = jax.random.split(key)
    params = init_params(k_param)
    prm = prepare_params(params)          # pad / flatten / cast weights ONCE
    x = jax.random.uniform(k_x, (2, 3, 64, 64), dtype=jnp.float32)  # NCHW

    fwd = jax.jit(faster_rcnn_forward)
    out = fwd(prm, x)
    jax.tree_util.tree_map(jax.block_until_ready, out)

    assert out["boxes"].shape == (2, TOPK, 4)
    assert out["cls_logits"].shape == (2, TOPK, NUM_CLASSES)
    assert out["box_deltas"].shape == (2, TOPK, NUM_CLASSES * 4)
    print("KERNEL_OK")
</pallas_src>

<mosaic_0001>
module attributes {stable_mosaic.version = 11 : i64} {
  func.func @_mm_bias_act_kernel(%arg0: i32, %arg1: memref<256x256xbf16, #tpu.memory_space<vmem>>, %arg2: memref<256x128xbf16, #tpu.memory_space<vmem>>, %arg3: memref<1x128xf32, #tpu.memory_space<vmem>>, %arg4: memref<256x128xbf16, #tpu.memory_space<vmem>>) attributes {dimension_semantics = [#tpu.dimension_semantics<parallel>], iteration_bounds = array<i64: 8>, scalar_prefetch = 0 : i64, scratch_operands = 0 : i64, tpu.core_type = #tpu.core_type<tc>, window_params = [{transform_indices = @transform_0, window_bounds = array<i64: 256, 256>}, {pipeline_mode = #tpu.pipeline_mode<synchronous>, transform_indices = @transform_1, window_bounds = array<i64: 256, 128>}, {pipeline_mode = #tpu.pipeline_mode<synchronous>, transform_indices = @transform_2, window_bounds = array<i64: 1, 128>}, {transform_indices = @transform_3, window_bounds = array<i64: 256, 128>}]} {
    %c0 = arith.constant 0 : index
    %c0_0 = arith.constant 0 : index
    %0 = vector.load %arg1[%c0, %c0_0] : memref<256x256xbf16, #tpu.memory_space<vmem>>, vector<256x256xbf16>
    %c0_1 = arith.constant 0 : index
    %c0_2 = arith.constant 0 : index
    %1 = vector.load %arg2[%c0_1, %c0_2] : memref<256x128xbf16, #tpu.memory_space<vmem>>, vector<256x128xbf16>
    %cst = arith.constant dense<0.000000e+00> : vector<256x128xf32>
    %2 = tpu.matmul %0, %1, %cst {dimension_numbers = #tpu.dot_dimension_numbers<[1], [0], [0], [1], [0, 0, 1, 1], [], []>} : vector<256x256xbf16>, vector<256x128xbf16>, vector<256x128xf32> -> vector<256x128xf32>
    %c0_3 = arith.constant 0 : index
    %c0_4 = arith.constant 0 : index
    %3 = vector.load %arg3[%c0_3, %c0_4] : memref<1x128xf32, #tpu.memory_space<vmem>>, vector<1x128xf32>
    %4 = vector.broadcast %3 : vector<1x128xf32> to vector<256x128xf32>
    %5 = arith.addf %2, %4 : vector<256x128xf32>
    %cst_5 = arith.constant 0.000000e+00 : f32
    %6 = vector.broadcast %cst_5 : f32 to vector<256x128xf32>
    %7 = arith.maximumf %5, %6 : vector<256x128xf32>
    %8 = arith.truncf %7 : vector<256x128xf32> to vector<256x128xbf16>
    %c0_6 = arith.constant 0 : index
    %c0_7 = arith.constant 0 : index
    %9 = vector.load %arg4[%c0_6, %c0_7] : memref<256x128xbf16, #tpu.memory_space<vmem>>, vector<256x128xbf16>
    tpu.vector_store %arg4[%c0_6, %c0_7], %8 {strides = array<i32>} : memref<256x128xbf16, #tpu.memory_space<vmem>>, vector<256x128xbf16>,
    return
  }
  func.func @transform_0(%arg0: i32) -> (i32, i32) {
    %c0_i32 = arith.constant 0 : i32
    %c0_i32_0 = arith.constant 0 : i32
    return %arg0, %c0_i32 : i32, i32
  }
  func.func @transform_1(%arg0: i32) -> (i32, i32) {
    %c0_i32 = arith.constant 0 : i32
    %c0_i32_0 = arith.constant 0 : i32
    %c0_i32_1 = arith.constant 0 : i32
    return %c0_i32, %c0_i32_0 : i32, i32
  }
  func.func @transform_2(%arg0: i32) -> (i32, i32) {
    %c0_i32 = arith.constant 0 : i32
    %c0_i32_0 = arith.constant 0 : i32
    %c0_i32_1 = arith.constant 0 : i32
    return %c0_i32, %c0_i32_0 : i32, i32
  }
  func.func @transform_3(%arg0: i32) -> (i32, i32) {
    %c0_i32 = arith.constant 0 : i32
    %c0_i32_0 = arith.constant 0 : i32
    return %arg0, %c0_i32 : i32, i32
  }
}

module attributes {stable_mosaic.version = 11 : i64} {
  func.func @_mm_bias_act_kernel(%arg0: i32, %arg1: memref<256x256xbf16, #tpu.memory_space<vmem>>, %arg2: memref<256x128xbf16, #tpu.memory_space<vmem>>, %arg3: memref<1x128xf32, #tpu.memory_space<vmem>>, %arg4: memref<256x128xbf16, #tpu.memory_space<vmem>>) attributes {dimension_semantics = [#tpu.dimension_semantics<parallel>], iteration_bounds = array<i64: 2>, scalar_prefetch = 0 : i64, scratch_operands = 0 : i64, tpu.core_type = #tpu.core_type<tc>, window_params = [{transform_indices = @transform_0, window_bounds = array<i64: 256, 256>}, {pipeline_mode = #tpu.pipeline_mode<synchronous>, transform_indices = @transform_1, window_bounds = array<i64: 256, 128>}, {pipeline_mode = #tpu.pipeline_mode<synchronous>, transform_indices = @transform_2, window_bounds = array<i64: 1, 128>}, {transform_indices = @transform_3, window_bounds = array<i64: 256, 128>}]} {
    %c0 = arith.constant 0 : index
    %c0_0 = arith.constant 0 : index
    %0 = vector.load %arg1[%c0, %c0_0] : memref<256x256xbf16, #tpu.memory_space<vmem>>, vector<256x256xbf16>
    %c0_1 = arith.constant 0 : index
    %c0_2 = arith.constant 0 : index
    %1 = vector.load %arg2[%c0_1, %c0_2] : memref<256x128xbf16, #tpu.memory_space<vmem>>, vector<256x128xbf16>
    %cst = arith.constant dense<0.000000e+00> : vector<256x128xf32>
    %2 = tpu.matmul %0, %1, %cst {dimension_numbers = #tpu.dot_dimension_numbers<[1], [0], [0], [1], [0, 0, 1, 1], [], []>} : vector<256x256xbf16>, vector<256x128xbf16>, vector<256x128xf32> -> vector<256x128xf32>
    %c0_3 = arith.constant 0 : index
    %c0_4 = arith.constant 0 : index
    %3 = vector.load %arg3[%c0_3, %c0_4] : memref<1x128xf32, #tpu.memory_space<vmem>>, vector<1x128xf32>
    %4 = vector.broadcast %3 : vector<1x128xf32> to vector<256x128xf32>
    %5 = arith.addf %2, %4 : vector<256x128xf32>
    %cst_5 = arith.constant 0.000000e+00 : f32
    %6 = vector.broadcast %cst_5 : f32 to vector<256x128xf32>
    %7 = arith.maximumf %5, %6 : vector<256x128xf32>
    %8 = arith.truncf %7 : vector<256x128xf32> to vector<256x128xbf16>
    %c0_6 = arith.constant 0 : index
    %c0_7 = arith.constant 0 : index
    %9 = vector.load %arg4[%c0_6, %c0_7] : memref<256x128xbf16, #tpu.memory_space<vmem>>, vector<256x128xbf16>
    tpu.vector_store %arg4[%c0_6, %c0_7], %8 {strides = array<i32>} : memref<256x128xbf16, #tpu.memory_space<vmem>>, vector<256x128xbf16>,
    return
  }
  func.func @transform_0(%arg0: i32) -> (i32, i32) {
    %c0_i32 = arith.constant 0 : i32
    %c0_i32_0 = arith.constant 0 : i32
    return %arg0, %c0_i32 : i32, i32
  }
  func.func @transform_1(%arg0: i32) -> (i32, i32) {
    %c0_i32 = arith.constant 0 : i32
    %c0_i32_0 = arith.constant 0 : i32
    %c0_i32_1 = arith.constant 0 : i32
    return %c0_i32, %c0_i32_0 : i32, i32
  }
  func.func @transform_2(%arg0: i32) -> (i32, i32) {
    %c0_i32 = arith.constant 0 : i32
    %c0_i32_0 = arith.constant 0 : i32
    %c0_i32_1 = arith.constant 0 : i32
    return %c0_i32, %c0_i32_0 : i32, i32
  }
  func.func @transform_3(%arg0: i32) -> (i32, i32) {
    %c0_i32 = arith.constant 0 : i32
    %c0_i32_0 = arith.constant 0 : i32
    return %arg0, %c0_i32 : i32, i32
  }
}

module attributes {stable_mosaic.version = 11 : i64} {
  func.func @_mm_bias_act_kernel(%arg0: i32, %arg1: memref<256x128xbf16, #tpu.memory_space<vmem>>, %arg2: memref<128x128xbf16, #tpu.memory_space<vmem>>, %arg3: memref<1x128xf32, #tpu.memory_space<vmem>>, %arg4: memref<256x128xbf16, #tpu.memory_space<vmem>>) attributes {dimension_semantics = [#tpu.dimension_semantics<parallel>], iteration_bounds = array<i64: 2>, scalar_prefetch = 0 : i64, scratch_operands = 0 : i64, tpu.core_type = #tpu.core_type<tc>, window_params = [{transform_indices = @transform_0, window_bounds = array<i64: 256, 128>}, {pipeline_mode = #tpu.pipeline_mode<synchronous>, transform_indices = @transform_1, window_bounds = array<i64: 128, 128>}, {pipeline_mode = #tpu.pipeline_mode<synchronous>, transform_indices = @transform_2, window_bounds = array<i64: 1, 128>}, {transform_indices = @transform_3, window_bounds = array<i64: 256, 128>}]} {
    %c0 = arith.constant 0 : index
    %c0_0 = arith.constant 0 : index
    %0 = vector.load %arg1[%c0, %c0_0] : memref<256x128xbf16, #tpu.memory_space<vmem>>, vector<256x128xbf16>
    %c0_1 = arith.constant 0 : index
    %c0_2 = arith.constant 0 : index
    %1 = vector.load %arg2[%c0_1, %c0_2] : memref<128x128xbf16, #tpu.memory_space<vmem>>, vector<128x128xbf16>
    %cst = arith.constant dense<0.000000e+00> : vector<256x128xf32>
    %2 = tpu.matmul %0, %1, %cst {dimension_numbers = #tpu.dot_dimension_numbers<[1], [0], [0], [1], [0, 0, 1, 1], [], []>} : vector<256x128xbf16>, vector<128x128xbf16>, vector<256x128xf32> -> vector<256x128xf32>
    %c0_3 = arith.constant 0 : index
    %c0_4 = arith.constant 0 : index
    %3 = vector.load %arg3[%c0_3, %c0_4] : memref<1x128xf32, #tpu.memory_space<vmem>>, vector<1x128xf32>
    %4 = vector.broadcast %3 : vector<1x128xf32> to vector<256x128xf32>
    %5 = arith.addf %2, %4 : vector<256x128xf32>
    %6 = arith.truncf %5 : vector<256x128xf32> to vector<256x128xbf16>
    %c0_5 = arith.constant 0 : index
    %c0_6 = arith.constant 0 : index
    %7 = vector.load %arg4[%c0_5, %c0_6] : memref<256x128xbf16, #tpu.memory_space<vmem>>, vector<256x128xbf16>
    tpu.vector_store %arg4[%c0_5, %c0_6], %6 {strides = array<i32>} : memref<256x128xbf16, #tpu.memory_space<vmem>>, vector<256x128xbf16>,
    return
  }
  func.func @transform_0(%arg0: i32) -> (i32, i32) {
    %c0_i32 = arith.constant 0 : i32
    %c0_i32_0 = arith.constant 0 : i32
    return %arg0, %c0_i32 : i32, i32
  }
  func.func @transform_1(%arg0: i32) -> (i32, i32) {
    %c0_i32 = arith.constant 0 : i32
    %c0_i32_0 = arith.constant 0 : i32
    %c0_i32_1 = arith.constant 0 : i32
    return %c0_i32, %c0_i32_0 : i32, i32
  }
  func.func @transform_2(%arg0: i32) -> (i32, i32) {
    %c0_i32 = arith.constant 0 : i32
    %c0_i32_0 = arith.constant 0 : i32
    %c0_i32_1 = arith.constant 0 : i32
    return %c0_i32, %c0_i32_0 : i32, i32
  }
  func.func @transform_3(%arg0: i32) -> (i32, i32) {
    %c0_i32 = arith.constant 0 : i32
    %c0_i32_0 = arith.constant 0 : i32
    return %arg0, %c0_i32 : i32, i32
  }
}

module attributes {stable_mosaic.version = 11 : i64} {
  func.func @_mm_bias_act_kernel(%arg0: i32, %arg1: memref<128x128xbf16, #tpu.memory_space<vmem>>, %arg2: memref<128x128xbf16, #tpu.memory_space<vmem>>, %arg3: memref<1x128xf32, #tpu.memory_space<vmem>>, %arg4: memref<128x128xbf16, #tpu.memory_space<vmem>>) attributes {dimension_semantics = [#tpu.dimension_semantics<parallel>], iteration_bounds = array<i64: 1>, scalar_prefetch = 0 : i64, scratch_operands = 0 : i64, tpu.core_type = #tpu.core_type<tc>, window_params = [{transform_indices = @transform_0, window_bounds = array<i64: 128, 128>}, {pipeline_mode = #tpu.pipeline_mode<synchronous>, transform_indices = @transform_1, window_bounds = array<i64: 128, 128>}, {pipeline_mode = #tpu.pipeline_mode<synchronous>, transform_indices = @transform_2, window_bounds = array<i64: 1, 128>}, {transform_indices = @transform_3, window_bounds = array<i64: 128, 128>}]} {
    %c0 = arith.constant 0 : index
    %c0_0 = arith.constant 0 : index
    %0 = vector.load %arg1[%c0, %c0_0] : memref<128x128xbf16, #tpu.memory_space<vmem>>, vector<128x128xbf16>
    %c0_1 = arith.constant 0 : index
    %c0_2 = arith.constant 0 : index
    %1 = vector.load %arg2[%c0_1, %c0_2] : memref<128x128xbf16, #tpu.memory_space<vmem>>, vector<128x128xbf16>
    %cst = arith.constant dense<0.000000e+00> : vector<128x128xf32>
    %2 = tpu.matmul %0, %1, %cst {dimension_numbers = #tpu.dot_dimension_numbers<[1], [0], [0], [1], [0, 0, 1, 1], [], []>} : vector<128x128xbf16>, vector<128x128xbf16>, vector<128x128xf32> -> vector<128x128xf32>
    %c0_3 = arith.constant 0 : index
    %c0_4 = arith.constant 0 : index
    %3 = vector.load %arg3[%c0_3, %c0_4] : memref<1x128xf32, #tpu.memory_space<vmem>>, vector<1x128xf32>
    %4 = vector.broadcast %3 : vector<1x128xf32> to vector<128x128xf32>
    %5 = arith.addf %2, %4 : vector<128x128xf32>
    %6 = arith.truncf %5 : vector<128x128xf32> to vector<128x128xbf16>
    %c0_5 = arith.constant 0 : index
    %c0_6 = arith.constant 0 : index
    %7 = vector.load %arg4[%c0_5, %c0_6] : memref<128x128xbf16, #tpu.memory_space<vmem>>, vector<128x128xbf16>
    tpu.vector_store %arg4[%c0_5, %c0_6], %6 {strides = array<i32>} : memref<128x128xbf16, #tpu.memory_space<vmem>>, vector<128x128xbf16>,
    return
  }
  func.func @transform_0(%arg0: i32) -> (i32, i32) {
    %c0_i32 = arith.constant 0 : i32
    %c0_i32_0 = arith.constant 0 : i32
    return %arg0, %c0_i32 : i32, i32
  }
  func.func @transform_1(%arg0: i32) -> (i32, i32) {
    %c0_i32 = arith.constant 0 : i32
    %c0_i32_0 = arith.constant 0 : i32
    %c0_i32_1 = arith.constant 0 : i32
    return %c0_i32, %c0_i32_0 : i32, i32
  }
  func.func @transform_2(%arg0: i32) -> (i32, i32) {
    %c0_i32 = arith.constant 0 : i32
    %c0_i32_0 = arith.constant 0 : i32
    %c0_i32_1 = arith.constant 0 : i32
    return %c0_i32, %c0_i32_0 : i32, i32
  }
  func.func @transform_3(%arg0: i32) -> (i32, i32) {
    %c0_i32 = arith.constant 0 : i32
    %c0_i32_0 = arith.constant 0 : i32
    return %arg0, %c0_i32 : i32, i32
  }
}

module attributes {stable_mosaic.version = 11 : i64} {
  func.func @_mm_bias_act_kernel(%arg0: i32, %arg1: memref<128x256xbf16, #tpu.memory_space<vmem>>, %arg2: memref<256x128xbf16, #tpu.memory_space<vmem>>, %arg3: memref<1x128xf32, #tpu.memory_space<vmem>>, %arg4: memref<128x128xbf16, #tpu.memory_space<vmem>>) attributes {dimension_semantics = [#tpu.dimension_semantics<parallel>], iteration_bounds = array<i64: 1>, scalar_prefetch = 0 : i64, scratch_operands = 0 : i64, tpu.core_type = #tpu.core_type<tc>, window_params = [{transform_indices = @transform_0, window_bounds = array<i64: 128, 256>}, {pipeline_mode = #tpu.pipeline_mode<synchronous>, transform_indices = @transform_1, window_bounds = array<i64: 256, 128>}, {pipeline_mode = #tpu.pipeline_mode<synchronous>, transform_indices = @transform_2, window_bounds = array<i64: 1, 128>}, {transform_indices = @transform_3, window_bounds = array<i64: 128, 128>}]} {
    %c0 = arith.constant 0 : index
    %c0_0 = arith.constant 0 : index
    %0 = vector.load %arg1[%c0, %c0_0] : memref<128x256xbf16, #tpu.memory_space<vmem>>, vector<128x256xbf16>
    %c0_1 = arith.constant 0 : index
    %c0_2 = arith.constant 0 : index
    %1 = vector.load %arg2[%c0_1, %c0_2] : memref<256x128xbf16, #tpu.memory_space<vmem>>, vector<256x128xbf16>
    %cst = arith.constant dense<0.000000e+00> : vector<128x128xf32>
    %2 = tpu.matmul %0, %1, %cst {dimension_numbers = #tpu.dot_dimension_numbers<[1], [0], [0], [1], [0, 0, 1, 1], [], []>} : vector<128x256xbf16>, vector<256x128xbf16>, vector<128x128xf32> -> vector<128x128xf32>
    %c0_3 = arith.constant 0 : index
    %c0_4 = arith.constant 0 : index
    %3 = vector.load %arg3[%c0_3, %c0_4] : memref<1x128xf32, #tpu.memory_space<vmem>>, vector<1x128xf32>
    %4 = vector.broadcast %3 : vector<1x128xf32> to vector<128x128xf32>
    %5 = arith.addf %2, %4 : vector<128x128xf32>
    %cst_5 = arith.constant 0.000000e+00 : f32
    %6 = vector.broadcast %cst_5 : f32 to vector<128x128xf32>
    %7 = arith.maximumf %5, %6 : vector<128x128xf32>
    %8 = arith.truncf %7 : vector<128x128xf32> to vector<128x128xbf16>
    %c0_6 = arith.constant 0 : index
    %c0_7 = arith.constant 0 : index
    %9 = vector.load %arg4[%c0_6, %c0_7] : memref<128x128xbf16, #tpu.memory_space<vmem>>, vector<128x128xbf16>
    tpu.vector_store %arg4[%c0_6, %c0_7], %8 {strides = array<i32>} : memref<128x128xbf16, #tpu.memory_space<vmem>>, vector<128x128xbf16>,
    return
  }
  func.func @transform_0(%arg0: i32) -> (i32, i32) {
    %c0_i32 = arith.constant 0 : i32
    %c0_i32_0 = arith.constant 0 : i32
    return %arg0, %c0_i32 : i32, i32
  }
  func.func @transform_1(%arg0: i32) -> (i32, i32) {
    %c0_i32 = arith.constant 0 : i32
    %c0_i32_0 = arith.constant 0 : i32
    %c0_i32_1 = arith.constant 0 : i32
    return %c0_i32, %c0_i32_0 : i32, i32
  }
  func.func @transform_2(%arg0: i32) -> (i32, i32) {
    %c0_i32 = arith.constant 0 : i32
    %c0_i32_0 = arith.constant 0 : i32
    %c0_i32_1 = arith.constant 0 : i32
    return %c0_i32, %c0_i32_0 : i32, i32
  }
  func.func @transform_3(%arg0: i32) -> (i32, i32) {
    %c0_i32 = arith.constant 0 : i32
    %c0_i32_0 = arith.constant 0 : i32
    return %arg0, %c0_i32 : i32, i32
  }
}

module attributes {stable_mosaic.version = 11 : i64} {
  func.func @_mm_bias_act_kernel(%arg0: i32, %arg1: memref<32x128xbf16, #tpu.memory_space<vmem>>, %arg2: memref<128x128xbf16, #tpu.memory_space<vmem>>, %arg3: memref<1x128xf32, #tpu.memory_space<vmem>>, %arg4: memref<32x128xbf16, #tpu.memory_space<vmem>>) attributes {dimension_semantics = [#tpu.dimension_semantics<parallel>], iteration_bounds = array<i64: 1>, scalar_prefetch = 0 : i64, scratch_operands = 0 : i64, tpu.core_type = #tpu.core_type<tc>, window_params = [{transform_indices = @transform_0, window_bounds = array<i64: 32, 128>}, {pipeline_mode = #tpu.pipeline_mode<synchronous>, transform_indices = @transform_1, window_bounds = array<i64: 128, 128>}, {pipeline_mode = #tpu.pipeline_mode<synchronous>, transform_indices = @transform_2, window_bounds = array<i64: 1, 128>}, {transform_indices = @transform_3, window_bounds = array<i64: 32, 128>}]} {
    %c0 = arith.constant 0 : index
    %c0_0 = arith.constant 0 : index
    %0 = vector.load %arg1[%c0, %c0_0] : memref<32x128xbf16, #tpu.memory_space<vmem>>, vector<32x128xbf16>
    %c0_1 = arith.constant 0 : index
    %c0_2 = arith.constant 0 : index
    %1 = vector.load %arg2[%c0_1, %c0_2] : memref<128x128xbf16, #tpu.memory_space<vmem>>, vector<128x128xbf16>
    %cst = arith.constant dense<0.000000e+00> : vector<32x128xf32>
    %2 = tpu.matmul %0, %1, %cst {dimension_numbers = #tpu.dot_dimension_numbers<[1], [0], [0], [1], [0, 0, 1, 1], [], []>} : vector<32x128xbf16>, vector<128x128xbf16>, vector<32x128xf32> -> vector<32x128xf32>
    %c0_3 = arith.constant 0 : index
    %c0_4 = arith.constant 0 : index
    %3 = vector.load %arg3[%c0_3, %c0_4] : memref<1x128xf32, #tpu.memory_space<vmem>>, vector<1x128xf32>
    %4 = vector.broadcast %3 : vector<1x128xf32> to vector<32x128xf32>
    %5 = arith.addf %2, %4 : vector<32x128xf32>
    %6 = arith.truncf %5 : vector<32x128xf32> to vector<32x128xbf16>
    %c0_5 = arith.constant 0 : index
    %c0_6 = arith.constant 0 : index
    %7 = vector.load %arg4[%c0_5, %c0_6] : memref<32x128xbf16, #tpu.memory_space<vmem>>, vector<32x128xbf16>
    tpu.vector_store %arg4[%c0_5, %c0_6], %6 {strides = array<i32>} : memref<32x128xbf16, #tpu.memory_space<vmem>>, vector<32x128xbf16>,
    return
  }
  func.func @transform_0(%arg0: i32) -> (i32, i32) {
    %c0_i32 = arith.constant 0 : i32
    %c0_i32_0 = arith.constant 0 : i32
    return %arg0, %c0_i32 : i32, i32
  }
  func.func @transform_1(%arg0: i32) -> (i32, i32) {
    %c0_i32 = arith.constant 0 : i32
    %c0_i32_0 = arith.constant 0 : i32
    %c0_i32_1 = arith.constant 0 : i32
    return %c0_i32, %c0_i32_0 : i32, i32
  }
  func.func @transform_2(%arg0: i32) -> (i32, i32) {
    %c0_i32 = arith.constant 0 : i32
    %c0_i32_0 = arith.constant 0 : i32
    %c0_i32_1 = arith.constant 0 : i32
    return %c0_i32, %c0_i32_0 : i32, i32
  }
  func.func @transform_3(%arg0: i32) -> (i32, i32) {
    %c0_i32 = arith.constant 0 : i32
    %c0_i32_0 = arith.constant 0 : i32
    return %arg0, %c0_i32 : i32, i32
  }
}

module attributes {stable_mosaic.version = 11 : i64} {
  func.func @_mm_bias_act_kernel(%arg0: i32, %arg1: memref<32x384xbf16, #tpu.memory_space<vmem>>, %arg2: memref<384x128xbf16, #tpu.memory_space<vmem>>, %arg3: memref<1x128xf32, #tpu.memory_space<vmem>>, %arg4: memref<32x128xbf16, #tpu.memory_space<vmem>>) attributes {dimension_semantics = [#tpu.dimension_semantics<parallel>], iteration_bounds = array<i64: 1>, scalar_prefetch = 0 : i64, scratch_operands = 0 : i64, tpu.core_type = #tpu.core_type<tc>, window_params = [{transform_indices = @transform_0, window_bounds = array<i64: 32, 384>}, {pipeline_mode = #tpu.pipeline_mode<synchronous>, transform_indices = @transform_1, window_bounds = array<i64: 384, 128>}, {pipeline_mode = #tpu.pipeline_mode<synchronous>, transform_indices = @transform_2, window_bounds = array<i64: 1, 128>}, {transform_indices = @transform_3, window_bounds = array<i64: 32, 128>}]} {
    %c0 = arith.constant 0 : index
    %c0_0 = arith.constant 0 : index
    %0 = vector.load %arg1[%c0, %c0_0] : memref<32x384xbf16, #tpu.memory_space<vmem>>, vector<32x384xbf16>
    %c0_1 = arith.constant 0 : index
    %c0_2 = arith.constant 0 : index
    %1 = vector.load %arg2[%c0_1, %c0_2] : memref<384x128xbf16, #tpu.memory_space<vmem>>, vector<384x128xbf16>
    %cst = arith.constant dense<0.000000e+00> : vector<32x128xf32>
    %2 = tpu.matmul %0, %1, %cst {dimension_numbers = #tpu.dot_dimension_numbers<[1], [0], [0], [1], [0, 0, 1, 1], [], []>} : vector<32x384xbf16>, vector<384x128xbf16>, vector<32x128xf32> -> vector<32x128xf32>
    %c0_3 = arith.constant 0 : index
    %c0_4 = arith.constant 0 : index
    %3 = vector.load %arg3[%c0_3, %c0_4] : memref<1x128xf32, #tpu.memory_space<vmem>>, vector<1x128xf32>
    %4 = vector.broadcast %3 : vector<1x128xf32> to vector<32x128xf32>
    %5 = arith.addf %2, %4 : vector<32x128xf32>
    %cst_5 = arith.constant 0.000000e+00 : f32
    %6 = vector.broadcast %cst_5 : f32 to vector<32x128xf32>
    %7 = arith.maximumf %5, %6 : vector<32x128xf32>
    %8 = arith.truncf %7 : vector<32x128xf32> to vector<32x128xbf16>
    %c0_6 = arith.constant 0 : index
    %c0_7 = arith.constant 0 : index
    %9 = vector.load %arg4[%c0_6, %c0_7] : memref<32x128xbf16, #tpu.memory_space<vmem>>, vector<32x128xbf16>
    tpu.vector_store %arg4[%c0_6, %c0_7], %8 {strides = array<i32>} : memref<32x128xbf16, #tpu.memory_space<vmem>>, vector<32x128xbf16>,
    return
  }
  func.func @transform_0(%arg0: i32) -> (i32, i32) {
    %c0_i32 = arith.constant 0 : i32
    %c0_i32_0 = arith.constant 0 : i32
    return %arg0, %c0_i32 : i32, i32
  }
  func.func @transform_1(%arg0: i32) -> (i32, i32) {
    %c0_i32 = arith.constant 0 : i32
    %c0_i32_0 = arith.constant 0 : i32
    %c0_i32_1 = arith.constant 0 : i32
    return %c0_i32, %c0_i32_0 : i32, i32
  }
  func.func @transform_2(%arg0: i32) -> (i32, i32) {
    %c0_i32 = arith.constant 0 : i32
    %c0_i32_0 = arith.constant 0 : i32
    %c0_i32_1 = arith.constant 0 : i32
    return %c0_i32, %c0_i32_0 : i32, i32
  }
  func.func @transform_3(%arg0: i32) -> (i32, i32) {
    %c0_i32 = arith.constant 0 : i32
    %c0_i32_0 = arith.constant 0 : i32
    return %arg0, %c0_i32 : i32, i32
  }
}

module attributes {stable_mosaic.version = 11 : i64} {
  func.func @_mm_bias_act_kernel(%arg0: i32, %arg1: memref<16x128xbf16, #tpu.memory_space<vmem>>, %arg2: memref<128x128xbf16, #tpu.memory_space<vmem>>, %arg3: memref<1x128xf32, #tpu.memory_space<vmem>>, %arg4: memref<16x128xbf16, #tpu.memory_space<vmem>>) attributes {dimension_semantics = [#tpu.dimension_semantics<parallel>], iteration_bounds = array<i64: 1>, scalar_prefetch = 0 : i64, scratch_operands = 0 : i64, tpu.core_type = #tpu.core_type<tc>, window_params = [{transform_indices = @transform_0, window_bounds = array<i64: 16, 128>}, {pipeline_mode = #tpu.pipeline_mode<synchronous>, transform_indices = @transform_1, window_bounds = array<i64: 128, 128>}, {pipeline_mode = #tpu.pipeline_mode<synchronous>, transform_indices = @transform_2, window_bounds = array<i64: 1, 128>}, {transform_indices = @transform_3, window_bounds = array<i64: 16, 128>}]} {
    %c0 = arith.constant 0 : index
    %c0_0 = arith.constant 0 : index
    %0 = vector.load %arg1[%c0, %c0_0] : memref<16x128xbf16, #tpu.memory_space<vmem>>, vector<16x128xbf16>
    %c0_1 = arith.constant 0 : index
    %c0_2 = arith.constant 0 : index
    %1 = vector.load %arg2[%c0_1, %c0_2] : memref<128x128xbf16, #tpu.memory_space<vmem>>, vector<128x128xbf16>
    %cst = arith.constant dense<0.000000e+00> : vector<16x128xf32>
    %2 = tpu.matmul %0, %1, %cst {dimension_numbers = #tpu.dot_dimension_numbers<[1], [0], [0], [1], [0, 0, 1, 1], [], []>} : vector<16x128xbf16>, vector<128x128xbf16>, vector<16x128xf32> -> vector<16x128xf32>
    %c0_3 = arith.constant 0 : index
    %c0_4 = arith.constant 0 : index
    %3 = vector.load %arg3[%c0_3, %c0_4] : memref<1x128xf32, #tpu.memory_space<vmem>>, vector<1x128xf32>
    %4 = vector.broadcast %3 : vector<1x128xf32> to vector<16x128xf32>
    %5 = arith.addf %2, %4 : vector<16x128xf32>
    %6 = arith.truncf %5 : vector<16x128xf32> to vector<16x128xbf16>
    %c0_5 = arith.constant 0 : index
    %c0_6 = arith.constant 0 : index
    %7 = vector.load %arg4[%c0_5, %c0_6] : memref<16x128xbf16, #tpu.memory_space<vmem>>, vector<16x128xbf16>
    tpu.vector_store %arg4[%c0_5, %c0_6], %6 {strides = array<i32>} : memref<16x128xbf16, #tpu.memory_space<vmem>>, vector<16x128xbf16>,
    return
  }
  func.func @transform_0(%arg0: i32) -> (i32, i32) {
    %c0_i32 = arith.constant 0 : i32
    %c0_i32_0 = arith.constant 0 : i32
    return %arg0, %c0_i32 : i32, i32
  }
  func.func @transform_1(%arg0: i32) -> (i32, i32) {
    %c0_i32 = arith.constant 0 : i32
    %c0_i32_0 = arith.constant 0 : i32
    %c0_i32_1 = arith.constant 0 : i32
    return %c0_i32, %c0_i32_0 : i32, i32
  }
  func.func @transform_2(%arg0: i32) -> (i32, i32) {
    %c0_i32 = arith.constant 0 : i32
    %c0_i32_0 = arith.constant 0 : i32
    %c0_i32_1 = arith.constant 0 : i32
    return %c0_i32, %c0_i32_0 : i32, i32
  }
  func.func @transform_3(%arg0: i32) -> (i32, i32) {
    %c0_i32 = arith.constant 0 : i32
    %c0_i32_0 = arith.constant 0 : i32
    return %arg0, %c0_i32 : i32, i32
  }
}

module attributes {stable_mosaic.version = 11 : i64} {
  func.func @_mm_bias_act_kernel(%arg0: i32, %arg1: memref<16x640xbf16, #tpu.memory_space<vmem>>, %arg2: memref<640x128xbf16, #tpu.memory_space<vmem>>, %arg3: memref<1x128xf32, #tpu.memory_space<vmem>>, %arg4: memref<16x128xbf16, #tpu.memory_space<vmem>>) attributes {dimension_semantics = [#tpu.dimension_semantics<parallel>], iteration_bounds = array<i64: 1>, scalar_prefetch = 0 : i64, scratch_operands = 0 : i64, tpu.core_type = #tpu.core_type<tc>, window_params = [{transform_indices = @transform_0, window_bounds = array<i64: 16, 640>}, {pipeline_mode = #tpu.pipeline_mode<synchronous>, transform_indices = @transform_1, window_bounds = array<i64: 640, 128>}, {pipeline_mode = #tpu.pipeline_mode<synchronous>, transform_indices = @transform_2, window_bounds = array<i64: 1, 128>}, {transform_indices = @transform_3, window_bounds = array<i64: 16, 128>}]} {
    %c0 = arith.constant 0 : index
    %c0_0 = arith.constant 0 : index
    %0 = vector.load %arg1[%c0, %c0_0] : memref<16x640xbf16, #tpu.memory_space<vmem>>, vector<16x640xbf16>
    %c0_1 = arith.constant 0 : index
    %c0_2 = arith.constant 0 : index
    %1 = vector.load %arg2[%c0_1, %c0_2] : memref<640x128xbf16, #tpu.memory_space<vmem>>, vector<640x128xbf16>
    %cst = arith.constant dense<0.000000e+00> : vector<16x128xf32>
    %2 = tpu.matmul %0, %1, %cst {dimension_numbers = #tpu.dot_dimension_numbers<[1], [0], [0], [1], [0, 0, 1, 1], [], []>} : vector<16x640xbf16>, vector<640x128xbf16>, vector<16x128xf32> -> vector<16x128xf32>
    %c0_3 = arith.constant 0 : index
    %c0_4 = arith.constant 0 : index
    %3 = vector.load %arg3[%c0_3, %c0_4] : memref<1x128xf32, #tpu.memory_space<vmem>>, vector<1x128xf32>
    %4 = vector.broadcast %3 : vector<1x128xf32> to vector<16x128xf32>
    %5 = arith.addf %2, %4 : vector<16x128xf32>
    %cst_5 = arith.constant 0.000000e+00 : f32
    %6 = vector.broadcast %cst_5 : f32 to vector<16x128xf32>
    %7 = arith.maximumf %5, %6 : vector<16x128xf32>
    %8 = arith.truncf %7 : vector<16x128xf32> to vector<16x128xbf16>
    %c0_6 = arith.constant 0 : index
    %c0_7 = arith.constant 0 : index
    %9 = vector.load %arg4[%c0_6, %c0_7] : memref<16x128xbf16, #tpu.memory_space<vmem>>, vector<16x128xbf16>
    tpu.vector_store %arg4[%c0_6, %c0_7], %8 {strides = array<i32>} : memref<16x128xbf16, #tpu.memory_space<vmem>>, vector<16x128xbf16>,
    return
  }
  func.func @transform_0(%arg0: i32) -> (i32, i32) {
    %c0_i32 = arith.constant 0 : i32
    %c0_i32_0 = arith.constant 0 : i32
    return %arg0, %c0_i32 : i32, i32
  }
  func.func @transform_1(%arg0: i32) -> (i32, i32) {
    %c0_i32 = arith.constant 0 : i32
    %c0_i32_0 = arith.constant 0 : i32
    %c0_i32_1 = arith.constant 0 : i32
    return %c0_i32, %c0_i32_0 : i32, i32
  }
  func.func @transform_2(%arg0: i32) -> (i32, i32) {
    %c0_i32 = arith.constant 0 : i32
    %c0_i32_0 = arith.constant 0 : i32
    %c0_i32_1 = arith.constant 0 : i32
    return %c0_i32, %c0_i32_0 : i32, i32
  }
  func.func @transform_3(%arg0: i32) -> (i32, i32) {
    %c0_i32 = arith.constant 0 : i32
    %c0_i32_0 = arith.constant 0 : i32
    return %arg0, %c0_i32 : i32, i32
  }
}

module attributes {stable_mosaic.version = 11 : i64} {
  func.func @_mm_bias_act_kernel(%arg0: i32, %arg1: memref<16x384xbf16, #tpu.memory_space<vmem>>, %arg2: memref<384x128xbf16, #tpu.memory_space<vmem>>, %arg3: memref<1x128xf32, #tpu.memory_space<vmem>>, %arg4: memref<16x128xbf16, #tpu.memory_space<vmem>>) attributes {dimension_semantics = [#tpu.dimension_semantics<parallel>], iteration_bounds = array<i64: 1>, scalar_prefetch = 0 : i64, scratch_operands = 0 : i64, tpu.core_type = #tpu.core_type<tc>, window_params = [{transform_indices = @transform_0, window_bounds = array<i64: 16, 384>}, {pipeline_mode = #tpu.pipeline_mode<synchronous>, transform_indices = @transform_1, window_bounds = array<i64: 384, 128>}, {pipeline_mode = #tpu.pipeline_mode<synchronous>, transform_indices = @transform_2, window_bounds = array<i64: 1, 128>}, {transform_indices = @transform_3, window_bounds = array<i64: 16, 128>}]} {
    %c0 = arith.constant 0 : index
    %c0_0 = arith.constant 0 : index
    %0 = vector.load %arg1[%c0, %c0_0] : memref<16x384xbf16, #tpu.memory_space<vmem>>, vector<16x384xbf16>
    %c0_1 = arith.constant 0 : index
    %c0_2 = arith.constant 0 : index
    %1 = vector.load %arg2[%c0_1, %c0_2] : memref<384x128xbf16, #tpu.memory_space<vmem>>, vector<384x128xbf16>
    %cst = arith.constant dense<0.000000e+00> : vector<16x128xf32>
    %2 = tpu.matmul %0, %1, %cst {dimension_numbers = #tpu.dot_dimension_numbers<[1], [0], [0], [1], [0, 0, 1, 1], [], []>} : vector<16x384xbf16>, vector<384x128xbf16>, vector<16x128xf32> -> vector<16x128xf32>
    %c0_3 = arith.constant 0 : index
    %c0_4 = arith.constant 0 : index
    %3 = vector.load %arg3[%c0_3, %c0_4] : memref<1x128xf32, #tpu.memory_space<vmem>>, vector<1x128xf32>
    %4 = vector.broadcast %3 : vector<1x128xf32> to vector<16x128xf32>
    %5 = arith.addf %2, %4 : vector<16x128xf32>
    %6 = arith.truncf %5 : vector<16x128xf32> to vector<16x128xbf16>
    %c0_5 = arith.constant 0 : index
    %c0_6 = arith.constant 0 : index
    %7 = vector.load %arg4[%c0_5, %c0_6] : memref<16x128xbf16, #tpu.memory_space<vmem>>, vector<16x128xbf16>
    tpu.vector_store %arg4[%c0_5, %c0_6], %6 {strides = array<i32>} : memref<16x128xbf16, #tpu.memory_space<vmem>>, vector<16x128xbf16>,
    return
  }
  func.func @transform_0(%arg0: i32) -> (i32, i32) {
    %c0_i32 = arith.constant 0 : i32
    %c0_i32_0 = arith.constant 0 : i32
    return %arg0, %c0_i32 : i32, i32
  }
  func.func @transform_1(%arg0: i32) -> (i32, i32) {
    %c0_i32 = arith.constant 0 : i32
    %c0_i32_0 = arith.constant 0 : i32
    %c0_i32_1 = arith.constant 0 : i32
    return %c0_i32, %c0_i32_0 : i32, i32
  }
  func.func @transform_2(%arg0: i32) -> (i32, i32) {
    %c0_i32 = arith.constant 0 : i32
    %c0_i32_0 = arith.constant 0 : i32
    %c0_i32_1 = arith.constant 0 : i32
    return %c0_i32, %c0_i32_0 : i32, i32
  }
  func.func @transform_3(%arg0: i32) -> (i32, i32) {
    %c0_i32 = arith.constant 0 : i32
    %c0_i32_0 = arith.constant 0 : i32
    return %arg0, %c0_i32 : i32, i32
  }
}

module attributes {stable_mosaic.version = 11 : i64} {
  func.func @_mm_bias_act_kernel(%arg0: i32, %arg1: memref<32x384xbf16, #tpu.memory_space<vmem>>, %arg2: memref<384x128xbf16, #tpu.memory_space<vmem>>, %arg3: memref<1x128xf32, #tpu.memory_space<vmem>>, %arg4: memref<32x128xbf16, #tpu.memory_space<vmem>>) attributes {dimension_semantics = [#tpu.dimension_semantics<parallel>], iteration_bounds = array<i64: 1>, scalar_prefetch = 0 : i64, scratch_operands = 0 : i64, tpu.core_type = #tpu.core_type<tc>, window_params = [{transform_indices = @transform_0, window_bounds = array<i64: 32, 384>}, {pipeline_mode = #tpu.pipeline_mode<synchronous>, transform_indices = @transform_1, window_bounds = array<i64: 384, 128>}, {pipeline_mode = #tpu.pipeline_mode<synchronous>, transform_indices = @transform_2, window_bounds = array<i64: 1, 128>}, {transform_indices = @transform_3, window_bounds = array<i64: 32, 128>}]} {
    %c0 = arith.constant 0 : index
    %c0_0 = arith.constant 0 : index
    %0 = vector.load %arg1[%c0, %c0_0] : memref<32x384xbf16, #tpu.memory_space<vmem>>, vector<32x384xbf16>
    %c0_1 = arith.constant 0 : index
    %c0_2 = arith.constant 0 : index
    %1 = vector.load %arg2[%c0_1, %c0_2] : memref<384x128xbf16, #tpu.memory_space<vmem>>, vector<384x128xbf16>
    %cst = arith.constant dense<0.000000e+00> : vector<32x128xf32>
    %2 = tpu.matmul %0, %1, %cst {dimension_numbers = #tpu.dot_dimension_numbers<[1], [0], [0], [1], [0, 0, 1, 1], [], []>} : vector<32x384xbf16>, vector<384x128xbf16>, vector<32x128xf32> -> vector<32x128xf32>
    %c0_3 = arith.constant 0 : index
    %c0_4 = arith.constant 0 : index
    %3 = vector.load %arg3[%c0_3, %c0_4] : memref<1x128xf32, #tpu.memory_space<vmem>>, vector<1x128xf32>
    %4 = vector.broadcast %3 : vector<1x128xf32> to vector<32x128xf32>
    %5 = arith.addf %2, %4 : vector<32x128xf32>
    %6 = arith.truncf %5 : vector<32x128xf32> to vector<32x128xbf16>
    %c0_5 = arith.constant 0 : index
    %c0_6 = arith.constant 0 : index
    %7 = vector.load %arg4[%c0_5, %c0_6] : memref<32x128xbf16, #tpu.memory_space<vmem>>, vector<32x128xbf16>
    tpu.vector_store %arg4[%c0_5, %c0_6], %6 {strides = array<i32>} : memref<32x128xbf16, #tpu.memory_space<vmem>>, vector<32x128xbf16>,
    return
  }
  func.func @transform_0(%arg0: i32) -> (i32, i32) {
    %c0_i32 = arith.constant 0 : i32
    %c0_i32_0 = arith.constant 0 : i32
    return %arg0, %c0_i32 : i32, i32
  }
  func.func @transform_1(%arg0: i32) -> (i32, i32) {
    %c0_i32 = arith.constant 0 : i32
    %c0_i32_0 = arith.constant 0 : i32
    %c0_i32_1 = arith.constant 0 : i32
    return %c0_i32, %c0_i32_0 : i32, i32
  }
  func.func @transform_2(%arg0: i32) -> (i32, i32) {
    %c0_i32 = arith.constant 0 : i32
    %c0_i32_0 = arith.constant 0 : i32
    %c0_i32_1 = arith.constant 0 : i32
    return %c0_i32, %c0_i32_0 : i32, i32
  }
  func.func @transform_3(%arg0: i32) -> (i32, i32) {
    %c0_i32 = arith.constant 0 : i32
    %c0_i32_0 = arith.constant 0 : i32
    return %arg0, %c0_i32 : i32, i32
  }
}

module attributes {stable_mosaic.version = 11 : i64} {
  func.func @_mm_bias_act_kernel(%arg0: i32, %arg1: memref<128x384xbf16, #tpu.memory_space<vmem>>, %arg2: memref<384x128xbf16, #tpu.memory_space<vmem>>, %arg3: memref<1x128xf32, #tpu.memory_space<vmem>>, %arg4: memref<128x128xbf16, #tpu.memory_space<vmem>>) attributes {dimension_semantics = [#tpu.dimension_semantics<parallel>], iteration_bounds = array<i64: 1>, scalar_prefetch = 0 : i64, scratch_operands = 0 : i64, tpu.core_type = #tpu.core_type<tc>, window_params = [{transform_indices = @transform_0, window_bounds = array<i64: 128, 384>}, {pipeline_mode = #tpu.pipeline_mode<synchronous>, transform_indices = @transform_1, window_bounds = array<i64: 384, 128>}, {pipeline_mode = #tpu.pipeline_mode<synchronous>, transform_indices = @transform_2, window_bounds = array<i64: 1, 128>}, {transform_indices = @transform_3, window_bounds = array<i64: 128, 128>}]} {
    %c0 = arith.constant 0 : index
    %c0_0 = arith.constant 0 : index
    %0 = vector.load %arg1[%c0, %c0_0] : memref<128x384xbf16, #tpu.memory_space<vmem>>, vector<128x384xbf16>
    %c0_1 = arith.constant 0 : index
    %c0_2 = arith.constant 0 : index
    %1 = vector.load %arg2[%c0_1, %c0_2] : memref<384x128xbf16, #tpu.memory_space<vmem>>, vector<384x128xbf16>
    %cst = arith.constant dense<0.000000e+00> : vector<128x128xf32>
    %2 = tpu.matmul %0, %1, %cst {dimension_numbers = #tpu.dot_dimension_numbers<[1], [0], [0], [1], [0, 0, 1, 1], [], []>} : vector<128x384xbf16>, vector<384x128xbf16>, vector<128x128xf32> -> vector<128x128xf32>
    %c0_3 = arith.constant 0 : index
    %c0_4 = arith.constant 0 : index
    %3 = vector.load %arg3[%c0_3, %c0_4] : memref<1x128xf32, #tpu.memory_space<vmem>>, vector<1x128xf32>
    %4 = vector.broadcast %3 : vector<1x128xf32> to vector<128x128xf32>
    %5 = arith.addf %2, %4 : vector<128x128xf32>
    %6 = arith.truncf %5 : vector<128x128xf32> to vector<128x128xbf16>
    %c0_5 = arith.constant 0 : index
    %c0_6 = arith.constant 0 : index
    %7 = vector.load %arg4[%c0_5, %c0_6] : memref<128x128xbf16, #tpu.memory_space<vmem>>, vector<128x128xbf16>
    tpu.vector_store %arg4[%c0_5, %c0_6], %6 {strides = array<i32>} : memref<128x128xbf16, #tpu.memory_space<vmem>>, vector<128x128xbf16>,
    return
  }
  func.func @transform_0(%arg0: i32) -> (i32, i32) {
    %c0_i32 = arith.constant 0 : i32
    %c0_i32_0 = arith.constant 0 : i32
    return %arg0, %c0_i32 : i32, i32
  }
  func.func @transform_1(%arg0: i32) -> (i32, i32) {
    %c0_i32 = arith.constant 0 : i32
    %c0_i32_0 = arith.constant 0 : i32
    %c0_i32_1 = arith.constant 0 : i32
    return %c0_i32, %c0_i32_0 : i32, i32
  }
  func.func @transform_2(%arg0: i32) -> (i32, i32) {
    %c0_i32 = arith.constant 0 : i32
    %c0_i32_0 = arith.constant 0 : i32
    %c0_i32_1 = arith.constant 0 : i32
    return %c0_i32, %c0_i32_0 : i32, i32
  }
  func.func @transform_3(%arg0: i32) -> (i32, i32) {
    %c0_i32 = arith.constant 0 : i32
    %c0_i32_0 = arith.constant 0 : i32
    return %arg0, %c0_i32 : i32, i32
  }
}

module attributes {stable_mosaic.version = 11 : i64} {
  func.func @_mm_bias_act_kernel(%arg0: i32, %arg1: memref<256x384xbf16, #tpu.memory_space<vmem>>, %arg2: memref<384x128xbf16, #tpu.memory_space<vmem>>, %arg3: memref<1x128xf32, #tpu.memory_space<vmem>>, %arg4: memref<256x128xbf16, #tpu.memory_space<vmem>>) attributes {dimension_semantics = [#tpu.dimension_semantics<parallel>], iteration_bounds = array<i64: 2>, scalar_prefetch = 0 : i64, scratch_operands = 0 : i64, tpu.core_type = #tpu.core_type<tc>, window_params = [{transform_indices = @transform_0, window_bounds = array<i64: 256, 384>}, {pipeline_mode = #tpu.pipeline_mode<synchronous>, transform_indices = @transform_1, window_bounds = array<i64: 384, 128>}, {pipeline_mode = #tpu.pipeline_mode<synchronous>, transform_indices = @transform_2, window_bounds = array<i64: 1, 128>}, {transform_indices = @transform_3, window_bounds = array<i64: 256, 128>}]} {
    %c0 = arith.constant 0 : index
    %c0_0 = arith.constant 0 : index
    %0 = vector.load %arg1[%c0, %c0_0] : memref<256x384xbf16, #tpu.memory_space<vmem>>, vector<256x384xbf16>
    %c0_1 = arith.constant 0 : index
    %c0_2 = arith.constant 0 : index
    %1 = vector.load %arg2[%c0_1, %c0_2] : memref<384x128xbf16, #tpu.memory_space<vmem>>, vector<384x128xbf16>
    %cst = arith.constant dense<0.000000e+00> : vector<256x128xf32>
    %2 = tpu.matmul %0, %1, %cst {dimension_numbers = #tpu.dot_dimension_numbers<[1], [0], [0], [1], [0, 0, 1, 1], [], []>} : vector<256x384xbf16>, vector<384x128xbf16>, vector<256x128xf32> -> vector<256x128xf32>
    %c0_3 = arith.constant 0 : index
    %c0_4 = arith.constant 0 : index
    %3 = vector.load %arg3[%c0_3, %c0_4] : memref<1x128xf32, #tpu.memory_space<vmem>>, vector<1x128xf32>
    %4 = vector.broadcast %3 : vector<1x128xf32> to vector<256x128xf32>
    %5 = arith.addf %2, %4 : vector<256x128xf32>
    %6 = arith.truncf %5 : vector<256x128xf32> to vector<256x128xbf16>
    %c0_5 = arith.constant 0 : index
    %c0_6 = arith.constant 0 : index
    %7 = vector.load %arg4[%c0_5, %c0_6] : memref<256x128xbf16, #tpu.memory_space<vmem>>, vector<256x128xbf16>
    tpu.vector_store %arg4[%c0_5, %c0_6], %6 {strides = array<i32>} : memref<256x128xbf16, #tpu.memory_space<vmem>>, vector<256x128xbf16>,
    return
  }
  func.func @transform_0(%arg0: i32) -> (i32, i32) {
    %c0_i32 = arith.constant 0 : i32
    %c0_i32_0 = arith.constant 0 : i32
    return %arg0, %c0_i32 : i32, i32
  }
  func.func @transform_1(%arg0: i32) -> (i32, i32) {
    %c0_i32 = arith.constant 0 : i32
    %c0_i32_0 = arith.constant 0 : i32
    %c0_i32_1 = arith.constant 0 : i32
    return %c0_i32, %c0_i32_0 : i32, i32
  }
  func.func @transform_2(%arg0: i32) -> (i32, i32) {
    %c0_i32 = arith.constant 0 : i32
    %c0_i32_0 = arith.constant 0 : i32
    %c0_i32_1 = arith.constant 0 : i32
    return %c0_i32, %c0_i32_0 : i32, i32
  }
  func.func @transform_3(%arg0: i32) -> (i32, i32) {
    %c0_i32 = arith.constant 0 : i32
    %c0_i32_0 = arith.constant 0 : i32
    return %arg0, %c0_i32 : i32, i32
  }
}

module attributes {stable_mosaic.version = 11 : i64} {
  func.func @_mm_bias_act_kernel(%arg0: i32, %arg1: memref<256x384xbf16, #tpu.memory_space<vmem>>, %arg2: memref<384x128xbf16, #tpu.memory_space<vmem>>, %arg3: memref<1x128xf32, #tpu.memory_space<vmem>>, %arg4: memref<256x128xbf16, #tpu.memory_space<vmem>>) attributes {dimension_semantics = [#tpu.dimension_semantics<parallel>], iteration_bounds = array<i64: 3>, scalar_prefetch = 0 : i64, scratch_operands = 0 : i64, tpu.core_type = #tpu.core_type<tc>, window_params = [{transform_indices = @transform_0, window_bounds = array<i64: 256, 384>}, {pipeline_mode = #tpu.pipeline_mode<synchronous>, transform_indices = @transform_1, window_bounds = array<i64: 384, 128>}, {pipeline_mode = #tpu.pipeline_mode<synchronous>, transform_indices = @transform_2, window_bounds = array<i64: 1, 128>}, {transform_indices = @transform_3, window_bounds = array<i64: 256, 128>}]} {
    %c0 = arith.constant 0 : index
    %c0_0 = arith.constant 0 : index
    %0 = vector.load %arg1[%c0, %c0_0] : memref<256x384xbf16, #tpu.memory_space<vmem>>, vector<256x384xbf16>
    %c0_1 = arith.constant 0 : index
    %c0_2 = arith.constant 0 : index
    %1 = vector.load %arg2[%c0_1, %c0_2] : memref<384x128xbf16, #tpu.memory_space<vmem>>, vector<384x128xbf16>
    %cst = arith.constant dense<0.000000e+00> : vector<256x128xf32>
    %2 = tpu.matmul %0, %1, %cst {dimension_numbers = #tpu.dot_dimension_numbers<[1], [0], [0], [1], [0, 0, 1, 1], [], []>} : vector<256x384xbf16>, vector<384x128xbf16>, vector<256x128xf32> -> vector<256x128xf32>
    %c0_3 = arith.constant 0 : index
    %c0_4 = arith.constant 0 : index
    %3 = vector.load %arg3[%c0_3, %c0_4] : memref<1x128xf32, #tpu.memory_space<vmem>>, vector<1x128xf32>
    %4 = vector.broadcast %3 : vector<1x128xf32> to vector<256x128xf32>
    %5 = arith.addf %2, %4 : vector<256x128xf32>
    %cst_5 = arith.constant 0.000000e+00 : f32
    %6 = vector.broadcast %cst_5 : f32 to vector<256x128xf32>
    %7 = arith.maximumf %5, %6 : vector<256x128xf32>
    %8 = arith.truncf %7 : vector<256x128xf32> to vector<256x128xbf16>
    %c0_6 = arith.constant 0 : index
    %c0_7 = arith.constant 0 : index
    %9 = vector.load %arg4[%c0_6, %c0_7] : memref<256x128xbf16, #tpu.memory_space<vmem>>, vector<256x128xbf16>
    tpu.vector_store %arg4[%c0_6, %c0_7], %8 {strides = array<i32>} : memref<256x128xbf16, #tpu.memory_space<vmem>>, vector<256x128xbf16>,
    return
  }
  func.func @transform_0(%arg0: i32) -> (i32, i32) {
    %c0_i32 = arith.constant 0 : i32
    %c0_i32_0 = arith.constant 0 : i32
    return %arg0, %c0_i32 : i32, i32
  }
  func.func @transform_1(%arg0: i32) -> (i32, i32) {
    %c0_i32 = arith.constant 0 : i32
    %c0_i32_0 = arith.constant 0 : i32
    %c0_i32_1 = arith.constant 0 : i32
    return %c0_i32, %c0_i32_0 : i32, i32
  }
  func.func @transform_2(%arg0: i32) -> (i32, i32) {
    %c0_i32 = arith.constant 0 : i32
    %c0_i32_0 = arith.constant 0 : i32
    %c0_i32_1 = arith.constant 0 : i32
    return %c0_i32, %c0_i32_0 : i32, i32
  }
  func.func @transform_3(%arg0: i32) -> (i32, i32) {
    %c0_i32 = arith.constant 0 : i32
    %c0_i32_0 = arith.constant 0 : i32
    return %arg0, %c0_i32 : i32, i32
  }
}

module attributes {stable_mosaic.version = 11 : i64} {
  func.func @_mm_bias_act_kernel(%arg0: i32, %arg1: memref<256x128xbf16, #tpu.memory_space<vmem>>, %arg2: memref<128x128xbf16, #tpu.memory_space<vmem>>, %arg3: memref<1x128xf32, #tpu.memory_space<vmem>>, %arg4: memref<256x128xbf16, #tpu.memory_space<vmem>>) attributes {dimension_semantics = [#tpu.dimension_semantics<parallel>], iteration_bounds = array<i64: 3>, scalar_prefetch = 0 : i64, scratch_operands = 0 : i64, tpu.core_type = #tpu.core_type<tc>, window_params = [{transform_indices = @transform_0, window_bounds = array<i64: 256, 128>}, {pipeline_mode = #tpu.pipeline_mode<synchronous>, transform_indices = @transform_1, window_bounds = array<i64: 128, 128>}, {pipeline_mode = #tpu.pipeline_mode<synchronous>, transform_indices = @transform_2, window_bounds = array<i64: 1, 128>}, {transform_indices = @transform_3, window_bounds = array<i64: 256, 128>}]} {
    %c0 = arith.constant 0 : index
    %c0_0 = arith.constant 0 : index
    %0 = vector.load %arg1[%c0, %c0_0] : memref<256x128xbf16, #tpu.memory_space<vmem>>, vector<256x128xbf16>
    %c0_1 = arith.constant 0 : index
    %c0_2 = arith.constant 0 : index
    %1 = vector.load %arg2[%c0_1, %c0_2] : memref<128x128xbf16, #tpu.memory_space<vmem>>, vector<128x128xbf16>
    %cst = arith.constant dense<0.000000e+00> : vector<256x128xf32>
    %2 = tpu.matmul %0, %1, %cst {dimension_numbers = #tpu.dot_dimension_numbers<[1], [0], [0], [1], [0, 0, 1, 1], [], []>} : vector<256x128xbf16>, vector<128x128xbf16>, vector<256x128xf32> -> vector<256x128xf32>
    %c0_3 = arith.constant 0 : index
    %c0_4 = arith.constant 0 : index
    %3 = vector.load %arg3[%c0_3, %c0_4] : memref<1x128xf32, #tpu.memory_space<vmem>>, vector<1x128xf32>
    %4 = vector.broadcast %3 : vector<1x128xf32> to vector<256x128xf32>
    %5 = arith.addf %2, %4 : vector<256x128xf32>
    %6 = arith.truncf %5 : vector<256x128xf32> to vector<256x128xbf16>
    %c0_5 = arith.constant 0 : index
    %c0_6 = arith.constant 0 : index
    %7 = vector.load %arg4[%c0_5, %c0_6] : memref<256x128xbf16, #tpu.memory_space<vmem>>, vector<256x128xbf16>
    tpu.vector_store %arg4[%c0_5, %c0_6], %6 {strides = array<i32>} : memref<256x128xbf16, #tpu.memory_space<vmem>>, vector<256x128xbf16>,
    return
  }
  func.func @transform_0(%arg0: i32) -> (i32, i32) {
    %c0_i32 = arith.constant 0 : i32
    %c0_i32_0 = arith.constant 0 : i32
    return %arg0, %c0_i32 : i32, i32
  }
  func.func @transform_1(%arg0: i32) -> (i32, i32) {
    %c0_i32 = arith.constant 0 : i32
    %c0_i32_0 = arith.constant 0 : i32
    %c0_i32_1 = arith.constant 0 : i32
    return %c0_i32, %c0_i32_0 : i32, i32
  }
  func.func @transform_2(%arg0: i32) -> (i32, i32) {
    %c0_i32 = arith.constant 0 : i32
    %c0_i32_0 = arith.constant 0 : i32
    %c0_i32_1 = arith.constant 0 : i32
    return %c0_i32, %c0_i32_0 : i32, i32
  }
  func.func @transform_3(%arg0: i32) -> (i32, i32) {
    %c0_i32 = arith.constant 0 : i32
    %c0_i32_0 = arith.constant 0 : i32
    return %arg0, %c0_i32 : i32, i32
  }
}

module attributes {stable_mosaic.version = 11 : i64} {
  func.func @_mm_bias_act_kernel(%arg0: i32, %arg1: memref<16x1664xbf16, #tpu.memory_space<vmem>>, %arg2: memref<1664x128xbf16, #tpu.memory_space<vmem>>, %arg3: memref<1x128xf32, #tpu.memory_space<vmem>>, %arg4: memref<16x128xbf16, #tpu.memory_space<vmem>>) attributes {dimension_semantics = [#tpu.dimension_semantics<parallel>], iteration_bounds = array<i64: 1>, scalar_prefetch = 0 : i64, scratch_operands = 0 : i64, tpu.core_type = #tpu.core_type<tc>, window_params = [{transform_indices = @transform_0, window_bounds = array<i64: 16, 1664>}, {pipeline_mode = #tpu.pipeline_mode<synchronous>, transform_indices = @transform_1, window_bounds = array<i64: 1664, 128>}, {pipeline_mode = #tpu.pipeline_mode<synchronous>, transform_indices = @transform_2, window_bounds = array<i64: 1, 128>}, {transform_indices = @transform_3, window_bounds = array<i64: 16, 128>}]} {
    %c0 = arith.constant 0 : index
    %c0_0 = arith.constant 0 : index
    %0 = vector.load %arg1[%c0, %c0_0] : memref<16x1664xbf16, #tpu.memory_space<vmem>>, vector<16x1664xbf16>
    %c0_1 = arith.constant 0 : index
    %c0_2 = arith.constant 0 : index
    %1 = vector.load %arg2[%c0_1, %c0_2] : memref<1664x128xbf16, #tpu.memory_space<vmem>>, vector<1664x128xbf16>
    %cst = arith.constant dense<0.000000e+00> : vector<16x128xf32>
    %2 = tpu.matmul %0, %1, %cst {dimension_numbers = #tpu.dot_dimension_numbers<[1], [0], [0], [1], [0, 0, 1, 1], [], []>} : vector<16x1664xbf16>, vector<1664x128xbf16>, vector<16x128xf32> -> vector<16x128xf32>
    %c0_3 = arith.constant 0 : index
    %c0_4 = arith.constant 0 : index
    %3 = vector.load %arg3[%c0_3, %c0_4] : memref<1x128xf32, #tpu.memory_space<vmem>>, vector<1x128xf32>
    %4 = vector.broadcast %3 : vector<1x128xf32> to vector<16x128xf32>
    %5 = arith.addf %2, %4 : vector<16x128xf32>
    %cst_5 = arith.constant 0.000000e+00 : f32
    %6 = vector.broadcast %cst_5 : f32 to vector<16x128xf32>
    %7 = arith.maximumf %5, %6 : vector<16x128xf32>
    %8 = arith.truncf %7 : vector<16x128xf32> to vector<16x128xbf16>
    %c0_6 = arith.constant 0 : index
    %c0_7 = arith.constant 0 : index
    %9 = vector.load %arg4[%c0_6, %c0_7] : memref<16x128xbf16, #tpu.memory_space<vmem>>, vector<16x128xbf16>
    tpu.vector_store %arg4[%c0_6, %c0_7], %8 {strides = array<i32>} : memref<16x128xbf16, #tpu.memory_space<vmem>>, vector<16x128xbf16>,
    return
  }
  func.func @transform_0(%arg0: i32) -> (i32, i32) {
    %c0_i32 = arith.constant 0 : i32
    %c0_i32_0 = arith.constant 0 : i32
    return %arg0, %c0_i32 : i32, i32
  }
  func.func @transform_1(%arg0: i32) -> (i32, i32) {
    %c0_i32 = arith.constant 0 : i32
    %c0_i32_0 = arith.constant 0 : i32
    %c0_i32_1 = arith.constant 0 : i32
    return %c0_i32, %c0_i32_0 : i32, i32
  }
  func.func @transform_2(%arg0: i32) -> (i32, i32) {
    %c0_i32 = arith.constant 0 : i32
    %c0_i32_0 = arith.constant 0 : i32
    %c0_i32_1 = arith.constant 0 : i32
    return %c0_i32, %c0_i32_0 : i32, i32
  }
  func.func @transform_3(%arg0: i32) -> (i32, i32) {
    %c0_i32 = arith.constant 0 : i32
    %c0_i32_0 = arith.constant 0 : i32
    return %arg0, %c0_i32 : i32, i32
  }
}

module attributes {stable_mosaic.version = 11 : i64} {
  func.func @_mm_bias_act_kernel(%arg0: i32, %arg1: memref<16x128xbf16, #tpu.memory_space<vmem>>, %arg2: memref<128x128xbf16, #tpu.memory_space<vmem>>, %arg3: memref<1x128xf32, #tpu.memory_space<vmem>>, %arg4: memref<16x128xbf16, #tpu.memory_space<vmem>>) attributes {dimension_semantics = [#tpu.dimension_semantics<parallel>], iteration_bounds = array<i64: 1>, scalar_prefetch = 0 : i64, scratch_operands = 0 : i64, tpu.core_type = #tpu.core_type<tc>, window_params = [{transform_indices = @transform_0, window_bounds = array<i64: 16, 128>}, {pipeline_mode = #tpu.pipeline_mode<synchronous>, transform_indices = @transform_1, window_bounds = array<i64: 128, 128>}, {pipeline_mode = #tpu.pipeline_mode<synchronous>, transform_indices = @transform_2, window_bounds = array<i64: 1, 128>}, {transform_indices = @transform_3, window_bounds = array<i64: 16, 128>}]} {
    %c0 = arith.constant 0 : index
    %c0_0 = arith.constant 0 : index
    %0 = vector.load %arg1[%c0, %c0_0] : memref<16x128xbf16, #tpu.memory_space<vmem>>, vector<16x128xbf16>
    %c0_1 = arith.constant 0 : index
    %c0_2 = arith.constant 0 : index
    %1 = vector.load %arg2[%c0_1, %c0_2] : memref<128x128xbf16, #tpu.memory_space<vmem>>, vector<128x128xbf16>
    %cst = arith.constant dense<0.000000e+00> : vector<16x128xf32>
    %2 = tpu.matmul %0, %1, %cst {dimension_numbers = #tpu.dot_dimension_numbers<[1], [0], [0], [1], [0, 0, 1, 1], [], []>} : vector<16x128xbf16>, vector<128x128xbf16>, vector<16x128xf32> -> vector<16x128xf32>
    %c0_3 = arith.constant 0 : index
    %c0_4 = arith.constant 0 : index
    %3 = vector.load %arg3[%c0_3, %c0_4] : memref<1x128xf32, #tpu.memory_space<vmem>>, vector<1x128xf32>
    %4 = vector.broadcast %3 : vector<1x128xf32> to vector<16x128xf32>
    %5 = arith.addf %2, %4 : vector<16x128xf32>
    %cst_5 = arith.constant 0.000000e+00 : f32
    %6 = vector.broadcast %cst_5 : f32 to vector<16x128xf32>
    %7 = arith.maximumf %5, %6 : vector<16x128xf32>
    %8 = arith.truncf %7 : vector<16x128xf32> to vector<16x128xbf16>
    %c0_6 = arith.constant 0 : index
    %c0_7 = arith.constant 0 : index
    %9 = vector.load %arg4[%c0_6, %c0_7] : memref<16x128xbf16, #tpu.memory_space<vmem>>, vector<16x128xbf16>
    tpu.vector_store %arg4[%c0_6, %c0_7], %8 {strides = array<i32>} : memref<16x128xbf16, #tpu.memory_space<vmem>>, vector<16x128xbf16>,
    return
  }
  func.func @transform_0(%arg0: i32) -> (i32, i32) {
    %c0_i32 = arith.constant 0 : i32
    %c0_i32_0 = arith.constant 0 : i32
    return %arg0, %c0_i32 : i32, i32
  }
  func.func @transform_1(%arg0: i32) -> (i32, i32) {
    %c0_i32 = arith.constant 0 : i32
    %c0_i32_0 = arith.constant 0 : i32
    %c0_i32_1 = arith.constant 0 : i32
    return %c0_i32, %c0_i32_0 : i32, i32
  }
  func.func @transform_2(%arg0: i32) -> (i32, i32) {
    %c0_i32 = arith.constant 0 : i32
    %c0_i32_0 = arith.constant 0 : i32
    %c0_i32_1 = arith.constant 0 : i32
    return %c0_i32, %c0_i32_0 : i32, i32
  }
  func.func @transform_3(%arg0: i32) -> (i32, i32) {
    %c0_i32 = arith.constant 0 : i32
    %c0_i32_0 = arith.constant 0 : i32
    return %arg0, %c0_i32 : i32, i32
  }
}

module attributes {stable_mosaic.version = 11 : i64} {
  func.func @_mm_bias_act_kernel(%arg0: i32, %arg1: memref<16x128xbf16, #tpu.memory_space<vmem>>, %arg2: memref<128x512xbf16, #tpu.memory_space<vmem>>, %arg3: memref<1x512xf32, #tpu.memory_space<vmem>>, %arg4: memref<16x512xf32, #tpu.memory_space<vmem>>) attributes {dimension_semantics = [#tpu.dimension_semantics<parallel>], iteration_bounds = array<i64: 1>, scalar_prefetch = 0 : i64, scratch_operands = 0 : i64, tpu.core_type = #tpu.core_type<tc>, window_params = [{transform_indices = @transform_0, window_bounds = array<i64: 16, 128>}, {pipeline_mode = #tpu.pipeline_mode<synchronous>, transform_indices = @transform_1, window_bounds = array<i64: 128, 512>}, {pipeline_mode = #tpu.pipeline_mode<synchronous>, transform_indices = @transform_2, window_bounds = array<i64: 1, 512>}, {transform_indices = @transform_3, window_bounds = array<i64: 16, 512>}]} {
    %c0 = arith.constant 0 : index
    %c0_0 = arith.constant 0 : index
    %0 = vector.load %arg1[%c0, %c0_0] : memref<16x128xbf16, #tpu.memory_space<vmem>>, vector<16x128xbf16>
    %c0_1 = arith.constant 0 : index
    %c0_2 = arith.constant 0 : index
    %1 = vector.load %arg2[%c0_1, %c0_2] : memref<128x512xbf16, #tpu.memory_space<vmem>>, vector<128x512xbf16>
    %cst = arith.constant dense<0.000000e+00> : vector<16x512xf32>
    %2 = tpu.matmul %0, %1, %cst {dimension_numbers = #tpu.dot_dimension_numbers<[1], [0], [0], [1], [0, 0, 1, 1], [], []>} : vector<16x128xbf16>, vector<128x512xbf16>, vector<16x512xf32> -> vector<16x512xf32>
    %c0_3 = arith.constant 0 : index
    %c0_4 = arith.constant 0 : index
    %3 = vector.load %arg3[%c0_3, %c0_4] : memref<1x512xf32, #tpu.memory_space<vmem>>, vector<1x512xf32>
    %4 = vector.broadcast %3 : vector<1x512xf32> to vector<16x512xf32>
    %5 = arith.addf %2, %4 : vector<16x512xf32>
    %c0_5 = arith.constant 0 : index
    %c0_6 = arith.constant 0 : index
    %6 = vector.load %arg4[%c0_5, %c0_6] : memref<16x512xf32, #tpu.memory_space<vmem>>, vector<16x512xf32>
    tpu.vector_store %arg4[%c0_5, %c0_6], %5 {strides = array<i32>} : memref<16x512xf32, #tpu.memory_space<vmem>>, vector<16x512xf32>,
    return
  }
  func.func @transform_0(%arg0: i32) -> (i32, i32) {
    %c0_i32 = arith.constant 0 : i32
    %c0_i32_0 = arith.constant 0 : i32
    return %arg0, %c0_i32 : i32, i32
  }
  func.func @transform_1(%arg0: i32) -> (i32, i32) {
    %c0_i32 = arith.constant 0 : i32
    %c0_i32_0 = arith.constant 0 : i32
    %c0_i32_1 = arith.constant 0 : i32
    return %c0_i32, %c0_i32_0 : i32, i32
  }
  func.func @transform_2(%arg0: i32) -> (i32, i32) {
    %c0_i32 = arith.constant 0 : i32
    %c0_i32_0 = arith.constant 0 : i32
    %c0_i32_1 = arith.constant 0 : i32
    return %c0_i32, %c0_i32_0 : i32, i32
  }
  func.func @transform_3(%arg0: i32) -> (i32, i32) {
    %c0_i32 = arith.constant 0 : i32
    %c0_i32_0 = arith.constant 0 : i32
    return %arg0, %c0_i32 : i32, i32
  }
}

</mosaic_0001>

<bundles_post_ra>
// kernel: faster_rcnn_forward.18
= control target key start
LH: loop header
LB: loop body
LE: loop exit
PB: predicated region body
PF: predicated region fallthrough
CT: control target
= control target key end

     0   :  { %s1363_s12 = smov 0   ;;  %s1521_s0 = inlined_call_operand.vmem [shape: bf16[2048,256], index: 0, kind: input, shape index: {}]   ;;  %s1522_s1 = inlined_call_operand.vmem [shape: bf16[256,128], index: 1, kind: input, shape index: {}]   ;;  %s1523_s2 = inlined_call_operand.vmem [shape: f32[1,128], index: 2, kind: input, shape index: {}]   ;;  %s1524_s3 = inlined_call_operand.vmem [shape: bf16[2048,128], index: 3, kind: output, shape index: {}]  }
   0x1 LB: > { %s914_s13 = sadd.s32 4294967295, %s1341_s12   ;;  %p918_p0 = scmp.ge.s32.totalorder %s1341_s12, 1  ;;  %s1341_s12 = sphi %s1363_s12, %s13_s12  }
   0x2   : > { %p139_p1 = scmp.lt.s32.totalorder %s1341_s12, 9 }
   0x4   : > { %p140_p2 = pnand %p918_p0, %p139_p1 }
   0x5   : > { %v1271_v0 = vld [vmem:[%s1522_s1 + $0x40] sm:$0xff] (!%p140_p2)   ;;  %s919_s16 = sshll.u32 (!%p140_p2), %s914_s13, 5  ;;  %v1273_v2 = vld [vmem:[%s1522_s1 + $0x48] sm:$0xff] (!%p140_p2)   ;;  %v1275_v4 = vld [vmem:[%s1522_s1 + $0x50] sm:$0xff] (!%p140_p2)  }
   0x6   : > { %143 = sbr.rel (%p140_p2) target bundleno = 319 (0x13f), region = 32  ;;  %v1272_v1 = vld [vmem:[%s1522_s1] sm:$0xff] (!%p140_p2)   ;;  %1135 = vmatprep.subr.bf16.mxu0 (!%p140_p2), %v1271_v0  ;;  %1247 = vmatprep.subr.bf16.mxu1 (!%p140_p2), %v1271_v0  ;;  %v1274_v3 = vld [vmem:[%s1522_s1 + $0x8] sm:$0xff] (!%p140_p2)   ;;  %p165_p3 = scmp.lt.s32.totalorder (!%p140_p2), %s919_s16, 255  ;;  %v1276_v5 = vld [vmem:[%s1522_s1 + $0x10] sm:$0xff] (!%p140_p2)  }
   0x7   : > { %1136 = vmatpush3.bf16.msra.mxu0 (!%p140_p2), %v1272_v1  ;;  %1255 = vmatpush3.bf16.msra.mxu1 (!%p140_p2), %v1272_v1  ;;  %v1277_v6 = vld [vmem:[%s1522_s1 + $0x58] sm:$0xff] (!%p140_p2)   ;;  %v1279_v8 = vld [vmem:[%s1522_s1 + $0x60] sm:$0xff] (!%p140_p2)   ;;  %v1281_v10 = vld [vmem:[%s1522_s1 + $0x68] sm:$0xff] (!%p140_p2)  }
   0x8   : > { %1137 = vmatprep.subr.bf16.mxu0 (!%p140_p2), %v1273_v2  ;;  %1248 = vmatprep.subr.bf16.mxu1 (!%p140_p2), %v1273_v2  ;;  %v1278_v7 = vld [vmem:[%s1522_s1 + $0x18] sm:$0xff] (!%p140_p2)   ;;  %v1280_v9 = vld [vmem:[%s1522_s1 + $0x20] sm:$0xff] (!%p140_p2)   ;;  %v1282_v13 = vld [vmem:[%s1522_s1 + $0x28] sm:$0xff] (!%p140_p2)  }
   0x9   : > { %v1283_v14 = vld [vmem:[%s1522_s1 + $0x70] sm:$0xff] (!%p140_p2)   ;;  %v1285_v16 = vld [vmem:[%s1522_s1 + $0x78] sm:$0xff] (!%p140_p2)   ;;  %v1462_v50 = vld [vmem:[%s1523_s2] ss:$0 sm:$0xff] (!%p140_p2) }
   0xa   : > { %v1284_v15 = vld [vmem:[%s1522_s1 + $0x30] sm:$0xff] (!%p140_p2)   ;;  %v1286_v17 = vld [vmem:[%s1522_s1 + $0x38] sm:$0xff] (!%p140_p2)  }
   0xb   : > { %1138 = vmatpush3.bf16.msra.mxu0 (!%p140_p2), %v1274_v3  ;;  %1256 = vmatpush3.bf16.msra.mxu1 (!%p140_p2), %v1274_v3 }
   0xc   : > { %1139 = vmatprep.subr.bf16.mxu0 (!%p140_p2), %v1275_v4  ;;  %1249 = vmatprep.subr.bf16.mxu1 (!%p140_p2), %v1275_v4 }
   0xd   : > { %s1526_s16 = smov (!%p165_p3, %s919_s16), 255 }
   0xe   : > { %s1007_s4 = sshll.u32 %s1526_s16, 3  ;;  %s923_s28 = sshll.u32 %s1526_s16, 2 }
   0xf   : > { %1140 = vmatpush3.bf16.msra.mxu0 %v1276_v5  ;;  %1257 = vmatpush3.bf16.msra.mxu1 %v1276_v5  ;;  %s1404_s9 = scalar_lea.vmem %s1521_s0, %s1007_s4  ;;  %s1472_s4 = scalar_lea.vmem %s1524_s3, %s923_s28 }
  0x10   : > { %1141 = vmatprep.subr.bf16.mxu0 %v1277_v6  ;;  %1250 = vmatprep.subr.bf16.mxu1 %v1277_v6  ;;  %v1289_v11 = vld [vmem:[%s1404_s9 + $0x4] ss:$8 sps:$4 sm:$0xff]   ;;  %v1287_v18 = vld [vmem:[%s1404_s9] ss:$8 sps:$4 sm:$0xff]   ;;  %v1293_v20 = vld [vmem:[%s1404_s9 + $0x14] ss:$8 sps:$4 sm:$0xff]  }
  0x11   : > { %v1292_v12 = vld [vmem:[%s1404_s9 + $0x84] ss:$8 sps:$4 sm:$0xff]   ;;  %537 = vmatprep.mubr.bf16.mxu0 %v1289_v11  ;;  %v1290_v19 = vld [vmem:[%s1404_s9 + $0x80] ss:$8 sps:$4 sm:$0xff]   ;;  %v1295_v21 = vld [vmem:[%s1404_s9 + $0x94] ss:$8 sps:$4 sm:$0xff]  }
  0x12   : > { %601 = vmatprep.mubr.bf16.mxu1 %v1292_v12  ;;  %v1297_v22 = vld [vmem:[%s1404_s9 + $0x10] ss:$8 sps:$4 sm:$0xff]   ;;  %v1299_v24 = vld [vmem:[%s1404_s9 + $0x24] ss:$8 sps:$4 sm:$0xff]   ;;  %v1303_v26 = vld [vmem:[%s1404_s9 + $0x20] ss:$8 sps:$4 sm:$0xff]  }
  0x13   : > { %1142 = vmatpush3.bf16.msra.mxu0 %v1278_v7  ;;  %1258 = vmatpush3.bf16.msra.mxu1 %v1278_v7  ;;  %v1298_v23 = vld [vmem:[%s1404_s9 + $0x90] ss:$8 sps:$4 sm:$0xff]   ;;  %v1301_v25 = vld [vmem:[%s1404_s9 + $0xa4] ss:$8 sps:$4 sm:$0xff]   ;;  %v1304_v27 = vld [vmem:[%s1404_s9 + $0xa0] ss:$8 sps:$4 sm:$0xff]  }
  0x14   : > { %1143 = vmatprep.subr.bf16.mxu0 %v1279_v8  ;;  %1251 = vmatprep.subr.bf16.mxu1 %v1279_v8  ;;  %v1305_v28 = vld [vmem:[%s1404_s9 + $0x34] ss:$8 sps:$4 sm:$0xff]   ;;  %v1309_v30 = vld [vmem:[%s1404_s9 + $0x30] ss:$8 sps:$4 sm:$0xff]   ;;  %v1311_v32 = vld [vmem:[%s1404_s9 + $0x44] ss:$8 sps:$4 sm:$0xff]  }
  0x15   : > { %v1307_v29 = vld [vmem:[%s1404_s9 + $0xb4] ss:$8 sps:$4 sm:$0xff]   ;;  %v1310_v31 = vld [vmem:[%s1404_s9 + $0xb0] ss:$8 sps:$4 sm:$0xff]   ;;  %v1313_v33 = vld [vmem:[%s1404_s9 + $0xc4] ss:$8 sps:$4 sm:$0xff]  }
  0x16   : > { %v1315_v34 = vld [vmem:[%s1404_s9 + $0x40] ss:$8 sps:$4 sm:$0xff]   ;;  %v1317_v36 = vld [vmem:[%s1404_s9 + $0x54] ss:$8 sps:$4 sm:$0xff]   ;;  %v1321_v38 = vld [vmem:[%s1404_s9 + $0x50] ss:$8 sps:$4 sm:$0xff]  }
  0x17   : > { %1144 = vmatpush3.bf16.msra.mxu0 %v1280_v9  ;;  %1259 = vmatpush3.bf16.msra.mxu1 %v1280_v9  ;;  %v1316_v35 = vld [vmem:[%s1404_s9 + $0xc0] ss:$8 sps:$4 sm:$0xff]   ;;  %v1319_v37 = vld [vmem:[%s1404_s9 + $0xd4] ss:$8 sps:$4 sm:$0xff]   ;;  %v1322_v39 = vld [vmem:[%s1404_s9 + $0xd0] ss:$8 sps:$4 sm:$0xff]  }
  0x18   : > { %1145 = vmatprep.subr.bf16.mxu0 %v1281_v10  ;;  %1252 = vmatprep.subr.bf16.mxu1 %v1281_v10  ;;  %v1323_v40 = vld [vmem:[%s1404_s9 + $0x64] ss:$8 sps:$4 sm:$0xff]   ;;  %v1327_v42 = vld [vmem:[%s1404_s9 + $0x60] ss:$8 sps:$4 sm:$0xff]   ;;  %v1329_v44 = vld [vmem:[%s1404_s9 + $0x74] ss:$8 sps:$4 sm:$0xff]  }
  0x19   : > { %v1325_v41 = vld [vmem:[%s1404_s9 + $0xe4] ss:$8 sps:$4 sm:$0xff]   ;;  %v1328_v43 = vld [vmem:[%s1404_s9 + $0xe0] ss:$8 sps:$4 sm:$0xff]   ;;  %v1331_v45 = vld [vmem:[%s1404_s9 + $0xf4] ss:$8 sps:$4 sm:$0xff]  }
  0x1a   : > { %v1333_v46 = vld [vmem:[%s1404_s9 + $0x70] ss:$8 sps:$4 sm:$0xff]  }
  0x1b   : > { %1146 = vmatpush3.bf16.msra.mxu0 %v1282_v13  ;;  %1260 = vmatpush3.bf16.msra.mxu1 %v1282_v13  ;;  %v1334_v47 = vld [vmem:[%s1404_s9 + $0xf0] ss:$8 sps:$4 sm:$0xff]  }
  0x1c   : > { %1147 = vmatprep.subr.bf16.mxu0 %v1283_v14  ;;  %1253 = vmatprep.subr.bf16.mxu1 %v1283_v14 }
  0x1f   : > { %1148 = vmatpush3.bf16.msra.mxu0 %v1284_v15  ;;  %1261 = vmatpush3.bf16.msra.mxu1 %v1284_v15 }
  0x20   : > { %1149 = vmatprep.subr.bf16.mxu0 %v1285_v16  ;;  %1254 = vmatprep.subr.bf16.mxu1 %v1285_v16 }
  0x23   : > { %1150 = vmatpush3.bf16.msra.mxu0 %v1286_v17  ;;  %1262 = vmatpush3.bf16.msra.mxu1 %v1286_v17 }
  0x26   : > { %538 = vmatmul.mubr.bf16.vlgmr.msra.gmra.mrb[0].mxu0 %v1287_v18  ;;  %602 = vmatmul.mubr.bf16.vlgmr.msra.gmra.mrb[0].mxu1 %v1290_v19 }
  0x27   : > { %545 = vmatprep.mubr.bf16.mxu0 %v1293_v20  ;;  %609 = vmatprep.mubr.bf16.mxu1 %v1295_v21 }
  0x2e   : > { %546 = vmatmul.mubr.bf16.gmra.mrb[4].mxu0 %v1297_v22  ;;  %610 = vmatmul.mubr.bf16.gmra.mrb[4].mxu1 %v1298_v23 }
  0x2f   : > { %553 = vmatprep.mubr.bf16.mxu0 %v1299_v24  ;;  %617 = vmatprep.mubr.bf16.mxu1 %v1301_v25 }
  0x36   : > { %554 = vmatmul.mubr.bf16.gmra.mrb[8].mxu0 %v1303_v26  ;;  %618 = vmatmul.mubr.bf16.gmra.mrb[8].mxu1 %v1304_v27 }
  0x37   : > { %561 = vmatprep.mubr.bf16.mxu0 %v1305_v28  ;;  %625 = vmatprep.mubr.bf16.mxu1 %v1307_v29 }
  0x3e   : > { %562 = vmatmul.mubr.bf16.gmra.mrb[12].mxu0 %v1309_v30  ;;  %626 = vmatmul.mubr.bf16.gmra.mrb[12].mxu1 %v1310_v31 }
  0x3f   : > { %569 = vmatprep.mubr.bf16.mxu0 %v1311_v32  ;;  %633 = vmatprep.mubr.bf16.mxu1 %v1313_v33 }
  0x46   : > { %570 = vmatmul.mubr.bf16.gmra.mrb[16].mxu0 %v1315_v34  ;;  %634 = vmatmul.mubr.bf16.gmra.mrb[16].mxu1 %v1316_v35 }
  0x47   : > { %577 = vmatprep.mubr.bf16.mxu0 %v1317_v36  ;;  %641 = vmatprep.mubr.bf16.mxu1 %v1319_v37 }
  0x4e   : > { %578 = vmatmul.mubr.bf16.gmra.mrb[20].mxu0 %v1321_v38  ;;  %642 = vmatmul.mubr.bf16.gmra.mrb[20].mxu1 %v1322_v39 }
  0x4f   : > { %585 = vmatprep.mubr.bf16.mxu0 %v1323_v40  ;;  %649 = vmatprep.mubr.bf16.mxu1 %v1325_v41 }
  0x56   : > { %586 = vmatmul.mubr.bf16.gmra.mrb[24].mxu0 %v1327_v42  ;;  %650 = vmatmul.mubr.bf16.gmra.mrb[24].mxu1 %v1328_v43 }
  0x57   : > { %593 = vmatprep.mubr.bf16.mxu0 %v1329_v44  ;;  %657 = vmatprep.mubr.bf16.mxu1 %v1331_v45 }
  0x5e   : > { %594 = vmatmul.mubr.bf16.gmra.mrb[28].mxu0 %v1333_v46  ;;  %658 = vmatmul.mubr.bf16.gmra.mrb[28].mxu1 %v1334_v47 }
  0xf9   : > { %v1151_v48 = vpop.f32.mrb[0].mxu0  ;;  %v1199_v49 = vpop.f32.mrb[0].mxu1 }
  0xfa   : > { %v1152_v51 = vpop.f32.mrb[1].mxu0  ;;  %v1200_v52 = vpop.f32.mrb[1].mxu1 }
  0xfb   : > { %v1153_v53 = vadd.f32 %v1152_v51, %v1151_v48  ;;  %v1201_v54 = vadd.f32 %v1200_v52, %v1199_v49  ;;  %v1154_v55 = vpop.f32.mrb[2].mxu0  ;;  %v1202_v56 = vpop.f32.mrb[2].mxu1 }
  0xfc   : > { %v1155_v57 = vpop.f32.mrb[3].mxu0  ;;  %v1203_v58 = vpop.f32.mrb[3].mxu1 }
  0xfd   : > { %v540_v59 = vadd.f32 %v1153_v53, %v1462_v50  ;;  %v604_v60 = vadd.f32 %v1201_v54, %v1462_v50  ;;  %v1156_v61 = vadd.f32 %v1155_v57, %v1154_v55  ;;  %v1204_v62 = vadd.f32 %v1203_v58, %v1202_v56 }
  0xff   : > { %v543_v63 = vadd.f32 %v1156_v61, %v1462_v50  ;;  %v607_v0 = vadd.f32 %v1204_v62, %v1462_v50  ;;  %v666_v1 = vmax.f32 %v540_v59, 0.0  ;;  %v682_v2 = vmax.f32 %v604_v60, 0.0 }
 0x101   : > { %v667_v3 = vmax.f32 %v543_v63, 0.0  ;;  %v683_v4 = vmax.f32 %v607_v0, 0.0  ;;  %v1157_v5 = vpop.f32.mrb[4].mxu0  ;;  %v1205_v6 = vpop.f32.mrb[4].mxu1 }
 0x102   : > { %v1158_v7 = vpop.f32.mrb[5].mxu0  ;;  %v1206_v8 = vpop.f32.mrb[5].mxu1 }
 0x103   : > { %v1043_v9 = vpack.c.bf16 %v667_v3, %v666_v1  ;;  %v1083_v10 = vpack.c.bf16 %v683_v4, %v682_v2  ;;  %v1159_v11 = vadd.f32 %v1158_v7, %v1157_v5  ;;  %v1207_v12 = vadd.f32 %v1206_v8, %v1205_v6  ;;  %v1160_v13 = vpop.f32.mrb[6].mxu0  ;;  %v1208_v14 = vpop.f32.mrb[6].mxu1 }
 0x104   : > { %v1161_v15 = vpop.f32.mrb[7].mxu0  ;;  %v1209_v16 = vpop.f32.mrb[7].mxu1 }
 0x105   : > { %1044 = vst [vmem:[%s1472_s4] sm:$0xff] %v1043_v9   ;;  %1127 = vst [vmem:[%s1472_s4 + $0x40] sm:$0xff] %v1083_v10   ;;  %v548_v17 = vadd.f32 %v1159_v11, %v1462_v50  ;;  %v612_v18 = vadd.f32 %v1207_v12, %v1462_v50  ;;  %v1162_v19 = vadd.f32 %v1161_v15, %v1160_v13 }
 0x106   : > { %v1210_v20 = vadd.f32 %v1209_v16, %v1208_v14 }
 0x107   : > { %v551_v21 = vadd.f32 %v1162_v19, %v1462_v50  ;;  %v668_v23 = vmax.f32 %v548_v17, 0.0  ;;  %v684_v24 = vmax.f32 %v612_v18, 0.0 }
 0x108   : > { %v615_v22 = vadd.f32 %v1210_v20, %v1462_v50 }
 0x109   : > { %v669_v25 = vmax.f32 %v551_v21, 0.0  ;;  %v1163_v27 = vpop.f32.mrb[8].mxu0  ;;  %v1211_v28 = vpop.f32.mrb[8].mxu1 }
 0x10a   : > { %v685_v26 = vmax.f32 %v615_v22, 0.0  ;;  %v1164_v29 = vpop.f32.mrb[9].mxu0  ;;  %v1212_v30 = vpop.f32.mrb[9].mxu1 }
 0x10b   : > { %v1048_v31 = vpack.c.bf16 %v669_v25, %v668_v23  ;;  %v1165_v33 = vadd.f32 %v1164_v29, %v1163_v27  ;;  %v1213_v34 = vadd.f32 %v1212_v30, %v1211_v28  ;;  %v1166_v35 = vpop.f32.mrb[10].mxu0  ;;  %v1214_v36 = vpop.f32.mrb[10].mxu1 }
 0x10c   : > { %v1088_v32 = vpack.c.bf16 %v685_v26, %v684_v24  ;;  %v1167_v37 = vpop.f32.mrb[11].mxu0  ;;  %v1215_v38 = vpop.f32.mrb[11].mxu1 }
 0x10d   : > { %1120 = vst [vmem:[%s1472_s4 + $0x8] sm:$0xff] %v1048_v31   ;;  %v556_v39 = vadd.f32 %v1165_v33, %v1462_v50  ;;  %v620_v40 = vadd.f32 %v1213_v34, %v1462_v50  ;;  %v1168_v41 = vadd.f32 %v1167_v37, %v1166_v35  ;;  %v1216_v42 = vadd.f32 %v1215_v38, %v1214_v36 }
 0x10e   : > { %1128 = vst [vmem:[%s1472_s4 + $0x48] sm:$0xff] %v1088_v32  }
 0x10f   : > { %v559_v43 = vadd.f32 %v1168_v41, %v1462_v50  ;;  %v623_v44 = vadd.f32 %v1216_v42, %v1462_v50  ;;  %v670_v45 = vmax.f32 %v556_v39, 0.0  ;;  %v686_v46 = vmax.f32 %v620_v40, 0.0 }
 0x111   : > { %v671_v47 = vmax.f32 %v559_v43, 0.0  ;;  %v687_v48 = vmax.f32 %v623_v44, 0.0  ;;  %v1169_v49 = vpop.f32.mrb[12].mxu0  ;;  %v1217_v51 = vpop.f32.mrb[12].mxu1 }
 0x112   : > { %v1170_v52 = vpop.f32.mrb[13].mxu0  ;;  %v1218_v53 = vpop.f32.mrb[13].mxu1 }
 0x113   : > { %v1053_v54 = vpack.c.bf16 %v671_v47, %v670_v45  ;;  %v1093_v55 = vpack.c.bf16 %v687_v48, %v686_v46  ;;  %v1171_v56 = vadd.f32 %v1170_v52, %v1169_v49  ;;  %v1219_v57 = vadd.f32 %v1218_v53, %v1217_v51  ;;  %v1172_v58 = vpop.f32.mrb[14].mxu0  ;;  %v1220_v59 = vpop.f32.mrb[14].mxu1 }
 0x114   : > { %v1173_v60 = vpop.f32.mrb[15].mxu0  ;;  %v1221_v61 = vpop.f32.mrb[15].mxu1 }
 0x115   : > { %1121 = vst [vmem:[%s1472_s4 + $0x10] sm:$0xff] %v1053_v54   ;;  %1129 = vst [vmem:[%s1472_s4 + $0x50] sm:$0xff] %v1093_v55   ;;  %v564_v62 = vadd.f32 %v1171_v56, %v1462_v50  ;;  %v628_v63 = vadd.f32 %v1219_v57, %v1462_v50  ;;  %v1174_v0 = vadd.f32 %v1173_v60, %v1172_v58 }
 0x116   : > { %v1222_v1 = vadd.f32 %v1221_v61, %v1220_v59 }
 0x117   : > { %v567_v2 = vadd.f32 %v1174_v0, %v1462_v50  ;;  %v672_v4 = vmax.f32 %v564_v62, 0.0  ;;  %v688_v5 = vmax.f32 %v628_v63, 0.0 }
 0x118   : > { %v631_v3 = vadd.f32 %v1222_v1, %v1462_v50 }
 0x119   : > { %v673_v6 = vmax.f32 %v567_v2, 0.0  ;;  %v1175_v8 = vpop.f32.mrb[16].mxu0  ;;  %v1223_v9 = vpop.f32.mrb[16].mxu1 }
 0x11a   : > { %v689_v7 = vmax.f32 %v631_v3, 0.0  ;;  %v1176_v10 = vpop.f32.mrb[17].mxu0  ;;  %v1224_v11 = vpop.f32.mrb[17].mxu1 }
 0x11b   : > { %v1058_v12 = vpack.c.bf16 %v673_v6, %v672_v4  ;;  %v1177_v14 = vadd.f32 %v1176_v10, %v1175_v8  ;;  %v1225_v15 = vadd.f32 %v1224_v11, %v1223_v9  ;;  %v1178_v16 = vpop.f32.mrb[18].mxu0  ;;  %v1226_v17 = vpop.f32.mrb[18].mxu1 }
 0x11c   : > { %v1098_v13 = vpack.c.bf16 %v689_v7, %v688_v5  ;;  %v1179_v18 = vpop.f32.mrb[19].mxu0  ;;  %v1227_v19 = vpop.f32.mrb[19].mxu1 }
 0x11d   : > { %1122 = vst [vmem:[%s1472_s4 + $0x18] sm:$0xff] %v1058_v12   ;;  %v572_v20 = vadd.f32 %v1177_v14, %v1462_v50  ;;  %v636_v21 = vadd.f32 %v1225_v15, %v1462_v50  ;;  %v1180_v22 = vadd.f32 %v1179_v18, %v1178_v16  ;;  %v1228_v23 = vadd.f32 %v1227_v19, %v1226_v17 }
 0x11e   : > { %1130 = vst [vmem:[%s1472_s4 + $0x58] sm:$0xff] %v1098_v13  }
 0x11f   : > { %v575_v24 = vadd.f32 %v1180_v22, %v1462_v50  ;;  %v639_v25 = vadd.f32 %v1228_v23, %v1462_v50  ;;  %v674_v26 = vmax.f32 %v572_v20, 0.0  ;;  %v690_v27 = vmax.f32 %v636_v21, 0.0 }
 0x121   : > { %v675_v28 = vmax.f32 %v575_v24, 0.0  ;;  %v691_v29 = vmax.f32 %v639_v25, 0.0  ;;  %v1181_v30 = vpop.f32.mrb[20].mxu0  ;;  %v1229_v31 = vpop.f32.mrb[20].mxu1 }
 0x122   : > { %v1182_v32 = vpop.f32.mrb[21].mxu0  ;;  %v1230_v33 = vpop.f32.mrb[21].mxu1 }
 0x123   : > { %v1063_v34 = vpack.c.bf16 %v675_v28, %v674_v26  ;;  %v1103_v35 = vpack.c.bf16 %v691_v29, %v690_v27  ;;  %v1183_v36 = vadd.f32 %v1182_v32, %v1181_v30  ;;  %v1231_v37 = vadd.f32 %v1230_v33, %v1229_v31  ;;  %v1184_v38 = vpop.f32.mrb[22].mxu0  ;;  %v1232_v39 = vpop.f32.mrb[22].mxu1 }
 0x124   : > { %v1185_v40 = vpop.f32.mrb[23].mxu0  ;;  %v1233_v41 = vpop.f32.mrb[23].mxu1 }
 0x125   : > { %1123 = vst [vmem:[%s1472_s4 + $0x20] sm:$0xff] %v1063_v34   ;;  %1131 = vst [vmem:[%s1472_s4 + $0x60] sm:$0xff] %v1103_v35   ;;  %v580_v42 = vadd.f32 %v1183_v36, %v1462_v50  ;;  %v644_v43 = vadd.f32 %v1231_v37, %v1462_v50  ;;  %v1186_v44 = vadd.f32 %v1185_v40, %v1184_v38 }
 0x126   : > { %v1234_v45 = vadd.f32 %v1233_v41, %v1232_v39 }
 0x127   : > { %v583_v46 = vadd.f32 %v1186_v44, %v1462_v50  ;;  %v676_v48 = vmax.f32 %v580_v42, 0.0  ;;  %v692_v49 = vmax.f32 %v644_v43, 0.0 }
 0x128   : > { %v647_v47 = vadd.f32 %v1234_v45, %v1462_v50 }
 0x129   : > { %v677_v51 = vmax.f32 %v583_v46, 0.0  ;;  %v1187_v53 = vpop.f32.mrb[24].mxu0  ;;  %v1235_v54 = vpop.f32.mrb[24].mxu1 }
 0x12a   : > { %v693_v52 = vmax.f32 %v647_v47, 0.0  ;;  %v1188_v55 = vpop.f32.mrb[25].mxu0  ;;  %v1236_v56 = vpop.f32.mrb[25].mxu1 }
 0x12b   : > { %v1068_v57 = vpack.c.bf16 %v677_v51, %v676_v48  ;;  %v1189_v59 = vadd.f32 %v1188_v55, %v1187_v53  ;;  %v1237_v60 = vadd.f32 %v1236_v56, %v1235_v54  ;;  %v1190_v61 = vpop.f32.mrb[26].mxu0  ;;  %v1238_v62 = vpop.f32.mrb[26].mxu1 }
 0x12c   : > { %v1108_v58 = vpack.c.bf16 %v693_v52, %v692_v49  ;;  %v1191_v63 = vpop.f32.mrb[27].mxu0  ;;  %v1239_v0 = vpop.f32.mrb[27].mxu1 }
 0x12d   : > { %1124 = vst [vmem:[%s1472_s4 + $0x28] sm:$0xff] %v1068_v57   ;;  %v588_v1 = vadd.f32 %v1189_v59, %v1462_v50  ;;  %v652_v2 = vadd.f32 %v1237_v60, %v1462_v50  ;;  %v1192_v3 = vadd.f32 %v1191_v63, %v1190_v61  ;;  %v1240_v4 = vadd.f32 %v1239_v0, %v1238_v62 }
 0x12e   : > { %1132 = vst [vmem:[%s1472_s4 + $0x68] sm:$0xff] %v1108_v58  }
 0x12f   : > { %v591_v5 = vadd.f32 %v1192_v3, %v1462_v50  ;;  %v655_v6 = vadd.f32 %v1240_v4, %v1462_v50  ;;  %v678_v7 = vmax.f32 %v588_v1, 0.0  ;;  %v694_v8 = vmax.f32 %v652_v2, 0.0 }
 0x131   : > { %v679_v9 = vmax.f32 %v591_v5, 0.0  ;;  %v695_v10 = vmax.f32 %v655_v6, 0.0  ;;  %v1193_v11 = vpop.f32.mrb[28].mxu0  ;;  %v1241_v12 = vpop.f32.mrb[28].mxu1 }
 0x132   : > { %v1194_v13 = vpop.f32.mrb[29].mxu0  ;;  %v1242_v14 = vpop.f32.mrb[29].mxu1 }
 0x133   : > { %v1073_v15 = vpack.c.bf16 %v679_v9, %v678_v7  ;;  %v1113_v16 = vpack.c.bf16 %v695_v10, %v694_v8  ;;  %v1195_v17 = vadd.f32 %v1194_v13, %v1193_v11  ;;  %v1243_v18 = vadd.f32 %v1242_v14, %v1241_v12  ;;  %v1196_v19 = vpop.f32.mrb[30].mxu0  ;;  %v1244_v20 = vpop.f32.mrb[30].mxu1 }
 0x134   : > { %v1197_v21 = vpop.f32.mrb[31].mxu0  ;;  %v1245_v22 = vpop.f32.mrb[31].mxu1 }
 0x135   : > { %1125 = vst [vmem:[%s1472_s4 + $0x30] sm:$0xff] %v1073_v15   ;;  %1133 = vst [vmem:[%s1472_s4 + $0x70] sm:$0xff] %v1113_v16   ;;  %v596_v23 = vadd.f32 %v1195_v17, %v1462_v50  ;;  %v660_v24 = vadd.f32 %v1243_v18, %v1462_v50  ;;  %v1198_v25 = vadd.f32 %v1197_v21, %v1196_v19 }
 0x136   : > { %v1246_v26 = vadd.f32 %v1245_v22, %v1244_v20 }
 0x137   : > { %v599_v27 = vadd.f32 %v1198_v25, %v1462_v50  ;;  %v680_v29 = vmax.f32 %v596_v23, 0.0  ;;  %v696_v30 = vmax.f32 %v660_v24, 0.0 }
 0x138   : > { %v663_v28 = vadd.f32 %v1246_v26, %v1462_v50 }
 0x139   : > { %v681_v31 = vmax.f32 %v599_v27, 0.0 }
 0x13a   : > { %v697_v32 = vmax.f32 %v663_v28, 0.0 }
 0x13b   : > { %v1078_v33 = vpack.c.bf16 %v681_v31, %v680_v29 }
 0x13c   : > { %v1118_v34 = vpack.c.bf16 %v697_v32, %v696_v30 }
 0x13d   : > { %1126 = vst [vmem:[%s1472_s4 + $0x38] sm:$0xff] %v1078_v33  }
 0x13e   : > { %1134 = vst [vmem:[%s1472_s4 + $0x78] sm:$0xff] %v1118_v34  }
 0x13f PF: > { %s13_s12 = sadd.s32 1, %s1341_s12  }
 0x140   : > { %p10_p4 = scmp.ge.s32.totalorder %s13_s12, 10  }
 0x142   :  { %12 = sbr.rel (!%p10_p4) target bundleno = 1 (0x1), region = 62 }

// kernel: faster_rcnn_forward.19
= control target key start
LH: loop header
LB: loop body
LE: loop exit
PB: predicated region body
PF: predicated region fallthrough
CT: control target
= control target key end

     0   :  { %s1363_s12 = smov 0   ;;  %s1521_s0 = inlined_call_operand.vmem [shape: bf16[512,256], index: 0, kind: input, shape index: {}]   ;;  %s1522_s1 = inlined_call_operand.vmem [shape: bf16[256,128], index: 1, kind: input, shape index: {}]   ;;  %s1523_s2 = inlined_call_operand.vmem [shape: f32[1,128], index: 2, kind: input, shape index: {}]   ;;  %s1524_s3 = inlined_call_operand.vmem [shape: bf16[512,128], index: 3, kind: output, shape index: {}]  }
   0x1 LB: > { %s914_s13 = sadd.s32 4294967295, %s1341_s12   ;;  %p918_p0 = scmp.ge.s32.totalorder %s1341_s12, 1  ;;  %s1341_s12 = sphi %s1363_s12, %s13_s12  }
   0x2   : > { %p139_p1 = scmp.lt.s32.totalorder %s1341_s12, 3 }
   0x4   : > { %p140_p2 = pnand %p918_p0, %p139_p1 }
   0x5   : > { %v1271_v0 = vld [vmem:[%s1522_s1 + $0x40] sm:$0xff] (!%p140_p2)   ;;  %s919_s16 = sshll.u32 (!%p140_p2), %s914_s13, 5  ;;  %v1273_v2 = vld [vmem:[%s1522_s1 + $0x48] sm:$0xff] (!%p140_p2)   ;;  %v1275_v4 = vld [vmem:[%s1522_s1 + $0x50] sm:$0xff] (!%p140_p2)  }
   0x6   : > { %143 = sbr.rel (%p140_p2) target bundleno = 319 (0x13f), region = 32  ;;  %v1272_v1 = vld [vmem:[%s1522_s1] sm:$0xff] (!%p140_p2)   ;;  %1135 = vmatprep.subr.bf16.mxu0 (!%p140_p2), %v1271_v0  ;;  %1247 = vmatprep.subr.bf16.mxu1 (!%p140_p2), %v1271_v0  ;;  %v1274_v3 = vld [vmem:[%s1522_s1 + $0x8] sm:$0xff] (!%p140_p2)   ;;  %p165_p3 = scmp.lt.s32.totalorder (!%p140_p2), %s919_s16, 63  ;;  %v1276_v5 = vld [vmem:[%s1522_s1 + $0x10] sm:$0xff] (!%p140_p2)  }
   0x7   : > { %1136 = vmatpush3.bf16.msra.mxu0 (!%p140_p2), %v1272_v1  ;;  %1255 = vmatpush3.bf16.msra.mxu1 (!%p140_p2), %v1272_v1  ;;  %v1277_v6 = vld [vmem:[%s1522_s1 + $0x58] sm:$0xff] (!%p140_p2)   ;;  %v1279_v8 = vld [vmem:[%s1522_s1 + $0x60] sm:$0xff] (!%p140_p2)   ;;  %v1281_v10 = vld [vmem:[%s1522_s1 + $0x68] sm:$0xff] (!%p140_p2)  }
   0x8   : > { %1137 = vmatprep.subr.bf16.mxu0 (!%p140_p2), %v1273_v2  ;;  %1248 = vmatprep.subr.bf16.mxu1 (!%p140_p2), %v1273_v2  ;;  %v1278_v7 = vld [vmem:[%s1522_s1 + $0x18] sm:$0xff] (!%p140_p2)   ;;  %v1280_v9 = vld [vmem:[%s1522_s1 + $0x20] sm:$0xff] (!%p140_p2)   ;;  %v1282_v13 = vld [vmem:[%s1522_s1 + $0x28] sm:$0xff] (!%p140_p2)  }
   0x9   : > { %v1283_v14 = vld [vmem:[%s1522_s1 + $0x70] sm:$0xff] (!%p140_p2)   ;;  %v1285_v16 = vld [vmem:[%s1522_s1 + $0x78] sm:$0xff] (!%p140_p2)   ;;  %v1462_v50 = vld [vmem:[%s1523_s2] ss:$0 sm:$0xff] (!%p140_p2) }
   0xa   : > { %v1284_v15 = vld [vmem:[%s1522_s1 + $0x30] sm:$0xff] (!%p140_p2)   ;;  %v1286_v17 = vld [vmem:[%s1522_s1 + $0x38] sm:$0xff] (!%p140_p2)  }
   0xb   : > { %1138 = vmatpush3.bf16.msra.mxu0 (!%p140_p2), %v1274_v3  ;;  %1256 = vmatpush3.bf16.msra.mxu1 (!%p140_p2), %v1274_v3 }
   0xc   : > { %1139 = vmatprep.subr.bf16.mxu0 (!%p140_p2), %v1275_v4  ;;  %1249 = vmatprep.subr.bf16.mxu1 (!%p140_p2), %v1275_v4 }
   0xd   : > { %s1526_s16 = smov (!%p165_p3, %s919_s16), 63 }
   0xe   : > { %s1007_s4 = sshll.u32 %s1526_s16, 3  ;;  %s923_s28 = sshll.u32 %s1526_s16, 2 }
   0xf   : > { %1140 = vmatpush3.bf16.msra.mxu0 %v1276_v5  ;;  %1257 = vmatpush3.bf16.msra.mxu1 %v1276_v5  ;;  %s1404_s9 = scalar_lea.vmem %s1521_s0, %s1007_s4  ;;  %s1472_s4 = scalar_lea.vmem %s1524_s3, %s923_s28 }
  0x10   : > { %1141 = vmatprep.subr.bf16.mxu0 %v1277_v6  ;;  %1250 = vmatprep.subr.bf16.mxu1 %v1277_v6  ;;  %v1289_v11 = vld [vmem:[%s1404_s9 + $0x4] ss:$8 sps:$4 sm:$0xff]   ;;  %v1287_v18 = vld [vmem:[%s1404_s9] ss:$8 sps:$4 sm:$0xff]   ;;  %v1293_v20 = vld [vmem:[%s1404_s9 + $0x14] ss:$8 sps:$4 sm:$0xff]  }
  0x11   : > { %v1292_v12 = vld [vmem:[%s1404_s9 + $0x84] ss:$8 sps:$4 sm:$0xff]   ;;  %537 = vmatprep.mubr.bf16.mxu0 %v1289_v11  ;;  %v1290_v19 = vld [vmem:[%s1404_s9 + $0x80] ss:$8 sps:$4 sm:$0xff]   ;;  %v1295_v21 = vld [vmem:[%s1404_s9 + $0x94] ss:$8 sps:$4 sm:$0xff]  }
  0x12   : > { %601 = vmatprep.mubr.bf16.mxu1 %v1292_v12  ;;  %v1297_v22 = vld [vmem:[%s1404_s9 + $0x10] ss:$8 sps:$4 sm:$0xff]   ;;  %v1299_v24 = vld [vmem:[%s1404_s9 + $0x24] ss:$8 sps:$4 sm:$0xff]   ;;  %v1303_v26 = vld [vmem:[%s1404_s9 + $0x20] ss:$8 sps:$4 sm:$0xff]  }
  0x13   : > { %1142 = vmatpush3.bf16.msra.mxu0 %v1278_v7  ;;  %1258 = vmatpush3.bf16.msra.mxu1 %v1278_v7  ;;  %v1298_v23 = vld [vmem:[%s1404_s9 + $0x90] ss:$8 sps:$4 sm:$0xff]   ;;  %v1301_v25 = vld [vmem:[%s1404_s9 + $0xa4] ss:$8 sps:$4 sm:$0xff]   ;;  %v1304_v27 = vld [vmem:[%s1404_s9 + $0xa0] ss:$8 sps:$4 sm:$0xff]  }
  0x14   : > { %1143 = vmatprep.subr.bf16.mxu0 %v1279_v8  ;;  %1251 = vmatprep.subr.bf16.mxu1 %v1279_v8  ;;  %v1305_v28 = vld [vmem:[%s1404_s9 + $0x34] ss:$8 sps:$4 sm:$0xff]   ;;  %v1309_v30 = vld [vmem:[%s1404_s9 + $0x30] ss:$8 sps:$4 sm:$0xff]   ;;  %v1311_v32 = vld [vmem:[%s1404_s9 + $0x44] ss:$8 sps:$4 sm:$0xff]  }
  0x15   : > { %v1307_v29 = vld [vmem:[%s1404_s9 + $0xb4] ss:$8 sps:$4 sm:$0xff]   ;;  %v1310_v31 = vld [vmem:[%s1404_s9 + $0xb0] ss:$8 sps:$4 sm:$0xff]   ;;  %v1313_v33 = vld [vmem:[%s1404_s9 + $0xc4] ss:$8 sps:$4 sm:$0xff]  }
  0x16   : > { %v1315_v34 = vld [vmem:[%s1404_s9 + $0x40] ss:$8 sps:$4 sm:$0xff]   ;;  %v1317_v36 = vld [vmem:[%s1404_s9 + $0x54] ss:$8 sps:$4 sm:$0xff]   ;;  %v1321_v38 = vld [vmem:[%s1404_s9 + $0x50] ss:$8 sps:$4 sm:$0xff]  }
  0x17   : > { %1144 = vmatpush3.bf16.msra.mxu0 %v1280_v9  ;;  %1259 = vmatpush3.bf16.msra.mxu1 %v1280_v9  ;;  %v1316_v35 = vld [vmem:[%s1404_s9 + $0xc0] ss:$8 sps:$4 sm:$0xff]   ;;  %v1319_v37 = vld [vmem:[%s1404_s9 + $0xd4] ss:$8 sps:$4 sm:$0xff]   ;;  %v1322_v39 = vld [vmem:[%s1404_s9 + $0xd0] ss:$8 sps:$4 sm:$0xff]  }
  0x18   : > { %1145 = vmatprep.subr.bf16.mxu0 %v1281_v10  ;;  %1252 = vmatprep.subr.bf16.mxu1 %v1281_v10  ;;  %v1323_v40 = vld [vmem:[%s1404_s9 + $0x64] ss:$8 sps:$4 sm:$0xff]   ;;  %v1327_v42 = vld [vmem:[%s1404_s9 + $0x60] ss:$8 sps:$4 sm:$0xff]   ;;  %v1329_v44 = vld [vmem:[%s1404_s9 + $0x74] ss:$8 sps:$4 sm:$0xff]  }
  0x19   : > { %v1325_v41 = vld [vmem:[%s1404_s9 + $0xe4] ss:$8 sps:$4 sm:$0xff]   ;;  %v1328_v43 = vld [vmem:[%s1404_s9 + $0xe0] ss:$8 sps:$4 sm:$0xff]   ;;  %v1331_v45 = vld [vmem:[%s1404_s9 + $0xf4] ss:$8 sps:$4 sm:$0xff]  }
  0x1a   : > { %v1333_v46 = vld [vmem:[%s1404_s9 + $0x70] ss:$8 sps:$4 sm:$0xff]  }
  0x1b   : > { %1146 = vmatpush3.bf16.msra.mxu0 %v1282_v13  ;;  %1260 = vmatpush3.bf16.msra.mxu1 %v1282_v13  ;;  %v1334_v47 = vld [vmem:[%s1404_s9 + $0xf0] ss:$8 sps:$4 sm:$0xff]  }
  0x1c   : > { %1147 = vmatprep.subr.bf16.mxu0 %v1283_v14  ;;  %1253 = vmatprep.subr.bf16.mxu1 %v1283_v14 }
  0x1f   : > { %1148 = vmatpush3.bf16.msra.mxu0 %v1284_v15  ;;  %1261 = vmatpush3.bf16.msra.mxu1 %v1284_v15 }
  0x20   : > { %1149 = vmatprep.subr.bf16.mxu0 %v1285_v16  ;;  %1254 = vmatprep.subr.bf16.mxu1 %v1285_v16 }
  0x23   : > { %1150 = vmatpush3.bf16.msra.mxu0 %v1286_v17  ;;  %1262 = vmatpush3.bf16.msra.mxu1 %v1286_v17 }
  0x26   : > { %538 = vmatmul.mubr.bf16.vlgmr.msra.gmra.mrb[0].mxu0 %v1287_v18  ;;  %602 = vmatmul.mubr.bf16.vlgmr.msra.gmra.mrb[0].mxu1 %v1290_v19 }
  0x27   : > { %545 = vmatprep.mubr.bf16.mxu0 %v1293_v20  ;;  %609 = vmatprep.mubr.bf16.mxu1 %v1295_v21 }
  0x2e   : > { %546 = vmatmul.mubr.bf16.gmra.mrb[4].mxu0 %v1297_v22  ;;  %610 = vmatmul.mubr.bf16.gmra.mrb[4].mxu1 %v1298_v23 }
  0x2f   : > { %553 = vmatprep.mubr.bf16.mxu0 %v1299_v24  ;;  %617 = vmatprep.mubr.bf16.mxu1 %v1301_v25 }
  0x36   : > { %554 = vmatmul.mubr.bf16.gmra.mrb[8].mxu0 %v1303_v26  ;;  %618 = vmatmul.mubr.bf16.gmra.mrb[8].mxu1 %v1304_v27 }
  0x37   : > { %561 = vmatprep.mubr.bf16.mxu0 %v1305_v28  ;;  %625 = vmatprep.mubr.bf16.mxu1 %v1307_v29 }
  0x3e   : > { %562 = vmatmul.mubr.bf16.gmra.mrb[12].mxu0 %v1309_v30  ;;  %626 = vmatmul.mubr.bf16.gmra.mrb[12].mxu1 %v1310_v31 }
  0x3f   : > { %569 = vmatprep.mubr.bf16.mxu0 %v1311_v32  ;;  %633 = vmatprep.mubr.bf16.mxu1 %v1313_v33 }
  0x46   : > { %570 = vmatmul.mubr.bf16.gmra.mrb[16].mxu0 %v1315_v34  ;;  %634 = vmatmul.mubr.bf16.gmra.mrb[16].mxu1 %v1316_v35 }
  0x47   : > { %577 = vmatprep.mubr.bf16.mxu0 %v1317_v36  ;;  %641 = vmatprep.mubr.bf16.mxu1 %v1319_v37 }
  0x4e   : > { %578 = vmatmul.mubr.bf16.gmra.mrb[20].mxu0 %v1321_v38  ;;  %642 = vmatmul.mubr.bf16.gmra.mrb[20].mxu1 %v1322_v39 }
  0x4f   : > { %585 = vmatprep.mubr.bf16.mxu0 %v1323_v40  ;;  %649 = vmatprep.mubr.bf16.mxu1 %v1325_v41 }
  0x56   : > { %586 = vmatmul.mubr.bf16.gmra.mrb[24].mxu0 %v1327_v42  ;;  %650 = vmatmul.mubr.bf16.gmra.mrb[24].mxu1 %v1328_v43 }
  0x57   : > { %593 = vmatprep.mubr.bf16.mxu0 %v1329_v44  ;;  %657 = vmatprep.mubr.bf16.mxu1 %v1331_v45 }
  0x5e   : > { %594 = vmatmul.mubr.bf16.gmra.mrb[28].mxu0 %v1333_v46  ;;  %658 = vmatmul.mubr.bf16.gmra.mrb[28].mxu1 %v1334_v47 }
  0xf9   : > { %v1151_v48 = vpop.f32.mrb[0].mxu0  ;;  %v1199_v49 = vpop.f32.mrb[0].mxu1 }
  0xfa   : > { %v1152_v51 = vpop.f32.mrb[1].mxu0  ;;  %v1200_v52 = vpop.f32.mrb[1].mxu1 }
  0xfb   : > { %v1153_v53 = vadd.f32 %v1152_v51, %v1151_v48  ;;  %v1201_v54 = vadd.f32 %v1200_v52, %v1199_v49  ;;  %v1154_v55 = vpop.f32.mrb[2].mxu0  ;;  %v1202_v56 = vpop.f32.mrb[2].mxu1 }
  0xfc   : > { %v1155_v57 = vpop.f32.mrb[3].mxu0  ;;  %v1203_v58 = vpop.f32.mrb[3].mxu1 }
  0xfd   : > { %v540_v59 = vadd.f32 %v1153_v53, %v1462_v50  ;;  %v604_v60 = vadd.f32 %v1201_v54, %v1462_v50  ;;  %v1156_v61 = vadd.f32 %v1155_v57, %v1154_v55  ;;  %v1204_v62 = vadd.f32 %v1203_v58, %v1202_v56 }
  0xff   : > { %v543_v63 = vadd.f32 %v1156_v61, %v1462_v50  ;;  %v607_v0 = vadd.f32 %v1204_v62, %v1462_v50  ;;  %v666_v1 = vmax.f32 %v540_v59, 0.0  ;;  %v682_v2 = vmax.f32 %v604_v60, 0.0 }
 0x101   : > { %v667_v3 = vmax.f32 %v543_v63, 0.0  ;;  %v683_v4 = vmax.f32 %v607_v0, 0.0  ;;  %v1157_v5 = vpop.f32.mrb[4].mxu0  ;;  %v1205_v6 = vpop.f32.mrb[4].mxu1 }
 0x102   : > { %v1158_v7 = vpop.f32.mrb[5].mxu0  ;;  %v1206_v8 = vpop.f32.mrb[5].mxu1 }
 0x103   : > { %v1043_v9 = vpack.c.bf16 %v667_v3, %v666_v1  ;;  %v1083_v10 = vpack.c.bf16 %v683_v4, %v682_v2  ;;  %v1159_v11 = vadd.f32 %v1158_v7, %v1157_v5  ;;  %v1207_v12 = vadd.f32 %v1206_v8, %v1205_v6  ;;  %v1160_v13 = vpop.f32.mrb[6].mxu0  ;;  %v1208_v14 = vpop.f32.mrb[6].mxu1 }
 0x104   : > { %v1161_v15 = vpop.f32.mrb[7].mxu0  ;;  %v1209_v16 = vpop.f32.mrb[7].mxu1 }
 0x105   : > { %1044 = vst [vmem:[%s1472_s4] sm:$0xff] %v1043_v9   ;;  %1127 = vst [vmem:[%s1472_s4 + $0x40] sm:$0xff] %v1083_v10   ;;  %v548_v17 = vadd.f32 %v1159_v11, %v1462_v50  ;;  %v612_v18 = vadd.f32 %v1207_v12, %v1462_v50  ;;  %v1162_v19 = vadd.f32 %v1161_v15, %v1160_v13 }
 0x106   : > { %v1210_v20 = vadd.f32 %v1209_v16, %v1208_v14 }
 0x107   : > { %v551_v21 = vadd.f32 %v1162_v19, %v1462_v50  ;;  %v668_v23 = vmax.f32 %v548_v17, 0.0  ;;  %v684_v24 = vmax.f32 %v612_v18, 0.0 }
 0x108   : > { %v615_v22 = vadd.f32 %v1210_v20, %v1462_v50 }
 0x109   : > { %v669_v25 = vmax.f32 %v551_v21, 0.0  ;;  %v1163_v27 = vpop.f32.mrb[8].mxu0  ;;  %v1211_v28 = vpop.f32.mrb[8].mxu1 }
 0x10a   : > { %v685_v26 = vmax.f32 %v615_v22, 0.0  ;;  %v1164_v29 = vpop.f32.mrb[9].mxu0  ;;  %v1212_v30 = vpop.f32.mrb[9].mxu1 }
 0x10b   : > { %v1048_v31 = vpack.c.bf16 %v669_v25, %v668_v23  ;;  %v1165_v33 = vadd.f32 %v1164_v29, %v1163_v27  ;;  %v1213_v34 = vadd.f32 %v1212_v30, %v1211_v28  ;;  %v1166_v35 = vpop.f32.mrb[10].mxu0  ;;  %v1214_v36 = vpop.f32.mrb[10].mxu1 }
 0x10c   : > { %v1088_v32 = vpack.c.bf16 %v685_v26, %v684_v24  ;;  %v1167_v37 = vpop.f32.mrb[11].mxu0  ;;  %v1215_v38 = vpop.f32.mrb[11].mxu1 }
 0x10d   : > { %1120 = vst [vmem:[%s1472_s4 + $0x8] sm:$0xff] %v1048_v31   ;;  %v556_v39 = vadd.f32 %v1165_v33, %v1462_v50  ;;  %v620_v40 = vadd.f32 %v1213_v34, %v1462_v50  ;;  %v1168_v41 = vadd.f32 %v1167_v37, %v1166_v35  ;;  %v1216_v42 = vadd.f32 %v1215_v38, %v1214_v36 }
 0x10e   : > { %1128 = vst [vmem:[%s1472_s4 + $0x48] sm:$0xff] %v1088_v32  }
 0x10f   : > { %v559_v43 = vadd.f32 %v1168_v41, %v1462_v50  ;;  %v623_v44 = vadd.f32 %v1216_v42, %v1462_v50  ;;  %v670_v45 = vmax.f32 %v556_v39, 0.0  ;;  %v686_v46 = vmax.f32 %v620_v40, 0.0 }
 0x111   : > { %v671_v47 = vmax.f32 %v559_v43, 0.0  ;;  %v687_v48 = vmax.f32 %v623_v44, 0.0  ;;  %v1169_v49 = vpop.f32.mrb[12].mxu0  ;;  %v1217_v51 = vpop.f32.mrb[12].mxu1 }
 0x112   : > { %v1170_v52 = vpop.f32.mrb[13].mxu0  ;;  %v1218_v53 = vpop.f32.mrb[13].mxu1 }
 0x113   : > { %v1053_v54 = vpack.c.bf16 %v671_v47, %v670_v45  ;;  %v1093_v55 = vpack.c.bf16 %v687_v48, %v686_v46  ;;  %v1171_v56 = vadd.f32 %v1170_v52, %v1169_v49  ;;  %v1219_v57 = vadd.f32 %v1218_v53, %v1217_v51  ;;  %v1172_v58 = vpop.f32.mrb[14].mxu0  ;;  %v1220_v59 = vpop.f32.mrb[14].mxu1 }
 0x114   : > { %v1173_v60 = vpop.f32.mrb[15].mxu0  ;;  %v1221_v61 = vpop.f32.mrb[15].mxu1 }
 0x115   : > { %1121 = vst [vmem:[%s1472_s4 + $0x10] sm:$0xff] %v1053_v54   ;;  %1129 = vst [vmem:[%s1472_s4 + $0x50] sm:$0xff] %v1093_v55   ;;  %v564_v62 = vadd.f32 %v1171_v56, %v1462_v50  ;;  %v628_v63 = vadd.f32 %v1219_v57, %v1462_v50  ;;  %v1174_v0 = vadd.f32 %v1173_v60, %v1172_v58 }
 0x116   : > { %v1222_v1 = vadd.f32 %v1221_v61, %v1220_v59 }
 0x117   : > { %v567_v2 = vadd.f32 %v1174_v0, %v1462_v50  ;;  %v672_v4 = vmax.f32 %v564_v62, 0.0  ;;  %v688_v5 = vmax.f32 %v628_v63, 0.0 }
 0x118   : > { %v631_v3 = vadd.f32 %v1222_v1, %v1462_v50 }
 0x119   : > { %v673_v6 = vmax.f32 %v567_v2, 0.0  ;;  %v1175_v8 = vpop.f32.mrb[16].mxu0  ;;  %v1223_v9 = vpop.f32.mrb[16].mxu1 }
 0x11a   : > { %v689_v7 = vmax.f32 %v631_v3, 0.0  ;;  %v1176_v10 = vpop.f32.mrb[17].mxu0  ;;  %v1224_v11 = vpop.f32.mrb[17].mxu1 }
 0x11b   : > { %v1058_v12 = vpack.c.bf16 %v673_v6, %v672_v4  ;;  %v1177_v14 = vadd.f32 %v1176_v10, %v1175_v8  ;;  %v1225_v15 = vadd.f32 %v1224_v11, %v1223_v9  ;;  %v1178_v16 = vpop.f32.mrb[18].mxu0  ;;  %v1226_v17 = vpop.f32.mrb[18].mxu1 }
 0x11c   : > { %v1098_v13 = vpack.c.bf16 %v689_v7, %v688_v5  ;;  %v1179_v18 = vpop.f32.mrb[19].mxu0  ;;  %v1227_v19 = vpop.f32.mrb[19].mxu1 }
 0x11d   : > { %1122 = vst [vmem:[%s1472_s4 + $0x18] sm:$0xff] %v1058_v12   ;;  %v572_v20 = vadd.f32 %v1177_v14, %v1462_v50  ;;  %v636_v21 = vadd.f32 %v1225_v15, %v1462_v50  ;;  %v1180_v22 = vadd.f32 %v1179_v18, %v1178_v16  ;;  %v1228_v23 = vadd.f32 %v1227_v19, %v1226_v17 }
 0x11e   : > { %1130 = vst [vmem:[%s1472_s4 + $0x58] sm:$0xff] %v1098_v13  }
 0x11f   : > { %v575_v24 = vadd.f32 %v1180_v22, %v1462_v50  ;;  %v639_v25 = vadd.f32 %v1228_v23, %v1462_v50  ;;  %v674_v26 = vmax.f32 %v572_v20, 0.0  ;;  %v690_v27 = vmax.f32 %v636_v21, 0.0 }
 0x121   : > { %v675_v28 = vmax.f32 %v575_v24, 0.0  ;;  %v691_v29 = vmax.f32 %v639_v25, 0.0  ;;  %v1181_v30 = vpop.f32.mrb[20].mxu0  ;;  %v1229_v31 = vpop.f32.mrb[20].mxu1 }
 0x122   : > { %v1182_v32 = vpop.f32.mrb[21].mxu0  ;;  %v1230_v33 = vpop.f32.mrb[21].mxu1 }
 0x123   : > { %v1063_v34 = vpack.c.bf16 %v675_v28, %v674_v26  ;;  %v1103_v35 = vpack.c.bf16 %v691_v29, %v690_v27  ;;  %v1183_v36 = vadd.f32 %v1182_v32, %v1181_v30  ;;  %v1231_v37 = vadd.f32 %v1230_v33, %v1229_v31  ;;  %v1184_v38 = vpop.f32.mrb[22].mxu0  ;;  %v1232_v39 = vpop.f32.mrb[22].mxu1 }
 0x124   : > { %v1185_v40 = vpop.f32.mrb[23].mxu0  ;;  %v1233_v41 = vpop.f32.mrb[23].mxu1 }
 0x125   : > { %1123 = vst [vmem:[%s1472_s4 + $0x20] sm:$0xff] %v1063_v34   ;;  %1131 = vst [vmem:[%s1472_s4 + $0x60] sm:$0xff] %v1103_v35   ;;  %v580_v42 = vadd.f32 %v1183_v36, %v1462_v50  ;;  %v644_v43 = vadd.f32 %v1231_v37, %v1462_v50  ;;  %v1186_v44 = vadd.f32 %v1185_v40, %v1184_v38 }
 0x126   : > { %v1234_v45 = vadd.f32 %v1233_v41, %v1232_v39 }
 0x127   : > { %v583_v46 = vadd.f32 %v1186_v44, %v1462_v50  ;;  %v676_v48 = vmax.f32 %v580_v42, 0.0  ;;  %v692_v49 = vmax.f32 %v644_v43, 0.0 }
 0x128   : > { %v647_v47 = vadd.f32 %v1234_v45, %v1462_v50 }
 0x129   : > { %v677_v51 = vmax.f32 %v583_v46, 0.0  ;;  %v1187_v53 = vpop.f32.mrb[24].mxu0  ;;  %v1235_v54 = vpop.f32.mrb[24].mxu1 }
 0x12a   : > { %v693_v52 = vmax.f32 %v647_v47, 0.0  ;;  %v1188_v55 = vpop.f32.mrb[25].mxu0  ;;  %v1236_v56 = vpop.f32.mrb[25].mxu1 }
 0x12b   : > { %v1068_v57 = vpack.c.bf16 %v677_v51, %v676_v48  ;;  %v1189_v59 = vadd.f32 %v1188_v55, %v1187_v53  ;;  %v1237_v60 = vadd.f32 %v1236_v56, %v1235_v54  ;;  %v1190_v61 = vpop.f32.mrb[26].mxu0  ;;  %v1238_v62 = vpop.f32.mrb[26].mxu1 }
 0x12c   : > { %v1108_v58 = vpack.c.bf16 %v693_v52, %v692_v49  ;;  %v1191_v63 = vpop.f32.mrb[27].mxu0  ;;  %v1239_v0 = vpop.f32.mrb[27].mxu1 }
 0x12d   : > { %1124 = vst [vmem:[%s1472_s4 + $0x28] sm:$0xff] %v1068_v57   ;;  %v588_v1 = vadd.f32 %v1189_v59, %v1462_v50  ;;  %v652_v2 = vadd.f32 %v1237_v60, %v1462_v50  ;;  %v1192_v3 = vadd.f32 %v1191_v63, %v1190_v61  ;;  %v1240_v4 = vadd.f32 %v1239_v0, %v1238_v62 }
 0x12e   : > { %1132 = vst [vmem:[%s1472_s4 + $0x68] sm:$0xff] %v1108_v58  }
 0x12f   : > { %v591_v5 = vadd.f32 %v1192_v3, %v1462_v50  ;;  %v655_v6 = vadd.f32 %v1240_v4, %v1462_v50  ;;  %v678_v7 = vmax.f32 %v588_v1, 0.0  ;;  %v694_v8 = vmax.f32 %v652_v2, 0.0 }
 0x131   : > { %v679_v9 = vmax.f32 %v591_v5, 0.0  ;;  %v695_v10 = vmax.f32 %v655_v6, 0.0  ;;  %v1193_v11 = vpop.f32.mrb[28].mxu0  ;;  %v1241_v12 = vpop.f32.mrb[28].mxu1 }
 0x132   : > { %v1194_v13 = vpop.f32.mrb[29].mxu0  ;;  %v1242_v14 = vpop.f32.mrb[29].mxu1 }
 0x133   : > { %v1073_v15 = vpack.c.bf16 %v679_v9, %v678_v7  ;;  %v1113_v16 = vpack.c.bf16 %v695_v10, %v694_v8  ;;  %v1195_v17 = vadd.f32 %v1194_v13, %v1193_v11  ;;  %v1243_v18 = vadd.f32 %v1242_v14, %v1241_v12  ;;  %v1196_v19 = vpop.f32.mrb[30].mxu0  ;;  %v1244_v20 = vpop.f32.mrb[30].mxu1 }
 0x134   : > { %v1197_v21 = vpop.f32.mrb[31].mxu0  ;;  %v1245_v22 = vpop.f32.mrb[31].mxu1 }
 0x135   : > { %1125 = vst [vmem:[%s1472_s4 + $0x30] sm:$0xff] %v1073_v15   ;;  %1133 = vst [vmem:[%s1472_s4 + $0x70] sm:$0xff] %v1113_v16   ;;  %v596_v23 = vadd.f32 %v1195_v17, %v1462_v50  ;;  %v660_v24 = vadd.f32 %v1243_v18, %v1462_v50  ;;  %v1198_v25 = vadd.f32 %v1197_v21, %v1196_v19 }
 0x136   : > { %v1246_v26 = vadd.f32 %v1245_v22, %v1244_v20 }
 0x137   : > { %v599_v27 = vadd.f32 %v1198_v25, %v1462_v50  ;;  %v680_v29 = vmax.f32 %v596_v23, 0.0  ;;  %v696_v30 = vmax.f32 %v660_v24, 0.0 }
 0x138   : > { %v663_v28 = vadd.f32 %v1246_v26, %v1462_v50 }
 0x139   : > { %v681_v31 = vmax.f32 %v599_v27, 0.0 }
 0x13a   : > { %v697_v32 = vmax.f32 %v663_v28, 0.0 }
 0x13b   : > { %v1078_v33 = vpack.c.bf16 %v681_v31, %v680_v29 }
 0x13c   : > { %v1118_v34 = vpack.c.bf16 %v697_v32, %v696_v30 }
 0x13d   : > { %1126 = vst [vmem:[%s1472_s4 + $0x38] sm:$0xff] %v1078_v33  }
 0x13e   : > { %1134 = vst [vmem:[%s1472_s4 + $0x78] sm:$0xff] %v1118_v34  }
 0x13f PF: > { %s13_s12 = sadd.s32 1, %s1341_s12  }
 0x140   : > { %p10_p4 = scmp.ge.s32.totalorder %s13_s12, 4  }
 0x142   :  { %12 = sbr.rel (!%p10_p4) target bundleno = 1 (0x1), region = 62 }

// kernel: faster_rcnn_forward.23
= control target key start
LH: loop header
LB: loop body
LE: loop exit
PB: predicated region body
PF: predicated region fallthrough
CT: control target
= control target key end

     0   :  { %s1094_s12 = smov 0   ;;  %s1215_s0 = inlined_call_operand.vmem [shape: bf16[512,128], index: 0, kind: input, shape index: {}]   ;;  %s1216_s1 = inlined_call_operand.vmem [shape: bf16[128,128], index: 1, kind: input, shape index: {}]   ;;  %s1217_s2 = inlined_call_operand.vmem [shape: f32[1,128], index: 2, kind: input, shape index: {}]   ;;  %s1218_s3 = inlined_call_operand.vmem [shape: bf16[512,128], index: 3, kind: output, shape index: {}]  }
   0x1 LB: > { %s751_s13 = sadd.s32 4294967295, %s1072_s12   ;;  %p755_p0 = scmp.ge.s32.totalorder %s1072_s12, 1  ;;  %s1072_s12 = sphi %s1094_s12, %s13_s12  }
   0x2   : > { %p138_p1 = scmp.lt.s32.totalorder %s1072_s12, 3 }
   0x4   : > { %p139_p2 = pnand %p755_p0, %p138_p1 }
   0x5   : > { %v1042_v0 = vld [vmem:[%s1216_s1] sm:$0xff] (!%p139_p2)   ;;  %s756_s16 = sshll.u32 (!%p139_p2), %s751_s13, 5  ;;  %v1043_v1 = vld [vmem:[%s1216_s1 + $0x8] sm:$0xff] (!%p139_p2)   ;;  %v1044_v2 = vld [vmem:[%s1216_s1 + $0x10] sm:$0xff] (!%p139_p2)  }
   0x6   : > { %142 = sbr.rel (%p139_p2) target bundleno = 282 (0x11a), region = 32  ;;  %p163_p3 = scmp.lt.s32.totalorder (!%p139_p2), %s756_s16, 63  ;;  %970 = vmatprep.subr.bf16.mxu0 (!%p139_p2), %v1042_v0  ;;  %1018 = vmatprep.subr.bf16.mxu1 (!%p139_p2), %v1042_v0  ;;  %v1045_v3 = vld [vmem:[%s1216_s1 + $0x18] sm:$0xff] (!%p139_p2)   ;;  %v1046_v6 = vld [vmem:[%s1216_s1 + $0x20] sm:$0xff] (!%p139_p2)   ;;  %v1047_v7 = vld [vmem:[%s1216_s1 + $0x28] sm:$0xff] (!%p139_p2)  }
   0x7   : > { %971 = vmatpush3.bf16.msra.mxu0 (!%p139_p2), %v1042_v0  ;;  %1026 = vmatpush3.bf16.msra.mxu1 (!%p139_p2), %v1042_v0  ;;  %v1048_v8 = vld [vmem:[%s1216_s1 + $0x30] sm:$0xff] (!%p139_p2)   ;;  %v1049_v9 = vld [vmem:[%s1216_s1 + $0x38] sm:$0xff] (!%p139_p2)   ;;  %v1155_v25 = vld [vmem:[%s1217_s2] ss:$0 sm:$0xff] (!%p139_p2) }
   0x8   : > { %972 = vmatprep.subr.bf16.mxu0 (!%p139_p2), %v1043_v1  ;;  %1019 = vmatprep.subr.bf16.mxu1 (!%p139_p2), %v1043_v1 }
   0xb   : > { %973 = vmatpush3.bf16.msra.mxu0 (!%p139_p2), %v1043_v1  ;;  %1027 = vmatpush3.bf16.msra.mxu1 (!%p139_p2), %v1043_v1 }
   0xc   : > { %974 = vmatprep.subr.bf16.mxu0 (!%p139_p2), %v1044_v2  ;;  %1020 = vmatprep.subr.bf16.mxu1 (!%p139_p2), %v1044_v2 }
   0xd   : > { %s1220_s16 = smov (!%p163_p3, %s756_s16), 63 }
   0xe   : > { %s757_s21 = sshll.u32 %s1220_s16, 2 }
   0xf   : > { %s1119_s24 = scalar_lea.vmem %s1215_s0, %s757_s21  ;;  %975 = vmatpush3.bf16.msra.mxu0 %v1044_v2  ;;  %1028 = vmatpush3.bf16.msra.mxu1 %v1044_v2  ;;  %s1168_s13 = scalar_lea.vmem %s1218_s3, %s757_s21 }
  0x10   : > { %v1050_v4 = vld [vmem:[%s1119_s24] sm:$0xff]   ;;  %976 = vmatprep.subr.bf16.mxu0 %v1045_v3  ;;  %1021 = vmatprep.subr.bf16.mxu1 %v1045_v3  ;;  %v1052_v10 = vld [vmem:[%s1119_s24 + $0x8] sm:$0xff]   ;;  %v1054_v12 = vld [vmem:[%s1119_s24 + $0x10] sm:$0xff]  }
  0x11   : > { %v1051_v5 = vld [vmem:[%s1119_s24 + $0x40] sm:$0xff]   ;;  %986 = vmatprep.mubr.bf16.mxu0 %v1050_v4  ;;  %v1053_v11 = vld [vmem:[%s1119_s24 + $0x48] sm:$0xff]   ;;  %v1055_v13 = vld [vmem:[%s1119_s24 + $0x50] sm:$0xff]  }
  0x12   : > { %1002 = vmatprep.mubr.bf16.mxu1 %v1051_v5  ;;  %v1056_v14 = vld [vmem:[%s1119_s24 + $0x18] sm:$0xff]   ;;  %v1058_v16 = vld [vmem:[%s1119_s24 + $0x20] sm:$0xff]   ;;  %v1060_v18 = vld [vmem:[%s1119_s24 + $0x28] sm:$0xff]  }
  0x13   : > { %977 = vmatpush3.bf16.msra.mxu0 %v1045_v3  ;;  %1029 = vmatpush3.bf16.msra.mxu1 %v1045_v3  ;;  %v1057_v15 = vld [vmem:[%s1119_s24 + $0x58] sm:$0xff]   ;;  %v1059_v17 = vld [vmem:[%s1119_s24 + $0x60] sm:$0xff]   ;;  %v1061_v19 = vld [vmem:[%s1119_s24 + $0x68] sm:$0xff]  }
  0x14   : > { %978 = vmatprep.subr.bf16.mxu0 %v1046_v6  ;;  %1022 = vmatprep.subr.bf16.mxu1 %v1046_v6  ;;  %v1062_v20 = vld [vmem:[%s1119_s24 + $0x30] sm:$0xff]   ;;  %v1064_v22 = vld [vmem:[%s1119_s24 + $0x38] sm:$0xff]  }
  0x15   : > { %v1063_v21 = vld [vmem:[%s1119_s24 + $0x70] sm:$0xff]   ;;  %v1065_v23 = vld [vmem:[%s1119_s24 + $0x78] sm:$0xff]  }
  0x17   : > { %979 = vmatpush3.bf16.msra.mxu0 %v1046_v6  ;;  %1030 = vmatpush3.bf16.msra.mxu1 %v1046_v6 }
  0x18   : > { %980 = vmatprep.subr.bf16.mxu0 %v1047_v7  ;;  %1023 = vmatprep.subr.bf16.mxu1 %v1047_v7 }
  0x1b   : > { %981 = vmatpush3.bf16.msra.mxu0 %v1047_v7  ;;  %1031 = vmatpush3.bf16.msra.mxu1 %v1047_v7 }
  0x1c   : > { %982 = vmatprep.subr.bf16.mxu0 %v1048_v8  ;;  %1024 = vmatprep.subr.bf16.mxu1 %v1048_v8 }
  0x1f   : > { %983 = vmatpush3.bf16.msra.mxu0 %v1048_v8  ;;  %1032 = vmatpush3.bf16.msra.mxu1 %v1048_v8 }
  0x20   : > { %984 = vmatprep.subr.bf16.mxu0 %v1049_v9  ;;  %1025 = vmatprep.subr.bf16.mxu1 %v1049_v9 }
  0x23   : > { %985 = vmatpush3.bf16.msra.mxu0 %v1049_v9  ;;  %1033 = vmatpush3.bf16.msra.mxu1 %v1049_v9 }
  0x26   : > { %987 = vmatmul.mubr.bf16.vlgmr.msra.gmra.mrb[0].mxu0 %v1052_v10  ;;  %1003 = vmatmul.mubr.bf16.vlgmr.msra.gmra.mrb[0].mxu1 %v1053_v11 }
  0x27   : > { %990 = vmatprep.mubr.bf16.mxu0 %v1054_v12  ;;  %1006 = vmatprep.mubr.bf16.mxu1 %v1055_v13 }
  0x2e   : > { %991 = vmatmul.mubr.bf16.gmra.mrb[4].mxu0 %v1056_v14  ;;  %1007 = vmatmul.mubr.bf16.gmra.mrb[4].mxu1 %v1057_v15 }
  0x2f   : > { %994 = vmatprep.mubr.bf16.mxu0 %v1058_v16  ;;  %1010 = vmatprep.mubr.bf16.mxu1 %v1059_v17 }
  0x36   : > { %995 = vmatmul.mubr.bf16.gmra.mrb[8].mxu0 %v1060_v18  ;;  %1011 = vmatmul.mubr.bf16.gmra.mrb[8].mxu1 %v1061_v19 }
  0x37   : > { %998 = vmatprep.mubr.bf16.mxu0 %v1062_v20  ;;  %1014 = vmatprep.mubr.bf16.mxu1 %v1063_v21 }
  0x3e   : > { %999 = vmatmul.mubr.bf16.gmra.mrb[12].mxu0 %v1064_v22  ;;  %1015 = vmatmul.mubr.bf16.gmra.mrb[12].mxu1 %v1065_v23 }
  0xf9   : > { %v988_v24 = vpop.f32.mrb[0].mxu0  ;;  %v1004_v26 = vpop.f32.mrb[0].mxu1 }
  0xfa   : > { %v408_v27 = vpop.f32.mrb[1].mxu0  ;;  %v472_v28 = vpop.f32.mrb[1].mxu1  ;;  %v417_v31 = vadd.f32 %v988_v24, %v1155_v25  ;;  %v481_v32 = vadd.f32 %v1004_v26, %v1155_v25 }
  0xfb   : > { %v989_v29 = vpop.f32.mrb[2].mxu0  ;;  %v1005_v30 = vpop.f32.mrb[2].mxu1  ;;  %v409_v37 = vadd.f32 %v1155_v25, %v408_v27  ;;  %v473_v38 = vadd.f32 %v1155_v25, %v472_v28 }
  0xfc   : > { %v420_v33 = vadd.f32 %v989_v29, %v1155_v25  ;;  %v484_v34 = vadd.f32 %v1005_v30, %v1155_v25  ;;  %v411_v35 = vpop.f32.mrb[3].mxu0  ;;  %v475_v36 = vpop.f32.mrb[3].mxu1 }
  0xfd   : > { %v412_v39 = vadd.f32 %v1155_v25, %v411_v35  ;;  %v476_v40 = vadd.f32 %v1155_v25, %v475_v36 }
  0xfe   : > { %v859_v41 = vpack.c.bf16 %v420_v33, %v417_v31  ;;  %v899_v42 = vpack.c.bf16 %v484_v34, %v481_v32 }
  0xff   : > { %v854_v43 = vpack.c.bf16 %v412_v39, %v409_v37  ;;  %v894_v44 = vpack.c.bf16 %v476_v40, %v473_v38 }
 0x100   : > { %931 = vst [vmem:[%s1168_s13 + $0x8] sm:$0xff] %v859_v41   ;;  %939 = vst [vmem:[%s1168_s13 + $0x48] sm:$0xff] %v899_v42  }
 0x101   : > { %855 = vst [vmem:[%s1168_s13] sm:$0xff] %v854_v43   ;;  %938 = vst [vmem:[%s1168_s13 + $0x40] sm:$0xff] %v894_v44   ;;  %v992_v45 = vpop.f32.mrb[4].mxu0  ;;  %v1008_v46 = vpop.f32.mrb[4].mxu1 }
 0x102   : > { %v424_v47 = vpop.f32.mrb[5].mxu0  ;;  %v488_v48 = vpop.f32.mrb[5].mxu1  ;;  %v433_v51 = vadd.f32 %v992_v45, %v1155_v25  ;;  %v497_v52 = vadd.f32 %v1008_v46, %v1155_v25 }
 0x103   : > { %v993_v49 = vpop.f32.mrb[6].mxu0  ;;  %v1009_v50 = vpop.f32.mrb[6].mxu1  ;;  %v425_v57 = vadd.f32 %v1155_v25, %v424_v47  ;;  %v489_v58 = vadd.f32 %v1155_v25, %v488_v48 }
 0x104   : > { %v436_v53 = vadd.f32 %v993_v49, %v1155_v25  ;;  %v500_v54 = vadd.f32 %v1009_v50, %v1155_v25  ;;  %v427_v55 = vpop.f32.mrb[7].mxu0  ;;  %v491_v56 = vpop.f32.mrb[7].mxu1 }
 0x105   : > { %v428_v59 = vadd.f32 %v1155_v25, %v427_v55  ;;  %v492_v60 = vadd.f32 %v1155_v25, %v491_v56 }
 0x106   : > { %v869_v61 = vpack.c.bf16 %v436_v53, %v433_v51  ;;  %v909_v62 = vpack.c.bf16 %v500_v54, %v497_v52 }
 0x107   : > { %v864_v63 = vpack.c.bf16 %v428_v59, %v425_v57  ;;  %v904_v0 = vpack.c.bf16 %v492_v60, %v489_v58 }
 0x108   : > { %933 = vst [vmem:[%s1168_s13 + $0x18] sm:$0xff] %v869_v61   ;;  %941 = vst [vmem:[%s1168_s13 + $0x58] sm:$0xff] %v909_v62  }
 0x109   : > { %932 = vst [vmem:[%s1168_s13 + $0x10] sm:$0xff] %v864_v63   ;;  %940 = vst [vmem:[%s1168_s13 + $0x50] sm:$0xff] %v904_v0   ;;  %v996_v1 = vpop.f32.mrb[8].mxu0  ;;  %v1012_v2 = vpop.f32.mrb[8].mxu1 }
 0x10a   : > { %v440_v3 = vpop.f32.mrb[9].mxu0  ;;  %v504_v4 = vpop.f32.mrb[9].mxu1  ;;  %v449_v7 = vadd.f32 %v996_v1, %v1155_v25  ;;  %v513_v8 = vadd.f32 %v1012_v2, %v1155_v25 }
 0x10b   : > { %v997_v5 = vpop.f32.mrb[10].mxu0  ;;  %v1013_v6 = vpop.f32.mrb[10].mxu1  ;;  %v441_v13 = vadd.f32 %v1155_v25, %v440_v3  ;;  %v505_v14 = vadd.f32 %v1155_v25, %v504_v4 }
 0x10c   : > { %v452_v9 = vadd.f32 %v997_v5, %v1155_v25  ;;  %v516_v10 = vadd.f32 %v1013_v6, %v1155_v25  ;;  %v443_v11 = vpop.f32.mrb[11].mxu0  ;;  %v507_v12 = vpop.f32.mrb[11].mxu1 }
 0x10d   : > { %v444_v15 = vadd.f32 %v1155_v25, %v443_v11  ;;  %v508_v16 = vadd.f32 %v1155_v25, %v507_v12 }
 0x10e   : > { %v879_v17 = vpack.c.bf16 %v452_v9, %v449_v7  ;;  %v919_v18 = vpack.c.bf16 %v516_v10, %v513_v8 }
 0x10f   : > { %v874_v19 = vpack.c.bf16 %v444_v15, %v441_v13  ;;  %v914_v20 = vpack.c.bf16 %v508_v16, %v505_v14 }
 0x110   : > { %935 = vst [vmem:[%s1168_s13 + $0x28] sm:$0xff] %v879_v17   ;;  %943 = vst [vmem:[%s1168_s13 + $0x68] sm:$0xff] %v919_v18  }
 0x111   : > { %934 = vst [vmem:[%s1168_s13 + $0x20] sm:$0xff] %v874_v19   ;;  %942 = vst [vmem:[%s1168_s13 + $0x60] sm:$0xff] %v914_v20   ;;  %v1000_v21 = vpop.f32.mrb[12].mxu0  ;;  %v1016_v22 = vpop.f32.mrb[12].mxu1 }
 0x112   : > { %v456_v23 = vpop.f32.mrb[13].mxu0  ;;  %v520_v24 = vpop.f32.mrb[13].mxu1  ;;  %v465_v28 = vadd.f32 %v1000_v21, %v1155_v25  ;;  %v529_v29 = vadd.f32 %v1016_v22, %v1155_v25 }
 0x113   : > { %v1001_v26 = vpop.f32.mrb[14].mxu0  ;;  %v1017_v27 = vpop.f32.mrb[14].mxu1  ;;  %v457_v34 = vadd.f32 %v1155_v25, %v456_v23  ;;  %v521_v35 = vadd.f32 %v1155_v25, %v520_v24 }
 0x114   : > { %v468_v30 = vadd.f32 %v1001_v26, %v1155_v25  ;;  %v532_v31 = vadd.f32 %v1017_v27, %v1155_v25  ;;  %v459_v32 = vpop.f32.mrb[15].mxu0  ;;  %v523_v33 = vpop.f32.mrb[15].mxu1 }
 0x115   : > { %v460_v36 = vadd.f32 %v1155_v25, %v459_v32  ;;  %v524_v37 = vadd.f32 %v1155_v25, %v523_v33 }
 0x116   : > { %v889_v38 = vpack.c.bf16 %v468_v30, %v465_v28  ;;  %v929_v39 = vpack.c.bf16 %v532_v31, %v529_v29 }
 0x117   : > { %v884_v40 = vpack.c.bf16 %v460_v36, %v457_v34  ;;  %v924_v41 = vpack.c.bf16 %v524_v37, %v521_v35 }
 0x118   : > { %937 = vst [vmem:[%s1168_s13 + $0x38] sm:$0xff] %v889_v38   ;;  %945 = vst [vmem:[%s1168_s13 + $0x78] sm:$0xff] %v929_v39  }
 0x119   : > { %936 = vst [vmem:[%s1168_s13 + $0x30] sm:$0xff] %v884_v40   ;;  %944 = vst [vmem:[%s1168_s13 + $0x70] sm:$0xff] %v924_v41  }
 0x11a PF: > { %s13_s12 = sadd.s32 1, %s1072_s12  }
 0x11b   : > { %p10_p4 = scmp.ge.s32.totalorder %s13_s12, 4  }
 0x11d   :  { %12 = sbr.rel (!%p10_p4) target bundleno = 1 (0x1), region = 62 }

// kernel: faster_rcnn_forward.24
= control target key start
LH: loop header
LB: loop body
LE: loop exit
PB: predicated region body
PF: predicated region fallthrough
CT: control target
= control target key end

     0   :  { %s602_s1 = inlined_call_operand.vmem [shape: bf16[128,128], index: 1, kind: input, shape index: {}]   ;;  %s603_s0 = inlined_call_operand.vmem [shape: bf16[128,128], index: 0, kind: input, shape index: {}]   ;;  %s604_s2 = inlined_call_operand.vmem [shape: f32[1,128], index: 2, kind: input, shape index: {}]   ;;  %s605_s3 = inlined_call_operand.vmem [shape: bf16[128,128], index: 3, kind: output, shape index: {}]  }
   0x1   :  { %v491_v0 = vld [vmem:[%s602_s1] sm:$0xff]   ;;  %v492_v1 = vld [vmem:[%s602_s1 + $0x8] sm:$0xff]   ;;  %v493_v2 = vld [vmem:[%s602_s1 + $0x10] sm:$0xff]  }
   0x2   :  { %443 = vmatprep.subr.bf16.mxu0 %v491_v0  ;;  %475 = vmatprep.subr.bf16.mxu1 %v491_v0  ;;  %v494_v3 = vld [vmem:[%s602_s1 + $0x18] sm:$0xff]   ;;  %v499_v4 = vld [vmem:[%s603_s0] sm:$0xff]   ;;  %v496_v7 = vld [vmem:[%s602_s1 + $0x28] sm:$0xff]  }
   0x3   :  { %444 = vmatpush3.bf16.msra.mxu0 %v491_v0  ;;  %483 = vmatpush3.bf16.msra.mxu1 %v491_v0  ;;  %v500_v5 = vld [vmem:[%s603_s0 + $0x20] sm:$0xff]   ;;  %v497_v8 = vld [vmem:[%s602_s1 + $0x30] sm:$0xff]   ;;  %v498_v9 = vld [vmem:[%s602_s1 + $0x38] sm:$0xff]  }
   0x4   :  { %445 = vmatprep.subr.bf16.mxu0 %v492_v1  ;;  %476 = vmatprep.subr.bf16.mxu1 %v492_v1  ;;  %v495_v6 = vld [vmem:[%s602_s1 + $0x20] sm:$0xff]   ;;  %v501_v10 = vld [vmem:[%s603_s0 + $0x8] sm:$0xff]   ;;  %v503_v12 = vld [vmem:[%s603_s0 + $0x10] sm:$0xff]  }
   0x5   :  { %459 = vmatprep.mubr.bf16.mxu0 %v499_v4  ;;  %467 = vmatprep.mubr.bf16.mxu1 %v500_v5  ;;  %v502_v11 = vld [vmem:[%s603_s0 + $0x28] sm:$0xff]   ;;  %v504_v13 = vld [vmem:[%s603_s0 + $0x30] sm:$0xff]   ;;  %v505_v14 = vld [vmem:[%s603_s0 + $0x18] sm:$0xff]  }
   0x6   :  { %v506_v15 = vld [vmem:[%s603_s0 + $0x38] sm:$0xff]   ;;  %v331_v17 = vld [vmem:[%s604_s2] ss:$0 sm:$0xff] }
   0x7   :  { %446 = vmatpush3.bf16.msra.mxu0 %v492_v1  ;;  %484 = vmatpush3.bf16.msra.mxu1 %v492_v1 }
   0x8   :  { %447 = vmatprep.subr.bf16.mxu0 %v493_v2  ;;  %477 = vmatprep.subr.bf16.mxu1 %v493_v2 }
   0xb   :  { %448 = vmatpush3.bf16.msra.mxu0 %v493_v2  ;;  %485 = vmatpush3.bf16.msra.mxu1 %v493_v2 }
   0xc   :  { %449 = vmatprep.subr.bf16.mxu0 %v494_v3  ;;  %478 = vmatprep.subr.bf16.mxu1 %v494_v3 }
   0xf   :  { %450 = vmatpush3.bf16.msra.mxu0 %v494_v3  ;;  %486 = vmatpush3.bf16.msra.mxu1 %v494_v3 }
  0x10   :  { %451 = vmatprep.subr.bf16.mxu0 %v495_v6  ;;  %479 = vmatprep.subr.bf16.mxu1 %v495_v6 }
  0x13   :  { %452 = vmatpush3.bf16.msra.mxu0 %v495_v6  ;;  %487 = vmatpush3.bf16.msra.mxu1 %v495_v6 }
  0x14   :  { %453 = vmatprep.subr.bf16.mxu0 %v496_v7  ;;  %480 = vmatprep.subr.bf16.mxu1 %v496_v7 }
  0x17   :  { %454 = vmatpush3.bf16.msra.mxu0 %v496_v7  ;;  %488 = vmatpush3.bf16.msra.mxu1 %v496_v7 }
  0x18   :  { %455 = vmatprep.subr.bf16.mxu0 %v497_v8  ;;  %481 = vmatprep.subr.bf16.mxu1 %v497_v8 }
  0x1b   :  { %456 = vmatpush3.bf16.msra.mxu0 %v497_v8  ;;  %489 = vmatpush3.bf16.msra.mxu1 %v497_v8 }
  0x1c   :  { %457 = vmatprep.subr.bf16.mxu0 %v498_v9  ;;  %482 = vmatprep.subr.bf16.mxu1 %v498_v9 }
  0x1f   :  { %458 = vmatpush3.bf16.msra.mxu0 %v498_v9  ;;  %490 = vmatpush3.bf16.msra.mxu1 %v498_v9 }
  0x22   :  { %460 = vmatmul.mubr.bf16.vlgmr.msra.gmra.mrb[0].mxu0 %v501_v10  ;;  %468 = vmatmul.mubr.bf16.vlgmr.msra.gmra.mrb[0].mxu1 %v502_v11 }
  0x23   :  { %463 = vmatprep.mubr.bf16.mxu0 %v503_v12  ;;  %471 = vmatprep.mubr.bf16.mxu1 %v504_v13 }
  0x2a   :  { %464 = vmatmul.mubr.bf16.gmra.mrb[4].mxu0 %v505_v14  ;;  %472 = vmatmul.mubr.bf16.gmra.mrb[4].mxu1 %v506_v15 }
  0xf5   :  { %v461_v16 = vpop.f32.mrb[0].mxu0  ;;  %v469_v18 = vpop.f32.mrb[0].mxu1 }
  0xf6   :  { %v184_v19 = vpop.f32.mrb[1].mxu0  ;;  %v216_v20 = vpop.f32.mrb[1].mxu1  ;;  %v193_v23 = vadd.f32 %v461_v16, %v331_v17  ;;  %v225_v24 = vadd.f32 %v469_v18, %v331_v17 }
  0xf7   :  { %v462_v21 = vpop.f32.mrb[2].mxu0  ;;  %v470_v22 = vpop.f32.mrb[2].mxu1  ;;  %v185_v29 = vadd.f32 %v331_v17, %v184_v19  ;;  %v217_v30 = vadd.f32 %v331_v17, %v216_v20 }
  0xf8   :  { %v196_v25 = vadd.f32 %v462_v21, %v331_v17  ;;  %v228_v26 = vadd.f32 %v470_v22, %v331_v17  ;;  %v187_v27 = vpop.f32.mrb[3].mxu0  ;;  %v219_v28 = vpop.f32.mrb[3].mxu1 }
  0xf9   :  { %v188_v31 = vadd.f32 %v331_v17, %v187_v27  ;;  %v220_v32 = vadd.f32 %v331_v17, %v219_v28 }
  0xfa   :  { %v388_v33 = vpack.c.bf16 %v196_v25, %v193_v23  ;;  %v408_v34 = vpack.c.bf16 %v228_v26, %v225_v24 }
  0xfb   :  { %v383_v35 = vpack.c.bf16 %v188_v31, %v185_v29  ;;  %v403_v36 = vpack.c.bf16 %v220_v32, %v217_v30 }
  0xfc   :  { %420 = vst [vmem:[%s605_s3 + $0x8] sm:$0xff] %v388_v33   ;;  %424 = vst [vmem:[%s605_s3 + $0x28] sm:$0xff] %v408_v34  }
  0xfd   :  { %384 = vst [vmem:[%s605_s3] sm:$0xff] %v383_v35   ;;  %423 = vst [vmem:[%s605_s3 + $0x20] sm:$0xff] %v403_v36   ;;  %v465_v37 = vpop.f32.mrb[4].mxu0  ;;  %v473_v38 = vpop.f32.mrb[4].mxu1 }
  0xfe   :  { %v200_v39 = vpop.f32.mrb[5].mxu0  ;;  %v232_v40 = vpop.f32.mrb[5].mxu1  ;;  %v209_v43 = vadd.f32 %v465_v37, %v331_v17  ;;  %v241_v44 = vadd.f32 %v473_v38, %v331_v17 }
  0xff   :  { %v466_v41 = vpop.f32.mrb[6].mxu0  ;;  %v474_v42 = vpop.f32.mrb[6].mxu1  ;;  %v201_v49 = vadd.f32 %v331_v17, %v200_v39  ;;  %v233_v50 = vadd.f32 %v331_v17, %v232_v40 }
 0x100   :  { %v212_v45 = vadd.f32 %v466_v41, %v331_v17  ;;  %v244_v46 = vadd.f32 %v474_v42, %v331_v17  ;;  %v203_v47 = vpop.f32.mrb[7].mxu0  ;;  %v235_v48 = vpop.f32.mrb[7].mxu1 }
 0x101   :  { %v204_v51 = vadd.f32 %v331_v17, %v203_v47  ;;  %v236_v52 = vadd.f32 %v331_v17, %v235_v48 }
 0x102   :  { %v398_v53 = vpack.c.bf16 %v212_v45, %v209_v43  ;;  %v418_v54 = vpack.c.bf16 %v244_v46, %v241_v44 }
 0x103   :  { %v393_v55 = vpack.c.bf16 %v204_v51, %v201_v49  ;;  %v413_v56 = vpack.c.bf16 %v236_v52, %v233_v50 }
 0x104   :  { %422 = vst [vmem:[%s605_s3 + $0x18] sm:$0xff] %v398_v53   ;;  %426 = vst [vmem:[%s605_s3 + $0x38] sm:$0xff] %v418_v54  }
 0x105   :  { %421 = vst [vmem:[%s605_s3 + $0x10] sm:$0xff] %v393_v55   ;;  %425 = vst [vmem:[%s605_s3 + $0x30] sm:$0xff] %v413_v56  }

// kernel: faster_rcnn_forward.20
= control target key start
LH: loop header
LB: loop body
LE: loop exit
PB: predicated region body
PF: predicated region fallthrough
CT: control target
= control target key end

     0   :  { %s836_s1 = inlined_call_operand.vmem [shape: bf16[256,128], index: 1, kind: input, shape index: {}]   ;;  %s837_s0 = inlined_call_operand.vmem [shape: bf16[128,256], index: 0, kind: input, shape index: {}]   ;;  %s838_s2 = inlined_call_operand.vmem [shape: f32[1,128], index: 2, kind: input, shape index: {}]   ;;  %s839_s3 = inlined_call_operand.vmem [shape: bf16[128,128], index: 3, kind: output, shape index: {}]  }
   0x1   :  { %v635_v0 = vld [vmem:[%s836_s1 + $0x40] sm:$0xff]   ;;  %v637_v2 = vld [vmem:[%s836_s1 + $0x48] sm:$0xff]   ;;  %v639_v4 = vld [vmem:[%s836_s1 + $0x50] sm:$0xff]  }
   0x2   :  { %v636_v1 = vld [vmem:[%s836_s1] sm:$0xff]   ;;  %555 = vmatprep.subr.bf16.mxu0 %v635_v0  ;;  %619 = vmatprep.subr.bf16.mxu1 %v635_v0  ;;  %v638_v3 = vld [vmem:[%s836_s1 + $0x8] sm:$0xff]   ;;  %v640_v5 = vld [vmem:[%s836_s1 + $0x10] sm:$0xff]  }
   0x3   :  { %556 = vmatpush3.bf16.msra.mxu0 %v636_v1  ;;  %627 = vmatpush3.bf16.msra.mxu1 %v636_v1  ;;  %v641_v6 = vld [vmem:[%s836_s1 + $0x58] sm:$0xff]   ;;  %v643_v8 = vld [vmem:[%s836_s1 + $0x60] sm:$0xff]   ;;  %v645_v10 = vld [vmem:[%s836_s1 + $0x68] sm:$0xff]  }
   0x4   :  { %557 = vmatprep.subr.bf16.mxu0 %v637_v2  ;;  %620 = vmatprep.subr.bf16.mxu1 %v637_v2  ;;  %v642_v7 = vld [vmem:[%s836_s1 + $0x18] sm:$0xff]   ;;  %v644_v9 = vld [vmem:[%s836_s1 + $0x20] sm:$0xff]   ;;  %v646_v13 = vld [vmem:[%s836_s1 + $0x28] sm:$0xff]  }
   0x5   :  { %v653_v11 = vld [vmem:[%s837_s0 + $0x4] ss:$8 sps:$4 sm:$0xff]   ;;  %v647_v14 = vld [vmem:[%s836_s1 + $0x70] sm:$0xff]   ;;  %v649_v16 = vld [vmem:[%s836_s1 + $0x78] sm:$0xff]  }
   0x6   :  { %v656_v12 = vld [vmem:[%s837_s0 + $0x44] ss:$8 sps:$4 sm:$0xff]   ;;  %278 = vmatprep.mubr.bf16.mxu0 %v653_v11  ;;  %v648_v15 = vld [vmem:[%s836_s1 + $0x30] sm:$0xff]   ;;  %v650_v17 = vld [vmem:[%s836_s1 + $0x38] sm:$0xff]  }
   0x7   :  { %558 = vmatpush3.bf16.msra.mxu0 %v638_v3  ;;  %628 = vmatpush3.bf16.msra.mxu1 %v638_v3  ;;  %v651_v18 = vld [vmem:[%s837_s0] ss:$8 sps:$4 sm:$0xff]   ;;  %v657_v20 = vld [vmem:[%s837_s0 + $0x14] ss:$8 sps:$4 sm:$0xff]   ;;  %v661_v22 = vld [vmem:[%s837_s0 + $0x10] ss:$8 sps:$4 sm:$0xff]  }
   0x8   :  { %559 = vmatprep.subr.bf16.mxu0 %v639_v4  ;;  %621 = vmatprep.subr.bf16.mxu1 %v639_v4  ;;  %v654_v19 = vld [vmem:[%s837_s0 + $0x40] ss:$8 sps:$4 sm:$0xff]   ;;  %v659_v21 = vld [vmem:[%s837_s0 + $0x54] ss:$8 sps:$4 sm:$0xff]   ;;  %v662_v23 = vld [vmem:[%s837_s0 + $0x50] ss:$8 sps:$4 sm:$0xff]  }
   0x9   :  { %310 = vmatprep.mubr.bf16.mxu1 %v656_v12  ;;  %v663_v24 = vld [vmem:[%s837_s0 + $0x24] ss:$8 sps:$4 sm:$0xff]   ;;  %v667_v26 = vld [vmem:[%s837_s0 + $0x20] ss:$8 sps:$4 sm:$0xff]   ;;  %v669_v28 = vld [vmem:[%s837_s0 + $0x34] ss:$8 sps:$4 sm:$0xff]  }
   0xa   :  { %v665_v25 = vld [vmem:[%s837_s0 + $0x64] ss:$8 sps:$4 sm:$0xff]   ;;  %v668_v27 = vld [vmem:[%s837_s0 + $0x60] ss:$8 sps:$4 sm:$0xff]   ;;  %v671_v29 = vld [vmem:[%s837_s0 + $0x74] ss:$8 sps:$4 sm:$0xff]  }
   0xb   :  { %560 = vmatpush3.bf16.msra.mxu0 %v640_v5  ;;  %629 = vmatpush3.bf16.msra.mxu1 %v640_v5  ;;  %v673_v30 = vld [vmem:[%s837_s0 + $0x30] ss:$8 sps:$4 sm:$0xff]   ;;  %v794_v34 = vld [vmem:[%s838_s2] ss:$0 sm:$0xff] }
   0xc   :  { %561 = vmatprep.subr.bf16.mxu0 %v641_v6  ;;  %622 = vmatprep.subr.bf16.mxu1 %v641_v6  ;;  %v674_v31 = vld [vmem:[%s837_s0 + $0x70] ss:$8 sps:$4 sm:$0xff]  }
   0xf   :  { %562 = vmatpush3.bf16.msra.mxu0 %v642_v7  ;;  %630 = vmatpush3.bf16.msra.mxu1 %v642_v7 }
  0x10   :  { %563 = vmatprep.subr.bf16.mxu0 %v643_v8  ;;  %623 = vmatprep.subr.bf16.mxu1 %v643_v8 }
  0x13   :  { %564 = vmatpush3.bf16.msra.mxu0 %v644_v9  ;;  %631 = vmatpush3.bf16.msra.mxu1 %v644_v9 }
  0x14   :  { %565 = vmatprep.subr.bf16.mxu0 %v645_v10  ;;  %624 = vmatprep.subr.bf16.mxu1 %v645_v10 }
  0x17   :  { %566 = vmatpush3.bf16.msra.mxu0 %v646_v13  ;;  %632 = vmatpush3.bf16.msra.mxu1 %v646_v13 }
  0x18   :  { %567 = vmatprep.subr.bf16.mxu0 %v647_v14  ;;  %625 = vmatprep.subr.bf16.mxu1 %v647_v14 }
  0x1b   :  { %568 = vmatpush3.bf16.msra.mxu0 %v648_v15  ;;  %633 = vmatpush3.bf16.msra.mxu1 %v648_v15 }
  0x1c   :  { %569 = vmatprep.subr.bf16.mxu0 %v649_v16  ;;  %626 = vmatprep.subr.bf16.mxu1 %v649_v16 }
  0x1f   :  { %570 = vmatpush3.bf16.msra.mxu0 %v650_v17  ;;  %634 = vmatpush3.bf16.msra.mxu1 %v650_v17 }
  0x22   :  { %279 = vmatmul.mubr.bf16.vlgmr.msra.gmra.mrb[0].mxu0 %v651_v18  ;;  %311 = vmatmul.mubr.bf16.vlgmr.msra.gmra.mrb[0].mxu1 %v654_v19 }
  0x23   :  { %286 = vmatprep.mubr.bf16.mxu0 %v657_v20  ;;  %318 = vmatprep.mubr.bf16.mxu1 %v659_v21 }
  0x2a   :  { %287 = vmatmul.mubr.bf16.gmra.mrb[4].mxu0 %v661_v22  ;;  %319 = vmatmul.mubr.bf16.gmra.mrb[4].mxu1 %v662_v23 }
  0x2b   :  { %294 = vmatprep.mubr.bf16.mxu0 %v663_v24  ;;  %326 = vmatprep.mubr.bf16.mxu1 %v665_v25 }
  0x32   :  { %295 = vmatmul.mubr.bf16.gmra.mrb[8].mxu0 %v667_v26  ;;  %327 = vmatmul.mubr.bf16.gmra.mrb[8].mxu1 %v668_v27 }
  0x33   :  { %302 = vmatprep.mubr.bf16.mxu0 %v669_v28  ;;  %334 = vmatprep.mubr.bf16.mxu1 %v671_v29 }
  0x3a   :  { %303 = vmatmul.mubr.bf16.gmra.mrb[12].mxu0 %v673_v30  ;;  %335 = vmatmul.mubr.bf16.gmra.mrb[12].mxu1 %v674_v31 }
  0xf5   :  { %v571_v32 = vpop.f32.mrb[0].mxu0  ;;  %v595_v33 = vpop.f32.mrb[0].mxu1 }
  0xf6   :  { %v572_v35 = vpop.f32.mrb[1].mxu0  ;;  %v596_v36 = vpop.f32.mrb[1].mxu1 }
  0xf7   :  { %v573_v37 = vadd.f32 %v572_v35, %v571_v32  ;;  %v597_v38 = vadd.f32 %v596_v36, %v595_v33  ;;  %v574_v39 = vpop.f32.mrb[2].mxu0  ;;  %v598_v40 = vpop.f32.mrb[2].mxu1 }
  0xf8   :  { %v575_v41 = vpop.f32.mrb[3].mxu0  ;;  %v599_v42 = vpop.f32.mrb[3].mxu1 }
  0xf9   :  { %v281_v43 = vadd.f32 %v573_v37, %v794_v34  ;;  %v313_v44 = vadd.f32 %v597_v38, %v794_v34  ;;  %v576_v45 = vadd.f32 %v575_v41, %v574_v39  ;;  %v600_v46 = vadd.f32 %v599_v42, %v598_v40 }
  0xfb   :  { %v284_v47 = vadd.f32 %v576_v45, %v794_v34  ;;  %v316_v48 = vadd.f32 %v600_v46, %v794_v34  ;;  %v343_v49 = vmax.f32 %v281_v43, 0.0  ;;  %v351_v50 = vmax.f32 %v313_v44, 0.0 }
  0xfd   :  { %v344_v51 = vmax.f32 %v284_v47, 0.0  ;;  %v352_v52 = vmax.f32 %v316_v48, 0.0  ;;  %v577_v53 = vpop.f32.mrb[4].mxu0  ;;  %v601_v54 = vpop.f32.mrb[4].mxu1 }
  0xfe   :  { %v578_v55 = vpop.f32.mrb[5].mxu0  ;;  %v602_v56 = vpop.f32.mrb[5].mxu1 }
  0xff   :  { %v511_v57 = vpack.c.bf16 %v344_v51, %v343_v49  ;;  %v531_v58 = vpack.c.bf16 %v352_v52, %v351_v50  ;;  %v579_v59 = vadd.f32 %v578_v55, %v577_v53  ;;  %v603_v60 = vadd.f32 %v602_v56, %v601_v54  ;;  %v580_v61 = vpop.f32.mrb[6].mxu0  ;;  %v604_v62 = vpop.f32.mrb[6].mxu1 }
 0x100   :  { %v581_v63 = vpop.f32.mrb[7].mxu0  ;;  %v605_v0 = vpop.f32.mrb[7].mxu1 }
 0x101   :  { %512 = vst [vmem:[%s839_s3] sm:$0xff] %v511_v57   ;;  %551 = vst [vmem:[%s839_s3 + $0x20] sm:$0xff] %v531_v58   ;;  %v289_v1 = vadd.f32 %v579_v59, %v794_v34  ;;  %v321_v2 = vadd.f32 %v603_v60, %v794_v34  ;;  %v582_v3 = vadd.f32 %v581_v63, %v580_v61 }
 0x102   :  { %v606_v4 = vadd.f32 %v605_v0, %v604_v62 }
 0x103   :  { %v292_v5 = vadd.f32 %v582_v3, %v794_v34  ;;  %v345_v7 = vmax.f32 %v289_v1, 0.0  ;;  %v353_v8 = vmax.f32 %v321_v2, 0.0 }
 0x104   :  { %v324_v6 = vadd.f32 %v606_v4, %v794_v34 }
 0x105   :  { %v346_v9 = vmax.f32 %v292_v5, 0.0  ;;  %v583_v11 = vpop.f32.mrb[8].mxu0  ;;  %v607_v12 = vpop.f32.mrb[8].mxu1 }
 0x106   :  { %v354_v10 = vmax.f32 %v324_v6, 0.0  ;;  %v584_v13 = vpop.f32.mrb[9].mxu0  ;;  %v608_v14 = vpop.f32.mrb[9].mxu1 }
 0x107   :  { %v516_v15 = vpack.c.bf16 %v346_v9, %v345_v7  ;;  %v585_v17 = vadd.f32 %v584_v13, %v583_v11  ;;  %v609_v18 = vadd.f32 %v608_v14, %v607_v12  ;;  %v586_v19 = vpop.f32.mrb[10].mxu0  ;;  %v610_v20 = vpop.f32.mrb[10].mxu1 }
 0x108   :  { %v536_v16 = vpack.c.bf16 %v354_v10, %v353_v8  ;;  %v587_v21 = vpop.f32.mrb[11].mxu0  ;;  %v611_v22 = vpop.f32.mrb[11].mxu1 }
 0x109   :  { %548 = vst [vmem:[%s839_s3 + $0x8] sm:$0xff] %v516_v15   ;;  %v297_v23 = vadd.f32 %v585_v17, %v794_v34  ;;  %v329_v24 = vadd.f32 %v609_v18, %v794_v34  ;;  %v588_v25 = vadd.f32 %v587_v21, %v586_v19  ;;  %v612_v26 = vadd.f32 %v611_v22, %v610_v20 }
 0x10a   :  { %552 = vst [vmem:[%s839_s3 + $0x28] sm:$0xff] %v536_v16  }
 0x10b   :  { %v300_v27 = vadd.f32 %v588_v25, %v794_v34  ;;  %v332_v28 = vadd.f32 %v612_v26, %v794_v34  ;;  %v347_v29 = vmax.f32 %v297_v23, 0.0  ;;  %v355_v30 = vmax.f32 %v329_v24, 0.0 }
 0x10d   :  { %v348_v31 = vmax.f32 %v300_v27, 0.0  ;;  %v356_v32 = vmax.f32 %v332_v28, 0.0  ;;  %v589_v33 = vpop.f32.mrb[12].mxu0  ;;  %v613_v35 = vpop.f32.mrb[12].mxu1 }
 0x10e   :  { %v590_v36 = vpop.f32.mrb[13].mxu0  ;;  %v614_v37 = vpop.f32.mrb[13].mxu1 }
 0x10f   :  { %v521_v38 = vpack.c.bf16 %v348_v31, %v347_v29  ;;  %v541_v39 = vpack.c.bf16 %v356_v32, %v355_v30  ;;  %v591_v40 = vadd.f32 %v590_v36, %v589_v33  ;;  %v615_v41 = vadd.f32 %v614_v37, %v613_v35  ;;  %v592_v42 = vpop.f32.mrb[14].mxu0  ;;  %v616_v43 = vpop.f32.mrb[14].mxu1 }
 0x110   :  { %v593_v44 = vpop.f32.mrb[15].mxu0  ;;  %v617_v45 = vpop.f32.mrb[15].mxu1 }
 0x111   :  { %549 = vst [vmem:[%s839_s3 + $0x10] sm:$0xff] %v521_v38   ;;  %553 = vst [vmem:[%s839_s3 + $0x30] sm:$0xff] %v541_v39   ;;  %v305_v46 = vadd.f32 %v591_v40, %v794_v34  ;;  %v337_v47 = vadd.f32 %v615_v41, %v794_v34  ;;  %v594_v48 = vadd.f32 %v593_v44, %v592_v42 }
 0x112   :  { %v618_v49 = vadd.f32 %v617_v45, %v616_v43 }
 0x113   :  { %v308_v50 = vadd.f32 %v594_v48, %v794_v34  ;;  %v349_v52 = vmax.f32 %v305_v46, 0.0  ;;  %v357_v53 = vmax.f32 %v337_v47, 0.0 }
 0x114   :  { %v340_v51 = vadd.f32 %v618_v49, %v794_v34 }
 0x115   :  { %v350_v54 = vmax.f32 %v308_v50, 0.0 }
 0x116   :  { %v358_v55 = vmax.f32 %v340_v51, 0.0 }
 0x117   :  { %v526_v56 = vpack.c.bf16 %v350_v54, %v349_v52 }
 0x118   :  { %v546_v57 = vpack.c.bf16 %v358_v55, %v357_v53 }
 0x119   :  { %550 = vst [vmem:[%s839_s3 + $0x18] sm:$0xff] %v526_v56  }
 0x11a   :  { %554 = vst [vmem:[%s839_s3 + $0x38] sm:$0xff] %v546_v57  }

// kernel: faster_rcnn_forward.25
= control target key start
LH: loop header
LB: loop body
LE: loop exit
PB: predicated region body
PF: predicated region fallthrough
CT: control target
= control target key end

     0   :  { %s304_s1 = inlined_call_operand.vmem [shape: bf16[128,128], index: 1, kind: input, shape index: {}]   ;;  %s305_s0 = inlined_call_operand.vmem [shape: bf16[32,128], index: 0, kind: input, shape index: {}]   ;;  %s306_s2 = inlined_call_operand.vmem [shape: f32[1,128], index: 2, kind: input, shape index: {}]   ;;  %s307_s3 = inlined_call_operand.vmem [shape: bf16[32,128], index: 3, kind: output, shape index: {}]  }
   0x1   :  { %v235_v0 = vld [vmem:[%s304_s1] sm:$0xff]   ;;  %v236_v1 = vld [vmem:[%s304_s1 + $0x8] sm:$0xff]   ;;  %v237_v2 = vld [vmem:[%s304_s1 + $0x10] sm:$0xff]  }
   0x2   :  { %215 = vmatprep.subr.bf16.mxu0 %v235_v0  ;;  %v238_v3 = vld [vmem:[%s304_s1 + $0x18] sm:$0xff]   ;;  %v243_v4 = vld [vmem:[%s305_s0] sm:$0xff]   ;;  %v240_v6 = vld [vmem:[%s304_s1 + $0x28] sm:$0xff]  }
   0x3   :  { %216 = vmatpush3.bf16.msra.mxu0 %v235_v0  ;;  %231 = vmatprep.mubr.bf16.mxu0 %v243_v4  ;;  %v239_v5 = vld [vmem:[%s304_s1 + $0x20] sm:$0xff]   ;;  %v241_v7 = vld [vmem:[%s304_s1 + $0x30] sm:$0xff]   ;;  %v242_v8 = vld [vmem:[%s304_s1 + $0x38] sm:$0xff]  }
   0x4   :  { %217 = vmatprep.subr.bf16.mxu0 %v236_v1  ;;  %v244_v9 = vld [vmem:[%s305_s0 + $0x8] sm:$0xff]   ;;  %v175_v11 = vld [vmem:[%s306_s2] ss:$0 sm:$0xff] }
   0x7   :  { %218 = vmatpush3.bf16.msra.mxu0 %v236_v1 }
   0x8   :  { %219 = vmatprep.subr.bf16.mxu0 %v237_v2 }
   0xb   :  { %220 = vmatpush3.bf16.msra.mxu0 %v237_v2 }
   0xc   :  { %221 = vmatprep.subr.bf16.mxu0 %v238_v3 }
   0xf   :  { %222 = vmatpush3.bf16.msra.mxu0 %v238_v3 }
  0x10   :  { %223 = vmatprep.subr.bf16.mxu0 %v239_v5 }
  0x13   :  { %224 = vmatpush3.bf16.msra.mxu0 %v239_v5 }
  0x14   :  { %225 = vmatprep.subr.bf16.mxu0 %v240_v6 }
  0x17   :  { %226 = vmatpush3.bf16.msra.mxu0 %v240_v6 }
  0x18   :  { %227 = vmatprep.subr.bf16.mxu0 %v241_v7 }
  0x1b   :  { %228 = vmatpush3.bf16.msra.mxu0 %v241_v7 }
  0x1c   :  { %229 = vmatprep.subr.bf16.mxu0 %v242_v8 }
  0x1f   :  { %230 = vmatpush3.bf16.msra.mxu0 %v242_v8 }
  0x22   :  { %232 = vmatmul.mubr.bf16.vlgmr.msra.gmra.mrb[0].mxu0 %v244_v9 }
  0xf5   :  { %v233_v10 = vpop.f32.mrb[0].mxu0 }
  0xf6   :  { %v136_v12 = vpop.f32.mrb[1].mxu0  ;;  %v145_v14 = vadd.f32 %v233_v10, %v175_v11 }
  0xf7   :  { %v234_v13 = vpop.f32.mrb[2].mxu0  ;;  %v137_v17 = vadd.f32 %v175_v11, %v136_v12 }
  0xf8   :  { %v148_v15 = vadd.f32 %v234_v13, %v175_v11  ;;  %v139_v16 = vpop.f32.mrb[3].mxu0 }
  0xf9   :  { %v140_v18 = vadd.f32 %v175_v11, %v139_v16 }
  0xfa   :  { %v202_v19 = vpack.c.bf16 %v148_v15, %v145_v14 }
  0xfb   :  { %v197_v20 = vpack.c.bf16 %v140_v18, %v137_v17 }
  0xfc   :  { %204 = vst [vmem:[%s307_s3 + $0x8] sm:$0xff] %v202_v19  }
  0xfd   :  { %198 = vst [vmem:[%s307_s3] sm:$0xff] %v197_v20  }

// kernel: faster_rcnn_forward.21
= control target key start
LH: loop header
LB: loop body
LE: loop exit
PB: predicated region body
PF: predicated region fallthrough
CT: control target
= control target key end

     0   :  { %s639_s1 = inlined_call_operand.vmem [shape: bf16[384,128], index: 1, kind: input, shape index: {}]   ;;  %s640_s0 = inlined_call_operand.vmem [shape: bf16[32,384], index: 0, kind: input, shape index: {}]   ;;  %s641_s2 = inlined_call_operand.vmem [shape: f32[1,128], index: 2, kind: input, shape index: {}]   ;;  %s642_s3 = inlined_call_operand.vmem [shape: bf16[32,128], index: 3, kind: output, shape index: {}]  }
   0x1   :  { %v488_v0 = vld [vmem:[%s639_s1 + $0x40] sm:$0xff]   ;;  %v490_v2 = vld [vmem:[%s639_s1 + $0x48] sm:$0xff]   ;;  %v493_v5 = vld [vmem:[%s639_s1 + $0x50] sm:$0xff]  }
   0x2   :  { %v489_v1 = vld [vmem:[%s639_s1] sm:$0xff]   ;;  %430 = vmatprep.subr.bf16.mxu0 %v488_v0  ;;  %v492_v4 = vld [vmem:[%s639_s1 + $0x8] sm:$0xff]   ;;  %v495_v7 = vld [vmem:[%s639_s1 + $0x10] sm:$0xff]  }
   0x3   :  { %431 = vmatpush3.bf16.msra.mxu0 %v489_v1  ;;  %v491_v3 = vld [vmem:[%s639_s1 + $0x80] sm:$0xff]   ;;  %v494_v6 = vld [vmem:[%s639_s1 + $0x88] sm:$0xff]   ;;  %v496_v8 = vld [vmem:[%s639_s1 + $0x58] sm:$0xff]  }
   0x4   :  { %432 = vmatprep.subr.bf16.mxu0 %v490_v2  ;;  %468 = vmatprep.subr.bf16.mxu1 %v491_v3  ;;  %v497_v9 = vld [vmem:[%s639_s1 + $0x90] sm:$0xff]   ;;  %v498_v10 = vld [vmem:[%s639_s1 + $0x18] sm:$0xff]   ;;  %v499_v11 = vld [vmem:[%s639_s1 + $0x60] sm:$0xff]  }
   0x5   :  { %469 = vmatpush3.bf16.msra.mxu1 %v491_v3  ;;  %v500_v12 = vld [vmem:[%s639_s1 + $0x98] sm:$0xff]   ;;  %v501_v13 = vld [vmem:[%s639_s1 + $0x20] sm:$0xff]   ;;  %v502_v15 = vld [vmem:[%s639_s1 + $0x68] sm:$0xff]  }
   0x6   :  { %470 = vmatprep.subr.bf16.mxu1 %v494_v6  ;;  %v503_v14 = vld [vmem:[%s639_s1 + $0xa0] sm:$0xff]   ;;  %v504_v16 = vld [vmem:[%s639_s1 + $0x28] sm:$0xff]   ;;  %v505_v18 = vld [vmem:[%s639_s1 + $0x70] sm:$0xff]  }
   0x7   :  { %433 = vmatpush3.bf16.msra.mxu0 %v492_v4  ;;  %v506_v17 = vld [vmem:[%s639_s1 + $0xa8] sm:$0xff]   ;;  %v507_v19 = vld [vmem:[%s639_s1 + $0x30] sm:$0xff]   ;;  %v508_v20 = vld [vmem:[%s639_s1 + $0x78] sm:$0xff]  }
   0x8   :  { %434 = vmatprep.subr.bf16.mxu0 %v493_v5  ;;  %v509_v21 = vld [vmem:[%s639_s1 + $0xb0] sm:$0xff]   ;;  %v510_v23 = vld [vmem:[%s639_s1 + $0x38] sm:$0xff]   ;;  %v511_v26 = vld [vmem:[%s640_s0] ss:$12 sps:$4 sm:$0xff]  }
   0x9   :  { %471 = vmatpush3.bf16.msra.mxu1 %v494_v6  ;;  %v513_v22 = vld [vmem:[%s640_s0 + $0x4] ss:$12 sps:$4 sm:$0xff]   ;;  %v515_v24 = vld [vmem:[%s640_s0 + $0x8] ss:$12 sps:$4 sm:$0xff]   ;;  %v514_v25 = vld [vmem:[%s639_s1 + $0xb8] sm:$0xff]  }
   0xa   :  { %472 = vmatprep.subr.bf16.mxu1 %v497_v9  ;;  %286 = vmatprep.mubr.bf16.mxu0 %v513_v22  ;;  %v517_v27 = vld [vmem:[%s640_s0 + $0x1c] ss:$12 sps:$4 sm:$0xff]   ;;  %v516_v28 = vld [vmem:[%s640_s0 + $0x20] ss:$12 sps:$4 sm:$0xff]   ;;  %v519_v29 = vld [vmem:[%s640_s0 + $0x18] ss:$12 sps:$4 sm:$0xff]  }
   0xb   :  { %435 = vmatpush3.bf16.msra.mxu0 %v495_v7  ;;  %484 = vmatprep.mubr.bf16.mxu1 %v515_v24  ;;  %v380_v32 = vld [vmem:[%s641_s2] ss:$0 sm:$0xff] }
   0xc   :  { %436 = vmatprep.subr.bf16.mxu0 %v496_v8 }
   0xd   :  { %473 = vmatpush3.bf16.msra.mxu1 %v497_v9 }
   0xe   :  { %474 = vmatprep.subr.bf16.mxu1 %v500_v12 }
   0xf   :  { %437 = vmatpush3.bf16.msra.mxu0 %v498_v10 }
  0x10   :  { %438 = vmatprep.subr.bf16.mxu0 %v499_v11 }
  0x11   :  { %475 = vmatpush3.bf16.msra.mxu1 %v500_v12 }
  0x12   :  { %476 = vmatprep.subr.bf16.mxu1 %v503_v14 }
  0x13   :  { %439 = vmatpush3.bf16.msra.mxu0 %v501_v13 }
  0x14   :  { %440 = vmatprep.subr.bf16.mxu0 %v502_v15 }
  0x15   :  { %477 = vmatpush3.bf16.msra.mxu1 %v503_v14 }
  0x16   :  { %478 = vmatprep.subr.bf16.mxu1 %v506_v17 }
  0x17   :  { %441 = vmatpush3.bf16.msra.mxu0 %v504_v16 }
  0x18   :  { %442 = vmatprep.subr.bf16.mxu0 %v505_v18 }
  0x19   :  { %479 = vmatpush3.bf16.msra.mxu1 %v506_v17 }
  0x1a   :  { %480 = vmatprep.subr.bf16.mxu1 %v509_v21 }
  0x1b   :  { %443 = vmatpush3.bf16.msra.mxu0 %v507_v19 }
  0x1c   :  { %444 = vmatprep.subr.bf16.mxu0 %v508_v20 }
  0x1d   :  { %481 = vmatpush3.bf16.msra.mxu1 %v509_v21 }
  0x1e   :  { %482 = vmatprep.subr.bf16.mxu1 %v514_v25 }
  0x1f   :  { %445 = vmatpush3.bf16.msra.mxu0 %v510_v23 }
  0x21   :  { %483 = vmatpush3.bf16.msra.mxu1 %v514_v25 }
  0x22   :  { %287 = vmatmul.mubr.bf16.vlgmr.msra.gmra.mrb[0].mxu0 %v511_v26 }
  0x23   :  { %294 = vmatprep.mubr.bf16.mxu0 %v517_v27 }
  0x24   :  { %485 = vmatmul.mubr.bf16.vlgmr.msra.gmra.mrb[0].mxu1 %v516_v28 }
  0x2a   :  { %295 = vmatmul.mubr.bf16.gmra.mrb[4].mxu0 %v519_v29 }
  0xf5   :  { %v446_v30 = vpop.f32.mrb[0].mxu0 }
  0xf6   :  { %v447_v31 = vpop.f32.mrb[1].mxu0 }
  0xf7   :  { %v448_v33 = vadd.f32 %v447_v31, %v446_v30  ;;  %v449_v34 = vpop.f32.mrb[2].mxu0  ;;  %v486_v36 = vpop.f32.mrb[0].mxu1 }
  0xf8   :  { %v450_v35 = vpop.f32.mrb[3].mxu0  ;;  %v337_v39 = vpop.f32.mrb[1].mxu1 }
  0xf9   :  { %v451_v37 = vadd.f32 %v450_v35, %v449_v34  ;;  %v289_v38 = vadd.f32 %v448_v33, %v380_v32  ;;  %v487_v40 = vpop.f32.mrb[2].mxu1 }
  0xfa   :  { %v340_v43 = vpop.f32.mrb[3].mxu1 }
  0xfb   :  { %v338_v41 = vadd.f32 %v337_v39, %v289_v38  ;;  %v292_v42 = vadd.f32 %v451_v37, %v380_v32 }
  0xfd   :  { %v341_v44 = vadd.f32 %v340_v43, %v292_v42  ;;  %v452_v45 = vpop.f32.mrb[4].mxu0  ;;  %v352_v47 = vmax.f32 %v338_v41, 0.0 }
  0xfe   :  { %v453_v46 = vpop.f32.mrb[5].mxu0 }
  0xff   :  { %v353_v48 = vmax.f32 %v341_v44, 0.0  ;;  %v454_v49 = vadd.f32 %v453_v46, %v452_v45  ;;  %v455_v50 = vpop.f32.mrb[6].mxu0 }
 0x100   :  { %v456_v51 = vpop.f32.mrb[7].mxu0 }
 0x101   :  { %v422_v52 = vpack.c.bf16 %v353_v48, %v352_v47  ;;  %v297_v53 = vadd.f32 %v454_v49, %v380_v32  ;;  %v457_v54 = vadd.f32 %v456_v51, %v455_v50 }
 0x103   :  { %423 = vst [vmem:[%s642_s3] sm:$0xff] %v422_v52   ;;  %v346_v55 = vadd.f32 %v486_v36, %v297_v53  ;;  %v300_v56 = vadd.f32 %v457_v54, %v380_v32 }
 0x105   :  { %v349_v57 = vadd.f32 %v487_v40, %v300_v56  ;;  %v354_v58 = vmax.f32 %v346_v55, 0.0 }
 0x107   :  { %v355_v59 = vmax.f32 %v349_v57, 0.0 }
 0x109   :  { %v427_v60 = vpack.c.bf16 %v355_v59, %v354_v58 }
 0x10b   :  { %429 = vst [vmem:[%s642_s3 + $0x8] sm:$0xff] %v427_v60  }

// kernel: faster_rcnn_forward.26
= control target key start
LH: loop header
LB: loop body
LE: loop exit
PB: predicated region body
PF: predicated region fallthrough
CT: control target
= control target key end

     0   :  { %v208_v0 = vmov 0.0   ;;  %vm209_vm0 = vmmov 0   ;;  %s263_s1 = inlined_call_operand.vmem [shape: bf16[128,128], index: 1, kind: input, shape index: {}]   ;;  %s264_s0 = inlined_call_operand.vmem [shape: bf16[16,128], index: 0, kind: input, shape index: {}]   ;;  %s265_s2 = inlined_call_operand.vmem [shape: f32[1,128], index: 2, kind: input, shape index: {}]   ;;  %s266_s3 = inlined_call_operand.vmem [shape: bf16[16,128], index: 3, kind: output, shape index: {}]  }
   0x1   :  { %177 = vmatprep.subr.bf16.mxu0 %v208_v0  ;;  %v199_v1 = vld [vmem:[%s263_s1] sm:$0xff]   ;;  %193 = vmatprep.mubr.msk.bf16.mxu0 %vm209_vm0, %v208_v0  ;;  %v200_v2 = vld [vmem:[%s263_s1 + $0x8] sm:$0xff]   ;;  %v201_v3 = vld [vmem:[%s263_s1 + $0x10] sm:$0xff]  }
   0x2   :  { %178 = vmatpush3.bf16.msra.mxu0 %v199_v1  ;;  %v202_v4 = vld [vmem:[%s263_s1 + $0x18] sm:$0xff]   ;;  %v203_v5 = vld [vmem:[%s263_s1 + $0x20] sm:$0xff]   ;;  %v204_v6 = vld [vmem:[%s263_s1 + $0x28] sm:$0xff]  }
   0x3   :  { %179 = vmatprep.subr.bf16.mxu0 %v208_v0  ;;  %v205_v7 = vld [vmem:[%s263_s1 + $0x30] sm:$0xff]   ;;  %v206_v8 = vld [vmem:[%s263_s1 + $0x38] sm:$0xff]   ;;  %v207_v9 = vld [vmem:[%s264_s0] sm:$0xff]  }
   0x4   :  { %v149_v10 = vld [vmem:[%s265_s2] ss:$0 sm:$0xff] }
   0x6   :  { %180 = vmatpush3.bf16.msra.mxu0 %v200_v2 }
   0x7   :  { %181 = vmatprep.subr.bf16.mxu0 %v208_v0 }
   0xa   :  { %182 = vmatpush3.bf16.msra.mxu0 %v201_v3 }
   0xb   :  { %183 = vmatprep.subr.bf16.mxu0 %v208_v0 }
   0xe   :  { %184 = vmatpush3.bf16.msra.mxu0 %v202_v4 }
   0xf   :  { %185 = vmatprep.subr.bf16.mxu0 %v208_v0 }
  0x12   :  { %186 = vmatpush3.bf16.msra.mxu0 %v203_v5 }
  0x13   :  { %187 = vmatprep.subr.bf16.mxu0 %v208_v0 }
  0x16   :  { %188 = vmatpush3.bf16.msra.mxu0 %v204_v6 }
  0x17   :  { %189 = vmatprep.subr.bf16.mxu0 %v208_v0 }
  0x1a   :  { %190 = vmatpush3.bf16.msra.mxu0 %v205_v7 }
  0x1b   :  { %191 = vmatprep.subr.bf16.mxu0 %v208_v0 }
  0x1e   :  { %192 = vmatpush3.bf16.msra.mxu0 %v206_v8 }
  0x21   :  { %194 = vmatmul.mubr.bf16.vlgmr.msra.gmra.mrb[0].mxu0 %v207_v9 }
  0xf4   :  { %v128_v11 = vpop.f32.mrb[0].mxu0 }
  0xf5   :  { %v195_v12 = vpop.f32.mrb[1].mxu0  ;;  %v129_v14 = vadd.f32 %v149_v10, %v128_v11 }
  0xf6   :  { %v131_v13 = vpop.f32.mrb[2].mxu0 }
  0xf7   :  { %v132_v15 = vadd.f32 %v149_v10, %v131_v13  ;;  %v196_v16 = vpop.f32.mrb[3].mxu0 }
  0xf9   :  { %v166_v17 = vpack.c.bf16 %v132_v15, %v129_v14 }
  0xfb   :  { %167 = vst [vmem:[%s266_s3] sm:$0xff] %v166_v17  }

// kernel: faster_rcnn_forward.22
= control target key start
LH: loop header
LB: loop body
LE: loop exit
PB: predicated region body
PF: predicated region fallthrough
CT: control target
= control target key end

     0   :  { %v690_v33 = vmov 0.0   ;;  %vm691_vm0 = vmmov 0   ;;  %s853_s1 = inlined_call_operand.vmem [shape: bf16[640,128], index: 1, kind: input, shape index: {}]   ;;  %s854_s0 = inlined_call_operand.vmem [shape: bf16[16,640], index: 0, kind: input, shape index: {}]   ;;  %s855_s2 = inlined_call_operand.vmem [shape: f32[1,128], index: 2, kind: input, shape index: {}]   ;;  %s856_s3 = inlined_call_operand.vmem [shape: bf16[16,128], index: 3, kind: output, shape index: {}]  }
   0x1   :  { %v643_v0 = vld [vmem:[%s853_s1 + $0x40] sm:$0xff]   ;;  %v647_v4 = vld [vmem:[%s853_s1 + $0x48] sm:$0xff]   ;;  %v651_v8 = vld [vmem:[%s853_s1 + $0x50] sm:$0xff]  }
   0x2   :  { %v644_v1 = vld [vmem:[%s853_s1] sm:$0xff]   ;;  %568 = vmatprep.subr.bf16.mxu0 %v643_v0  ;;  %v648_v5 = vld [vmem:[%s853_s1 + $0x8] sm:$0xff]   ;;  %v652_v9 = vld [vmem:[%s853_s1 + $0x10] sm:$0xff]  }
   0x3   :  { %v645_v2 = vld [vmem:[%s853_s1 + $0xc0] sm:$0xff]   ;;  %569 = vmatpush3.bf16.msra.mxu0 %v644_v1  ;;  %v649_v6 = vld [vmem:[%s853_s1 + $0xc8] sm:$0xff]   ;;  %v653_v10 = vld [vmem:[%s853_s1 + $0xd0] sm:$0xff]  }
   0x4   :  { %v646_v3 = vld [vmem:[%s853_s1 + $0x80] sm:$0xff]   ;;  %590 = vmatprep.subr.bf16.mxu1 %v645_v2  ;;  %570 = vmatprep.subr.bf16.mxu0 %v647_v4  ;;  %v650_v7 = vld [vmem:[%s853_s1 + $0x88] sm:$0xff]   ;;  %v654_v11 = vld [vmem:[%s853_s1 + $0x90] sm:$0xff]  }
   0x5   :  { %591 = vmatpush3.bf16.msra.mxu1 %v646_v3  ;;  %v655_v12 = vld [vmem:[%s853_s1 + $0x58] sm:$0xff]   ;;  %v659_v16 = vld [vmem:[%s853_s1 + $0x60] sm:$0xff]   ;;  %v663_v20 = vld [vmem:[%s853_s1 + $0x68] sm:$0xff]  }
   0x6   :  { %592 = vmatprep.subr.bf16.mxu1 %v649_v6  ;;  %v656_v13 = vld [vmem:[%s853_s1 + $0x18] sm:$0xff]   ;;  %v660_v17 = vld [vmem:[%s853_s1 + $0x20] sm:$0xff]   ;;  %v664_v21 = vld [vmem:[%s853_s1 + $0x28] sm:$0xff]  }
   0x7   :  { %571 = vmatpush3.bf16.msra.mxu0 %v648_v5  ;;  %v657_v14 = vld [vmem:[%s853_s1 + $0xd8] sm:$0xff]   ;;  %v661_v18 = vld [vmem:[%s853_s1 + $0xe0] sm:$0xff]   ;;  %v665_v22 = vld [vmem:[%s853_s1 + $0xe8] sm:$0xff]  }
   0x8   :  { %572 = vmatprep.subr.bf16.mxu0 %v651_v8  ;;  %v658_v15 = vld [vmem:[%s853_s1 + $0x98] sm:$0xff]   ;;  %v662_v19 = vld [vmem:[%s853_s1 + $0xa0] sm:$0xff]   ;;  %v666_v23 = vld [vmem:[%s853_s1 + $0xa8] sm:$0xff]  }
   0x9   :  { %593 = vmatpush3.bf16.msra.mxu1 %v650_v7  ;;  %v667_v24 = vld [vmem:[%s853_s1 + $0x70] sm:$0xff]   ;;  %v671_v28 = vld [vmem:[%s853_s1 + $0x78] sm:$0xff]   ;;  %v680_v36 = vld [vmem:[%s854_s0 + $0xc] ss:$20 sps:$4 sm:$0xff]  }
   0xa   :  { %594 = vmatprep.subr.bf16.mxu1 %v653_v10  ;;  %v668_v25 = vld [vmem:[%s853_s1 + $0x30] sm:$0xff]   ;;  %v672_v29 = vld [vmem:[%s853_s1 + $0x38] sm:$0xff]   ;;  %v681_v37 = vld [vmem:[%s853_s1 + $0x100] sm:$0xff]   ;;  %447 = vmatprep.mubr.bf16.mxu1 %v680_v36 }
   0xb   :  { %573 = vmatpush3.bf16.msra.mxu0 %v652_v9  ;;  %v669_v26 = vld [vmem:[%s853_s1 + $0xf0] sm:$0xff]   ;;  %v673_v30 = vld [vmem:[%s853_s1 + $0xf8] sm:$0xff]   ;;  %v682_v38 = vld [vmem:[%s853_s1 + $0x108] sm:$0xff]  }
   0xc   :  { %574 = vmatprep.subr.bf16.mxu0 %v655_v12  ;;  %v670_v27 = vld [vmem:[%s853_s1 + $0xb0] sm:$0xff]   ;;  %v676_v32 = vld [vmem:[%s854_s0 + $0x4] ss:$20 sps:$4 sm:$0xff]   ;;  %v678_v35 = vld [vmem:[%s854_s0 + $0x8] ss:$20 sps:$4 sm:$0xff]  }
   0xd   :  { %595 = vmatpush3.bf16.msra.mxu1 %v654_v11  ;;  %v674_v31 = vld [vmem:[%s854_s0] ss:$20 sps:$4 sm:$0xff]   ;;  %v677_v34 = vld [vmem:[%s853_s1 + $0xb8] sm:$0xff]   ;;  %406 = vmatprep.mubr.bf16.mxu0 %v676_v32  ;;  %v686_v42 = vld [vmem:[%s853_s1 + $0x128] sm:$0xff]  }
   0xe   :  { %596 = vmatprep.subr.bf16.mxu1 %v657_v14  ;;  %v683_v39 = vld [vmem:[%s853_s1 + $0x110] sm:$0xff]   ;;  %v684_v40 = vld [vmem:[%s853_s1 + $0x118] sm:$0xff]   ;;  %v685_v41 = vld [vmem:[%s853_s1 + $0x120] sm:$0xff]  }
   0xf   :  { %575 = vmatpush3.bf16.msra.mxu0 %v656_v13  ;;  %v687_v43 = vld [vmem:[%s853_s1 + $0x130] sm:$0xff]   ;;  %v688_v44 = vld [vmem:[%s853_s1 + $0x138] sm:$0xff]   ;;  %v513_v47 = vld [vmem:[%s855_s2] ss:$0 sm:$0xff] }
  0x10   :  { %576 = vmatprep.subr.bf16.mxu0 %v659_v16  ;;  %v689_v45 = vld [vmem:[%s854_s0 + $0x10] ss:$20 sps:$4 sm:$0xff]  }
  0x11   :  { %597 = vmatpush3.bf16.msra.mxu1 %v658_v15 }
  0x12   :  { %598 = vmatprep.subr.bf16.mxu1 %v661_v18 }
  0x13   :  { %577 = vmatpush3.bf16.msra.mxu0 %v660_v17 }
  0x14   :  { %578 = vmatprep.subr.bf16.mxu0 %v663_v20 }
  0x15   :  { %599 = vmatpush3.bf16.msra.mxu1 %v662_v19 }
  0x16   :  { %600 = vmatprep.subr.bf16.mxu1 %v665_v22 }
  0x17   :  { %579 = vmatpush3.bf16.msra.mxu0 %v664_v21 }
  0x18   :  { %580 = vmatprep.subr.bf16.mxu0 %v667_v24 }
  0x19   :  { %601 = vmatpush3.bf16.msra.mxu1 %v666_v23 }
  0x1a   :  { %602 = vmatprep.subr.bf16.mxu1 %v669_v26 }
  0x1b   :  { %581 = vmatpush3.bf16.msra.mxu0 %v668_v25 }
  0x1c   :  { %582 = vmatprep.subr.bf16.mxu0 %v671_v28 }
  0x1d   :  { %603 = vmatpush3.bf16.msra.mxu1 %v670_v27 }
  0x1e   :  { %604 = vmatprep.subr.bf16.mxu1 %v673_v30 }
  0x1f   :  { %583 = vmatpush3.bf16.msra.mxu0 %v672_v29 }
  0x20   :  { %621 = vmatprep.subr.bf16.mxu0 %v690_v33 }
  0x21   :  { %605 = vmatpush3.bf16.msra.mxu1 %v677_v34 }
  0x22   :  { %407 = vmatmul.mubr.bf16.vlgmr.msra.gmra.mrb[0].mxu0 %v674_v31 }
  0x23   :  { %637 = vmatprep.mubr.msk.bf16.mxu0 %vm691_vm0, %v690_v33  ;;  %622 = vmatpush3.bf16.msra.mxu0 %v681_v37 }
  0x24   :  { %448 = vmatmul.mubr.bf16.vlgmr.msra.gmra.mrb[0].mxu1 %v678_v35  ;;  %623 = vmatprep.subr.bf16.mxu0 %v690_v33 }
  0x27   :  { %624 = vmatpush3.bf16.msra.mxu0 %v682_v38 }
  0x28   :  { %625 = vmatprep.subr.bf16.mxu0 %v690_v33 }
  0x2b   :  { %626 = vmatpush3.bf16.msra.mxu0 %v683_v39 }
  0x2c   :  { %627 = vmatprep.subr.bf16.mxu0 %v690_v33 }
  0x2f   :  { %628 = vmatpush3.bf16.msra.mxu0 %v684_v40 }
  0x30   :  { %629 = vmatprep.subr.bf16.mxu0 %v690_v33 }
  0x33   :  { %630 = vmatpush3.bf16.msra.mxu0 %v685_v41 }
  0x34   :  { %631 = vmatprep.subr.bf16.mxu0 %v690_v33 }
  0x37   :  { %632 = vmatpush3.bf16.msra.mxu0 %v686_v42 }
  0x38   :  { %633 = vmatprep.subr.bf16.mxu0 %v690_v33 }
  0x3b   :  { %634 = vmatpush3.bf16.msra.mxu0 %v687_v43 }
  0x3c   :  { %635 = vmatprep.subr.bf16.mxu0 %v690_v33 }
  0x3f   :  { %636 = vmatpush3.bf16.msra.mxu0 %v688_v44 }
  0x42   :  { %638 = vmatmul.mubr.bf16.vlgmr.msra.gmra.mrb[4].mxu0 %v689_v45 }
  0xf5   :  { %v584_v46 = vpop.f32.mrb[0].mxu0 }
  0xf6   :  { %v585_v48 = vpop.f32.mrb[1].mxu0 }
  0xf7   :  { %v586_v49 = vadd.f32 %v585_v48, %v584_v46  ;;  %v587_v50 = vpop.f32.mrb[2].mxu0  ;;  %v606_v51 = vpop.f32.mrb[0].mxu1 }
  0xf8   :  { %v588_v52 = vpop.f32.mrb[3].mxu0  ;;  %v607_v55 = vpop.f32.mrb[1].mxu1 }
  0xf9   :  { %v409_v53 = vadd.f32 %v586_v49, %v513_v47  ;;  %v589_v54 = vadd.f32 %v588_v52, %v587_v50  ;;  %v608_v56 = vadd.f32 %v607_v55, %v606_v51  ;;  %v609_v57 = vpop.f32.mrb[2].mxu1 }
  0xfa   :  { %v610_v59 = vpop.f32.mrb[3].mxu1 }
  0xfb   :  { %v412_v58 = vadd.f32 %v589_v54, %v513_v47  ;;  %v611_v60 = vadd.f32 %v610_v59, %v609_v57  ;;  %v450_v61 = vadd.f32 %v608_v56, %v409_v53 }
  0xfd   :  { %v453_v62 = vadd.f32 %v611_v60, %v412_v58 }
 0x115   :  { %v490_v63 = vpop.f32.mrb[4].mxu0 }
 0x116   :  { %v491_v0 = vadd.f32 %v490_v63, %v450_v61  ;;  %v639_v1 = vpop.f32.mrb[5].mxu0 }
 0x117   :  { %v493_v2 = vpop.f32.mrb[6].mxu0 }
 0x118   :  { %v494_v3 = vadd.f32 %v493_v2, %v453_v62  ;;  %v640_v4 = vpop.f32.mrb[7].mxu0  ;;  %v497_v5 = vmax.f32 %v491_v0, 0.0 }
 0x11a   :  { %v498_v6 = vmax.f32 %v494_v3, 0.0 }
 0x11c   :  { %v566_v7 = vpack.c.bf16 %v498_v6, %v497_v5 }
 0x11e   :  { %567 = vst [vmem:[%s856_s3] sm:$0xff] %v566_v7  }

// kernel: faster_rcnn_forward.30
= control target key start
LH: loop header
LB: loop body
LE: loop exit
PB: predicated region body
PF: predicated region fallthrough
CT: control target
= control target key end

     0   :  { %v448_v1 = vmov 0.0   ;;  %vm449_vm0 = vmmov 0   ;;  %s557_s1 = inlined_call_operand.vmem [shape: bf16[384,128], index: 1, kind: input, shape index: {}]   ;;  %s558_s0 = inlined_call_operand.vmem [shape: bf16[16,384], index: 0, kind: input, shape index: {}]   ;;  %s559_s2 = inlined_call_operand.vmem [shape: f32[1,128], index: 2, kind: input, shape index: {}]   ;;  %s560_s3 = inlined_call_operand.vmem [shape: bf16[16,128], index: 3, kind: output, shape index: {}]  }
   0x1   :  { %v420_v0 = vld [vmem:[%s557_s1 + $0x40] sm:$0xff]   ;;  %398 = vmatprep.subr.bf16.mxu1 %v448_v1  ;;  %414 = vmatprep.mubr.msk.bf16.mxu1 %vm449_vm0, %v448_v1  ;;  %v423_v4 = vld [vmem:[%s557_s1 + $0x48] sm:$0xff]   ;;  %v426_v7 = vld [vmem:[%s557_s1 + $0x50] sm:$0xff]  }
   0x2   :  { %v421_v2 = vld [vmem:[%s557_s1] sm:$0xff]   ;;  %367 = vmatprep.subr.bf16.mxu0 %v420_v0  ;;  %v424_v5 = vld [vmem:[%s557_s1 + $0x8] sm:$0xff]   ;;  %v427_v8 = vld [vmem:[%s557_s1 + $0x10] sm:$0xff]  }
   0x3   :  { %v422_v3 = vld [vmem:[%s557_s1 + $0x80] sm:$0xff]   ;;  %368 = vmatpush3.bf16.msra.mxu0 %v421_v2  ;;  %v425_v6 = vld [vmem:[%s557_s1 + $0x88] sm:$0xff]   ;;  %v428_v9 = vld [vmem:[%s557_s1 + $0x90] sm:$0xff]  }
   0x4   :  { %399 = vmatpush3.bf16.msra.mxu1 %v422_v3  ;;  %369 = vmatprep.subr.bf16.mxu0 %v423_v4  ;;  %v429_v10 = vld [vmem:[%s557_s1 + $0x58] sm:$0xff]   ;;  %v432_v13 = vld [vmem:[%s557_s1 + $0x60] sm:$0xff]   ;;  %v435_v16 = vld [vmem:[%s557_s1 + $0x68] sm:$0xff]  }
   0x5   :  { %400 = vmatprep.subr.bf16.mxu1 %v448_v1  ;;  %v430_v11 = vld [vmem:[%s557_s1 + $0x18] sm:$0xff]   ;;  %v433_v14 = vld [vmem:[%s557_s1 + $0x20] sm:$0xff]   ;;  %v436_v17 = vld [vmem:[%s557_s1 + $0x28] sm:$0xff]  }
   0x6   :  { %v431_v12 = vld [vmem:[%s557_s1 + $0x98] sm:$0xff]   ;;  %v434_v15 = vld [vmem:[%s557_s1 + $0xa0] sm:$0xff]   ;;  %v437_v18 = vld [vmem:[%s557_s1 + $0xa8] sm:$0xff]  }
   0x7   :  { %370 = vmatpush3.bf16.msra.mxu0 %v424_v5  ;;  %v438_v19 = vld [vmem:[%s557_s1 + $0x70] sm:$0xff]   ;;  %v441_v22 = vld [vmem:[%s557_s1 + $0x78] sm:$0xff]   ;;  %v443_v26 = vld [vmem:[%s558_s0] ss:$12 sps:$4 sm:$0xff]  }
   0x8   :  { %401 = vmatpush3.bf16.msra.mxu1 %v425_v6  ;;  %371 = vmatprep.subr.bf16.mxu0 %v426_v7  ;;  %v439_v20 = vld [vmem:[%s557_s1 + $0x30] sm:$0xff]   ;;  %v442_v24 = vld [vmem:[%s557_s1 + $0x38] sm:$0xff]   ;;  %v330_v30 = vld [vmem:[%s559_s2] ss:$0 sm:$0xff] }
   0x9   :  { %402 = vmatprep.subr.bf16.mxu1 %v448_v1  ;;  %v440_v21 = vld [vmem:[%s557_s1 + $0xb0] sm:$0xff]   ;;  %v446_v25 = vld [vmem:[%s557_s1 + $0xb8] sm:$0xff]  }
   0xa   :  { %v445_v23 = vld [vmem:[%s558_s0 + $0x4] ss:$12 sps:$4 sm:$0xff]   ;;  %v447_v27 = vld [vmem:[%s558_s0 + $0x8] ss:$12 sps:$4 sm:$0xff]  }
   0xb   :  { %372 = vmatpush3.bf16.msra.mxu0 %v427_v8  ;;  %266 = vmatprep.mubr.bf16.mxu0 %v445_v23 }
   0xc   :  { %403 = vmatpush3.bf16.msra.mxu1 %v428_v9  ;;  %373 = vmatprep.subr.bf16.mxu0 %v429_v10 }
   0xd   :  { %404 = vmatprep.subr.bf16.mxu1 %v448_v1 }
   0xf   :  { %374 = vmatpush3.bf16.msra.mxu0 %v430_v11 }
  0x10   :  { %405 = vmatpush3.bf16.msra.mxu1 %v431_v12  ;;  %375 = vmatprep.subr.bf16.mxu0 %v432_v13 }
  0x11   :  { %406 = vmatprep.subr.bf16.mxu1 %v448_v1 }
  0x13   :  { %376 = vmatpush3.bf16.msra.mxu0 %v433_v14 }
  0x14   :  { %407 = vmatpush3.bf16.msra.mxu1 %v434_v15  ;;  %377 = vmatprep.subr.bf16.mxu0 %v435_v16 }
  0x15   :  { %408 = vmatprep.subr.bf16.mxu1 %v448_v1 }
  0x17   :  { %378 = vmatpush3.bf16.msra.mxu0 %v436_v17 }
  0x18   :  { %409 = vmatpush3.bf16.msra.mxu1 %v437_v18  ;;  %379 = vmatprep.subr.bf16.mxu0 %v438_v19 }
  0x19   :  { %410 = vmatprep.subr.bf16.mxu1 %v448_v1 }
  0x1b   :  { %380 = vmatpush3.bf16.msra.mxu0 %v439_v20 }
  0x1c   :  { %411 = vmatpush3.bf16.msra.mxu1 %v440_v21  ;;  %381 = vmatprep.subr.bf16.mxu0 %v441_v22 }
  0x1d   :  { %412 = vmatprep.subr.bf16.mxu1 %v448_v1 }
  0x1f   :  { %382 = vmatpush3.bf16.msra.mxu0 %v442_v24 }
  0x20   :  { %413 = vmatpush3.bf16.msra.mxu1 %v446_v25 }
  0x22   :  { %267 = vmatmul.mubr.bf16.vlgmr.msra.gmra.mrb[0].mxu0 %v443_v26 }
  0x23   :  { %415 = vmatmul.mubr.bf16.vlgmr.msra.gmra.mrb[0].mxu1 %v447_v27 }
  0xf5   :  { %v383_v28 = vpop.f32.mrb[0].mxu0 }
  0xf6   :  { %v384_v29 = vpop.f32.mrb[1].mxu0  ;;  %v309_v31 = vpop.f32.mrb[0].mxu1 }
  0xf7   :  { %v385_v32 = vadd.f32 %v384_v29, %v383_v28  ;;  %v386_v33 = vpop.f32.mrb[2].mxu0  ;;  %v416_v34 = vpop.f32.mrb[1].mxu1 }
  0xf8   :  { %v387_v35 = vpop.f32.mrb[3].mxu0  ;;  %v312_v36 = vpop.f32.mrb[2].mxu1 }
  0xf9   :  { %v269_v37 = vadd.f32 %v385_v32, %v330_v30  ;;  %v388_v38 = vadd.f32 %v387_v35, %v386_v33  ;;  %v417_v39 = vpop.f32.mrb[3].mxu1 }
  0xfb   :  { %v310_v40 = vadd.f32 %v309_v31, %v269_v37  ;;  %v272_v41 = vadd.f32 %v388_v38, %v330_v30 }
  0xfd   :  { %v313_v42 = vadd.f32 %v312_v36, %v272_v41 }
  0xff   :  { %v365_v43 = vpack.c.bf16 %v313_v42, %v310_v40 }
 0x101   :  { %366 = vst [vmem:[%s560_s3] sm:$0xff] %v365_v43  }

// kernel: faster_rcnn_forward.29
= control target key start
LH: loop header
LB: loop body
LE: loop exit
PB: predicated region body
PF: predicated region fallthrough
CT: control target
= control target key end

     0   :  { %s635_s1 = inlined_call_operand.vmem [shape: bf16[384,128], index: 1, kind: input, shape index: {}]   ;;  %s636_s0 = inlined_call_operand.vmem [shape: bf16[32,384], index: 0, kind: input, shape index: {}]   ;;  %s637_s2 = inlined_call_operand.vmem [shape: f32[1,128], index: 2, kind: input, shape index: {}]   ;;  %s638_s3 = inlined_call_operand.vmem [shape: bf16[32,128], index: 3, kind: output, shape index: {}]  }
   0x1   :  { %v484_v0 = vld [vmem:[%s635_s1 + $0x40] sm:$0xff]   ;;  %v486_v2 = vld [vmem:[%s635_s1 + $0x48] sm:$0xff]   ;;  %v489_v5 = vld [vmem:[%s635_s1 + $0x50] sm:$0xff]  }
   0x2   :  { %v485_v1 = vld [vmem:[%s635_s1] sm:$0xff]   ;;  %426 = vmatprep.subr.bf16.mxu0 %v484_v0  ;;  %v488_v4 = vld [vmem:[%s635_s1 + $0x8] sm:$0xff]   ;;  %v491_v7 = vld [vmem:[%s635_s1 + $0x10] sm:$0xff]  }
   0x3   :  { %427 = vmatpush3.bf16.msra.mxu0 %v485_v1  ;;  %v487_v3 = vld [vmem:[%s635_s1 + $0x80] sm:$0xff]   ;;  %v490_v6 = vld [vmem:[%s635_s1 + $0x88] sm:$0xff]   ;;  %v492_v8 = vld [vmem:[%s635_s1 + $0x58] sm:$0xff]  }
   0x4   :  { %428 = vmatprep.subr.bf16.mxu0 %v486_v2  ;;  %464 = vmatprep.subr.bf16.mxu1 %v487_v3  ;;  %v493_v9 = vld [vmem:[%s635_s1 + $0x90] sm:$0xff]   ;;  %v494_v10 = vld [vmem:[%s635_s1 + $0x18] sm:$0xff]   ;;  %v495_v11 = vld [vmem:[%s635_s1 + $0x60] sm:$0xff]  }
   0x5   :  { %465 = vmatpush3.bf16.msra.mxu1 %v487_v3  ;;  %v496_v12 = vld [vmem:[%s635_s1 + $0x98] sm:$0xff]   ;;  %v497_v13 = vld [vmem:[%s635_s1 + $0x20] sm:$0xff]   ;;  %v498_v15 = vld [vmem:[%s635_s1 + $0x68] sm:$0xff]  }
   0x6   :  { %466 = vmatprep.subr.bf16.mxu1 %v490_v6  ;;  %v499_v14 = vld [vmem:[%s635_s1 + $0xa0] sm:$0xff]   ;;  %v500_v16 = vld [vmem:[%s635_s1 + $0x28] sm:$0xff]   ;;  %v501_v18 = vld [vmem:[%s635_s1 + $0x70] sm:$0xff]  }
   0x7   :  { %429 = vmatpush3.bf16.msra.mxu0 %v488_v4  ;;  %v502_v17 = vld [vmem:[%s635_s1 + $0xa8] sm:$0xff]   ;;  %v503_v19 = vld [vmem:[%s635_s1 + $0x30] sm:$0xff]   ;;  %v504_v20 = vld [vmem:[%s635_s1 + $0x78] sm:$0xff]  }
   0x8   :  { %430 = vmatprep.subr.bf16.mxu0 %v489_v5  ;;  %v505_v21 = vld [vmem:[%s635_s1 + $0xb0] sm:$0xff]   ;;  %v506_v23 = vld [vmem:[%s635_s1 + $0x38] sm:$0xff]   ;;  %v507_v26 = vld [vmem:[%s636_s0] ss:$12 sps:$4 sm:$0xff]  }
   0x9   :  { %467 = vmatpush3.bf16.msra.mxu1 %v490_v6  ;;  %v509_v22 = vld [vmem:[%s636_s0 + $0x4] ss:$12 sps:$4 sm:$0xff]   ;;  %v511_v24 = vld [vmem:[%s636_s0 + $0x8] ss:$12 sps:$4 sm:$0xff]   ;;  %v510_v25 = vld [vmem:[%s635_s1 + $0xb8] sm:$0xff]  }
   0xa   :  { %468 = vmatprep.subr.bf16.mxu1 %v493_v9  ;;  %286 = vmatprep.mubr.bf16.mxu0 %v509_v22  ;;  %v513_v27 = vld [vmem:[%s636_s0 + $0x1c] ss:$12 sps:$4 sm:$0xff]   ;;  %v512_v28 = vld [vmem:[%s636_s0 + $0x20] ss:$12 sps:$4 sm:$0xff]   ;;  %v515_v29 = vld [vmem:[%s636_s0 + $0x18] ss:$12 sps:$4 sm:$0xff]  }
   0xb   :  { %431 = vmatpush3.bf16.msra.mxu0 %v491_v7  ;;  %480 = vmatprep.mubr.bf16.mxu1 %v511_v24  ;;  %v376_v32 = vld [vmem:[%s637_s2] ss:$0 sm:$0xff] }
   0xc   :  { %432 = vmatprep.subr.bf16.mxu0 %v492_v8 }
   0xd   :  { %469 = vmatpush3.bf16.msra.mxu1 %v493_v9 }
   0xe   :  { %470 = vmatprep.subr.bf16.mxu1 %v496_v12 }
   0xf   :  { %433 = vmatpush3.bf16.msra.mxu0 %v494_v10 }
  0x10   :  { %434 = vmatprep.subr.bf16.mxu0 %v495_v11 }
  0x11   :  { %471 = vmatpush3.bf16.msra.mxu1 %v496_v12 }
  0x12   :  { %472 = vmatprep.subr.bf16.mxu1 %v499_v14 }
  0x13   :  { %435 = vmatpush3.bf16.msra.mxu0 %v497_v13 }
  0x14   :  { %436 = vmatprep.subr.bf16.mxu0 %v498_v15 }
  0x15   :  { %473 = vmatpush3.bf16.msra.mxu1 %v499_v14 }
  0x16   :  { %474 = vmatprep.subr.bf16.mxu1 %v502_v17 }
  0x17   :  { %437 = vmatpush3.bf16.msra.mxu0 %v500_v16 }
  0x18   :  { %438 = vmatprep.subr.bf16.mxu0 %v501_v18 }
  0x19   :  { %475 = vmatpush3.bf16.msra.mxu1 %v502_v17 }
  0x1a   :  { %476 = vmatprep.subr.bf16.mxu1 %v505_v21 }
  0x1b   :  { %439 = vmatpush3.bf16.msra.mxu0 %v503_v19 }
  0x1c   :  { %440 = vmatprep.subr.bf16.mxu0 %v504_v20 }
  0x1d   :  { %477 = vmatpush3.bf16.msra.mxu1 %v505_v21 }
  0x1e   :  { %478 = vmatprep.subr.bf16.mxu1 %v510_v25 }
  0x1f   :  { %441 = vmatpush3.bf16.msra.mxu0 %v506_v23 }
  0x21   :  { %479 = vmatpush3.bf16.msra.mxu1 %v510_v25 }
  0x22   :  { %287 = vmatmul.mubr.bf16.vlgmr.msra.gmra.mrb[0].mxu0 %v507_v26 }
  0x23   :  { %294 = vmatprep.mubr.bf16.mxu0 %v513_v27 }
  0x24   :  { %481 = vmatmul.mubr.bf16.vlgmr.msra.gmra.mrb[0].mxu1 %v512_v28 }
  0x2a   :  { %295 = vmatmul.mubr.bf16.gmra.mrb[4].mxu0 %v515_v29 }
  0xf5   :  { %v442_v30 = vpop.f32.mrb[0].mxu0 }
  0xf6   :  { %v443_v31 = vpop.f32.mrb[1].mxu0 }
  0xf7   :  { %v444_v33 = vadd.f32 %v443_v31, %v442_v30  ;;  %v445_v34 = vpop.f32.mrb[2].mxu0  ;;  %v482_v36 = vpop.f32.mrb[0].mxu1 }
  0xf8   :  { %v446_v35 = vpop.f32.mrb[3].mxu0  ;;  %v337_v39 = vpop.f32.mrb[1].mxu1 }
  0xf9   :  { %v447_v37 = vadd.f32 %v446_v35, %v445_v34  ;;  %v289_v38 = vadd.f32 %v444_v33, %v376_v32  ;;  %v483_v40 = vpop.f32.mrb[2].mxu1 }
  0xfa   :  { %v340_v43 = vpop.f32.mrb[3].mxu1 }
  0xfb   :  { %v338_v41 = vadd.f32 %v337_v39, %v289_v38  ;;  %v292_v42 = vadd.f32 %v447_v37, %v376_v32 }
  0xfd   :  { %v341_v44 = vadd.f32 %v340_v43, %v292_v42  ;;  %v448_v45 = vpop.f32.mrb[4].mxu0 }
  0xfe   :  { %v449_v46 = vpop.f32.mrb[5].mxu0 }
  0xff   :  { %v418_v47 = vpack.c.bf16 %v341_v44, %v338_v41  ;;  %v450_v48 = vadd.f32 %v449_v46, %v448_v45  ;;  %v451_v49 = vpop.f32.mrb[6].mxu0 }
 0x100   :  { %v452_v50 = vpop.f32.mrb[7].mxu0 }
 0x101   :  { %419 = vst [vmem:[%s638_s3] sm:$0xff] %v418_v47   ;;  %v297_v51 = vadd.f32 %v450_v48, %v376_v32  ;;  %v453_v52 = vadd.f32 %v452_v50, %v451_v49 }
 0x103   :  { %v346_v53 = vadd.f32 %v482_v36, %v297_v51  ;;  %v300_v54 = vadd.f32 %v453_v52, %v376_v32 }
 0x105   :  { %v349_v55 = vadd.f32 %v483_v40, %v300_v54 }
 0x107   :  { %v423_v56 = vpack.c.bf16 %v349_v55, %v346_v53 }
 0x109   :  { %425 = vst [vmem:[%s638_s3 + $0x8] sm:$0xff] %v423_v56  }

// kernel: faster_rcnn_forward.28
= control target key start
LH: loop header
LB: loop body
LE: loop exit
PB: predicated region body
PF: predicated region fallthrough
CT: control target
= control target key end

     0   :  { %s1157_s1 = inlined_call_operand.vmem [shape: bf16[384,128], index: 1, kind: input, shape index: {}]   ;;  %s1158_s0 = inlined_call_operand.vmem [shape: bf16[128,384], index: 0, kind: input, shape index: {}]   ;;  %s1159_s2 = inlined_call_operand.vmem [shape: f32[1,128], index: 2, kind: input, shape index: {}]   ;;  %s1160_s3 = inlined_call_operand.vmem [shape: bf16[128,128], index: 3, kind: output, shape index: {}]  }
   0x1   :  { %v892_v0 = vld [vmem:[%s1157_s1 + $0x40] sm:$0xff]   ;;  %v894_v2 = vld [vmem:[%s1157_s1 + $0x48] sm:$0xff]   ;;  %v897_v5 = vld [vmem:[%s1157_s1 + $0x50] sm:$0xff]  }
   0x2   :  { %v893_v1 = vld [vmem:[%s1157_s1] sm:$0xff]   ;;  %780 = vmatprep.subr.bf16.mxu0 %v892_v0  ;;  %v896_v4 = vld [vmem:[%s1157_s1 + $0x8] sm:$0xff]   ;;  %v899_v7 = vld [vmem:[%s1157_s1 + $0x10] sm:$0xff]  }
   0x3   :  { %781 = vmatpush3.bf16.msra.mxu0 %v893_v1  ;;  %v895_v3 = vld [vmem:[%s1157_s1 + $0x80] sm:$0xff]   ;;  %v898_v6 = vld [vmem:[%s1157_s1 + $0x88] sm:$0xff]   ;;  %v900_v8 = vld [vmem:[%s1157_s1 + $0x58] sm:$0xff]  }
   0x4   :  { %782 = vmatprep.subr.bf16.mxu0 %v894_v2  ;;  %860 = vmatprep.subr.bf16.mxu1 %v895_v3  ;;  %v901_v9 = vld [vmem:[%s1157_s1 + $0x90] sm:$0xff]   ;;  %v902_v10 = vld [vmem:[%s1157_s1 + $0x18] sm:$0xff]   ;;  %v903_v11 = vld [vmem:[%s1157_s1 + $0x60] sm:$0xff]  }
   0x5   :  { %861 = vmatpush3.bf16.msra.mxu1 %v895_v3  ;;  %v904_v12 = vld [vmem:[%s1157_s1 + $0x98] sm:$0xff]   ;;  %v905_v13 = vld [vmem:[%s1157_s1 + $0x20] sm:$0xff]   ;;  %v906_v15 = vld [vmem:[%s1157_s1 + $0x68] sm:$0xff]  }
   0x6   :  { %862 = vmatprep.subr.bf16.mxu1 %v898_v6  ;;  %v907_v14 = vld [vmem:[%s1157_s1 + $0xa0] sm:$0xff]   ;;  %v908_v16 = vld [vmem:[%s1157_s1 + $0x28] sm:$0xff]   ;;  %v909_v18 = vld [vmem:[%s1157_s1 + $0x70] sm:$0xff]  }
   0x7   :  { %783 = vmatpush3.bf16.msra.mxu0 %v896_v4  ;;  %v910_v17 = vld [vmem:[%s1157_s1 + $0xa8] sm:$0xff]   ;;  %v911_v19 = vld [vmem:[%s1157_s1 + $0x30] sm:$0xff]   ;;  %v912_v20 = vld [vmem:[%s1157_s1 + $0x78] sm:$0xff]  }
   0x8   :  { %784 = vmatprep.subr.bf16.mxu0 %v897_v5  ;;  %v913_v21 = vld [vmem:[%s1157_s1 + $0xb0] sm:$0xff]   ;;  %v914_v23 = vld [vmem:[%s1157_s1 + $0x38] sm:$0xff]   ;;  %v915_v26 = vld [vmem:[%s1158_s0] ss:$12 sps:$4 sm:$0xff]  }
   0x9   :  { %863 = vmatpush3.bf16.msra.mxu1 %v898_v6  ;;  %v917_v22 = vld [vmem:[%s1158_s0 + $0x4] ss:$12 sps:$4 sm:$0xff]   ;;  %v919_v24 = vld [vmem:[%s1158_s0 + $0x8] ss:$12 sps:$4 sm:$0xff]   ;;  %v918_v25 = vld [vmem:[%s1157_s1 + $0xb8] sm:$0xff]  }
   0xa   :  { %864 = vmatprep.subr.bf16.mxu1 %v901_v9  ;;  %406 = vmatprep.mubr.bf16.mxu0 %v917_v22  ;;  %v921_v27 = vld [vmem:[%s1158_s0 + $0x1c] ss:$12 sps:$4 sm:$0xff]   ;;  %v920_v28 = vld [vmem:[%s1158_s0 + $0x20] ss:$12 sps:$4 sm:$0xff]   ;;  %v927_v29 = vld [vmem:[%s1158_s0 + $0x38] ss:$12 sps:$4 sm:$0xff]  }
   0xb   :  { %785 = vmatpush3.bf16.msra.mxu0 %v899_v7  ;;  %876 = vmatprep.mubr.bf16.mxu1 %v919_v24  ;;  %v923_v30 = vld [vmem:[%s1158_s0 + $0x18] ss:$12 sps:$4 sm:$0xff]   ;;  %v924_v31 = vld [vmem:[%s1158_s0 + $0x34] ss:$12 sps:$4 sm:$0xff]   ;;  %v928_v32 = vld [vmem:[%s1158_s0 + $0x50] ss:$12 sps:$4 sm:$0xff]  }
   0xc   :  { %786 = vmatprep.subr.bf16.mxu0 %v900_v8  ;;  %v935_v33 = vld [vmem:[%s1158_s0 + $0x68] ss:$12 sps:$4 sm:$0xff]   ;;  %v926_v34 = vld [vmem:[%s1158_s0 + $0x30] ss:$12 sps:$4 sm:$0xff]   ;;  %v929_v35 = vld [vmem:[%s1158_s0 + $0x4c] ss:$12 sps:$4 sm:$0xff]  }
   0xd   :  { %865 = vmatpush3.bf16.msra.mxu1 %v901_v9  ;;  %v936_v36 = vld [vmem:[%s1158_s0 + $0x80] ss:$12 sps:$4 sm:$0xff]   ;;  %v943_v37 = vld [vmem:[%s1158_s0 + $0x98] ss:$12 sps:$4 sm:$0xff]   ;;  %v931_v38 = vld [vmem:[%s1158_s0 + $0x48] ss:$12 sps:$4 sm:$0xff]  }
   0xe   :  { %866 = vmatprep.subr.bf16.mxu1 %v904_v12  ;;  %v932_v39 = vld [vmem:[%s1158_s0 + $0x64] ss:$12 sps:$4 sm:$0xff]   ;;  %v934_v41 = vld [vmem:[%s1158_s0 + $0x60] ss:$12 sps:$4 sm:$0xff]   ;;  %v937_v42 = vld [vmem:[%s1158_s0 + $0x7c] ss:$12 sps:$4 sm:$0xff]  }
   0xf   :  { %787 = vmatpush3.bf16.msra.mxu0 %v902_v10  ;;  %v944_v40 = vld [vmem:[%s1158_s0 + $0xb0] ss:$12 sps:$4 sm:$0xff]   ;;  %v939_v43 = vld [vmem:[%s1158_s0 + $0x78] ss:$12 sps:$4 sm:$0xff]   ;;  %v940_v44 = vld [vmem:[%s1158_s0 + $0x94] ss:$12 sps:$4 sm:$0xff]  }
  0x10   :  { %788 = vmatprep.subr.bf16.mxu0 %v903_v11  ;;  %v942_v45 = vld [vmem:[%s1158_s0 + $0x90] ss:$12 sps:$4 sm:$0xff]   ;;  %v945_v46 = vld [vmem:[%s1158_s0 + $0xac] ss:$12 sps:$4 sm:$0xff]   ;;  %v947_v47 = vld [vmem:[%s1158_s0 + $0xa8] ss:$12 sps:$4 sm:$0xff]  }
  0x11   :  { %867 = vmatpush3.bf16.msra.mxu1 %v904_v12  ;;  %v1115_v50 = vld [vmem:[%s1159_s2] ss:$0 sm:$0xff] }
  0x12   :  { %868 = vmatprep.subr.bf16.mxu1 %v907_v14 }
  0x13   :  { %789 = vmatpush3.bf16.msra.mxu0 %v905_v13 }
  0x14   :  { %790 = vmatprep.subr.bf16.mxu0 %v906_v15 }
  0x15   :  { %869 = vmatpush3.bf16.msra.mxu1 %v907_v14 }
  0x16   :  { %870 = vmatprep.subr.bf16.mxu1 %v910_v17 }
  0x17   :  { %791 = vmatpush3.bf16.msra.mxu0 %v908_v16 }
  0x18   :  { %792 = vmatprep.subr.bf16.mxu0 %v909_v18 }
  0x19   :  { %871 = vmatpush3.bf16.msra.mxu1 %v910_v17 }
  0x1a   :  { %872 = vmatprep.subr.bf16.mxu1 %v913_v21 }
  0x1b   :  { %793 = vmatpush3.bf16.msra.mxu0 %v911_v19 }
  0x1c   :  { %794 = vmatprep.subr.bf16.mxu0 %v912_v20 }
  0x1d   :  { %873 = vmatpush3.bf16.msra.mxu1 %v913_v21 }
  0x1e   :  { %874 = vmatprep.subr.bf16.mxu1 %v918_v25 }
  0x1f   :  { %795 = vmatpush3.bf16.msra.mxu0 %v914_v23 }
  0x21   :  { %875 = vmatpush3.bf16.msra.mxu1 %v918_v25 }
  0x22   :  { %407 = vmatmul.mubr.bf16.vlgmr.msra.gmra.mrb[0].mxu0 %v915_v26 }
  0x23   :  { %414 = vmatprep.mubr.bf16.mxu0 %v921_v27 }
  0x24   :  { %877 = vmatmul.mubr.bf16.vlgmr.msra.gmra.mrb[0].mxu1 %v920_v28 }
  0x25   :  { %880 = vmatprep.mubr.bf16.mxu1 %v927_v29 }
  0x2a   :  { %415 = vmatmul.mubr.bf16.gmra.mrb[4].mxu0 %v923_v30 }
  0x2b   :  { %422 = vmatprep.mubr.bf16.mxu0 %v924_v31 }
  0x2c   :  { %881 = vmatmul.mubr.bf16.gmra.mrb[4].mxu1 %v928_v32 }
  0x2d   :  { %884 = vmatprep.mubr.bf16.mxu1 %v935_v33 }
  0x32   :  { %423 = vmatmul.mubr.bf16.gmra.mrb[8].mxu0 %v926_v34 }
  0x33   :  { %430 = vmatprep.mubr.bf16.mxu0 %v929_v35 }
  0x34   :  { %885 = vmatmul.mubr.bf16.gmra.mrb[8].mxu1 %v936_v36 }
  0x35   :  { %888 = vmatprep.mubr.bf16.mxu1 %v943_v37 }
  0x3a   :  { %431 = vmatmul.mubr.bf16.gmra.mrb[12].mxu0 %v931_v38 }
  0x3b   :  { %438 = vmatprep.mubr.bf16.mxu0 %v932_v39 }
  0x3c   :  { %889 = vmatmul.mubr.bf16.gmra.mrb[12].mxu1 %v944_v40 }
  0x42   :  { %439 = vmatmul.mubr.bf16.gmra.mrb[16].mxu0 %v934_v41 }
  0x43   :  { %446 = vmatprep.mubr.bf16.mxu0 %v937_v42 }
  0x4a   :  { %447 = vmatmul.mubr.bf16.gmra.mrb[20].mxu0 %v939_v43 }
  0x4b   :  { %454 = vmatprep.mubr.bf16.mxu0 %v940_v44 }
  0x52   :  { %455 = vmatmul.mubr.bf16.gmra.mrb[24].mxu0 %v942_v45 }
  0x53   :  { %462 = vmatprep.mubr.bf16.mxu0 %v945_v46 }
  0x5a   :  { %463 = vmatmul.mubr.bf16.gmra.mrb[28].mxu0 %v947_v47 }
  0xf5   :  { %v796_v48 = vpop.f32.mrb[0].mxu0 }
  0xf6   :  { %v797_v49 = vpop.f32.mrb[1].mxu0 }
  0xf7   :  { %v798_v51 = vadd.f32 %v797_v49, %v796_v48  ;;  %v799_v52 = vpop.f32.mrb[2].mxu0  ;;  %v878_v54 = vpop.f32.mrb[0].mxu1 }
  0xf8   :  { %v800_v53 = vpop.f32.mrb[3].mxu0  ;;  %v505_v57 = vpop.f32.mrb[1].mxu1 }
  0xf9   :  { %v801_v55 = vadd.f32 %v800_v53, %v799_v52  ;;  %v409_v56 = vadd.f32 %v798_v51, %v1115_v50  ;;  %v879_v58 = vpop.f32.mrb[2].mxu1 }
  0xfa   :  { %v508_v61 = vpop.f32.mrb[3].mxu1 }
  0xfb   :  { %v506_v59 = vadd.f32 %v505_v57, %v409_v56  ;;  %v412_v60 = vadd.f32 %v801_v55, %v1115_v50 }
  0xfd   :  { %v509_v62 = vadd.f32 %v508_v61, %v412_v60  ;;  %v802_v63 = vpop.f32.mrb[4].mxu0 }
  0xfe   :  { %v803_v0 = vpop.f32.mrb[5].mxu0 }
  0xff   :  { %v736_v1 = vpack.c.bf16 %v509_v62, %v506_v59  ;;  %v804_v2 = vadd.f32 %v803_v0, %v802_v63  ;;  %v805_v3 = vpop.f32.mrb[6].mxu0  ;;  %v882_v5 = vpop.f32.mrb[4].mxu1 }
 0x100   :  { %v806_v4 = vpop.f32.mrb[7].mxu0  ;;  %v521_v8 = vpop.f32.mrb[5].mxu1 }
 0x101   :  { %737 = vst [vmem:[%s1160_s3] sm:$0xff] %v736_v1   ;;  %v417_v6 = vadd.f32 %v804_v2, %v1115_v50  ;;  %v807_v7 = vadd.f32 %v806_v4, %v805_v3  ;;  %v883_v9 = vpop.f32.mrb[6].mxu1 }
 0x102   :  { %v524_v12 = vpop.f32.mrb[7].mxu1 }
 0x103   :  { %v514_v10 = vadd.f32 %v878_v54, %v417_v6  ;;  %v420_v11 = vadd.f32 %v807_v7, %v1115_v50 }
 0x105   :  { %v517_v13 = vadd.f32 %v879_v58, %v420_v11  ;;  %v808_v14 = vpop.f32.mrb[8].mxu0 }
 0x106   :  { %v809_v15 = vpop.f32.mrb[9].mxu0 }
 0x107   :  { %v741_v16 = vpack.c.bf16 %v517_v13, %v514_v10  ;;  %v810_v17 = vadd.f32 %v809_v15, %v808_v14  ;;  %v811_v18 = vpop.f32.mrb[10].mxu0  ;;  %v886_v20 = vpop.f32.mrb[8].mxu1 }
 0x108   :  { %v812_v19 = vpop.f32.mrb[11].mxu0  ;;  %v537_v23 = vpop.f32.mrb[9].mxu1 }
 0x109   :  { %773 = vst [vmem:[%s1160_s3 + $0x8] sm:$0xff] %v741_v16   ;;  %v813_v21 = vadd.f32 %v812_v19, %v811_v18  ;;  %v425_v22 = vadd.f32 %v810_v17, %v1115_v50  ;;  %v887_v24 = vpop.f32.mrb[10].mxu1 }
 0x10a   :  { %v540_v27 = vpop.f32.mrb[11].mxu1 }
 0x10b   :  { %v522_v25 = vadd.f32 %v521_v8, %v425_v22  ;;  %v428_v26 = vadd.f32 %v813_v21, %v1115_v50 }
 0x10d   :  { %v525_v28 = vadd.f32 %v524_v12, %v428_v26  ;;  %v814_v29 = vpop.f32.mrb[12].mxu0 }
 0x10e   :  { %v815_v30 = vpop.f32.mrb[13].mxu0 }
 0x10f   :  { %v746_v31 = vpack.c.bf16 %v525_v28, %v522_v25  ;;  %v816_v32 = vadd.f32 %v815_v30, %v814_v29  ;;  %v817_v33 = vpop.f32.mrb[14].mxu0  ;;  %v890_v35 = vpop.f32.mrb[12].mxu1 }
 0x110   :  { %v818_v34 = vpop.f32.mrb[15].mxu0  ;;  %v553_v38 = vpop.f32.mrb[13].mxu1 }
 0x111   :  { %774 = vst [vmem:[%s1160_s3 + $0x10] sm:$0xff] %v746_v31   ;;  %v433_v36 = vadd.f32 %v816_v32, %v1115_v50  ;;  %v819_v37 = vadd.f32 %v818_v34, %v817_v33  ;;  %v891_v39 = vpop.f32.mrb[14].mxu1 }
 0x112   :  { %v556_v42 = vpop.f32.mrb[15].mxu1 }
 0x113   :  { %v530_v40 = vadd.f32 %v882_v5, %v433_v36  ;;  %v436_v41 = vadd.f32 %v819_v37, %v1115_v50 }
 0x115   :  { %v533_v43 = vadd.f32 %v883_v9, %v436_v41  ;;  %v820_v44 = vpop.f32.mrb[16].mxu0 }
 0x116   :  { %v821_v45 = vpop.f32.mrb[17].mxu0 }
 0x117   :  { %v751_v46 = vpack.c.bf16 %v533_v43, %v530_v40  ;;  %v822_v47 = vadd.f32 %v821_v45, %v820_v44  ;;  %v823_v48 = vpop.f32.mrb[18].mxu0 }
 0x118   :  { %v824_v49 = vpop.f32.mrb[19].mxu0 }
 0x119   :  { %775 = vst [vmem:[%s1160_s3 + $0x18] sm:$0xff] %v751_v46   ;;  %v825_v51 = vadd.f32 %v824_v49, %v823_v48  ;;  %v441_v52 = vadd.f32 %v822_v47, %v1115_v50 }
 0x11b   :  { %v538_v53 = vadd.f32 %v537_v23, %v441_v52  ;;  %v444_v54 = vadd.f32 %v825_v51, %v1115_v50 }
 0x11d   :  { %v541_v55 = vadd.f32 %v540_v27, %v444_v54  ;;  %v826_v56 = vpop.f32.mrb[20].mxu0 }
 0x11e   :  { %v827_v57 = vpop.f32.mrb[21].mxu0 }
 0x11f   :  { %v756_v58 = vpack.c.bf16 %v541_v55, %v538_v53  ;;  %v828_v59 = vadd.f32 %v827_v57, %v826_v56  ;;  %v829_v60 = vpop.f32.mrb[22].mxu0 }
 0x120   :  { %v830_v61 = vpop.f32.mrb[23].mxu0 }
 0x121   :  { %776 = vst [vmem:[%s1160_s3 + $0x20] sm:$0xff] %v756_v58   ;;  %v449_v62 = vadd.f32 %v828_v59, %v1115_v50  ;;  %v831_v63 = vadd.f32 %v830_v61, %v829_v60 }
 0x123   :  { %v546_v0 = vadd.f32 %v886_v20, %v449_v62  ;;  %v452_v1 = vadd.f32 %v831_v63, %v1115_v50 }
 0x125   :  { %v549_v2 = vadd.f32 %v887_v24, %v452_v1  ;;  %v832_v3 = vpop.f32.mrb[24].mxu0 }
 0x126   :  { %v833_v4 = vpop.f32.mrb[25].mxu0 }
 0x127   :  { %v761_v5 = vpack.c.bf16 %v549_v2, %v546_v0  ;;  %v834_v6 = vadd.f32 %v833_v4, %v832_v3  ;;  %v835_v7 = vpop.f32.mrb[26].mxu0 }
 0x128   :  { %v836_v8 = vpop.f32.mrb[27].mxu0 }
 0x129   :  { %777 = vst [vmem:[%s1160_s3 + $0x28] sm:$0xff] %v761_v5   ;;  %v837_v9 = vadd.f32 %v836_v8, %v835_v7  ;;  %v457_v10 = vadd.f32 %v834_v6, %v1115_v50 }
 0x12b   :  { %v554_v11 = vadd.f32 %v553_v38, %v457_v10  ;;  %v460_v12 = vadd.f32 %v837_v9, %v1115_v50 }
 0x12d   :  { %v557_v13 = vadd.f32 %v556_v42, %v460_v12  ;;  %v838_v14 = vpop.f32.mrb[28].mxu0 }
 0x12e   :  { %v839_v15 = vpop.f32.mrb[29].mxu0 }
 0x12f   :  { %v766_v16 = vpack.c.bf16 %v557_v13, %v554_v11  ;;  %v840_v17 = vadd.f32 %v839_v15, %v838_v14  ;;  %v841_v18 = vpop.f32.mrb[30].mxu0 }
 0x130   :  { %v842_v19 = vpop.f32.mrb[31].mxu0 }
 0x131   :  { %778 = vst [vmem:[%s1160_s3 + $0x30] sm:$0xff] %v766_v16   ;;  %v465_v20 = vadd.f32 %v840_v17, %v1115_v50  ;;  %v843_v21 = vadd.f32 %v842_v19, %v841_v18 }
 0x133   :  { %v562_v22 = vadd.f32 %v890_v35, %v465_v20  ;;  %v468_v23 = vadd.f32 %v843_v21, %v1115_v50 }
 0x135   :  { %v565_v24 = vadd.f32 %v891_v39, %v468_v23 }
 0x137   :  { %v771_v25 = vpack.c.bf16 %v565_v24, %v562_v22 }
 0x139   :  { %779 = vst [vmem:[%s1160_s3 + $0x38] sm:$0xff] %v771_v25  }

// kernel: faster_rcnn_forward.27
= control target key start
LH: loop header
LB: loop body
LE: loop exit
PB: predicated region body
PF: predicated region fallthrough
CT: control target
= control target key end

     0   :  { %s1803_s12 = smov 0   ;;  %s2031_s0 = inlined_call_operand.vmem [shape: bf16[512,384], index: 0, kind: input, shape index: {}]   ;;  %s2032_s1 = inlined_call_operand.vmem [shape: bf16[384,128], index: 1, kind: input, shape index: {}]   ;;  %s2033_s2 = inlined_call_operand.vmem [shape: f32[1,128], index: 2, kind: input, shape index: {}]   ;;  %s2034_s3 = inlined_call_operand.vmem [shape: bf16[512,128], index: 3, kind: output, shape index: {}]  }
   0x1 LB: > { %s1235_s13 = sadd.s32 4294967295, %s1781_s12   ;;  %p1239_p0 = scmp.ge.s32.totalorder %s1781_s12, 1  ;;  %s1781_s12 = sphi %s1803_s12, %s13_s12  }
   0x2   : > { %p139_p1 = scmp.lt.s32.totalorder %s1781_s12, 3 }
   0x4   : > { %p140_p2 = pnand %p1239_p0, %p139_p1 }
   0x5   : > { %v1687_v0 = vld [vmem:[%s2032_s1 + $0x40] sm:$0xff] (!%p140_p2)   ;;  %s1240_s16 = sshll.u32 (!%p140_p2), %s1235_s13, 5  ;;  %v1689_v2 = vld [vmem:[%s2032_s1 + $0x48] sm:$0xff] (!%p140_p2)   ;;  %v1691_v4 = vld [vmem:[%s2032_s1 + $0x50] sm:$0xff] (!%p140_p2)  }
   0x6   : > { %143 = sbr.rel (%p140_p2) target bundleno = 350 (0x15e), region = 32  ;;  %v1688_v1 = vld [vmem:[%s2032_s1] sm:$0xff] (!%p140_p2)   ;;  %1478 = vmatprep.subr.bf16.mxu0 (!%p140_p2), %v1687_v0  ;;  %1662 = vmatprep.subr.bf16.mxu1 (!%p140_p2), %v1687_v0  ;;  %p165_p3 = scmp.lt.s32.totalorder (!%p140_p2), %s1240_s16, 63  ;;  %v1690_v3 = vld [vmem:[%s2032_s1 + $0x8] sm:$0xff] (!%p140_p2)   ;;  %v1692_v5 = vld [vmem:[%s2032_s1 + $0x10] sm:$0xff] (!%p140_p2)  }
   0x7   : > { %1479 = vmatpush3.bf16.msra.mxu0 (!%p140_p2), %v1688_v1  ;;  %1670 = vmatpush3.bf16.msra.mxu1 (!%p140_p2), %v1688_v1  ;;  %v1693_v6 = vld [vmem:[%s2032_s1 + $0x58] sm:$0xff] (!%p140_p2)   ;;  %v1695_v8 = vld [vmem:[%s2032_s1 + $0x60] sm:$0xff] (!%p140_p2)   ;;  %v1697_v10 = vld [vmem:[%s2032_s1 + $0x68] sm:$0xff] (!%p140_p2)  }
   0x8   : > { %1480 = vmatprep.subr.bf16.mxu0 (!%p140_p2), %v1689_v2  ;;  %1663 = vmatprep.subr.bf16.mxu1 (!%p140_p2), %v1689_v2  ;;  %v1694_v7 = vld [vmem:[%s2032_s1 + $0x18] sm:$0xff] (!%p140_p2)   ;;  %v1696_v9 = vld [vmem:[%s2032_s1 + $0x20] sm:$0xff] (!%p140_p2)   ;;  %v1698_v13 = vld [vmem:[%s2032_s1 + $0x28] sm:$0xff] (!%p140_p2)  }
   0x9   : > { %v1699_v14 = vld [vmem:[%s2032_s1 + $0x70] sm:$0xff] (!%p140_p2)   ;;  %v1701_v16 = vld [vmem:[%s2032_s1 + $0x78] sm:$0xff] (!%p140_p2)   ;;  %v1709_v18 = vld [vmem:[%s2032_s1 + $0x80] sm:$0xff] (!%p140_p2)  }
   0xa   : > { %v1700_v15 = vld [vmem:[%s2032_s1 + $0x30] sm:$0xff] (!%p140_p2)   ;;  %v1702_v17 = vld [vmem:[%s2032_s1 + $0x38] sm:$0xff] (!%p140_p2)   ;;  %v1710_v22 = vld [vmem:[%s2032_s1 + $0x88] sm:$0xff] (!%p140_p2)  }
   0xb   : > { %1481 = vmatpush3.bf16.msra.mxu0 (!%p140_p2), %v1690_v3  ;;  %1671 = vmatpush3.bf16.msra.mxu1 (!%p140_p2), %v1690_v3  ;;  %v1717_v25 = vld [vmem:[%s2032_s1 + $0x90] sm:$0xff] (!%p140_p2)   ;;  %v1718_v27 = vld [vmem:[%s2032_s1 + $0x98] sm:$0xff] (!%p140_p2)   ;;  %v1725_v30 = vld [vmem:[%s2032_s1 + $0xa0] sm:$0xff] (!%p140_p2)  }
   0xc   : > { %1482 = vmatprep.subr.bf16.mxu0 (!%p140_p2), %v1691_v4  ;;  %1664 = vmatprep.subr.bf16.mxu1 (!%p140_p2), %v1691_v4  ;;  %v1726_v33 = vld [vmem:[%s2032_s1 + $0xa8] sm:$0xff] (!%p140_p2)   ;;  %v1733_v36 = vld [vmem:[%s2032_s1 + $0xb0] sm:$0xff] (!%p140_p2)   ;;  %v1734_v40 = vld [vmem:[%s2032_s1 + $0xb8] sm:$0xff] (!%p140_p2)  }
   0xd   : > { %s2036_s16 = smov (!%p165_p3, %s1240_s16), 63 }
   0xe   : > { %s1678_s29 = smul.u32 12, %s2036_s16  ;;  %s1243_s19 = sshll.u32 %s2036_s16, 2 }
   0xf   : > { %1483 = vmatpush3.bf16.msra.mxu0 %v1692_v5  ;;  %1672 = vmatpush3.bf16.msra.mxu1 %v1692_v5  ;;  %s1968_s22 = scalar_lea.vmem %s2034_s3, %s1243_s19 }
  0x10   : > { %1484 = vmatprep.subr.bf16.mxu0 %v1693_v6  ;;  %1665 = vmatprep.subr.bf16.mxu1 %v1693_v6  ;;  %s1844_s9 = scalar_lea.vmem %s2031_s0, %s1678_s29 }
  0x11   : > { %v1705_v11 = vld [vmem:[%s1844_s9 + $0x4] ss:$12 sps:$4 sm:$0xff]   ;;  %v1703_v19 = vld [vmem:[%s1844_s9] ss:$12 sps:$4 sm:$0xff]   ;;  %v1711_v21 = vld [vmem:[%s1844_s9 + $0x1c] ss:$12 sps:$4 sm:$0xff]  }
  0x12   : > { %v1708_v12 = vld [vmem:[%s1844_s9 + $0x124] ss:$12 sps:$4 sm:$0xff]   ;;  %729 = vmatprep.mubr.bf16.mxu0 %v1705_v11  ;;  %v1706_v20 = vld [vmem:[%s1844_s9 + $0x120] ss:$12 sps:$4 sm:$0xff]   ;;  %v1713_v23 = vld [vmem:[%s1844_s9 + $0x13c] ss:$12 sps:$4 sm:$0xff]  }
  0x13   : > { %1485 = vmatpush3.bf16.msra.mxu0 %v1694_v7  ;;  %1673 = vmatpush3.bf16.msra.mxu1 %v1694_v7  ;;  %v1715_v24 = vld [vmem:[%s1844_s9 + $0x18] ss:$12 sps:$4 sm:$0xff]   ;;  %v1719_v28 = vld [vmem:[%s1844_s9 + $0x34] ss:$12 sps:$4 sm:$0xff]   ;;  %v1723_v31 = vld [vmem:[%s1844_s9 + $0x30] ss:$12 sps:$4 sm:$0xff]  }
  0x14   : > { %1486 = vmatprep.subr.bf16.mxu0 %v1695_v8  ;;  %1666 = vmatprep.subr.bf16.mxu1 %v1695_v8  ;;  %v1716_v26 = vld [vmem:[%s1844_s9 + $0x138] ss:$12 sps:$4 sm:$0xff]   ;;  %v1721_v29 = vld [vmem:[%s1844_s9 + $0x154] ss:$12 sps:$4 sm:$0xff]   ;;  %v1724_v32 = vld [vmem:[%s1844_s9 + $0x150] ss:$12 sps:$4 sm:$0xff]  }
  0x15   : > { %825 = vmatprep.mubr.bf16.mxu1 %v1708_v12  ;;  %v1727_v34 = vld [vmem:[%s1844_s9 + $0x4c] ss:$12 sps:$4 sm:$0xff]   ;;  %v1731_v37 = vld [vmem:[%s1844_s9 + $0x48] ss:$12 sps:$4 sm:$0xff]   ;;  %v1735_v39 = vld [vmem:[%s1844_s9 + $0x64] ss:$12 sps:$4 sm:$0xff]  }
  0x16   : > { %v1729_v35 = vld [vmem:[%s1844_s9 + $0x16c] ss:$12 sps:$4 sm:$0xff]   ;;  %v1732_v38 = vld [vmem:[%s1844_s9 + $0x168] ss:$12 sps:$4 sm:$0xff]   ;;  %v1744_v47 = vld [vmem:[%s1844_s9 + $0x50] ss:$12 sps:$4 sm:$0xff]  }
  0x17   : > { %1487 = vmatpush3.bf16.msra.mxu0 %v1696_v9  ;;  %1674 = vmatpush3.bf16.msra.mxu1 %v1696_v9  ;;  %v1737_v41 = vld [vmem:[%s1844_s9 + $0x8] ss:$12 sps:$4 sm:$0xff]   ;;  %v1738_v42 = vld [vmem:[%s1844_s9 + $0x60] ss:$12 sps:$4 sm:$0xff]   ;;  %v1742_v45 = vld [vmem:[%s1844_s9 + $0x38] ss:$12 sps:$4 sm:$0xff]  }
  0x18   : > { %1488 = vmatprep.subr.bf16.mxu0 %v1697_v10  ;;  %1667 = vmatprep.subr.bf16.mxu1 %v1697_v10  ;;  %v1739_v43 = vld [vmem:[%s1844_s9 + $0x20] ss:$12 sps:$4 sm:$0xff]   ;;  %v1740_v44 = vld [vmem:[%s1844_s9 + $0x7c] ss:$12 sps:$4 sm:$0xff]   ;;  %v1743_v46 = vld [vmem:[%s1844_s9 + $0x78] ss:$12 sps:$4 sm:$0xff]  }
  0x19   : > { %v1745_v48 = vld [vmem:[%s1844_s9 + $0x94] ss:$12 sps:$4 sm:$0xff]   ;;  %v1748_v50 = vld [vmem:[%s1844_s9 + $0x90] ss:$12 sps:$4 sm:$0xff]   ;;  %v1750_v52 = vld [vmem:[%s1844_s9 + $0xac] ss:$12 sps:$4 sm:$0xff]  }
  0x1a   : > { %v1747_v49 = vld [vmem:[%s1844_s9 + $0x68] ss:$12 sps:$4 sm:$0xff]   ;;  %v1749_v51 = vld [vmem:[%s1844_s9 + $0x80] ss:$12 sps:$4 sm:$0xff]   ;;  %v1752_v53 = vld [vmem:[%s1844_s9 + $0x98] ss:$12 sps:$4 sm:$0xff]  }
  0x1b   : > { %1489 = vmatpush3.bf16.msra.mxu0 %v1698_v13  ;;  %1675 = vmatpush3.bf16.msra.mxu1 %v1698_v13  ;;  %v1753_v54 = vld [vmem:[%s1844_s9 + $0xa8] ss:$12 sps:$4 sm:$0xff]   ;;  %v1754_v55 = vld [vmem:[%s1844_s9 + $0xb0] ss:$12 sps:$4 sm:$0xff]   ;;  %v1758_v58 = vld [vmem:[%s1844_s9 + $0xc0] ss:$12 sps:$4 sm:$0xff]  }
  0x1c   : > { %1490 = vmatprep.subr.bf16.mxu0 %v1699_v14  ;;  %1668 = vmatprep.subr.bf16.mxu1 %v1699_v14  ;;  %v1755_v56 = vld [vmem:[%s1844_s9 + $0xc4] ss:$12 sps:$4 sm:$0xff]   ;;  %v1757_v57 = vld [vmem:[%s1844_s9 + $0xc8] ss:$12 sps:$4 sm:$0xff]   ;;  %v1759_v59 = vld [vmem:[%s1844_s9 + $0xe0] ss:$12 sps:$4 sm:$0xff]  }
  0x1d   : > { %v1760_v60 = vld [vmem:[%s1844_s9 + $0xdc] ss:$12 sps:$4 sm:$0xff]   ;;  %v1762_v61 = vld [vmem:[%s1844_s9 + $0xf8] ss:$12 sps:$4 sm:$0xff]   ;;  %v1765_v0 = vld [vmem:[%s1844_s9 + $0xf4] ss:$12 sps:$4 sm:$0xff]  }
  0x1e   : > { %v1763_v62 = vld [vmem:[%s1844_s9 + $0xd8] ss:$12 sps:$4 sm:$0xff]   ;;  %v1764_v63 = vld [vmem:[%s1844_s9 + $0x110] ss:$12 sps:$4 sm:$0xff]   ;;  %v1767_v1 = vld [vmem:[%s1844_s9 + $0x128] ss:$12 sps:$4 sm:$0xff]  }
  0x1f   : > { %1491 = vmatpush3.bf16.msra.mxu0 %v1700_v15  ;;  %1676 = vmatpush3.bf16.msra.mxu1 %v1700_v15  ;;  %v1768_v2 = vld [vmem:[%s1844_s9 + $0xf0] ss:$12 sps:$4 sm:$0xff]   ;;  %v1769_v3 = vld [vmem:[%s1844_s9 + $0x140] ss:$12 sps:$4 sm:$0xff]   ;;  %v1772_v5 = vld [vmem:[%s1844_s9 + $0x158] ss:$12 sps:$4 sm:$0xff]  }
  0x20   : > { %1492 = vmatprep.subr.bf16.mxu0 %v1701_v16  ;;  %1669 = vmatprep.subr.bf16.mxu1 %v1701_v16  ;;  %v1770_v4 = vld [vmem:[%s1844_s9 + $0x10c] ss:$12 sps:$4 sm:$0xff]   ;;  %v1773_v6 = vld [vmem:[%s1844_s9 + $0x108] ss:$12 sps:$4 sm:$0xff]   ;;  %v1774_v7 = vld [vmem:[%s1844_s9 + $0x170] ss:$12 sps:$4 sm:$0xff]  }
  0x23   : > { %1493 = vmatpush3.bf16.msra.mxu0 %v1702_v17  ;;  %1677 = vmatpush3.bf16.msra.mxu1 %v1702_v17 }
  0x24   : > { %1614 = vmatprep.subr.bf16.mxu1 %v1709_v18 }
  0x26   : > { %730 = vmatmul.mubr.bf16.vlgmr.msra.gmra.mrb[0].mxu0 %v1703_v19  ;;  %826 = vmatmul.mubr.bf16.vlgmr.msra.gmra.mrb[0].mxu1 %v1706_v20 }
  0x27   : > { %1615 = vmatpush3.bf16.msra.mxu1 %v1709_v18  ;;  %737 = vmatprep.mubr.bf16.mxu0 %v1711_v21 }
  0x28   : > { %1616 = vmatprep.subr.bf16.mxu1 %v1710_v22  ;;  %833 = vmatprep.mubr.bf16.mxu1 %v1713_v23 }
  0x2b   : > { %1617 = vmatpush3.bf16.msra.mxu1 %v1710_v22 }
  0x2c   : > { %1618 = vmatprep.subr.bf16.mxu1 %v1717_v25 }
  0x2e   : > { %738 = vmatmul.mubr.bf16.gmra.mrb[4].mxu0 %v1715_v24  ;;  %834 = vmatmul.mubr.bf16.gmra.mrb[4].mxu1 %v1716_v26 }
  0x2f   : > { %1619 = vmatpush3.bf16.msra.mxu1 %v1717_v25  ;;  %745 = vmatprep.mubr.bf16.mxu0 %v1719_v28 }
  0x30   : > { %1620 = vmatprep.subr.bf16.mxu1 %v1718_v27  ;;  %841 = vmatprep.mubr.bf16.mxu1 %v1721_v29 }
  0x33   : > { %1621 = vmatpush3.bf16.msra.mxu1 %v1718_v27 }
  0x34   : > { %1622 = vmatprep.subr.bf16.mxu1 %v1725_v30 }
  0x36   : > { %746 = vmatmul.mubr.bf16.gmra.mrb[8].mxu0 %v1723_v31  ;;  %842 = vmatmul.mubr.bf16.gmra.mrb[8].mxu1 %v1724_v32 }
  0x37   : > { %1623 = vmatpush3.bf16.msra.mxu1 %v1725_v30  ;;  %753 = vmatprep.mubr.bf16.mxu0 %v1727_v34 }
  0x38   : > { %1624 = vmatprep.subr.bf16.mxu1 %v1726_v33  ;;  %849 = vmatprep.mubr.bf16.mxu1 %v1729_v35 }
  0x3b   : > { %1625 = vmatpush3.bf16.msra.mxu1 %v1726_v33 }
  0x3c   : > { %1626 = vmatprep.subr.bf16.mxu1 %v1733_v36 }
  0x3e   : > { %754 = vmatmul.mubr.bf16.gmra.mrb[12].mxu0 %v1731_v37  ;;  %850 = vmatmul.mubr.bf16.gmra.mrb[12].mxu1 %v1732_v38 }
  0x3f   : > { %1627 = vmatpush3.bf16.msra.mxu1 %v1733_v36  ;;  %761 = vmatprep.mubr.bf16.mxu0 %v1735_v39 }
  0x40   : > { %1628 = vmatprep.subr.bf16.mxu1 %v1734_v40  ;;  %1630 = vmatprep.mubr.bf16.mxu1 %v1737_v41 }
  0x43   : > { %1629 = vmatpush3.bf16.msra.mxu1 %v1734_v40 }
  0x46   : > { %762 = vmatmul.mubr.bf16.gmra.mrb[16].mxu0 %v1738_v42  ;;  %1631 = vmatmul.mubr.bf16.vlgmr.msra.gmra.mrb[16].mxu1 %v1739_v43 }
  0x47   : > { %769 = vmatprep.mubr.bf16.mxu0 %v1740_v44  ;;  %1634 = vmatprep.mubr.bf16.mxu1 %v1742_v45 }
  0x4e   : > { %770 = vmatmul.mubr.bf16.gmra.mrb[20].mxu0 %v1743_v46  ;;  %1635 = vmatmul.mubr.bf16.gmra.mrb[20].mxu1 %v1744_v47 }
  0x4f   : > { %777 = vmatprep.mubr.bf16.mxu0 %v1745_v48  ;;  %1638 = vmatprep.mubr.bf16.mxu1 %v1747_v49 }
  0x56   : > { %778 = vmatmul.mubr.bf16.gmra.mrb[24].mxu0 %v1748_v50  ;;  %1639 = vmatmul.mubr.bf16.gmra.mrb[24].mxu1 %v1749_v51 }
  0x57   : > { %785 = vmatprep.mubr.bf16.mxu0 %v1750_v52  ;;  %1642 = vmatprep.mubr.bf16.mxu1 %v1752_v53 }
  0x5e   : > { %786 = vmatmul.mubr.bf16.gmra.mrb[28].mxu0 %v1753_v54  ;;  %1643 = vmatmul.mubr.bf16.gmra.mrb[28].mxu1 %v1754_v55 }
  0x5f   : > { %793 = vmatprep.mubr.bf16.mxu0 %v1755_v56  ;;  %1646 = vmatprep.mubr.bf16.mxu1 %v1757_v57  ;;  %v1958_v56 = vld [vmem:[%s2033_s2] ss:$0 sm:$0xff] }
  0x66   : > { %794 = vmatmul.mubr.bf16.gmra.mrb[32].mxu0 %v1758_v58  ;;  %1647 = vmatmul.mubr.bf16.gmra.mrb[32].mxu1 %v1759_v59 }
  0x67   : > { %801 = vmatprep.mubr.bf16.mxu0 %v1760_v60  ;;  %1650 = vmatprep.mubr.bf16.mxu1 %v1762_v61 }
  0x6e   : > { %802 = vmatmul.mubr.bf16.gmra.mrb[36].mxu0 %v1763_v62  ;;  %1651 = vmatmul.mubr.bf16.gmra.mrb[36].mxu1 %v1764_v63 }
  0x6f   : > { %809 = vmatprep.mubr.bf16.mxu0 %v1765_v0  ;;  %1654 = vmatprep.mubr.bf16.mxu1 %v1767_v1 }
  0x76   : > { %810 = vmatmul.mubr.bf16.gmra.mrb[40].mxu0 %v1768_v2  ;;  %1655 = vmatmul.mubr.bf16.gmra.mrb[40].mxu1 %v1769_v3 }
  0x77   : > { %817 = vmatprep.mubr.bf16.mxu0 %v1770_v4  ;;  %1658 = vmatprep.mubr.bf16.mxu1 %v1772_v5 }
  0x7e   : > { %818 = vmatmul.mubr.bf16.gmra.mrb[44].mxu0 %v1773_v6  ;;  %1659 = vmatmul.mubr.bf16.gmra.mrb[44].mxu1 %v1774_v7 }
  0xf9   : > { %v1494_v8 = vpop.f32.mrb[0].mxu0  ;;  %v1566_v9 = vpop.f32.mrb[0].mxu1 }
  0xfa   : > { %v1495_v10 = vpop.f32.mrb[1].mxu0  ;;  %v1567_v11 = vpop.f32.mrb[1].mxu1 }
  0xfb   : > { %v1496_v12 = vadd.f32 %v1495_v10, %v1494_v8  ;;  %v1497_v13 = vpop.f32.mrb[2].mxu0  ;;  %v1939_v14 = vadd.f32 %v1567_v11, %v1566_v9  ;;  %v1569_v15 = vpop.f32.mrb[2].mxu1 }
  0xfc   : > { %v1498_v16 = vpop.f32.mrb[3].mxu0  ;;  %v1570_v17 = vpop.f32.mrb[3].mxu1 }
  0xfd   : > { %v1499_v18 = vadd.f32 %v1498_v16, %v1497_v13  ;;  %v1941_v19 = vadd.f32 %v1570_v17, %v1569_v15  ;;  %v732_v60 = vadd.f32 %v1496_v12, %v1958_v56 }
  0xff   : > { %v735_v5 = vadd.f32 %v1499_v18, %v1958_v56 }
 0x101   : > { %v1500_v20 = vpop.f32.mrb[4].mxu0  ;;  %v1572_v21 = vpop.f32.mrb[4].mxu1 }
 0x102   : > { %v1501_v22 = vpop.f32.mrb[5].mxu0  ;;  %v1573_v23 = vpop.f32.mrb[5].mxu1 }
 0x103   : > { %v1502_v24 = vadd.f32 %v1501_v22, %v1500_v20  ;;  %v1503_v25 = vpop.f32.mrb[6].mxu0  ;;  %v1943_v26 = vadd.f32 %v1573_v23, %v1572_v21  ;;  %v1575_v27 = vpop.f32.mrb[6].mxu1 }
 0x104   : > { %v1504_v28 = vpop.f32.mrb[7].mxu0  ;;  %v1576_v29 = vpop.f32.mrb[7].mxu1 }
 0x105   : > { %v1505_v30 = vadd.f32 %v1504_v28, %v1503_v25  ;;  %v1945_v31 = vadd.f32 %v1576_v29, %v1575_v27  ;;  %v740_v57 = vadd.f32 %v1502_v24, %v1958_v56 }
 0x107   : > { %v743_v0 = vadd.f32 %v1505_v30, %v1958_v56 }
 0x109   : > { %v1506_v32 = vpop.f32.mrb[8].mxu0  ;;  %v1578_v33 = vpop.f32.mrb[8].mxu1 }
 0x10a   : > { %v1507_v34 = vpop.f32.mrb[9].mxu0  ;;  %v1579_v35 = vpop.f32.mrb[9].mxu1 }
 0x10b   : > { %v1508_v36 = vadd.f32 %v1507_v34, %v1506_v32  ;;  %v1509_v37 = vpop.f32.mrb[10].mxu0  ;;  %v1947_v38 = vadd.f32 %v1579_v35, %v1578_v33  ;;  %v1581_v39 = vpop.f32.mrb[10].mxu1 }
 0x10c   : > { %v1510_v40 = vpop.f32.mrb[11].mxu0  ;;  %v1582_v41 = vpop.f32.mrb[11].mxu1 }
 0x10d   : > { %v1511_v42 = vadd.f32 %v1510_v40, %v1509_v37  ;;  %v1949_v43 = vadd.f32 %v1582_v41, %v1581_v39  ;;  %v748_v17 = vadd.f32 %v1508_v36, %v1958_v56 }
 0x10f   : > { %v751_v28 = vadd.f32 %v1511_v42, %v1958_v56 }
 0x111   : > { %v1512_v44 = vpop.f32.mrb[12].mxu0  ;;  %v1584_v45 = vpop.f32.mrb[12].mxu1 }
 0x112   : > { %v1513_v46 = vpop.f32.mrb[13].mxu0  ;;  %v1585_v47 = vpop.f32.mrb[13].mxu1 }
 0x113   : > { %v1514_v48 = vadd.f32 %v1513_v46, %v1512_v44  ;;  %v1515_v49 = vpop.f32.mrb[14].mxu0  ;;  %v1951_v50 = vadd.f32 %v1585_v47, %v1584_v45  ;;  %v1587_v51 = vpop.f32.mrb[14].mxu1 }
 0x114   : > { %v1516_v52 = vpop.f32.mrb[15].mxu0  ;;  %v1588_v53 = vpop.f32.mrb[15].mxu1 }
 0x115   : > { %v1517_v54 = vadd.f32 %v1516_v52, %v1515_v49  ;;  %v1953_v55 = vadd.f32 %v1588_v53, %v1587_v51  ;;  %v756_v13 = vadd.f32 %v1514_v48, %v1958_v56 }
 0x117   : > { %v759_v22 = vadd.f32 %v1517_v54, %v1958_v56 }
 0x119   : > { %v1518_v58 = vpop.f32.mrb[16].mxu0  ;;  %v1632_v59 = vpop.f32.mrb[16].mxu1 }
 0x11a   : > { %v901_v61 = vadd.f32 %v1632_v59, %v740_v57  ;;  %v1519_v62 = vpop.f32.mrb[17].mxu0  ;;  %v892_v63 = vpop.f32.mrb[17].mxu1 }
 0x11b   : > { %v1520_v1 = vadd.f32 %v1519_v62, %v1518_v58  ;;  %v893_v2 = vadd.f32 %v892_v63, %v732_v60  ;;  %v1521_v3 = vpop.f32.mrb[18].mxu0  ;;  %v1633_v4 = vpop.f32.mrb[18].mxu1 }
 0x11c   : > { %v904_v6 = vadd.f32 %v1633_v4, %v743_v0  ;;  %v1522_v7 = vpop.f32.mrb[19].mxu0  ;;  %v895_v8 = vpop.f32.mrb[19].mxu1 }
 0x11d   : > { %v1523_v9 = vadd.f32 %v1522_v7, %v1521_v3  ;;  %v896_v10 = vadd.f32 %v895_v8, %v735_v5  ;;  %v764_v41 = vadd.f32 %v1520_v1, %v1958_v56 }
 0x11e   : > { %v1391_v11 = vpack.c.bf16 %v904_v6, %v901_v61 }
 0x11f   : > { %v1386_v12 = vpack.c.bf16 %v896_v10, %v893_v2  ;;  %v767_v52 = vadd.f32 %v1523_v9, %v1958_v56 }
 0x120   : > { %1463 = vst [vmem:[%s1968_s22 + $0x8] sm:$0xff] %v1391_v11  }
 0x121   : > { %1387 = vst [vmem:[%s1968_s22] sm:$0xff] %v1386_v12   ;;  %v1524_v15 = vpop.f32.mrb[20].mxu0  ;;  %v1636_v16 = vpop.f32.mrb[20].mxu1 }
 0x122   : > { %v917_v18 = vadd.f32 %v1636_v16, %v756_v13  ;;  %v1525_v20 = vpop.f32.mrb[21].mxu0  ;;  %v908_v21 = vpop.f32.mrb[21].mxu1 }
 0x123   : > { %v1526_v23 = vadd.f32 %v1525_v20, %v1524_v15  ;;  %v909_v24 = vadd.f32 %v908_v21, %v748_v17  ;;  %v1527_v25 = vpop.f32.mrb[22].mxu0  ;;  %v1637_v27 = vpop.f32.mrb[22].mxu1 }
 0x124   : > { %v920_v29 = vadd.f32 %v1637_v27, %v759_v22  ;;  %v1528_v30 = vpop.f32.mrb[23].mxu0  ;;  %v911_v32 = vpop.f32.mrb[23].mxu1 }
 0x125   : > { %v1529_v33 = vadd.f32 %v1528_v30, %v1527_v25  ;;  %v912_v34 = vadd.f32 %v911_v32, %v751_v28  ;;  %v772_v37 = vadd.f32 %v1526_v23, %v1958_v56 }
 0x126   : > { %v1401_v35 = vpack.c.bf16 %v920_v29, %v917_v18 }
 0x127   : > { %v1396_v36 = vpack.c.bf16 %v912_v34, %v909_v24  ;;  %v775_v46 = vadd.f32 %v1529_v33, %v1958_v56 }
 0x128   : > { %1465 = vst [vmem:[%s1968_s22 + $0x18] sm:$0xff] %v1401_v35  }
 0x129   : > { %1464 = vst [vmem:[%s1968_s22 + $0x10] sm:$0xff] %v1396_v36   ;;  %v1530_v39 = vpop.f32.mrb[24].mxu0  ;;  %v1640_v40 = vpop.f32.mrb[24].mxu1 }
 0x12a   : > { %v933_v44 = vadd.f32 %v1640_v40, %v772_v37  ;;  %v1531_v45 = vpop.f32.mrb[25].mxu0  ;;  %v924_v42 = vpop.f32.mrb[25].mxu1 }
 0x12b   : > { %v1532_v47 = vadd.f32 %v1531_v45, %v1530_v39  ;;  %v925_v48 = vadd.f32 %v924_v42, %v764_v41  ;;  %v1533_v49 = vpop.f32.mrb[26].mxu0  ;;  %v1641_v51 = vpop.f32.mrb[26].mxu1 }
 0x12c   : > { %v936_v53 = vadd.f32 %v1641_v51, %v775_v46  ;;  %v1534_v54 = vpop.f32.mrb[27].mxu0  ;;  %v927_v57 = vpop.f32.mrb[27].mxu1 }
 0x12d   : > { %v1535_v58 = vadd.f32 %v1534_v54, %v1533_v49  ;;  %v928_v59 = vadd.f32 %v927_v57, %v767_v52  ;;  %v780_v0 = vadd.f32 %v1532_v47, %v1958_v56 }
 0x12e   : > { %v1411_v60 = vpack.c.bf16 %v936_v53, %v933_v44  ;;  %v836_v53 = vadd.f32 %v1943_v26, %v1958_v56  ;;  %v831_v26 = vadd.f32 %v1941_v19, %v1958_v56 }
 0x12f   : > { %v1406_v61 = vpack.c.bf16 %v928_v59, %v925_v48  ;;  %v783_v7 = vadd.f32 %v1535_v58, %v1958_v56  ;;  %v828_v59 = vadd.f32 %v1939_v14, %v1958_v56 }
 0x130   : > { %1467 = vst [vmem:[%s1968_s22 + $0x28] sm:$0xff] %v1411_v60  }
 0x131   : > { %1466 = vst [vmem:[%s1968_s22 + $0x20] sm:$0xff] %v1406_v61   ;;  %v1536_v62 = vpop.f32.mrb[28].mxu0  ;;  %v1644_v63 = vpop.f32.mrb[28].mxu1 }
 0x132   : > { %v1537_v1 = vpop.f32.mrb[29].mxu0  ;;  %v940_v2 = vpop.f32.mrb[29].mxu1 }
 0x133   : > { %v1538_v3 = vadd.f32 %v1537_v1, %v1536_v62  ;;  %v941_v4 = vadd.f32 %v940_v2, %v780_v0  ;;  %v1539_v5 = vpop.f32.mrb[30].mxu0  ;;  %v1645_v6 = vpop.f32.mrb[30].mxu1 }
 0x134   : > { %v1540_v8 = vpop.f32.mrb[31].mxu0  ;;  %v943_v9 = vpop.f32.mrb[31].mxu1 }
 0x135   : > { %v788_v10 = vadd.f32 %v1538_v3, %v1958_v56  ;;  %v1541_v11 = vadd.f32 %v1540_v8, %v1539_v5  ;;  %v944_v12 = vadd.f32 %v943_v9, %v783_v7 }
 0x137   : > { %v949_v13 = vadd.f32 %v1644_v63, %v788_v10  ;;  %v791_v15 = vadd.f32 %v1541_v11, %v1958_v56  ;;  %v1416_v16 = vpack.c.bf16 %v944_v12, %v941_v4  ;;  %v839_v63 = vadd.f32 %v1945_v31, %v1958_v56 }
 0x139   : > { %v952_v17 = vadd.f32 %v1645_v6, %v791_v15  ;;  %1468 = vst [vmem:[%s1968_s22 + $0x30] sm:$0xff] %v1416_v16   ;;  %v1542_v18 = vpop.f32.mrb[32].mxu0  ;;  %v1648_v20 = vpop.f32.mrb[32].mxu1 }
 0x13a   : > { %v1543_v21 = vpop.f32.mrb[33].mxu0  ;;  %v956_v22 = vpop.f32.mrb[33].mxu1 }
 0x13b   : > { %v1421_v23 = vpack.c.bf16 %v952_v17, %v949_v13  ;;  %v1544_v24 = vadd.f32 %v1543_v21, %v1542_v18  ;;  %v1545_v25 = vpop.f32.mrb[34].mxu0  ;;  %v1649_v27 = vpop.f32.mrb[34].mxu1  ;;  %v852_v13 = vadd.f32 %v1951_v50, %v1958_v56  ;;  %v844_v17 = vadd.f32 %v1947_v38, %v1958_v56 }
 0x13c   : > { %v1546_v28 = vpop.f32.mrb[35].mxu0  ;;  %v959_v29 = vpop.f32.mrb[35].mxu1 }
 0x13d   : > { %1469 = vst [vmem:[%s1968_s22 + $0x38] sm:$0xff] %v1421_v23   ;;  %v796_v30 = vadd.f32 %v1544_v24, %v1958_v56  ;;  %v1547_v32 = vadd.f32 %v1546_v28, %v1545_v25  ;;  %v847_v28 = vadd.f32 %v1949_v43, %v1958_v56 }
 0x13f   : > { %v957_v33 = vadd.f32 %v956_v22, %v796_v30  ;;  %v799_v34 = vadd.f32 %v1547_v32, %v1958_v56  ;;  %v855_v22 = vadd.f32 %v1953_v55, %v1958_v56 }
 0x141   : > { %v960_v35 = vadd.f32 %v959_v29, %v799_v34  ;;  %v1548_v36 = vpop.f32.mrb[36].mxu0  ;;  %v1992_v37 = vpop.f32.mrb[36].mxu1 }
 0x142   : > { %v1549_v39 = vpop.f32.mrb[37].mxu0  ;;  %v972_v40 = vpop.f32.mrb[37].mxu1 }
 0x143   : > { %v1426_v41 = vpack.c.bf16 %v960_v35, %v957_v33  ;;  %v1550_v44 = vadd.f32 %v1549_v39, %v1548_v36  ;;  %v1551_v45 = vpop.f32.mrb[38].mxu0  ;;  %v1994_v42 = vpop.f32.mrb[38].mxu1 }
 0x144   : > { %v1552_v46 = vpop.f32.mrb[39].mxu0  ;;  %v975_v47 = vpop.f32.mrb[39].mxu1 }
 0x145   : > { %1470 = vst [vmem:[%s1968_s22 + $0x40] sm:$0xff] %v1426_v41   ;;  %v804_v48 = vadd.f32 %v1550_v44, %v1958_v56  ;;  %v1553_v49 = vadd.f32 %v1552_v46, %v1551_v45 }
 0x147   : > { %v965_v51 = vadd.f32 %v1648_v20, %v804_v48  ;;  %v807_v52 = vadd.f32 %v1553_v49, %v1958_v56 }
 0x149   : > { %v968_v54 = vadd.f32 %v1649_v27, %v807_v52  ;;  %v1554_v57 = vpop.f32.mrb[40].mxu0  ;;  %v1656_v58 = vpop.f32.mrb[40].mxu1 }
 0x14a   : > { %v997_v60 = vadd.f32 %v1656_v58, %v836_v53  ;;  %v1555_v61 = vpop.f32.mrb[41].mxu0  ;;  %v988_v62 = vpop.f32.mrb[41].mxu1 }
 0x14b   : > { %v1431_v0 = vpack.c.bf16 %v968_v54, %v965_v51  ;;  %v1556_v1 = vadd.f32 %v1555_v61, %v1554_v57  ;;  %v989_v2 = vadd.f32 %v988_v62, %v828_v59  ;;  %v1557_v3 = vpop.f32.mrb[42].mxu0  ;;  %v1657_v4 = vpop.f32.mrb[42].mxu1 }
 0x14c   : > { %v1000_v5 = vadd.f32 %v1657_v4, %v839_v63  ;;  %v1558_v6 = vpop.f32.mrb[43].mxu0  ;;  %v991_v7 = vpop.f32.mrb[43].mxu1 }
 0x14d   : > { %1471 = vst [vmem:[%s1968_s22 + $0x48] sm:$0xff] %v1431_v0   ;;  %v812_v14 = vadd.f32 %v1556_v1, %v1958_v56  ;;  %v1559_v8 = vadd.f32 %v1558_v6, %v1557_v3  ;;  %v992_v9 = vadd.f32 %v991_v7, %v831_v26 }
 0x14e   : > { %v1451_v10 = vpack.c.bf16 %v1000_v5, %v997_v60 }
 0x14f   : > { %v973_v31 = vadd.f32 %v972_v40, %v812_v14  ;;  %v815_v11 = vadd.f32 %v1559_v8, %v1958_v56  ;;  %v1446_v12 = vpack.c.bf16 %v992_v9, %v989_v2 }
 0x150   : > { %1475 = vst [vmem:[%s1968_s22 + $0x68] sm:$0xff] %v1451_v10  }
 0x151   : > { %v976_v15 = vadd.f32 %v975_v47, %v815_v11  ;;  %1474 = vst [vmem:[%s1968_s22 + $0x60] sm:$0xff] %v1446_v12   ;;  %v1560_v19 = vpop.f32.mrb[44].mxu0  ;;  %v1660_v16 = vpop.f32.mrb[44].mxu1 }
 0x152   : > { %v1013_v18 = vadd.f32 %v1660_v16, %v852_v13  ;;  %v1561_v20 = vpop.f32.mrb[45].mxu0  ;;  %v1004_v21 = vpop.f32.mrb[45].mxu1 }
 0x153   : > { %v1436_v23 = vpack.c.bf16 %v976_v15, %v973_v31  ;;  %v1562_v24 = vadd.f32 %v1561_v20, %v1560_v19  ;;  %v1005_v25 = vadd.f32 %v1004_v21, %v844_v17  ;;  %v1563_v27 = vpop.f32.mrb[46].mxu0  ;;  %v1661_v50 = vpop.f32.mrb[46].mxu1 }
 0x154   : > { %v1016_v29 = vadd.f32 %v1661_v50, %v855_v22  ;;  %v1564_v30 = vpop.f32.mrb[47].mxu0  ;;  %v1007_v38 = vpop.f32.mrb[47].mxu1 }
 0x155   : > { %1472 = vst [vmem:[%s1968_s22 + $0x50] sm:$0xff] %v1436_v23   ;;  %v820_v32 = vadd.f32 %v1562_v24, %v1958_v56  ;;  %v1565_v33 = vadd.f32 %v1564_v30, %v1563_v27  ;;  %v1008_v34 = vadd.f32 %v1007_v38, %v847_v28 }
 0x156   : > { %v1461_v55 = vpack.c.bf16 %v1016_v29, %v1013_v18 }
 0x157   : > { %v981_v35 = vadd.f32 %v1992_v37, %v820_v32  ;;  %v823_v36 = vadd.f32 %v1565_v33, %v1958_v56  ;;  %v1456_v39 = vpack.c.bf16 %v1008_v34, %v1005_v25 }
 0x158   : > { %1477 = vst [vmem:[%s1968_s22 + $0x78] sm:$0xff] %v1461_v55  }
 0x159   : > { %v984_v40 = vadd.f32 %v1994_v42, %v823_v36  ;;  %1476 = vst [vmem:[%s1968_s22 + $0x70] sm:$0xff] %v1456_v39  }
 0x15b   : > { %v1441_v43 = vpack.c.bf16 %v984_v40, %v981_v35 }
 0x15d   : > { %1473 = vst [vmem:[%s1968_s22 + $0x58] sm:$0xff] %v1441_v43  }
 0x15e PF: > { %s13_s12 = sadd.s32 1, %s1781_s12  }
 0x15f   : > { %p10_p4 = scmp.ge.s32.totalorder %s13_s12, 4  }
 0x161   :  { %12 = sbr.rel (!%p10_p4) target bundleno = 1 (0x1), region = 62 }

// kernel: faster_rcnn_forward.32
= control target key start
LH: loop header
LB: loop body
LE: loop exit
PB: predicated region body
PF: predicated region fallthrough
CT: control target
= control target key end

     0   :  { %s1094_s12 = smov 0   ;;  %s1215_s0 = inlined_call_operand.vmem [shape: bf16[768,128], index: 0, kind: input, shape index: {}]   ;;  %s1216_s1 = inlined_call_operand.vmem [shape: bf16[128,128], index: 1, kind: input, shape index: {}]   ;;  %s1217_s2 = inlined_call_operand.vmem [shape: f32[1,128], index: 2, kind: input, shape index: {}]   ;;  %s1218_s3 = inlined_call_operand.vmem [shape: bf16[768,128], index: 3, kind: output, shape index: {}]  }
   0x1 LB: > { %s751_s13 = sadd.s32 4294967295, %s1072_s12   ;;  %p755_p0 = scmp.ge.s32.totalorder %s1072_s12, 1  ;;  %s1072_s12 = sphi %s1094_s12, %s13_s12  }
   0x2   : > { %p138_p1 = scmp.lt.s32.totalorder %s1072_s12, 4 }
   0x4   : > { %p139_p2 = pnand %p755_p0, %p138_p1 }
   0x5   : > { %v1042_v0 = vld [vmem:[%s1216_s1] sm:$0xff] (!%p139_p2)   ;;  %s756_s16 = sshll.u32 (!%p139_p2), %s751_s13, 5  ;;  %v1043_v1 = vld [vmem:[%s1216_s1 + $0x8] sm:$0xff] (!%p139_p2)   ;;  %v1044_v2 = vld [vmem:[%s1216_s1 + $0x10] sm:$0xff] (!%p139_p2)  }
   0x6   : > { %142 = sbr.rel (%p139_p2) target bundleno = 282 (0x11a), region = 32  ;;  %p163_p3 = scmp.lt.s32.totalorder (!%p139_p2), %s756_s16, 95  ;;  %970 = vmatprep.subr.bf16.mxu0 (!%p139_p2), %v1042_v0  ;;  %1018 = vmatprep.subr.bf16.mxu1 (!%p139_p2), %v1042_v0  ;;  %v1045_v3 = vld [vmem:[%s1216_s1 + $0x18] sm:$0xff] (!%p139_p2)   ;;  %v1046_v6 = vld [vmem:[%s1216_s1 + $0x20] sm:$0xff] (!%p139_p2)   ;;  %v1047_v7 = vld [vmem:[%s1216_s1 + $0x28] sm:$0xff] (!%p139_p2)  }
   0x7   : > { %971 = vmatpush3.bf16.msra.mxu0 (!%p139_p2), %v1042_v0  ;;  %1026 = vmatpush3.bf16.msra.mxu1 (!%p139_p2), %v1042_v0  ;;  %v1048_v8 = vld [vmem:[%s1216_s1 + $0x30] sm:$0xff] (!%p139_p2)   ;;  %v1049_v9 = vld [vmem:[%s1216_s1 + $0x38] sm:$0xff] (!%p139_p2)   ;;  %v1155_v25 = vld [vmem:[%s1217_s2] ss:$0 sm:$0xff] (!%p139_p2) }
   0x8   : > { %972 = vmatprep.subr.bf16.mxu0 (!%p139_p2), %v1043_v1  ;;  %1019 = vmatprep.subr.bf16.mxu1 (!%p139_p2), %v1043_v1 }
   0xb   : > { %973 = vmatpush3.bf16.msra.mxu0 (!%p139_p2), %v1043_v1  ;;  %1027 = vmatpush3.bf16.msra.mxu1 (!%p139_p2), %v1043_v1 }
   0xc   : > { %974 = vmatprep.subr.bf16.mxu0 (!%p139_p2), %v1044_v2  ;;  %1020 = vmatprep.subr.bf16.mxu1 (!%p139_p2), %v1044_v2 }
   0xd   : > { %s1220_s16 = smov (!%p163_p3, %s756_s16), 95 }
   0xe   : > { %s757_s21 = sshll.u32 %s1220_s16, 2 }
   0xf   : > { %s1119_s24 = scalar_lea.vmem %s1215_s0, %s757_s21  ;;  %975 = vmatpush3.bf16.msra.mxu0 %v1044_v2  ;;  %1028 = vmatpush3.bf16.msra.mxu1 %v1044_v2  ;;  %s1168_s13 = scalar_lea.vmem %s1218_s3, %s757_s21 }
  0x10   : > { %v1050_v4 = vld [vmem:[%s1119_s24] sm:$0xff]   ;;  %976 = vmatprep.subr.bf16.mxu0 %v1045_v3  ;;  %1021 = vmatprep.subr.bf16.mxu1 %v1045_v3  ;;  %v1052_v10 = vld [vmem:[%s1119_s24 + $0x8] sm:$0xff]   ;;  %v1054_v12 = vld [vmem:[%s1119_s24 + $0x10] sm:$0xff]  }
  0x11   : > { %v1051_v5 = vld [vmem:[%s1119_s24 + $0x40] sm:$0xff]   ;;  %986 = vmatprep.mubr.bf16.mxu0 %v1050_v4  ;;  %v1053_v11 = vld [vmem:[%s1119_s24 + $0x48] sm:$0xff]   ;;  %v1055_v13 = vld [vmem:[%s1119_s24 + $0x50] sm:$0xff]  }
  0x12   : > { %1002 = vmatprep.mubr.bf16.mxu1 %v1051_v5  ;;  %v1056_v14 = vld [vmem:[%s1119_s24 + $0x18] sm:$0xff]   ;;  %v1058_v16 = vld [vmem:[%s1119_s24 + $0x20] sm:$0xff]   ;;  %v1060_v18 = vld [vmem:[%s1119_s24 + $0x28] sm:$0xff]  }
  0x13   : > { %977 = vmatpush3.bf16.msra.mxu0 %v1045_v3  ;;  %1029 = vmatpush3.bf16.msra.mxu1 %v1045_v3  ;;  %v1057_v15 = vld [vmem:[%s1119_s24 + $0x58] sm:$0xff]   ;;  %v1059_v17 = vld [vmem:[%s1119_s24 + $0x60] sm:$0xff]   ;;  %v1061_v19 = vld [vmem:[%s1119_s24 + $0x68] sm:$0xff]  }
  0x14   : > { %978 = vmatprep.subr.bf16.mxu0 %v1046_v6  ;;  %1022 = vmatprep.subr.bf16.mxu1 %v1046_v6  ;;  %v1062_v20 = vld [vmem:[%s1119_s24 + $0x30] sm:$0xff]   ;;  %v1064_v22 = vld [vmem:[%s1119_s24 + $0x38] sm:$0xff]  }
  0x15   : > { %v1063_v21 = vld [vmem:[%s1119_s24 + $0x70] sm:$0xff]   ;;  %v1065_v23 = vld [vmem:[%s1119_s24 + $0x78] sm:$0xff]  }
  0x17   : > { %979 = vmatpush3.bf16.msra.mxu0 %v1046_v6  ;;  %1030 = vmatpush3.bf16.msra.mxu1 %v1046_v6 }
  0x18   : > { %980 = vmatprep.subr.bf16.mxu0 %v1047_v7  ;;  %1023 = vmatprep.subr.bf16.mxu1 %v1047_v7 }
  0x1b   : > { %981 = vmatpush3.bf16.msra.mxu0 %v1047_v7  ;;  %1031 = vmatpush3.bf16.msra.mxu1 %v1047_v7 }
  0x1c   : > { %982 = vmatprep.subr.bf16.mxu0 %v1048_v8  ;;  %1024 = vmatprep.subr.bf16.mxu1 %v1048_v8 }
  0x1f   : > { %983 = vmatpush3.bf16.msra.mxu0 %v1048_v8  ;;  %1032 = vmatpush3.bf16.msra.mxu1 %v1048_v8 }
  0x20   : > { %984 = vmatprep.subr.bf16.mxu0 %v1049_v9  ;;  %1025 = vmatprep.subr.bf16.mxu1 %v1049_v9 }
  0x23   : > { %985 = vmatpush3.bf16.msra.mxu0 %v1049_v9  ;;  %1033 = vmatpush3.bf16.msra.mxu1 %v1049_v9 }
  0x26   : > { %987 = vmatmul.mubr.bf16.vlgmr.msra.gmra.mrb[0].mxu0 %v1052_v10  ;;  %1003 = vmatmul.mubr.bf16.vlgmr.msra.gmra.mrb[0].mxu1 %v1053_v11 }
  0x27   : > { %990 = vmatprep.mubr.bf16.mxu0 %v1054_v12  ;;  %1006 = vmatprep.mubr.bf16.mxu1 %v1055_v13 }
  0x2e   : > { %991 = vmatmul.mubr.bf16.gmra.mrb[4].mxu0 %v1056_v14  ;;  %1007 = vmatmul.mubr.bf16.gmra.mrb[4].mxu1 %v1057_v15 }
  0x2f   : > { %994 = vmatprep.mubr.bf16.mxu0 %v1058_v16  ;;  %1010 = vmatprep.mubr.bf16.mxu1 %v1059_v17 }
  0x36   : > { %995 = vmatmul.mubr.bf16.gmra.mrb[8].mxu0 %v1060_v18  ;;  %1011 = vmatmul.mubr.bf16.gmra.mrb[8].mxu1 %v1061_v19 }
  0x37   : > { %998 = vmatprep.mubr.bf16.mxu0 %v1062_v20  ;;  %1014 = vmatprep.mubr.bf16.mxu1 %v1063_v21 }
  0x3e   : > { %999 = vmatmul.mubr.bf16.gmra.mrb[12].mxu0 %v1064_v22  ;;  %1015 = vmatmul.mubr.bf16.gmra.mrb[12].mxu1 %v1065_v23 }
  0xf9   : > { %v988_v24 = vpop.f32.mrb[0].mxu0  ;;  %v1004_v26 = vpop.f32.mrb[0].mxu1 }
  0xfa   : > { %v408_v27 = vpop.f32.mrb[1].mxu0  ;;  %v472_v28 = vpop.f32.mrb[1].mxu1  ;;  %v417_v31 = vadd.f32 %v988_v24, %v1155_v25  ;;  %v481_v32 = vadd.f32 %v1004_v26, %v1155_v25 }
  0xfb   : > { %v989_v29 = vpop.f32.mrb[2].mxu0  ;;  %v1005_v30 = vpop.f32.mrb[2].mxu1  ;;  %v409_v37 = vadd.f32 %v1155_v25, %v408_v27  ;;  %v473_v38 = vadd.f32 %v1155_v25, %v472_v28 }
  0xfc   : > { %v420_v33 = vadd.f32 %v989_v29, %v1155_v25  ;;  %v484_v34 = vadd.f32 %v1005_v30, %v1155_v25  ;;  %v411_v35 = vpop.f32.mrb[3].mxu0  ;;  %v475_v36 = vpop.f32.mrb[3].mxu1 }
  0xfd   : > { %v412_v39 = vadd.f32 %v1155_v25, %v411_v35  ;;  %v476_v40 = vadd.f32 %v1155_v25, %v475_v36 }
  0xfe   : > { %v859_v41 = vpack.c.bf16 %v420_v33, %v417_v31  ;;  %v899_v42 = vpack.c.bf16 %v484_v34, %v481_v32 }
  0xff   : > { %v854_v43 = vpack.c.bf16 %v412_v39, %v409_v37  ;;  %v894_v44 = vpack.c.bf16 %v476_v40, %v473_v38 }
 0x100   : > { %931 = vst [vmem:[%s1168_s13 + $0x8] sm:$0xff] %v859_v41   ;;  %939 = vst [vmem:[%s1168_s13 + $0x48] sm:$0xff] %v899_v42  }
 0x101   : > { %855 = vst [vmem:[%s1168_s13] sm:$0xff] %v854_v43   ;;  %938 = vst [vmem:[%s1168_s13 + $0x40] sm:$0xff] %v894_v44   ;;  %v992_v45 = vpop.f32.mrb[4].mxu0  ;;  %v1008_v46 = vpop.f32.mrb[4].mxu1 }
 0x102   : > { %v424_v47 = vpop.f32.mrb[5].mxu0  ;;  %v488_v48 = vpop.f32.mrb[5].mxu1  ;;  %v433_v51 = vadd.f32 %v992_v45, %v1155_v25  ;;  %v497_v52 = vadd.f32 %v1008_v46, %v1155_v25 }
 0x103   : > { %v993_v49 = vpop.f32.mrb[6].mxu0  ;;  %v1009_v50 = vpop.f32.mrb[6].mxu1  ;;  %v425_v57 = vadd.f32 %v1155_v25, %v424_v47  ;;  %v489_v58 = vadd.f32 %v1155_v25, %v488_v48 }
 0x104   : > { %v436_v53 = vadd.f32 %v993_v49, %v1155_v25  ;;  %v500_v54 = vadd.f32 %v1009_v50, %v1155_v25  ;;  %v427_v55 = vpop.f32.mrb[7].mxu0  ;;  %v491_v56 = vpop.f32.mrb[7].mxu1 }
 0x105   : > { %v428_v59 = vadd.f32 %v1155_v25, %v427_v55  ;;  %v492_v60 = vadd.f32 %v1155_v25, %v491_v56 }
 0x106   : > { %v869_v61 = vpack.c.bf16 %v436_v53, %v433_v51  ;;  %v909_v62 = vpack.c.bf16 %v500_v54, %v497_v52 }
 0x107   : > { %v864_v63 = vpack.c.bf16 %v428_v59, %v425_v57  ;;  %v904_v0 = vpack.c.bf16 %v492_v60, %v489_v58 }
 0x108   : > { %933 = vst [vmem:[%s1168_s13 + $0x18] sm:$0xff] %v869_v61   ;;  %941 = vst [vmem:[%s1168_s13 + $0x58] sm:$0xff] %v909_v62  }
 0x109   : > { %932 = vst [vmem:[%s1168_s13 + $0x10] sm:$0xff] %v864_v63   ;;  %940 = vst [vmem:[%s1168_s13 + $0x50] sm:$0xff] %v904_v0   ;;  %v996_v1 = vpop.f32.mrb[8].mxu0  ;;  %v1012_v2 = vpop.f32.mrb[8].mxu1 }
 0x10a   : > { %v440_v3 = vpop.f32.mrb[9].mxu0  ;;  %v504_v4 = vpop.f32.mrb[9].mxu1  ;;  %v449_v7 = vadd.f32 %v996_v1, %v1155_v25  ;;  %v513_v8 = vadd.f32 %v1012_v2, %v1155_v25 }
 0x10b   : > { %v997_v5 = vpop.f32.mrb[10].mxu0  ;;  %v1013_v6 = vpop.f32.mrb[10].mxu1  ;;  %v441_v13 = vadd.f32 %v1155_v25, %v440_v3  ;;  %v505_v14 = vadd.f32 %v1155_v25, %v504_v4 }
 0x10c   : > { %v452_v9 = vadd.f32 %v997_v5, %v1155_v25  ;;  %v516_v10 = vadd.f32 %v1013_v6, %v1155_v25  ;;  %v443_v11 = vpop.f32.mrb[11].mxu0  ;;  %v507_v12 = vpop.f32.mrb[11].mxu1 }
 0x10d   : > { %v444_v15 = vadd.f32 %v1155_v25, %v443_v11  ;;  %v508_v16 = vadd.f32 %v1155_v25, %v507_v12 }
 0x10e   : > { %v879_v17 = vpack.c.bf16 %v452_v9, %v449_v7  ;;  %v919_v18 = vpack.c.bf16 %v516_v10, %v513_v8 }
 0x10f   : > { %v874_v19 = vpack.c.bf16 %v444_v15, %v441_v13  ;;  %v914_v20 = vpack.c.bf16 %v508_v16, %v505_v14 }
 0x110   : > { %935 = vst [vmem:[%s1168_s13 + $0x28] sm:$0xff] %v879_v17   ;;  %943 = vst [vmem:[%s1168_s13 + $0x68] sm:$0xff] %v919_v18  }
 0x111   : > { %934 = vst [vmem:[%s1168_s13 + $0x20] sm:$0xff] %v874_v19   ;;  %942 = vst [vmem:[%s1168_s13 + $0x60] sm:$0xff] %v914_v20   ;;  %v1000_v21 = vpop.f32.mrb[12].mxu0  ;;  %v1016_v22 = vpop.f32.mrb[12].mxu1 }
 0x112   : > { %v456_v23 = vpop.f32.mrb[13].mxu0  ;;  %v520_v24 = vpop.f32.mrb[13].mxu1  ;;  %v465_v28 = vadd.f32 %v1000_v21, %v1155_v25  ;;  %v529_v29 = vadd.f32 %v1016_v22, %v1155_v25 }
 0x113   : > { %v1001_v26 = vpop.f32.mrb[14].mxu0  ;;  %v1017_v27 = vpop.f32.mrb[14].mxu1  ;;  %v457_v34 = vadd.f32 %v1155_v25, %v456_v23  ;;  %v521_v35 = vadd.f32 %v1155_v25, %v520_v24 }
 0x114   : > { %v468_v30 = vadd.f32 %v1001_v26, %v1155_v25  ;;  %v532_v31 = vadd.f32 %v1017_v27, %v1155_v25  ;;  %v459_v32 = vpop.f32.mrb[15].mxu0  ;;  %v523_v33 = vpop.f32.mrb[15].mxu1 }
 0x115   : > { %v460_v36 = vadd.f32 %v1155_v25, %v459_v32  ;;  %v524_v37 = vadd.f32 %v1155_v25, %v523_v33 }
 0x116   : > { %v889_v38 = vpack.c.bf16 %v468_v30, %v465_v28  ;;  %v929_v39 = vpack.c.bf16 %v532_v31, %v529_v29 }
 0x117   : > { %v884_v40 = vpack.c.bf16 %v460_v36, %v457_v34  ;;  %v924_v41 = vpack.c.bf16 %v524_v37, %v521_v35 }
 0x118   : > { %937 = vst [vmem:[%s1168_s13 + $0x38] sm:$0xff] %v889_v38   ;;  %945 = vst [vmem:[%s1168_s13 + $0x78] sm:$0xff] %v929_v39  }
 0x119   : > { %936 = vst [vmem:[%s1168_s13 + $0x30] sm:$0xff] %v884_v40   ;;  %944 = vst [vmem:[%s1168_s13 + $0x70] sm:$0xff] %v924_v41  }
 0x11a PF: > { %s13_s12 = sadd.s32 1, %s1072_s12  }
 0x11b   : > { %p10_p4 = scmp.ge.s32.totalorder %s13_s12, 5  }
 0x11d   :  { %12 = sbr.rel (!%p10_p4) target bundleno = 1 (0x1), region = 62 }

// kernel: faster_rcnn_forward.31
= control target key start
LH: loop header
LB: loop body
LE: loop exit
PB: predicated region body
PF: predicated region fallthrough
CT: control target
= control target key end

     0   :  { %s1835_s12 = smov 0   ;;  %s2063_s0 = inlined_call_operand.vmem [shape: bf16[768,384], index: 0, kind: input, shape index: {}]   ;;  %s2064_s1 = inlined_call_operand.vmem [shape: bf16[384,128], index: 1, kind: input, shape index: {}]   ;;  %s2065_s2 = inlined_call_operand.vmem [shape: f32[1,128], index: 2, kind: input, shape index: {}]   ;;  %s2066_s3 = inlined_call_operand.vmem [shape: bf16[768,128], index: 3, kind: output, shape index: {}]  }
   0x1 LB: > { %s1267_s13 = sadd.s32 4294967295, %s1813_s12   ;;  %p1271_p0 = scmp.ge.s32.totalorder %s1813_s12, 1  ;;  %s1813_s12 = sphi %s1835_s12, %s13_s12  }
   0x2   : > { %p139_p1 = scmp.lt.s32.totalorder %s1813_s12, 4 }
   0x4   : > { %p140_p2 = pnand %p1271_p0, %p139_p1 }
   0x5   : > { %v1719_v0 = vld [vmem:[%s2064_s1 + $0x40] sm:$0xff] (!%p140_p2)   ;;  %s1272_s16 = sshll.u32 (!%p140_p2), %s1267_s13, 5  ;;  %v1721_v2 = vld [vmem:[%s2064_s1 + $0x48] sm:$0xff] (!%p140_p2)   ;;  %v1723_v4 = vld [vmem:[%s2064_s1 + $0x50] sm:$0xff] (!%p140_p2)  }
   0x6   : > { %143 = sbr.rel (%p140_p2) target bundleno = 352 (0x160), region = 32  ;;  %v1720_v1 = vld [vmem:[%s2064_s1] sm:$0xff] (!%p140_p2)   ;;  %1510 = vmatprep.subr.bf16.mxu0 (!%p140_p2), %v1719_v0  ;;  %1694 = vmatprep.subr.bf16.mxu1 (!%p140_p2), %v1719_v0  ;;  %p165_p3 = scmp.lt.s32.totalorder (!%p140_p2), %s1272_s16, 95  ;;  %v1722_v3 = vld [vmem:[%s2064_s1 + $0x8] sm:$0xff] (!%p140_p2)   ;;  %v1724_v5 = vld [vmem:[%s2064_s1 + $0x10] sm:$0xff] (!%p140_p2)  }
   0x7   : > { %1511 = vmatpush3.bf16.msra.mxu0 (!%p140_p2), %v1720_v1  ;;  %1702 = vmatpush3.bf16.msra.mxu1 (!%p140_p2), %v1720_v1  ;;  %v1725_v6 = vld [vmem:[%s2064_s1 + $0x58] sm:$0xff] (!%p140_p2)   ;;  %v1727_v8 = vld [vmem:[%s2064_s1 + $0x60] sm:$0xff] (!%p140_p2)   ;;  %v1729_v10 = vld [vmem:[%s2064_s1 + $0x68] sm:$0xff] (!%p140_p2)  }
   0x8   : > { %1512 = vmatprep.subr.bf16.mxu0 (!%p140_p2), %v1721_v2  ;;  %1695 = vmatprep.subr.bf16.mxu1 (!%p140_p2), %v1721_v2  ;;  %v1726_v7 = vld [vmem:[%s2064_s1 + $0x18] sm:$0xff] (!%p140_p2)   ;;  %v1728_v9 = vld [vmem:[%s2064_s1 + $0x20] sm:$0xff] (!%p140_p2)   ;;  %v1730_v13 = vld [vmem:[%s2064_s1 + $0x28] sm:$0xff] (!%p140_p2)  }
   0x9   : > { %v1731_v14 = vld [vmem:[%s2064_s1 + $0x70] sm:$0xff] (!%p140_p2)   ;;  %v1733_v16 = vld [vmem:[%s2064_s1 + $0x78] sm:$0xff] (!%p140_p2)   ;;  %v1741_v18 = vld [vmem:[%s2064_s1 + $0x80] sm:$0xff] (!%p140_p2)  }
   0xa   : > { %v1732_v15 = vld [vmem:[%s2064_s1 + $0x30] sm:$0xff] (!%p140_p2)   ;;  %v1734_v17 = vld [vmem:[%s2064_s1 + $0x38] sm:$0xff] (!%p140_p2)   ;;  %v1742_v22 = vld [vmem:[%s2064_s1 + $0x88] sm:$0xff] (!%p140_p2)  }
   0xb   : > { %1513 = vmatpush3.bf16.msra.mxu0 (!%p140_p2), %v1722_v3  ;;  %1703 = vmatpush3.bf16.msra.mxu1 (!%p140_p2), %v1722_v3  ;;  %v1749_v25 = vld [vmem:[%s2064_s1 + $0x90] sm:$0xff] (!%p140_p2)   ;;  %v1750_v27 = vld [vmem:[%s2064_s1 + $0x98] sm:$0xff] (!%p140_p2)   ;;  %v1757_v30 = vld [vmem:[%s2064_s1 + $0xa0] sm:$0xff] (!%p140_p2)  }
   0xc   : > { %1514 = vmatprep.subr.bf16.mxu0 (!%p140_p2), %v1723_v4  ;;  %1696 = vmatprep.subr.bf16.mxu1 (!%p140_p2), %v1723_v4  ;;  %v1758_v33 = vld [vmem:[%s2064_s1 + $0xa8] sm:$0xff] (!%p140_p2)   ;;  %v1765_v36 = vld [vmem:[%s2064_s1 + $0xb0] sm:$0xff] (!%p140_p2)   ;;  %v1766_v40 = vld [vmem:[%s2064_s1 + $0xb8] sm:$0xff] (!%p140_p2)  }
   0xd   : > { %s2068_s16 = smov (!%p165_p3, %s1272_s16), 95 }
   0xe   : > { %s1710_s29 = smul.u32 12, %s2068_s16  ;;  %s1275_s19 = sshll.u32 %s2068_s16, 2 }
   0xf   : > { %1515 = vmatpush3.bf16.msra.mxu0 %v1724_v5  ;;  %1704 = vmatpush3.bf16.msra.mxu1 %v1724_v5  ;;  %s2000_s22 = scalar_lea.vmem %s2066_s3, %s1275_s19 }
  0x10   : > { %1516 = vmatprep.subr.bf16.mxu0 %v1725_v6  ;;  %1697 = vmatprep.subr.bf16.mxu1 %v1725_v6  ;;  %s1876_s9 = scalar_lea.vmem %s2063_s0, %s1710_s29 }
  0x11   : > { %v1737_v11 = vld [vmem:[%s1876_s9 + $0x4] ss:$12 sps:$4 sm:$0xff]   ;;  %v1735_v19 = vld [vmem:[%s1876_s9] ss:$12 sps:$4 sm:$0xff]   ;;  %v1743_v21 = vld [vmem:[%s1876_s9 + $0x1c] ss:$12 sps:$4 sm:$0xff]  }
  0x12   : > { %v1740_v12 = vld [vmem:[%s1876_s9 + $0x124] ss:$12 sps:$4 sm:$0xff]   ;;  %729 = vmatprep.mubr.bf16.mxu0 %v1737_v11  ;;  %v1738_v20 = vld [vmem:[%s1876_s9 + $0x120] ss:$12 sps:$4 sm:$0xff]   ;;  %v1745_v23 = vld [vmem:[%s1876_s9 + $0x13c] ss:$12 sps:$4 sm:$0xff]  }
  0x13   : > { %1517 = vmatpush3.bf16.msra.mxu0 %v1726_v7  ;;  %1705 = vmatpush3.bf16.msra.mxu1 %v1726_v7  ;;  %v1747_v24 = vld [vmem:[%s1876_s9 + $0x18] ss:$12 sps:$4 sm:$0xff]   ;;  %v1751_v28 = vld [vmem:[%s1876_s9 + $0x34] ss:$12 sps:$4 sm:$0xff]   ;;  %v1755_v31 = vld [vmem:[%s1876_s9 + $0x30] ss:$12 sps:$4 sm:$0xff]  }
  0x14   : > { %1518 = vmatprep.subr.bf16.mxu0 %v1727_v8  ;;  %1698 = vmatprep.subr.bf16.mxu1 %v1727_v8  ;;  %v1748_v26 = vld [vmem:[%s1876_s9 + $0x138] ss:$12 sps:$4 sm:$0xff]   ;;  %v1753_v29 = vld [vmem:[%s1876_s9 + $0x154] ss:$12 sps:$4 sm:$0xff]   ;;  %v1756_v32 = vld [vmem:[%s1876_s9 + $0x150] ss:$12 sps:$4 sm:$0xff]  }
  0x15   : > { %825 = vmatprep.mubr.bf16.mxu1 %v1740_v12  ;;  %v1759_v34 = vld [vmem:[%s1876_s9 + $0x4c] ss:$12 sps:$4 sm:$0xff]   ;;  %v1763_v37 = vld [vmem:[%s1876_s9 + $0x48] ss:$12 sps:$4 sm:$0xff]   ;;  %v1767_v39 = vld [vmem:[%s1876_s9 + $0x64] ss:$12 sps:$4 sm:$0xff]  }
  0x16   : > { %v1761_v35 = vld [vmem:[%s1876_s9 + $0x16c] ss:$12 sps:$4 sm:$0xff]   ;;  %v1764_v38 = vld [vmem:[%s1876_s9 + $0x168] ss:$12 sps:$4 sm:$0xff]   ;;  %v1776_v47 = vld [vmem:[%s1876_s9 + $0x50] ss:$12 sps:$4 sm:$0xff]  }
  0x17   : > { %1519 = vmatpush3.bf16.msra.mxu0 %v1728_v9  ;;  %1706 = vmatpush3.bf16.msra.mxu1 %v1728_v9  ;;  %v1769_v41 = vld [vmem:[%s1876_s9 + $0x8] ss:$12 sps:$4 sm:$0xff]   ;;  %v1770_v42 = vld [vmem:[%s1876_s9 + $0x60] ss:$12 sps:$4 sm:$0xff]   ;;  %v1774_v45 = vld [vmem:[%s1876_s9 + $0x38] ss:$12 sps:$4 sm:$0xff]  }
  0x18   : > { %1520 = vmatprep.subr.bf16.mxu0 %v1729_v10  ;;  %1699 = vmatprep.subr.bf16.mxu1 %v1729_v10  ;;  %v1771_v43 = vld [vmem:[%s1876_s9 + $0x20] ss:$12 sps:$4 sm:$0xff]   ;;  %v1772_v44 = vld [vmem:[%s1876_s9 + $0x7c] ss:$12 sps:$4 sm:$0xff]   ;;  %v1775_v46 = vld [vmem:[%s1876_s9 + $0x78] ss:$12 sps:$4 sm:$0xff]  }
  0x19   : > { %v1777_v48 = vld [vmem:[%s1876_s9 + $0x94] ss:$12 sps:$4 sm:$0xff]   ;;  %v1780_v50 = vld [vmem:[%s1876_s9 + $0x90] ss:$12 sps:$4 sm:$0xff]   ;;  %v1782_v52 = vld [vmem:[%s1876_s9 + $0xac] ss:$12 sps:$4 sm:$0xff]  }
  0x1a   : > { %v1779_v49 = vld [vmem:[%s1876_s9 + $0x68] ss:$12 sps:$4 sm:$0xff]   ;;  %v1781_v51 = vld [vmem:[%s1876_s9 + $0x80] ss:$12 sps:$4 sm:$0xff]   ;;  %v1784_v53 = vld [vmem:[%s1876_s9 + $0x98] ss:$12 sps:$4 sm:$0xff]  }
  0x1b   : > { %1521 = vmatpush3.bf16.msra.mxu0 %v1730_v13  ;;  %1707 = vmatpush3.bf16.msra.mxu1 %v1730_v13  ;;  %v1785_v54 = vld [vmem:[%s1876_s9 + $0xa8] ss:$12 sps:$4 sm:$0xff]   ;;  %v1786_v55 = vld [vmem:[%s1876_s9 + $0xb0] ss:$12 sps:$4 sm:$0xff]   ;;  %v1790_v58 = vld [vmem:[%s1876_s9 + $0xc0] ss:$12 sps:$4 sm:$0xff]  }
  0x1c   : > { %1522 = vmatprep.subr.bf16.mxu0 %v1731_v14  ;;  %1700 = vmatprep.subr.bf16.mxu1 %v1731_v14  ;;  %v1787_v56 = vld [vmem:[%s1876_s9 + $0xc4] ss:$12 sps:$4 sm:$0xff]   ;;  %v1789_v57 = vld [vmem:[%s1876_s9 + $0xc8] ss:$12 sps:$4 sm:$0xff]   ;;  %v1791_v59 = vld [vmem:[%s1876_s9 + $0xe0] ss:$12 sps:$4 sm:$0xff]  }
  0x1d   : > { %v1792_v60 = vld [vmem:[%s1876_s9 + $0xdc] ss:$12 sps:$4 sm:$0xff]   ;;  %v1794_v61 = vld [vmem:[%s1876_s9 + $0xf8] ss:$12 sps:$4 sm:$0xff]   ;;  %v1797_v0 = vld [vmem:[%s1876_s9 + $0xf4] ss:$12 sps:$4 sm:$0xff]  }
  0x1e   : > { %v1795_v62 = vld [vmem:[%s1876_s9 + $0xd8] ss:$12 sps:$4 sm:$0xff]   ;;  %v1796_v63 = vld [vmem:[%s1876_s9 + $0x110] ss:$12 sps:$4 sm:$0xff]   ;;  %v1799_v1 = vld [vmem:[%s1876_s9 + $0x128] ss:$12 sps:$4 sm:$0xff]  }
  0x1f   : > { %1523 = vmatpush3.bf16.msra.mxu0 %v1732_v15  ;;  %1708 = vmatpush3.bf16.msra.mxu1 %v1732_v15  ;;  %v1800_v2 = vld [vmem:[%s1876_s9 + $0xf0] ss:$12 sps:$4 sm:$0xff]   ;;  %v1801_v3 = vld [vmem:[%s1876_s9 + $0x140] ss:$12 sps:$4 sm:$0xff]   ;;  %v1804_v5 = vld [vmem:[%s1876_s9 + $0x158] ss:$12 sps:$4 sm:$0xff]  }
  0x20   : > { %1524 = vmatprep.subr.bf16.mxu0 %v1733_v16  ;;  %1701 = vmatprep.subr.bf16.mxu1 %v1733_v16  ;;  %v1802_v4 = vld [vmem:[%s1876_s9 + $0x10c] ss:$12 sps:$4 sm:$0xff]   ;;  %v1805_v6 = vld [vmem:[%s1876_s9 + $0x108] ss:$12 sps:$4 sm:$0xff]   ;;  %v1806_v7 = vld [vmem:[%s1876_s9 + $0x170] ss:$12 sps:$4 sm:$0xff]  }
  0x23   : > { %1525 = vmatpush3.bf16.msra.mxu0 %v1734_v17  ;;  %1709 = vmatpush3.bf16.msra.mxu1 %v1734_v17 }
  0x24   : > { %1646 = vmatprep.subr.bf16.mxu1 %v1741_v18 }
  0x26   : > { %730 = vmatmul.mubr.bf16.vlgmr.msra.gmra.mrb[0].mxu0 %v1735_v19  ;;  %826 = vmatmul.mubr.bf16.vlgmr.msra.gmra.mrb[0].mxu1 %v1738_v20 }
  0x27   : > { %1647 = vmatpush3.bf16.msra.mxu1 %v1741_v18  ;;  %737 = vmatprep.mubr.bf16.mxu0 %v1743_v21 }
  0x28   : > { %1648 = vmatprep.subr.bf16.mxu1 %v1742_v22  ;;  %833 = vmatprep.mubr.bf16.mxu1 %v1745_v23 }
  0x2b   : > { %1649 = vmatpush3.bf16.msra.mxu1 %v1742_v22 }
  0x2c   : > { %1650 = vmatprep.subr.bf16.mxu1 %v1749_v25 }
  0x2e   : > { %738 = vmatmul.mubr.bf16.gmra.mrb[4].mxu0 %v1747_v24  ;;  %834 = vmatmul.mubr.bf16.gmra.mrb[4].mxu1 %v1748_v26 }
  0x2f   : > { %1651 = vmatpush3.bf16.msra.mxu1 %v1749_v25  ;;  %745 = vmatprep.mubr.bf16.mxu0 %v1751_v28 }
  0x30   : > { %1652 = vmatprep.subr.bf16.mxu1 %v1750_v27  ;;  %841 = vmatprep.mubr.bf16.mxu1 %v1753_v29 }
  0x33   : > { %1653 = vmatpush3.bf16.msra.mxu1 %v1750_v27 }
  0x34   : > { %1654 = vmatprep.subr.bf16.mxu1 %v1757_v30 }
  0x36   : > { %746 = vmatmul.mubr.bf16.gmra.mrb[8].mxu0 %v1755_v31  ;;  %842 = vmatmul.mubr.bf16.gmra.mrb[8].mxu1 %v1756_v32 }
  0x37   : > { %1655 = vmatpush3.bf16.msra.mxu1 %v1757_v30  ;;  %753 = vmatprep.mubr.bf16.mxu0 %v1759_v34 }
  0x38   : > { %1656 = vmatprep.subr.bf16.mxu1 %v1758_v33  ;;  %849 = vmatprep.mubr.bf16.mxu1 %v1761_v35 }
  0x3b   : > { %1657 = vmatpush3.bf16.msra.mxu1 %v1758_v33 }
  0x3c   : > { %1658 = vmatprep.subr.bf16.mxu1 %v1765_v36 }
  0x3e   : > { %754 = vmatmul.mubr.bf16.gmra.mrb[12].mxu0 %v1763_v37  ;;  %850 = vmatmul.mubr.bf16.gmra.mrb[12].mxu1 %v1764_v38 }
  0x3f   : > { %1659 = vmatpush3.bf16.msra.mxu1 %v1765_v36  ;;  %761 = vmatprep.mubr.bf16.mxu0 %v1767_v39 }
  0x40   : > { %1660 = vmatprep.subr.bf16.mxu1 %v1766_v40  ;;  %1662 = vmatprep.mubr.bf16.mxu1 %v1769_v41 }
  0x43   : > { %1661 = vmatpush3.bf16.msra.mxu1 %v1766_v40 }
  0x46   : > { %762 = vmatmul.mubr.bf16.gmra.mrb[16].mxu0 %v1770_v42  ;;  %1663 = vmatmul.mubr.bf16.vlgmr.msra.gmra.mrb[16].mxu1 %v1771_v43 }
  0x47   : > { %769 = vmatprep.mubr.bf16.mxu0 %v1772_v44  ;;  %1666 = vmatprep.mubr.bf16.mxu1 %v1774_v45 }
  0x4e   : > { %770 = vmatmul.mubr.bf16.gmra.mrb[20].mxu0 %v1775_v46  ;;  %1667 = vmatmul.mubr.bf16.gmra.mrb[20].mxu1 %v1776_v47 }
  0x4f   : > { %777 = vmatprep.mubr.bf16.mxu0 %v1777_v48  ;;  %1670 = vmatprep.mubr.bf16.mxu1 %v1779_v49 }
  0x56   : > { %778 = vmatmul.mubr.bf16.gmra.mrb[24].mxu0 %v1780_v50  ;;  %1671 = vmatmul.mubr.bf16.gmra.mrb[24].mxu1 %v1781_v51 }
  0x57   : > { %785 = vmatprep.mubr.bf16.mxu0 %v1782_v52  ;;  %1674 = vmatprep.mubr.bf16.mxu1 %v1784_v53 }
  0x5e   : > { %786 = vmatmul.mubr.bf16.gmra.mrb[28].mxu0 %v1785_v54  ;;  %1675 = vmatmul.mubr.bf16.gmra.mrb[28].mxu1 %v1786_v55 }
  0x5f   : > { %793 = vmatprep.mubr.bf16.mxu0 %v1787_v56  ;;  %1678 = vmatprep.mubr.bf16.mxu1 %v1789_v57  ;;  %v1990_v56 = vld [vmem:[%s2065_s2] ss:$0 sm:$0xff] }
  0x66   : > { %794 = vmatmul.mubr.bf16.gmra.mrb[32].mxu0 %v1790_v58  ;;  %1679 = vmatmul.mubr.bf16.gmra.mrb[32].mxu1 %v1791_v59 }
  0x67   : > { %801 = vmatprep.mubr.bf16.mxu0 %v1792_v60  ;;  %1682 = vmatprep.mubr.bf16.mxu1 %v1794_v61 }
  0x6e   : > { %802 = vmatmul.mubr.bf16.gmra.mrb[36].mxu0 %v1795_v62  ;;  %1683 = vmatmul.mubr.bf16.gmra.mrb[36].mxu1 %v1796_v63 }
  0x6f   : > { %809 = vmatprep.mubr.bf16.mxu0 %v1797_v0  ;;  %1686 = vmatprep.mubr.bf16.mxu1 %v1799_v1 }
  0x76   : > { %810 = vmatmul.mubr.bf16.gmra.mrb[40].mxu0 %v1800_v2  ;;  %1687 = vmatmul.mubr.bf16.gmra.mrb[40].mxu1 %v1801_v3 }
  0x77   : > { %817 = vmatprep.mubr.bf16.mxu0 %v1802_v4  ;;  %1690 = vmatprep.mubr.bf16.mxu1 %v1804_v5 }
  0x7e   : > { %818 = vmatmul.mubr.bf16.gmra.mrb[44].mxu0 %v1805_v6  ;;  %1691 = vmatmul.mubr.bf16.gmra.mrb[44].mxu1 %v1806_v7 }
  0xf9   : > { %v1526_v8 = vpop.f32.mrb[0].mxu0  ;;  %v1598_v9 = vpop.f32.mrb[0].mxu1 }
  0xfa   : > { %v1527_v10 = vpop.f32.mrb[1].mxu0  ;;  %v1599_v11 = vpop.f32.mrb[1].mxu1 }
  0xfb   : > { %v1528_v12 = vadd.f32 %v1527_v10, %v1526_v8  ;;  %v1529_v13 = vpop.f32.mrb[2].mxu0  ;;  %v1971_v14 = vadd.f32 %v1599_v11, %v1598_v9  ;;  %v1601_v15 = vpop.f32.mrb[2].mxu1 }
  0xfc   : > { %v1530_v16 = vpop.f32.mrb[3].mxu0  ;;  %v1602_v17 = vpop.f32.mrb[3].mxu1 }
  0xfd   : > { %v1531_v18 = vadd.f32 %v1530_v16, %v1529_v13  ;;  %v1973_v19 = vadd.f32 %v1602_v17, %v1601_v15  ;;  %v732_v60 = vadd.f32 %v1528_v12, %v1990_v56 }
  0xff   : > { %v735_v5 = vadd.f32 %v1531_v18, %v1990_v56 }
 0x101   : > { %v1532_v20 = vpop.f32.mrb[4].mxu0  ;;  %v1604_v21 = vpop.f32.mrb[4].mxu1 }
 0x102   : > { %v1533_v22 = vpop.f32.mrb[5].mxu0  ;;  %v1605_v23 = vpop.f32.mrb[5].mxu1 }
 0x103   : > { %v1534_v24 = vadd.f32 %v1533_v22, %v1532_v20  ;;  %v1535_v25 = vpop.f32.mrb[6].mxu0  ;;  %v1975_v26 = vadd.f32 %v1605_v23, %v1604_v21  ;;  %v1607_v27 = vpop.f32.mrb[6].mxu1 }
 0x104   : > { %v1536_v28 = vpop.f32.mrb[7].mxu0  ;;  %v1608_v29 = vpop.f32.mrb[7].mxu1 }
 0x105   : > { %v1537_v30 = vadd.f32 %v1536_v28, %v1535_v25  ;;  %v1977_v31 = vadd.f32 %v1608_v29, %v1607_v27  ;;  %v740_v57 = vadd.f32 %v1534_v24, %v1990_v56 }
 0x107   : > { %v743_v0 = vadd.f32 %v1537_v30, %v1990_v56 }
 0x109   : > { %v1538_v32 = vpop.f32.mrb[8].mxu0  ;;  %v1610_v33 = vpop.f32.mrb[8].mxu1 }
 0x10a   : > { %v1539_v34 = vpop.f32.mrb[9].mxu0  ;;  %v1611_v35 = vpop.f32.mrb[9].mxu1 }
 0x10b   : > { %v1540_v36 = vadd.f32 %v1539_v34, %v1538_v32  ;;  %v1541_v37 = vpop.f32.mrb[10].mxu0  ;;  %v1979_v38 = vadd.f32 %v1611_v35, %v1610_v33  ;;  %v1613_v39 = vpop.f32.mrb[10].mxu1 }
 0x10c   : > { %v1542_v40 = vpop.f32.mrb[11].mxu0  ;;  %v1614_v41 = vpop.f32.mrb[11].mxu1 }
 0x10d   : > { %v1543_v42 = vadd.f32 %v1542_v40, %v1541_v37  ;;  %v1981_v43 = vadd.f32 %v1614_v41, %v1613_v39  ;;  %v748_v22 = vadd.f32 %v1540_v36, %v1990_v56 }
 0x10f   : > { %v751_v33 = vadd.f32 %v1543_v42, %v1990_v56 }
 0x111   : > { %v1544_v44 = vpop.f32.mrb[12].mxu0  ;;  %v1616_v45 = vpop.f32.mrb[12].mxu1 }
 0x112   : > { %v1545_v46 = vpop.f32.mrb[13].mxu0  ;;  %v1617_v47 = vpop.f32.mrb[13].mxu1 }
 0x113   : > { %v1546_v48 = vadd.f32 %v1545_v46, %v1544_v44  ;;  %v1547_v49 = vpop.f32.mrb[14].mxu0  ;;  %v1983_v50 = vadd.f32 %v1617_v47, %v1616_v45  ;;  %v1619_v51 = vpop.f32.mrb[14].mxu1 }
 0x114   : > { %v1548_v52 = vpop.f32.mrb[15].mxu0  ;;  %v1620_v53 = vpop.f32.mrb[15].mxu1 }
 0x115   : > { %v1549_v54 = vadd.f32 %v1548_v52, %v1547_v49  ;;  %v1985_v55 = vadd.f32 %v1620_v53, %v1619_v51  ;;  %v756_v17 = vadd.f32 %v1546_v48, %v1990_v56 }
 0x117   : > { %v759_v27 = vadd.f32 %v1549_v54, %v1990_v56 }
 0x119   : > { %v1550_v58 = vpop.f32.mrb[16].mxu0  ;;  %v1664_v59 = vpop.f32.mrb[16].mxu1 }
 0x11a   : > { %v901_v61 = vadd.f32 %v1664_v59, %v740_v57  ;;  %v1551_v62 = vpop.f32.mrb[17].mxu0  ;;  %v892_v63 = vpop.f32.mrb[17].mxu1 }
 0x11b   : > { %v1552_v1 = vadd.f32 %v1551_v62, %v1550_v58  ;;  %v893_v2 = vadd.f32 %v892_v63, %v732_v60  ;;  %v1553_v3 = vpop.f32.mrb[18].mxu0  ;;  %v1665_v4 = vpop.f32.mrb[18].mxu1 }
 0x11c   : > { %v904_v6 = vadd.f32 %v1665_v4, %v743_v0  ;;  %v1554_v7 = vpop.f32.mrb[19].mxu0  ;;  %v895_v8 = vpop.f32.mrb[19].mxu1  ;;  %v1021_v11 = vmax.f32 %v901_v61, 0.0 }
 0x11d   : > { %v1555_v9 = vadd.f32 %v1554_v7, %v1553_v3  ;;  %v896_v10 = vadd.f32 %v895_v8, %v735_v5  ;;  %v1019_v12 = vmax.f32 %v893_v2, 0.0  ;;  %v764_v52 = vadd.f32 %v1552_v1, %v1990_v56 }
 0x11e   : > { %v1022_v13 = vmax.f32 %v904_v6, 0.0 }
 0x11f   : > { %v1020_v15 = vmax.f32 %v896_v10, 0.0  ;;  %v767_v62 = vadd.f32 %v1555_v9, %v1990_v56 }
 0x120   : > { %v1423_v16 = vpack.c.bf16 %v1022_v13, %v1021_v11 }
 0x121   : > { %v1418_v18 = vpack.c.bf16 %v1020_v15, %v1019_v12  ;;  %v1556_v20 = vpop.f32.mrb[20].mxu0  ;;  %v1668_v21 = vpop.f32.mrb[20].mxu1 }
 0x122   : > { %1495 = vst [vmem:[%s2000_s22 + $0x8] sm:$0xff] %v1423_v16   ;;  %v917_v23 = vadd.f32 %v1668_v21, %v756_v17  ;;  %v1557_v24 = vpop.f32.mrb[21].mxu0  ;;  %v908_v25 = vpop.f32.mrb[21].mxu1 }
 0x123   : > { %1419 = vst [vmem:[%s2000_s22] sm:$0xff] %v1418_v18   ;;  %v1558_v28 = vadd.f32 %v1557_v24, %v1556_v20  ;;  %v909_v29 = vadd.f32 %v908_v25, %v748_v22  ;;  %v1559_v30 = vpop.f32.mrb[22].mxu0  ;;  %v1669_v32 = vpop.f32.mrb[22].mxu1 }
 0x124   : > { %v920_v34 = vadd.f32 %v1669_v32, %v759_v27  ;;  %v1560_v35 = vpop.f32.mrb[23].mxu0  ;;  %v911_v37 = vpop.f32.mrb[23].mxu1  ;;  %v1025_v36 = vmax.f32 %v917_v23, 0.0 }
 0x125   : > { %v1561_v39 = vadd.f32 %v1560_v35, %v1559_v30  ;;  %v912_v40 = vadd.f32 %v911_v37, %v751_v33  ;;  %v1023_v44 = vmax.f32 %v909_v29, 0.0  ;;  %v772_v47 = vadd.f32 %v1558_v28, %v1990_v56 }
 0x126   : > { %v1026_v41 = vmax.f32 %v920_v34, 0.0 }
 0x127   : > { %v1024_v45 = vmax.f32 %v912_v40, 0.0  ;;  %v775_v57 = vadd.f32 %v1561_v39, %v1990_v56 }
 0x128   : > { %v1433_v46 = vpack.c.bf16 %v1026_v41, %v1025_v36 }
 0x129   : > { %v1428_v48 = vpack.c.bf16 %v1024_v45, %v1023_v44  ;;  %v1562_v49 = vpop.f32.mrb[24].mxu0  ;;  %v1672_v51 = vpop.f32.mrb[24].mxu1 }
 0x12a   : > { %1497 = vst [vmem:[%s2000_s22 + $0x18] sm:$0xff] %v1433_v46   ;;  %v933_v42 = vadd.f32 %v1672_v51, %v772_v47  ;;  %v1563_v53 = vpop.f32.mrb[25].mxu0  ;;  %v924_v54 = vpop.f32.mrb[25].mxu1 }
 0x12b   : > { %1496 = vst [vmem:[%s2000_s22 + $0x10] sm:$0xff] %v1428_v48   ;;  %v1564_v58 = vadd.f32 %v1563_v53, %v1562_v49  ;;  %v925_v59 = vadd.f32 %v924_v54, %v764_v52  ;;  %v1565_v60 = vpop.f32.mrb[26].mxu0  ;;  %v1673_v61 = vpop.f32.mrb[26].mxu1 }
 0x12c   : > { %v936_v63 = vadd.f32 %v1673_v61, %v775_v57  ;;  %v1566_v0 = vpop.f32.mrb[27].mxu0  ;;  %v927_v2 = vpop.f32.mrb[27].mxu1  ;;  %v1029_v4 = vmax.f32 %v933_v42, 0.0 }
 0x12d   : > { %v1567_v3 = vadd.f32 %v1566_v0, %v1565_v60  ;;  %v928_v1 = vadd.f32 %v927_v2, %v767_v62  ;;  %v1027_v6 = vmax.f32 %v925_v59, 0.0  ;;  %v780_v12 = vadd.f32 %v1564_v58, %v1990_v56 }
 0x12e   : > { %v1030_v5 = vmax.f32 %v936_v63, 0.0 }
 0x12f   : > { %v1028_v7 = vmax.f32 %v928_v1, 0.0  ;;  %v783_v21 = vadd.f32 %v1567_v3, %v1990_v56 }
 0x130   : > { %v1443_v8 = vpack.c.bf16 %v1030_v5, %v1029_v4 }
 0x131   : > { %v1438_v10 = vpack.c.bf16 %v1028_v7, %v1027_v6  ;;  %v1568_v11 = vpop.f32.mrb[28].mxu0  ;;  %v1676_v13 = vpop.f32.mrb[28].mxu1 }
 0x132   : > { %1499 = vst [vmem:[%s2000_s22 + $0x28] sm:$0xff] %v1443_v8   ;;  %v1569_v15 = vpop.f32.mrb[29].mxu0  ;;  %v940_v16 = vpop.f32.mrb[29].mxu1 }
 0x133   : > { %1498 = vst [vmem:[%s2000_s22 + $0x20] sm:$0xff] %v1438_v10   ;;  %v1570_v9 = vadd.f32 %v1569_v15, %v1568_v11  ;;  %v941_v17 = vadd.f32 %v940_v16, %v780_v12  ;;  %v1571_v18 = vpop.f32.mrb[30].mxu0  ;;  %v1677_v20 = vpop.f32.mrb[30].mxu1  ;;  %v836_v10 = vadd.f32 %v1975_v26, %v1990_v56  ;;  %v828_v15 = vadd.f32 %v1971_v14, %v1990_v56 }
 0x134   : > { %v1572_v22 = vpop.f32.mrb[31].mxu0  ;;  %v943_v23 = vpop.f32.mrb[31].mxu1 }
 0x135   : > { %v788_v24 = vadd.f32 %v1570_v9, %v1990_v56  ;;  %v1573_v25 = vadd.f32 %v1572_v22, %v1571_v18  ;;  %v944_v27 = vadd.f32 %v943_v23, %v783_v21  ;;  %v1031_v29 = vmax.f32 %v941_v17, 0.0 }
 0x136   : > { %v839_v18 = vadd.f32 %v1977_v31, %v1990_v56 }
 0x137   : > { %v949_v28 = vadd.f32 %v1676_v13, %v788_v24  ;;  %v791_v30 = vadd.f32 %v1573_v25, %v1990_v56  ;;  %v1032_v32 = vmax.f32 %v944_v27, 0.0 }
 0x139   : > { %v952_v33 = vadd.f32 %v1677_v20, %v791_v30  ;;  %v1448_v34 = vpack.c.bf16 %v1032_v32, %v1031_v29  ;;  %v1574_v35 = vpop.f32.mrb[32].mxu0  ;;  %v1680_v37 = vpop.f32.mrb[32].mxu1  ;;  %v1033_v36 = vmax.f32 %v949_v28, 0.0  ;;  %v831_v28 = vadd.f32 %v1973_v19, %v1990_v56 }
 0x13a   : > { %v1575_v39 = vpop.f32.mrb[33].mxu0  ;;  %v956_v40 = vpop.f32.mrb[33].mxu1 }
 0x13b   : > { %v1034_v41 = vmax.f32 %v952_v33, 0.0  ;;  %1500 = vst [vmem:[%s2000_s22 + $0x30] sm:$0xff] %v1448_v34   ;;  %v1576_v44 = vadd.f32 %v1575_v39, %v1574_v35  ;;  %v1577_v45 = vpop.f32.mrb[34].mxu0  ;;  %v1681_v46 = vpop.f32.mrb[34].mxu1 }
 0x13c   : > { %v1578_v47 = vpop.f32.mrb[35].mxu0  ;;  %v959_v48 = vpop.f32.mrb[35].mxu1 }
 0x13d   : > { %v1453_v49 = vpack.c.bf16 %v1034_v41, %v1033_v36  ;;  %v796_v51 = vadd.f32 %v1576_v44, %v1990_v56  ;;  %v1579_v52 = vadd.f32 %v1578_v47, %v1577_v45  ;;  %v852_v41 = vadd.f32 %v1983_v50, %v1990_v56 }
 0x13f   : > { %1501 = vst [vmem:[%s2000_s22 + $0x38] sm:$0xff] %v1453_v49   ;;  %v957_v42 = vadd.f32 %v956_v40, %v796_v51  ;;  %v799_v53 = vadd.f32 %v1579_v52, %v1990_v56  ;;  %v855_v52 = vadd.f32 %v1985_v55, %v1990_v56 }
 0x141   : > { %v960_v54 = vadd.f32 %v959_v48, %v799_v53  ;;  %v1580_v57 = vpop.f32.mrb[36].mxu0  ;;  %v2024_v58 = vpop.f32.mrb[36].mxu1  ;;  %v1035_v61 = vmax.f32 %v957_v42, 0.0 }
 0x142   : > { %v1581_v59 = vpop.f32.mrb[37].mxu0  ;;  %v972_v60 = vpop.f32.mrb[37].mxu1 }
 0x143   : > { %v1036_v62 = vmax.f32 %v960_v54, 0.0  ;;  %v1582_v63 = vadd.f32 %v1581_v59, %v1580_v57  ;;  %v1583_v0 = vpop.f32.mrb[38].mxu0  ;;  %v2026_v2 = vpop.f32.mrb[38].mxu1 }
 0x144   : > { %v1584_v3 = vpop.f32.mrb[39].mxu0  ;;  %v975_v1 = vpop.f32.mrb[39].mxu1 }
 0x145   : > { %v1458_v4 = vpack.c.bf16 %v1036_v62, %v1035_v61  ;;  %v804_v5 = vadd.f32 %v1582_v63, %v1990_v56  ;;  %v1585_v6 = vadd.f32 %v1584_v3, %v1583_v0 }
 0x147   : > { %1502 = vst [vmem:[%s2000_s22 + $0x40] sm:$0xff] %v1458_v4   ;;  %v965_v7 = vadd.f32 %v1680_v37, %v804_v5  ;;  %v807_v8 = vadd.f32 %v1585_v6, %v1990_v56 }
 0x149   : > { %v968_v11 = vadd.f32 %v1681_v46, %v807_v8  ;;  %v1586_v13 = vpop.f32.mrb[40].mxu0  ;;  %v1688_v12 = vpop.f32.mrb[40].mxu1  ;;  %v1037_v20 = vmax.f32 %v965_v7, 0.0  ;;  %v844_v46 = vadd.f32 %v1979_v38, %v1990_v56  ;;  %v847_v38 = vadd.f32 %v1981_v43, %v1990_v56 }
 0x14a   : > { %v997_v16 = vadd.f32 %v1688_v12, %v836_v10  ;;  %v1587_v9 = vpop.f32.mrb[41].mxu0  ;;  %v988_v17 = vpop.f32.mrb[41].mxu1 }
 0x14b   : > { %v1038_v21 = vmax.f32 %v968_v11, 0.0  ;;  %v1588_v22 = vadd.f32 %v1587_v9, %v1586_v13  ;;  %v989_v23 = vadd.f32 %v988_v17, %v828_v15  ;;  %v1589_v24 = vpop.f32.mrb[42].mxu0  ;;  %v1689_v25 = vpop.f32.mrb[42].mxu1 }
 0x14c   : > { %v1000_v26 = vadd.f32 %v1689_v25, %v839_v18  ;;  %v1590_v27 = vpop.f32.mrb[43].mxu0  ;;  %v991_v29 = vpop.f32.mrb[43].mxu1  ;;  %v1045_v33 = vmax.f32 %v997_v16, 0.0 }
 0x14d   : > { %v1463_v14 = vpack.c.bf16 %v1038_v21, %v1037_v20  ;;  %v812_v30 = vadd.f32 %v1588_v22, %v1990_v56  ;;  %v1591_v32 = vadd.f32 %v1590_v27, %v1589_v24  ;;  %v992_v34 = vadd.f32 %v991_v29, %v831_v28 }
 0x14e   : > { %v1046_v31 = vmax.f32 %v1000_v26, 0.0  ;;  %v1043_v39 = vmax.f32 %v989_v23, 0.0 }
 0x14f   : > { %1503 = vst [vmem:[%s2000_s22 + $0x48] sm:$0xff] %v1463_v14   ;;  %v973_v35 = vadd.f32 %v972_v60, %v812_v30  ;;  %v815_v37 = vadd.f32 %v1591_v32, %v1990_v56  ;;  %v1044_v36 = vmax.f32 %v992_v34, 0.0 }
 0x150   : > { %v1483_v40 = vpack.c.bf16 %v1046_v31, %v1045_v33 }
 0x151   : > { %v976_v19 = vadd.f32 %v975_v1, %v815_v37  ;;  %v1592_v44 = vpop.f32.mrb[44].mxu0  ;;  %v1692_v45 = vpop.f32.mrb[44].mxu1  ;;  %v1478_v47 = vpack.c.bf16 %v1044_v36, %v1043_v39  ;;  %v1039_v42 = vmax.f32 %v973_v35, 0.0 }
 0x152   : > { %1507 = vst [vmem:[%s2000_s22 + $0x68] sm:$0xff] %v1483_v40   ;;  %v1013_v48 = vadd.f32 %v1692_v45, %v852_v41  ;;  %v1593_v49 = vpop.f32.mrb[45].mxu0  ;;  %v1004_v51 = vpop.f32.mrb[45].mxu1 }
 0x153   : > { %v1040_v53 = vmax.f32 %v976_v19, 0.0  ;;  %v1594_v54 = vadd.f32 %v1593_v49, %v1592_v44  ;;  %v1005_v50 = vadd.f32 %v1004_v51, %v844_v46  ;;  %v1595_v57 = vpop.f32.mrb[46].mxu0  ;;  %v1693_v59 = vpop.f32.mrb[46].mxu1  ;;  %1506 = vst [vmem:[%s2000_s22 + $0x60] sm:$0xff] %v1478_v47  }
 0x154   : > { %v1016_v60 = vadd.f32 %v1693_v59, %v855_v52  ;;  %v1596_v61 = vpop.f32.mrb[47].mxu0  ;;  %v1007_v62 = vpop.f32.mrb[47].mxu1  ;;  %v1049_v3 = vmax.f32 %v1013_v48, 0.0 }
 0x155   : > { %v1468_v63 = vpack.c.bf16 %v1040_v53, %v1039_v42  ;;  %v820_v0 = vadd.f32 %v1594_v54, %v1990_v56  ;;  %v1597_v55 = vadd.f32 %v1596_v61, %v1595_v57  ;;  %v1008_v4 = vadd.f32 %v1007_v62, %v847_v38 }
 0x156   : > { %v1050_v1 = vmax.f32 %v1016_v60, 0.0  ;;  %v1047_v7 = vmax.f32 %v1005_v50, 0.0 }
 0x157   : > { %1504 = vst [vmem:[%s2000_s22 + $0x50] sm:$0xff] %v1468_v63   ;;  %v981_v5 = vadd.f32 %v2024_v58, %v820_v0  ;;  %v823_v6 = vadd.f32 %v1597_v55, %v1990_v56  ;;  %v1048_v10 = vmax.f32 %v1008_v4, 0.0 }
 0x158   : > { %v1493_v8 = vpack.c.bf16 %v1050_v1, %v1049_v3 }
 0x159   : > { %v984_v43 = vadd.f32 %v2026_v2, %v823_v6  ;;  %v1488_v11 = vpack.c.bf16 %v1048_v10, %v1047_v7  ;;  %v1041_v13 = vmax.f32 %v981_v5, 0.0 }
 0x15a   : > { %1509 = vst [vmem:[%s2000_s22 + $0x78] sm:$0xff] %v1493_v8  }
 0x15b   : > { %v1042_v12 = vmax.f32 %v984_v43, 0.0  ;;  %1508 = vst [vmem:[%s2000_s22 + $0x70] sm:$0xff] %v1488_v11  }
 0x15d   : > { %v1473_v15 = vpack.c.bf16 %v1042_v12, %v1041_v13 }
 0x15f   : > { %1505 = vst [vmem:[%s2000_s22 + $0x58] sm:$0xff] %v1473_v15  }
 0x160 PF: > { %s13_s12 = sadd.s32 1, %s1813_s12  }
 0x161   : > { %p10_p4 = scmp.ge.s32.totalorder %s13_s12, 5  }
 0x163   :  { %12 = sbr.rel (!%p10_p4) target bundleno = 1 (0x1), region = 62 }

// kernel: custom-call
= control target key start
LH: loop header
LB: loop body
LE: loop exit
PB: predicated region body
PF: predicated region fallthrough
CT: control target
= control target key end

     0   :  { %5 = vsyncpa [#allocation9], 0  ;;  %v1086_v0 = vmov 2147483648   ;;  %v1087_v1 = vmov 2147483647   ;;  %s1221_s0 = inlined_call_operand.vmem [shape: f32[2,768], index: 0, kind: input, shape index: {}]   ;;  %s1222_s1 = inlined_call_operand.hbm [shape: f32[2,8], index: 1, kind: output, shape index: {0}]   ;;  %s1223_s2 = inlined_call_operand.vmem [shape: s32[2,8], index: 2, kind: output, shape index: {1}]  }
   0x1   :  { %7 = vst [vmem:[#allocation12] sm:$0xff] %v1086_v0  ;;  %8 = vst [vmem:[#allocation14] sm:$0xff] %v1087_v1 }
   0x2   :  { %v1022_v2 = vld [vmem:[%s1221_s0 + $0x8] sm:$0xf]  ;;  %v43_v3 = vlaneseq  ;;  %v27_v4 = vld [vmem:[%s1221_s0] sm:$0xff]  ;;  %v1088_v5 = vmov 2147483648   ;;  %v1089_v6 = vmov 2147483647  }
   0x3   :  { %39 = vst [vmem:[#allocation16 + $0x8] sm:$0xf] %v1022_v2  ;;  %84 = vst [vmem:[#allocation13] sm:$0xff] %v1088_v5  ;;  %v54_v10 = vsub.s32 2147483647, %v27_v4  ;;  %vm53_vm0 = vcmp.lt.s32.totalorder %v27_v4, 0 }
   0x4   :  { %85 = vst [vmem:[#allocation15] sm:$0xff] %v1089_v6  ;;  %v1118_v7 = vshrl.u32 %v43_v3, 7  ;;  %v44_v8 = vand.u32 127, %v43_v3  ;;  %s1122_s0 = smov 0  }
   0x5   :  { %v55_v13 = vsel %vm53_vm0, %v54_v10, %v27_v4 }
   0x6   :  { %v47_v9 = vshrl.u32 %v1118_v7, 1 }
   0x8   :  { %v49_v11 = vmul.u32 128, %v47_v9 }
   0xa   :  { %v50_v12 = vadd.s32 %v49_v11, %v44_v8  ;;  %v61_v14 = vld [vmem:[#allocation16 + $0x8] sm:$0xff] }
   0xb   :  { %vm62_vm1 = vcmp.lt.s32.totalorder %v61_v14, 0  ;;  %v63_v15 = vsub.s32 2147483647, %v61_v14 }
   0xc   :  { %vm57_vm2 = vcmp.lt.s32.totalorder %v50_v12, 768  ;;  %v65_v16 = vadd.s32 512, %v50_v12  ;;  %79 = vst [vmem:[#allocation17] sm:$0xff] %v50_v12 }
   0xd   :  { %v58_v17 = vsel %vm57_vm2, %v55_v13, 2147483648  ;;  %v64_v18 = vsel %vm62_vm1, %v63_v15, %v61_v14 }
   0xe   :  { %59 = vst [vmem:[#allocation16] sm:$0xff] %v58_v17  ;;  %vm66_vm3 = vcmp.lt.s32.totalorder %v65_v16, 768  ;;  %82 = vst [vmem:[#allocation17 + $0x8] sm:$0xff] %v65_v16 }
   0xf   :  { %v67_v19 = vsel %vm66_vm3, %v64_v18, 2147483648 }
  0x10   :  { %68 = vst [vmem:[#allocation16 + $0x8] sm:$0xff] %v67_v19 }
  0x11 LB: > { %s419_s13 = scalar_lea.vmem [#allocation13], %s1084_s0  ;;  %s421_s14 = scalar_lea.vmem [#allocation15], %s1084_s0  ;;  %s1084_s0 = sphi %s1122_s0, %s92_s0  }
  0x12   : > { %s92_s0 = sadd.s32 1, %s1084_s0  }
  0x13   : > { %v94_v21 = vld [vmem:[#allocation17] sm:$0xff]  ;;  %p89_p2 = scmp.ge.s32.totalorder %s92_s0, 8  }
  0x14   :  { %s1095_s0 = smov (%p89_p2), [#allocation8]  }
  0x15   : > { %v93_v20 = vld [vmem:[#allocation16] sm:$0xff]  ;;  %v99_v23 = vld [vmem:[#allocation17 + $0x8] sm:$0xff] }
  0x16   : > { %vm103_vm6 = vcmp.lt.s32.totalorder %v99_v23, %v94_v21 }
  0x17   : > { %v97_v22 = vld [vmem:[#allocation16 + $0x8] sm:$0xff] }
  0x18   : > { %vm101_vm4 = vcmp.gt.s32.totalorder %v97_v22, %v93_v20  ;;  %vm102_vm5 = vcmp.eq.s32.totalorder %v97_v22, %v93_v20 }
  0x19   : > { %vm104_vm7 = vmand %vm102_vm5, %vm103_vm6 }
  0x1a   : > { %vm105_vm8 = vmor %vm101_vm4, %vm104_vm7 }
  0x1b   : > { %v106_v24 = vsel %vm105_vm8, %v97_v22, %v93_v20  ;;  %v107_v25 = vsel %vm105_vm8, %v99_v23, %v94_v21 }
  0x1c   : > { %v109_v26 = vrot.slane %v106_v24, 2  ;;  %v110_v27 = vrot.slane %v107_v25, 2 }
  0x1e   : > { %vm112_vm9 = vcmp.gt.s32.totalorder %v109_v26, %v106_v24  ;;  %vm113_vm10 = vcmp.eq.s32.totalorder %v109_v26, %v106_v24  ;;  %vm114_vm11 = vcmp.lt.s32.totalorder %v110_v27, %v107_v25 }
  0x1f   : > { %vm115_vm12 = vmand %vm113_vm10, %vm114_vm11 }
  0x20   : > { %vm116_vm13 = vmor %vm112_vm9, %vm115_vm12 }
  0x21   : > { %v117_v28 = vsel %vm116_vm13, %v109_v26, %v106_v24  ;;  %v118_v29 = vsel %vm116_vm13, %v110_v27, %v107_v25 }
  0x22   : > { %v120_v30 = vrot.slane %v117_v28, 2  ;;  %v121_v31 = vrot.slane %v118_v29, 2 }
  0x24   : > { %vm123_vm14 = vcmp.gt.s32.totalorder %v120_v30, %v117_v28  ;;  %vm124_vm15 = vcmp.eq.s32.totalorder %v120_v30, %v117_v28  ;;  %vm125_vm0 = vcmp.lt.s32.totalorder %v121_v31, %v118_v29 }
  0x25   : > { %vm126_vm1 = vmand %vm124_vm15, %vm125_vm0 }
  0x26   : > { %vm127_vm2 = vmor %vm123_vm14, %vm126_vm1 }
  0x27   : > { %v128_v32 = vsel %vm127_vm2, %v120_v30, %v117_v28  ;;  %v129_v33 = vsel %vm127_vm2, %v121_v31, %v118_v29 }
  0x28   : > { %v131_v34 = vrot.slane %v128_v32, 2  ;;  %v132_v35 = vrot.slane %v129_v33, 2 }
  0x2a   : > { %vm134_vm3 = vcmp.gt.s32.totalorder %v131_v34, %v128_v32  ;;  %vm135_vm4 = vcmp.eq.s32.totalorder %v131_v34, %v128_v32  ;;  %vm136_vm5 = vcmp.lt.s32.totalorder %v132_v35, %v129_v33 }
  0x2b   : > { %vm137_vm6 = vmand %vm135_vm4, %vm136_vm5 }
  0x2c   : > { %vm138_vm7 = vmor %vm134_vm3, %vm137_vm6 }
  0x2d   : > { %v140_v36 = vsel %vm138_vm7, %v132_v35, %v129_v33  ;;  %v139_v37 = vsel %vm138_vm7, %v131_v34, %v128_v32 }
  0x2e   : > { %174 = vxpose.xlu1.b32.start [1/16] %v140_v36, 128  ;;  %142 = vxpose.xlu0.b32.start [1/16] %v139_v37, 128 }
  0x32   : > { %175 = vxpose.xlu1.b32.cont [2/16] %v140_v36, 128  ;;  %143 = vxpose.xlu0.b32.cont [2/16] %v139_v37, 128 }
  0x36   : > { %176 = vxpose.xlu1.b32.cont [3/16] %v140_v36, 128  ;;  %144 = vxpose.xlu0.b32.cont [3/16] %v139_v37, 128 }
  0x3a   : > { %177 = vxpose.xlu1.b32.cont [4/16] %v140_v36, 128  ;;  %145 = vxpose.xlu0.b32.cont [4/16] %v139_v37, 128 }
  0x3e   : > { %178 = vxpose.xlu1.b32.cont [5/16] %v140_v36, 128  ;;  %146 = vxpose.xlu0.b32.cont [5/16] %v139_v37, 128 }
  0x42   : > { %179 = vxpose.xlu1.b32.cont [6/16] %v140_v36, 128  ;;  %147 = vxpose.xlu0.b32.cont [6/16] %v139_v37, 128 }
  0x46   : > { %180 = vxpose.xlu1.b32.cont [7/16] %v140_v36, 128  ;;  %148 = vxpose.xlu0.b32.cont [7/16] %v139_v37, 128 }
  0x4a   : > { %181 = vxpose.xlu1.b32.cont [8/16] %v140_v36, 128  ;;  %149 = vxpose.xlu0.b32.cont [8/16] %v139_v37, 128 }
  0x4e   : > { %182 = vxpose.xlu1.b32.cont [9/16] %v140_v36, 128  ;;  %150 = vxpose.xlu0.b32.cont [9/16] %v139_v37, 128 }
  0x52   : > { %183 = vxpose.xlu1.b32.cont [10/16] %v140_v36, 128  ;;  %151 = vxpose.xlu0.b32.cont [10/16] %v139_v37, 128 }
  0x56   : > { %184 = vxpose.xlu1.b32.cont [11/16] %v140_v36, 128  ;;  %152 = vxpose.xlu0.b32.cont [11/16] %v139_v37, 128 }
  0x5a   : > { %185 = vxpose.xlu1.b32.cont [12/16] %v140_v36, 128  ;;  %153 = vxpose.xlu0.b32.cont [12/16] %v139_v37, 128 }
  0x5e   : > { %186 = vxpose.xlu1.b32.cont [13/16] %v140_v36, 128  ;;  %154 = vxpose.xlu0.b32.cont [13/16] %v139_v37, 128 }
  0x62   : > { %187 = vxpose.xlu1.b32.cont [14/16] %v140_v36, 128  ;;  %155 = vxpose.xlu0.b32.cont [14/16] %v139_v37, 128 }
  0x66   : > { %188 = vxpose.xlu1.b32.cont [15/16] %v140_v36, 128  ;;  %156 = vxpose.xlu0.b32.cont [15/16] %v139_v37, 128 }
  0x6a   : > { %189 = vxpose.xlu1.b32.end [16/16] %v140_v36, 128  ;;  %157 = vxpose.xlu0.b32.end [16/16] %v139_v37, 128 }
  0xae   : > { %v190_v38 = vpop.trf.xlu1  ;;  %v158_v39 = vpop.trf.xlu0 }
  0xb2   : > { %v191_v40 = vpop.trf.xlu1  ;;  %v159_v41 = vpop.trf.xlu0 }
  0xb3   : > { %vm210_vm8 = vcmp.lt.s32.totalorder %v191_v40, %v190_v38  ;;  %vm208_vm9 = vcmp.gt.s32.totalorder %v159_v41, %v158_v39  ;;  %vm209_vm10 = vcmp.eq.s32.totalorder %v159_v41, %v158_v39 }
  0xb4   : > { %vm211_vm11 = vmand %vm209_vm10, %vm210_vm8 }
  0xb5   : > { %vm212_vm12 = vmor %vm208_vm9, %vm211_vm11 }
  0xb6   : > { %v213_v42 = vsel %vm212_vm12, %v159_v41, %v158_v39  ;;  %v192_v43 = vpop.trf.xlu1  ;;  %v214_v44 = vsel %vm212_vm12, %v191_v40, %v190_v38  ;;  %v160_v45 = vpop.trf.xlu0 }
  0xb7   : > { %vm219_vm13 = vcmp.lt.s32.totalorder %v192_v43, %v214_v44  ;;  %vm217_vm14 = vcmp.gt.s32.totalorder %v160_v45, %v213_v42  ;;  %vm218_vm15 = vcmp.eq.s32.totalorder %v160_v45, %v213_v42 }
  0xb8   : > { %vm220_vm0 = vmand %vm218_vm15, %vm219_vm13 }
  0xb9   : > { %vm221_vm1 = vmor %vm217_vm14, %vm220_vm0 }
  0xba   : > { %v222_v46 = vsel %vm221_vm1, %v160_v45, %v213_v42  ;;  %v193_v47 = vpop.trf.xlu1  ;;  %v223_v48 = vsel %vm221_vm1, %v192_v43, %v214_v44  ;;  %v161_v49 = vpop.trf.xlu0 }
  0xbb   : > { %vm228_vm2 = vcmp.lt.s32.totalorder %v193_v47, %v223_v48  ;;  %vm226_vm3 = vcmp.gt.s32.totalorder %v161_v49, %v222_v46  ;;  %vm227_vm4 = vcmp.eq.s32.totalorder %v161_v49, %v222_v46 }
  0xbc   : > { %vm229_vm5 = vmand %vm227_vm4, %vm228_vm2 }
  0xbd   : > { %vm230_vm6 = vmor %vm226_vm3, %vm229_vm5 }
  0xbe   : > { %v231_v50 = vsel %vm230_vm6, %v161_v49, %v222_v46  ;;  %v194_v51 = vpop.trf.xlu1  ;;  %v232_v52 = vsel %vm230_vm6, %v193_v47, %v223_v48  ;;  %v162_v53 = vpop.trf.xlu0 }
  0xbf   : > { %vm237_vm7 = vcmp.lt.s32.totalorder %v194_v51, %v232_v52  ;;  %vm235_vm8 = vcmp.gt.s32.totalorder %v162_v53, %v231_v50  ;;  %vm236_vm9 = vcmp.eq.s32.totalorder %v162_v53, %v231_v50 }
  0xc0   : > { %vm238_vm10 = vmand %vm236_vm9, %vm237_vm7 }
  0xc1   : > { %vm239_vm11 = vmor %vm235_vm8, %vm238_vm10 }
  0xc2   : > { %v240_v54 = vsel %vm239_vm11, %v162_v53, %v231_v50  ;;  %v195_v55 = vpop.trf.xlu1  ;;  %v241_v56 = vsel %vm239_vm11, %v194_v51, %v232_v52  ;;  %v163_v57 = vpop.trf.xlu0 }
  0xc3   : > { %vm246_vm12 = vcmp.lt.s32.totalorder %v195_v55, %v241_v56  ;;  %vm244_vm13 = vcmp.gt.s32.totalorder %v163_v57, %v240_v54  ;;  %vm245_vm14 = vcmp.eq.s32.totalorder %v163_v57, %v240_v54 }
  0xc4   : > { %vm247_vm15 = vmand %vm245_vm14, %vm246_vm12 }
  0xc5   : > { %vm248_vm0 = vmor %vm244_vm13, %vm247_vm15 }
  0xc6   : > { %v249_v58 = vsel %vm248_vm0, %v163_v57, %v240_v54  ;;  %v196_v59 = vpop.trf.xlu1  ;;  %v250_v60 = vsel %vm248_vm0, %v195_v55, %v241_v56  ;;  %v164_v61 = vpop.trf.xlu0 }
  0xc7   : > { %vm255_vm1 = vcmp.lt.s32.totalorder %v196_v59, %v250_v60  ;;  %vm253_vm2 = vcmp.gt.s32.totalorder %v164_v61, %v249_v58  ;;  %vm254_vm3 = vcmp.eq.s32.totalorder %v164_v61, %v249_v58 }
  0xc8   : > { %vm256_vm4 = vmand %vm254_vm3, %vm255_vm1 }
  0xc9   : > { %vm257_vm5 = vmor %vm253_vm2, %vm256_vm4 }
  0xca   : > { %v258_v62 = vsel %vm257_vm5, %v164_v61, %v249_v58  ;;  %v197_v63 = vpop.trf.xlu1  ;;  %v259_v0 = vsel %vm257_vm5, %v196_v59, %v250_v60  ;;  %v165_v1 = vpop.trf.xlu0 }
  0xcb   : > { %vm264_vm6 = vcmp.lt.s32.totalorder %v197_v63, %v259_v0  ;;  %vm262_vm7 = vcmp.gt.s32.totalorder %v165_v1, %v258_v62  ;;  %vm263_vm8 = vcmp.eq.s32.totalorder %v165_v1, %v258_v62 }
  0xcc   : > { %vm265_vm9 = vmand %vm263_vm8, %vm264_vm6 }
  0xcd   : > { %vm266_vm10 = vmor %vm262_vm7, %vm265_vm9 }
  0xce   : > { %v267_v2 = vsel %vm266_vm10, %v165_v1, %v258_v62  ;;  %v198_v4 = vpop.trf.xlu1  ;;  %v268_v5 = vsel %vm266_vm10, %v197_v63, %v259_v0  ;;  %v166_v6 = vpop.trf.xlu0 }
  0xcf   : > { %vm273_vm11 = vcmp.lt.s32.totalorder %v198_v4, %v268_v5  ;;  %vm271_vm12 = vcmp.gt.s32.totalorder %v166_v6, %v267_v2  ;;  %vm272_vm13 = vcmp.eq.s32.totalorder %v166_v6, %v267_v2 }
  0xd0   : > { %vm274_vm14 = vmand %vm272_vm13, %vm273_vm11 }
  0xd1   : > { %vm275_vm15 = vmor %vm271_vm12, %vm274_vm14 }
  0xd2   : > { %v276_v8 = vsel %vm275_vm15, %v166_v6, %v267_v2  ;;  %v199_v9 = vpop.trf.xlu1  ;;  %v277_v10 = vsel %vm275_vm15, %v198_v4, %v268_v5  ;;  %v167_v11 = vpop.trf.xlu0  ;;  %v1090_v6 = vmov 2147483648  }
  0xd3   : > { %vm282_vm0 = vcmp.lt.s32.totalorder %v199_v9, %v277_v10  ;;  %vm280_vm1 = vcmp.gt.s32.totalorder %v167_v11, %v276_v8  ;;  %vm281_vm2 = vcmp.eq.s32.totalorder %v167_v11, %v276_v8 }
  0xd4   : > { %vm283_vm3 = vmand %vm281_vm2, %vm282_vm0 }
  0xd5   : > { %vm284_vm4 = vmor %vm280_vm1, %vm283_vm3 }
  0xd6   : > { %v285_v12 = vsel %vm284_vm4, %v167_v11, %v276_v8  ;;  %v200_v13 = vpop.trf.xlu1  ;;  %v286_v14 = vsel %vm284_vm4, %v199_v9, %v277_v10  ;;  %v168_v15 = vpop.trf.xlu0  ;;  %v1091_v8 = vmov 2147483647  }
  0xd7   : > { %vm291_vm5 = vcmp.lt.s32.totalorder %v200_v13, %v286_v14  ;;  %vm289_vm6 = vcmp.gt.s32.totalorder %v168_v15, %v285_v12  ;;  %vm290_vm7 = vcmp.eq.s32.totalorder %v168_v15, %v285_v12 }
  0xd8   : > { %vm292_vm8 = vmand %vm290_vm7, %vm291_vm5 }
  0xd9   : > { %vm293_vm9 = vmor %vm289_vm6, %vm292_vm8 }
  0xda   : > { %v294_v16 = vsel %vm293_vm9, %v168_v15, %v285_v12  ;;  %v201_v17 = vpop.trf.xlu1  ;;  %v295_v18 = vsel %vm293_vm9, %v200_v13, %v286_v14  ;;  %v169_v19 = vpop.trf.xlu0  ;;  %v517_v13 = vld [vmem:[#allocation12] sm:$0xff] (%p89_p2)  ;;  %v518_v14 = vld [vmem:[#allocation14] sm:$0xff] (%p89_p2)  ;;  %v1092_v15 = vmov (%p89_p2), 839939668  }
  0xdb   : > { %vm300_vm10 = vcmp.lt.s32.totalorder %v201_v17, %v295_v18  ;;  %vm298_vm11 = vcmp.gt.s32.totalorder %v169_v19, %v294_v16  ;;  %vm299_vm12 = vcmp.eq.s32.totalorder %v169_v19, %v294_v16 }
  0xdc   : > { %vm301_vm13 = vmand %vm299_vm12, %vm300_vm10 }
  0xdd   : > { %vm302_vm14 = vmor %vm298_vm11, %vm301_vm13 }
  0xde   : > { %v303_v20 = vsel %vm302_vm14, %v169_v19, %v294_v16  ;;  %v202_v21 = vpop.trf.xlu1  ;;  %v304_v22 = vsel %vm302_vm14, %v201_v17, %v295_v18  ;;  %v170_v23 = vpop.trf.xlu0  ;;  %v542_v16 = vunpack.c.l.s4 (%p89_p2), %v1092_v15  ;;  %v1093_v17 = vmov (%p89_p2), 1417023538  }
  0xdf   : > { %vm309_vm15 = vcmp.lt.s32.totalorder %v202_v21, %v304_v22  ;;  %vm307_vm0 = vcmp.gt.s32.totalorder %v170_v23, %v303_v20  ;;  %vm308_vm1 = vcmp.eq.s32.totalorder %v170_v23, %v303_v20  ;;  %v570_v18 = vunpack.c.l.s4 (%p89_p2), %v1093_v17 }
  0xe0   : > { %vm310_vm2 = vmand %vm308_vm1, %vm309_vm15  ;;  %v543_v19 = vunpack.c.0.s8 (%p89_p2), %v542_v16 }
  0xe1   : > { %vm311_vm3 = vmor %vm307_vm0, %vm310_vm2 }
  0xe2   : > { %v312_v24 = vsel %vm311_vm3, %v170_v23, %v303_v20  ;;  %v203_v25 = vpop.trf.xlu1  ;;  %v313_v26 = vsel %vm311_vm3, %v202_v21, %v304_v22  ;;  %v171_v27 = vpop.trf.xlu0  ;;  %v563_v23 = vand.u32 (%p89_p2), 4, %v1118_v7 }
  0xe3   : > { %vm318_vm4 = vcmp.lt.s32.totalorder %v203_v25, %v313_v26  ;;  %vm316_vm5 = vcmp.gt.s32.totalorder %v171_v27, %v312_v24  ;;  %vm317_vm6 = vcmp.eq.s32.totalorder %v171_v27, %v312_v24 }
  0xe4   : > { %vm319_vm7 = vmand %vm317_vm6, %vm318_vm4 }
  0xe5   : > { %vm320_vm8 = vmor %vm316_vm5, %vm319_vm7 }
  0xe6   : > { %v321_v28 = vsel %vm320_vm8, %v171_v27, %v312_v24  ;;  %v204_v29 = vpop.trf.xlu1  ;;  %v322_v30 = vsel %vm320_vm8, %v203_v25, %v313_v26  ;;  %v172_v31 = vpop.trf.xlu0  ;;  %v571_v25 = vunpack.c.0.s8 (%p89_p2), %v570_v18 }
  0xe7   : > { %vm327_vm9 = vcmp.lt.s32.totalorder %v204_v29, %v322_v30  ;;  %vm325_vm10 = vcmp.gt.s32.totalorder %v172_v31, %v321_v28  ;;  %vm326_vm11 = vcmp.eq.s32.totalorder %v172_v31, %v321_v28 }
  0xe8   : > { %vm328_vm12 = vmand %vm326_vm11, %vm327_vm9 }
  0xe9   : > { %vm329_vm13 = vmor %vm325_vm10, %vm328_vm12 }
  0xea   : > { %v330_v32 = vsel %vm329_vm13, %v172_v31, %v321_v28  ;;  %v205_v33 = vpop.trf.xlu1  ;;  %v331_v34 = vsel %vm329_vm13, %v204_v29, %v322_v30  ;;  %v173_v35 = vpop.trf.xlu0  ;;  %v1094_v31 = vmov (%p89_p2), 1732584193  }
  0xeb   : > { %vm336_vm14 = vcmp.lt.s32.totalorder %v205_v33, %v331_v34  ;;  %vm334_vm15 = vcmp.gt.s32.totalorder %v173_v35, %v330_v32  ;;  %vm335_vm0 = vcmp.eq.s32.totalorder %v173_v35, %v330_v32 }
  0xec   : > { %vm337_vm1 = vmand %vm335_vm0, %vm336_vm14 }
  0xed   : > { %vm338_vm2 = vmor %vm334_vm15, %vm337_vm1 }
  0xee   : > { %v339_v36 = vsel %vm338_vm2, %v173_v35, %v330_v32  ;;  %v340_v37 = vsel %vm338_vm2, %v205_v33, %v331_v34  ;;  %v598_v32 = vunpack.c.l.s4 (%p89_p2), %v1094_v31  ;;  %v1147_v33 = vsub.s32 (%p89_p2), %v571_v25, %v1118_v7 }
  0xef   : > { %v342_v38 = vrot.slane %v339_v36, 1  ;;  %v343_v39 = vrot.slane %v340_v37, 1  ;;  %v591_v34 = vand.u32 (%p89_p2), 2, %v1118_v7 }
  0xf1   : > { %vm345_vm3 = vcmp.gt.s32.totalorder %v342_v38, %v339_v36  ;;  %vm346_vm4 = vcmp.eq.s32.totalorder %v342_v38, %v339_v36  ;;  %vm347_vm5 = vcmp.lt.s32.totalorder %v343_v39, %v340_v37 }
  0xf2   : > { %vm348_vm6 = vmand %vm346_vm4, %vm347_vm5 }
  0xf3   : > { %vm349_vm7 = vmor %vm345_vm3, %vm348_vm6 }
  0xf4   : > { %v350_v40 = vsel %vm349_vm7, %v342_v38, %v339_v36  ;;  %v351_v41 = vsel %vm349_vm7, %v343_v39, %v340_v37  ;;  %v599_v37 = vunpack.c.0.s8 (%p89_p2), %v598_v32 }
  0xf5   : > { %v353_v42 = vrot.slane %v350_v40, 1  ;;  %v354_v43 = vrot.slane %v351_v41, 1 }
  0xf7   : > { %vm356_vm8 = vcmp.gt.s32.totalorder %v353_v42, %v350_v40  ;;  %vm357_vm9 = vcmp.eq.s32.totalorder %v353_v42, %v350_v40  ;;  %vm358_vm10 = vcmp.lt.s32.totalorder %v354_v43, %v351_v41 }
  0xf8   : > { %vm359_vm11 = vmand %vm357_vm9, %vm358_vm10 }
  0xf9   : > { %vm360_vm12 = vmor %vm356_vm8, %vm359_vm11 }
  0xfa   : > { %v361_v44 = vsel %vm360_vm12, %v353_v42, %v350_v40  ;;  %v362_v45 = vsel %vm360_vm12, %v354_v43, %v351_v41  ;;  %v1161_v42 = vsub.s32 (%p89_p2), %v599_v37, %v1118_v7 }
  0xfb   : > { %v364_v46 = vrot.slane %v361_v44, 1  ;;  %v365_v47 = vrot.slane %v362_v45, 1 }
  0xfd   : > { %vm369_vm13 = vcmp.lt.s32.totalorder %v365_v47, %v362_v45  ;;  %vm367_vm14 = vcmp.gt.s32.totalorder %v364_v46, %v361_v44  ;;  %vm368_vm15 = vcmp.eq.s32.totalorder %v364_v46, %v361_v44 }
  0xfe   : > { %vm370_vm0 = vmand %vm368_vm15, %vm369_vm13 }
  0xff   : > { %vm371_vm1 = vmor %vm367_vm14, %vm370_vm0 }
 0x100   : > { %v372_v48 = vsel %vm371_vm1, %v364_v46, %v361_v44  ;;  %v373_v49 = vsel %vm371_vm1, %v365_v47, %v362_v45  ;;  %v619_v46 = vand.u32 (%p89_p2), 1, %v1118_v7 }
 0x101   : > { %v375_v50 = vrot.slane %v372_v48, 1  ;;  %v376_v51 = vrot.slane %v373_v49, 1 }
 0x103   : > { %vm378_vm2 = vcmp.gt.s32.totalorder %v375_v50, %v372_v48  ;;  %vm379_vm3 = vcmp.eq.s32.totalorder %v375_v50, %v372_v48  ;;  %vm380_vm4 = vcmp.lt.s32.totalorder %v376_v51, %v373_v49 }
 0x104   : > { %vm381_vm5 = vmand %vm379_vm3, %vm380_vm4 }
 0x105   : > { %vm382_vm6 = vmor %vm378_vm2, %vm381_vm5 }
 0x106   : > { %v383_v52 = vsel %vm382_vm6, %v375_v50, %v372_v48  ;;  %v384_v53 = vsel %vm382_vm6, %v376_v51, %v373_v49 }
 0x107   : > { %v386_v54 = vrot.slane %v383_v52, 1  ;;  %v387_v55 = vrot.slane %v384_v53, 1 }
 0x109   : > { %vm389_vm7 = vcmp.gt.s32.totalorder %v386_v54, %v383_v52  ;;  %vm390_vm8 = vcmp.eq.s32.totalorder %v386_v54, %v383_v52  ;;  %vm391_vm9 = vcmp.lt.s32.totalorder %v387_v55, %v384_v53 }
 0x10a   : > { %vm392_vm10 = vmand %vm390_vm8, %vm391_vm9 }
 0x10b   : > { %vm393_vm11 = vmor %vm389_vm7, %vm392_vm10 }
 0x10c   : > { %v394_v56 = vsel %vm393_vm11, %v386_v54, %v383_v52  ;;  %v395_v57 = vsel %vm393_vm11, %v387_v55, %v384_v53 }
 0x10d   : > { %v397_v58 = vrot.slane %v394_v56, 1  ;;  %v398_v59 = vrot.slane %v395_v57, 1 }
 0x10f   : > { %vm400_vm12 = vcmp.gt.s32.totalorder %v397_v58, %v394_v56  ;;  %vm401_vm13 = vcmp.eq.s32.totalorder %v397_v58, %v394_v56  ;;  %vm402_vm14 = vcmp.lt.s32.totalorder %v398_v59, %v395_v57 }
 0x110   : > { %vm403_vm15 = vmand %vm401_vm13, %vm402_vm14  ;;  %vm1141_vm13 = vcmp.ne.s32.totalorder (%p89_p2), %v563_v23, 0 }
 0x111   : > { %vm404_vm0 = vmor %vm400_vm12, %vm403_vm15 }
 0x112   : > { %v405_v60 = vsel %vm404_vm0, %v397_v58, %v394_v56  ;;  %v406_v61 = vsel %vm404_vm0, %v398_v59, %v395_v57 }
 0x113   : > { %v408_v62 = vrot.slane %v405_v60, 1  ;;  %v409_v63 = vrot.slane %v406_v61, 1 }
 0x115   : > { %vm411_vm1 = vcmp.gt.s32.totalorder %v408_v62, %v405_v60  ;;  %vm412_vm2 = vcmp.eq.s32.totalorder %v408_v62, %v405_v60  ;;  %vm413_vm3 = vcmp.lt.s32.totalorder %v409_v63, %v406_v61 }
 0x116   : > { %vm414_vm4 = vmand %vm412_vm2, %vm413_vm3 }
 0x117   : > { %vm415_vm5 = vmor %vm411_vm1, %vm414_vm4 }
 0x118   : > { %v417_v0 = vsel %vm415_vm5, %v409_v63, %v406_v61  ;;  %v416_v1 = vsel %vm415_vm5, %v408_v62, %v405_v60 }
 0x119   : > { %424 = vxpose.xlu0.b32.start.end [1/1] (short) (narrow) %v417_v0, 8  ;;  %420 = vst [vmem:[%s419_s13] sm:$0x1] %v416_v1  ;;  %422 = vst [vmem:[%s421_s14] sm:$0x1] %v417_v0  ;;  %s958_s13 = sshll.u32 (%p89_p2), %s1095_s0, 4  ;;  %s959_s13 = int_to_ptr.vmem [resolvable:$true] %s958_s13 }
 0x11a   :  { %s1054_s14 = scalar_lea.vmem (%p89_p2), %s959_s13, 32  ;;  %p1059_p4 = scmp.lt.s32.totalorder (%p89_p2), %s959_s13, %s959_s13 }
 0x11b   :  { %p1055_p3 = scmp.ne.s32.totalorder (%p89_p2), %s959_s13, %s1054_s14  ;;  %p1060_p5 = scmp.lt.s32.totalorder (%p89_p2), %s1054_s14, %s1054_s14 }
 0x11d   :  { %p1061_p6 = por (%p89_p2), %p1060_p5, %p1059_p4 }
 0x11f   :  { %p1062_p7 = pnand (%p89_p2), %p1061_p6, %p1055_p3 }
 0x120   :  { %v505_v11 = vld [vmem:[#allocation13 + $0x7] ss:$-1 sm:$0xff] (%p89_p2)  ;;  %v511_v12 = vld [vmem:[#allocation15 + $0x7] ss:$-1 sm:$0xff] (%p89_p2) }
 0x121   :  { %vm523_vm8 = vcmp.gt.s32.totalorder (%p89_p2), %v517_v13, %v505_v11  ;;  %vm524_vm9 = vcmp.eq.s32.totalorder (%p89_p2), %v517_v13, %v505_v11  ;;  %vm525_vm10 = vcmp.lt.s32.totalorder (%p89_p2), %v518_v14, %v511_v12 }
 0x122   :  { %vm526_vm11 = vmand (%p89_p2), %vm524_vm9, %vm525_vm10  ;;  %vm1154_vm9 = vcmp.ne.s32.totalorder (%p89_p2), %v591_v34, 0 }
 0x123   :  { %vm527_vm12 = vmor (%p89_p2), %vm523_vm8, %vm526_vm11 }
 0x124   :  { %v528_v20 = vsel (%p89_p2), %vm527_vm12, %v517_v13, %v505_v11  ;;  %v530_v21 = vsel (%p89_p2), %vm527_vm12, %v505_v11, %v517_v13  ;;  %v532_v22 = vsel (%p89_p2), %vm527_vm12, %v518_v14, %v511_v12  ;;  %v534_v24 = vsel (%p89_p2), %vm527_vm12, %v511_v12, %v518_v14 }
 0x199   : > { %v440_v2 = vpop.trf.xlu0 }
 0x19a   : > { %v479_v4 = vrot.slane %v440_v2, 1  ;;  %1031 = vpush %v440_v2 }
 0x19c   : > { %1033 = vpush %v479_v4 }
 0x1cb   : > { %s1032_s15 = spop %1031 }
 0x1cc   : > { %s457_s16 = sshrl.u32 %s1032_s15, 9  ;;  %s459_s17 = ssub.s32 0, %s1032_s15 }
 0x1cd   : > { %p458_p0 = scmp.lt.s32.totalorder %s1032_s15, 0  ;;  %s1023_s18 = smin.u32 %s1032_s15, %s459_s17 }
 0x1ce   : > { %s461_s19 = sand.u32 511, %s1023_s18   ;;  %s1025_s20 = sshll.u32 %s457_s16, 3 }
 0x1cf   : > { %s462_s21 = ssub.s32 0, %s461_s19  ;;  %s1034_s22 = spop %1033 }
 0x1d0   : > { %s1231_s21 = smov (!%p458_p0, %s462_s21), %s461_s19  ;;  %s483_s26 = ssub.s32 0, %s1034_s22 }
 0x1d1   : > { %s464_s23 = sshrl.u32 %s1231_s21, 7  ;;  %s466_s24 = sand.u32 127, %s1231_s21  }
 0x1d2   : > { %s1024_s25 = sshll.u32 %s464_s23, 8  ;;  %s1027_s28 = smin.u32 %s1034_s22, %s483_s26 }
 0x1d3   : > { %s467_s27 = sadd.s32 %s1024_s25, %s466_s24  ;;  %p482_p1 = scmp.lt.s32.totalorder %s1034_s22, 0 }
 0x1d4   : > { %v469_v5 = vstv %s467_s27  ;;  %s485_s29 = sand.u32 511, %s1027_s28   ;;  %s473_s3 = scalar_lea.vmem [#allocation16], %s1025_s20 }
 0x1d5   : > { %vm471_vm6 = vcmp.eq.s32.totalorder %v43_v3, %v469_v5  ;;  %s486_s30 = ssub.s32 0, %s485_s29  ;;  %s476_s4 = scalar_lea.vmem [#allocation17], %s1025_s20 }
 0x1d6   : > { %474 = vst.msk [vmem:[%s473_s3] sm:$0xff] %vm471_vm6, %v1090_v6  ;;  %477 = vst.msk [vmem:[%s476_s4] sm:$0xff] %vm471_vm6, %v1091_v8  ;;  %s1233_s30 = smov (!%p482_p1, %s486_s30), %s485_s29  ;;  %s481_s5 = sshrl.u32 %s1034_s22, 9 }
 0x1d7   : > { %s488_s6 = sshrl.u32 %s1233_s30, 7  ;;  %s490_s7 = sand.u32 127, %s1233_s30  }
 0x1d8   : > { %s1028_s8 = sshll.u32 %s488_s6, 8  ;;  %s1029_s10 = sshll.u32 %s481_s5, 3 }
 0x1d9   : > { %s491_s9 = sadd.s32 %s1028_s8, %s490_s7  ;;  %s497_s11 = scalar_lea.vmem [#allocation16], %s1029_s10 }
 0x1da   : > { %v493_v9 = vstv %s491_s9  ;;  %s500_s12 = scalar_lea.vmem [#allocation17], %s1029_s10  ;;  %91 = sbr.rel (!%p89_p2) target bundleno = 17 (0x11), region = 107 }
 0x1db   : > { %v494_v10 = vadd.s32 128, %v493_v9 }
 0x1dd   : > { %vm495_vm7 = vcmp.eq.s32.totalorder %v43_v3, %v494_v10  ;;  %v1136_v3 = vsub.s32 (%p89_p2), %v543_v19, %v1118_v7 }
 0x1de   : > { %498 = vst.msk [vmem:[%s497_s11] sm:$0xff] %vm495_vm7, %v1090_v6  ;;  %501 = vst.msk [vmem:[%s500_s12] sm:$0xff] %vm495_vm7, %v1091_v8 }
 0x1df   :  { %v547_v26 = vrot.slane (%p89_p2), %v528_v20, %v1136_v3  ;;  %v554_v27 = vrot.slane (%p89_p2), %v532_v22, %v1136_v3  ;;  %v728_v28 = vrot.slane (%p89_p2), %v530_v21, %v1136_v3  ;;  %v735_v30 = vrot.slane (%p89_p2), %v534_v24, %v1136_v3 }
 0x1e1   :  { %vm556_vm14 = vcmp.gt.s32.totalorder %v528_v20, %v547_v26  ;;  %vm557_vm15 = vcmp.eq.s32.totalorder %v528_v20, %v547_v26  ;;  %vm558_vm0 = vcmp.lt.s32.totalorder %v532_v22, %v554_v27  ;;  %vm738_vm2 = vcmp.eq.s32.totalorder %v530_v21, %v728_v28 }
 0x1e2   :  { %vm559_vm1 = vmand %vm557_vm15, %vm558_vm0  ;;  %vm739_vm3 = vcmp.lt.s32.totalorder %v534_v24, %v735_v30  ;;  %vm737_vm5 = vcmp.gt.s32.totalorder %v530_v21, %v728_v28 }
 0x1e3   :  { %vm560_vm4 = vmor %vm556_vm14, %vm559_vm1 }
 0x1e4   :  { %vm565_vm6 = vmxor %vm560_vm4, %vm1141_vm13 }
 0x1e5   :  { %v566_v35 = vsel %vm565_vm6, %v528_v20, %v547_v26  ;;  %v567_v36 = vsel %vm565_vm6, %v532_v22, %v554_v27  ;;  %vm740_vm7 = vmand %vm738_vm2, %vm739_vm3 }
 0x1e6   :  { %v575_v38 = vrot.slane %v566_v35, %v1147_v33  ;;  %v582_v39 = vrot.slane %v567_v36, %v1147_v33  ;;  %vm741_vm8 = vmor %vm737_vm5, %vm740_vm7 }
 0x1e7   :  { %vm746_vm10 = vmxor %vm741_vm8, %vm1141_vm13 }
 0x1e8   :  { %vm584_vm11 = vcmp.gt.s32.totalorder %v566_v35, %v575_v38  ;;  %vm585_vm12 = vcmp.eq.s32.totalorder %v566_v35, %v575_v38  ;;  %vm586_vm14 = vcmp.lt.s32.totalorder %v567_v36, %v582_v39  ;;  %v747_v41 = vsel %vm746_vm10, %v530_v21, %v728_v28 }
 0x1e9   :  { %vm587_vm15 = vmand %vm585_vm12, %vm586_vm14  ;;  %v748_v43 = vsel %vm746_vm10, %v534_v24, %v735_v30  ;;  %v756_v44 = vrot.slane %v747_v41, %v1147_v33 }
 0x1ea   :  { %vm588_vm0 = vmor %vm584_vm11, %vm587_vm15  ;;  %v763_v45 = vrot.slane %v748_v43, %v1147_v33  ;;  %vm1170_vm11 = vcmp.ne.s32.totalorder %v619_v46, 0 }
 0x1eb   :  { %vm593_vm1 = vmxor %vm588_vm0, %vm1154_vm9  ;;  %vm765_vm2 = vcmp.gt.s32.totalorder %v747_v41, %v756_v44  ;;  %vm766_vm3 = vcmp.eq.s32.totalorder %v747_v41, %v756_v44 }
 0x1ec   :  { %v594_v47 = vsel %vm593_vm1, %v566_v35, %v575_v38  ;;  %v595_v48 = vsel %vm593_vm1, %v567_v36, %v582_v39  ;;  %vm767_vm4 = vcmp.lt.s32.totalorder %v748_v43, %v763_v45 }
 0x1ed   :  { %v603_v49 = vrot.slane %v594_v47, %v1161_v42  ;;  %v610_v50 = vrot.slane %v595_v48, %v1161_v42  ;;  %vm768_vm5 = vmand %vm766_vm3, %vm767_vm4 }
 0x1ee   :  { %vm769_vm6 = vmor %vm765_vm2, %vm768_vm5 }
 0x1ef   :  { %vm612_vm7 = vcmp.gt.s32.totalorder %v594_v47, %v603_v49  ;;  %vm613_vm8 = vcmp.eq.s32.totalorder %v594_v47, %v603_v49  ;;  %vm614_vm10 = vcmp.lt.s32.totalorder %v595_v48, %v610_v50  ;;  %vm774_vm12 = vmxor %vm769_vm6, %vm1154_vm9 }
 0x1f0   :  { %vm615_vm14 = vmand %vm613_vm8, %vm614_vm10  ;;  %v775_v7 = vsel %vm774_vm12, %v747_v41, %v756_v44  ;;  %v776_v52 = vsel %vm774_vm12, %v748_v43, %v763_v45 }
 0x1f1   :  { %vm616_vm15 = vmor %vm612_vm7, %vm615_vm14  ;;  %v784_v53 = vrot.slane %v775_v7, %v1161_v42  ;;  %v791_v54 = vrot.slane %v776_v52, %v1161_v42 }
 0x1f2   :  { %vm621_vm0 = vmxor %vm616_vm15, %vm1170_vm11 }
 0x1f3   :  { %v622_v55 = vsel %vm621_vm0, %v594_v47, %v603_v49  ;;  %v623_v56 = vsel %vm621_vm0, %v595_v48, %v610_v50  ;;  %vm793_vm1 = vcmp.gt.s32.totalorder %v775_v7, %v784_v53  ;;  %vm794_vm2 = vcmp.eq.s32.totalorder %v775_v7, %v784_v53 }
 0x1f4   :  { %v637_v57 = vrot.slane %v622_v55, %v1136_v3  ;;  %v644_v58 = vrot.slane %v623_v56, %v1136_v3  ;;  %vm795_vm3 = vcmp.lt.s32.totalorder %v776_v52, %v791_v54 }
 0x1f5   :  { %vm796_vm4 = vmand %vm794_vm2, %vm795_vm3 }
 0x1f6   :  { %vm646_vm5 = vcmp.gt.s32.totalorder %v622_v55, %v637_v57  ;;  %vm647_vm6 = vcmp.eq.s32.totalorder %v622_v55, %v637_v57  ;;  %vm648_vm7 = vcmp.lt.s32.totalorder %v623_v56, %v644_v58  ;;  %vm797_vm8 = vmor %vm793_vm1, %vm796_vm4 }
 0x1f7   :  { %vm649_vm10 = vmand %vm647_vm6, %vm648_vm7 }
 0x1f8   :  { %vm650_vm12 = vmor %vm646_vm5, %vm649_vm10 }
 0x1f9   :  { %vm655_vm14 = vmxor %vm650_vm12, %vm1141_vm13 }
 0x1fa   :  { %v656_v59 = vsel %vm655_vm14, %v622_v55, %v637_v57  ;;  %v657_v60 = vsel %vm655_vm14, %v623_v56, %v644_v58  ;;  %vm802_vm15 = vmxor %vm797_vm8, %vm1170_vm11 }
 0x1fb   :  { %v665_v61 = vrot.slane %v656_v59, %v1147_v33  ;;  %v672_v62 = vrot.slane %v657_v60, %v1147_v33  ;;  %v803_v63 = vsel %vm802_vm15, %v775_v7, %v784_v53  ;;  %v804_v0 = vsel %vm802_vm15, %v776_v52, %v791_v54 }
 0x1fc   :  { %v818_v1 = vrot.slane %v803_v63, %v1136_v3  ;;  %v825_v2 = vrot.slane %v804_v0, %v1136_v3 }
 0x1fd   :  { %vm674_vm0 = vcmp.gt.s32.totalorder %v656_v59, %v665_v61  ;;  %vm675_vm1 = vcmp.eq.s32.totalorder %v656_v59, %v665_v61  ;;  %vm676_vm2 = vcmp.lt.s32.totalorder %v657_v60, %v672_v62 }
 0x1fe   :  { %vm677_vm3 = vmand %vm675_vm1, %vm676_vm2  ;;  %vm828_vm4 = vcmp.eq.s32.totalorder %v803_v63, %v818_v1  ;;  %vm829_vm5 = vcmp.lt.s32.totalorder %v804_v0, %v825_v2  ;;  %vm827_vm7 = vcmp.gt.s32.totalorder %v803_v63, %v818_v1 }
 0x1ff   :  { %vm678_vm6 = vmor %vm674_vm0, %vm677_vm3 }
 0x200   :  { %vm683_vm8 = vmxor %vm678_vm6, %vm1154_vm9 }
 0x201   :  { %v684_v4 = vsel %vm683_vm8, %v656_v59, %v665_v61  ;;  %v685_v5 = vsel %vm683_vm8, %v657_v60, %v672_v62  ;;  %vm830_vm10 = vmand %vm828_vm4, %vm829_vm5 }
 0x202   :  { %v693_v6 = vrot.slane %v684_v4, %v1161_v42  ;;  %v700_v8 = vrot.slane %v685_v5, %v1161_v42  ;;  %vm831_vm12 = vmor %vm827_vm7, %vm830_vm10 }
 0x203   :  { %vm836_vm14 = vmxor %vm831_vm12, %vm1141_vm13 }
 0x204   :  { %vm702_vm15 = vcmp.gt.s32.totalorder %v684_v4, %v693_v6  ;;  %vm703_vm1 = vcmp.eq.s32.totalorder %v684_v4, %v693_v6  ;;  %vm704_vm2 = vcmp.lt.s32.totalorder %v685_v5, %v700_v8  ;;  %v837_v9 = vsel %vm836_vm14, %v803_v63, %v818_v1 }
 0x205   :  { %vm705_vm0 = vmand %vm703_vm1, %vm704_vm2  ;;  %v838_v10 = vsel %vm836_vm14, %v804_v0, %v825_v2  ;;  %v846_v11 = vrot.slane %v837_v9, %v1147_v33 }
 0x206   :  { %vm706_vm3 = vmor %vm702_vm15, %vm705_vm0  ;;  %v853_v12 = vrot.slane %v838_v10, %v1147_v33 }
 0x207   :  { %vm711_vm4 = vmxor %vm706_vm3, %vm1170_vm11  ;;  %vm855_vm5 = vcmp.gt.s32.totalorder %v837_v9, %v846_v11  ;;  %vm856_vm6 = vcmp.eq.s32.totalorder %v837_v9, %v846_v11 }
 0x208   :  { %v712_v13 = vsel %vm711_vm4, %v684_v4, %v693_v6  ;;  %v713_v14 = vsel %vm711_vm4, %v685_v5, %v700_v8  ;;  %vm857_vm7 = vcmp.lt.s32.totalorder %v838_v10, %v853_v12 }
 0x209   :  { %715 = vst [vmem:[#allocation12] sm:$0xff] %v712_v13  ;;  %716 = vst [vmem:[#allocation14] sm:$0xff] %v713_v14 }
 0x20a   :  { %vm858_vm13 = vmand %vm856_vm6, %vm857_vm7 }
 0x20b   :  { %vm859_vm8 = vmor %vm855_vm5, %vm858_vm13 }
 0x20c   :  { %vm864_vm10 = vmxor %vm859_vm8, %vm1154_vm9 }
 0x20d   :  { %v865_v15 = vsel %vm864_vm10, %v837_v9, %v846_v11  ;;  %v866_v16 = vsel %vm864_vm10, %v838_v10, %v853_v12 }
 0x20e   :  { %v874_v17 = vrot.slane %v865_v15, %v1161_v42  ;;  %v881_v18 = vrot.slane %v866_v16, %v1161_v42 }
 0x210   :  { %vm883_vm12 = vcmp.gt.s32.totalorder %v865_v15, %v874_v17  ;;  %vm884_vm14 = vcmp.eq.s32.totalorder %v865_v15, %v874_v17  ;;  %vm885_vm15 = vcmp.lt.s32.totalorder %v866_v16, %v881_v18  ;;  %v923_v21 = vld [vmem:[#allocation14] sm:$0xff]  ;;  %v899_v22 = vld [vmem:[#allocation12] sm:$0xff] }
 0x211   :  { %vm886_vm1 = vmand %vm884_vm14, %vm885_vm15  ;;  %924 = vxpose.xlu0.b32.start.end [1/1] (short) (narrow) %v923_v21, 8  ;;  %vm900_vm9 = vcmp.lt.s32.totalorder %v899_v22, 0  ;;  %v901_v23 = vsub.s32 2147483647, %v899_v22 }
 0x212   :  { %vm887_vm2 = vmor %vm883_vm12, %vm886_vm1 }
 0x213   :  { %vm892_vm0 = vmxor %vm887_vm2, %vm1170_vm11  ;;  %v902_v24 = vsel %vm900_vm9, %v901_v23, %v899_v22 }
 0x214   :  { %v893_v19 = vsel %vm892_vm0, %v865_v15, %v874_v17  ;;  %v894_v20 = vsel %vm892_vm0, %v866_v16, %v881_v18  ;;  %903 = vst [vmem:[#allocation12] sm:$0xff] %v902_v24 }
 0x215   :  { %896 = vst [vmem:[#allocation13] sm:$0xff] %v893_v19  ;;  %897 = vst [vmem:[#allocation15] sm:$0xff] %v894_v20  ;;  %905 = vxpose.xlu0.b32.start.end [1/1] (short) (narrow) %v902_v24, 8 }
 0x291   :  { %v925_v3 = vpop.trf.xlu0 }
 0x292   :  { %941 = vst [vmem:[#allocation10] sm:$0xff] %v925_v3 }
 0x295   :  { %v906_v25 = vpop.trf.xlu0 }
 0x296   :  { %922 = vst [vmem:[#allocation7] sm:$0xff] %v906_v25 }
 0x299   :  { %v951_v26 = vld [vmem:[#allocation10] sm:$0x3] }
 0x29a   :  { %953 = vst [vmem:[#allocation11] sm:$0x3] %v951_v26 }
 0x29d   :  { %v945_v27 = vld [vmem:[#allocation7] sm:$0x3] }
 0x29e   :  { %947 = vst [vmem:[#allocation8] sm:$0x3] %v945_v27 }
 0x29f   :  { %1065 = shalt.err (!%p1062_p7)
}
 0x2a0   :  { %s1066_s17 = scalar_lea.hbm %s1222_s1, 32 }
 0x2a1   :  { %p1067_p8 = scmp.ne.s32.totalorder %s1222_s1, %s1066_s17  ;;  %p1070_p9 = scmp.lt.u32.totalorder %s1066_s17, %s1222_s1 }
 0x2a3   :  { %p1072_p10 = pnand %p1070_p9, %p1067_p8 }
 0x2a5   :  { %1075 = shalt.err (!%p1072_p10)
}
 0x2a6   :  { %961 = dma.vmem_to_hbm [thread:$0]  %s959_s13, 32, %s1222_s1, [#allocation9]   ;;  %v977_v28 = vld [vmem:[#allocation11] sm:$0x3] }
 0x2a7   :  { %978 = vst [vmem:[%s1223_s2] sm:$0x3] %v977_v28 }
 0x2a8   :  { %1080 = dma.done.wait [#allocation9], 32  }
 0x2a9   :  { %1081 = vsyncadd [#allocation9], 4294967264 }
 0x2aa   :  { %994 = vsyncpa [#allocation9], 1 }

// kernel: faster_rcnn_forward.34
= control target key start
LH: loop header
LB: loop body
LE: loop exit
PB: predicated region body
PF: predicated region fallthrough
CT: control target
= control target key end

     0   :  { %v210_v0 = vmov 0.0   ;;  %vm211_vm0 = vmmov 0   ;;  %s265_s1 = inlined_call_operand.vmem [shape: bf16[128,128], index: 1, kind: input, shape index: {}]   ;;  %s266_s0 = inlined_call_operand.vmem [shape: bf16[16,128], index: 0, kind: input, shape index: {}]   ;;  %s267_s2 = inlined_call_operand.vmem [shape: f32[1,128], index: 2, kind: input, shape index: {}]   ;;  %s268_s3 = inlined_call_operand.vmem [shape: bf16[16,128], index: 3, kind: output, shape index: {}]  }
   0x1   :  { %179 = vmatprep.subr.bf16.mxu0 %v210_v0  ;;  %v201_v1 = vld [vmem:[%s265_s1] sm:$0xff]   ;;  %195 = vmatprep.mubr.msk.bf16.mxu0 %vm211_vm0, %v210_v0  ;;  %v202_v2 = vld [vmem:[%s265_s1 + $0x8] sm:$0xff]   ;;  %v203_v3 = vld [vmem:[%s265_s1 + $0x10] sm:$0xff]  }
   0x2   :  { %180 = vmatpush3.bf16.msra.mxu0 %v201_v1  ;;  %v204_v4 = vld [vmem:[%s265_s1 + $0x18] sm:$0xff]   ;;  %v205_v5 = vld [vmem:[%s265_s1 + $0x20] sm:$0xff]   ;;  %v206_v6 = vld [vmem:[%s265_s1 + $0x28] sm:$0xff]  }
   0x3   :  { %181 = vmatprep.subr.bf16.mxu0 %v210_v0  ;;  %v207_v7 = vld [vmem:[%s265_s1 + $0x30] sm:$0xff]   ;;  %v208_v8 = vld [vmem:[%s265_s1 + $0x38] sm:$0xff]   ;;  %v209_v9 = vld [vmem:[%s266_s0] sm:$0xff]  }
   0x4   :  { %v151_v10 = vld [vmem:[%s267_s2] ss:$0 sm:$0xff] }
   0x6   :  { %182 = vmatpush3.bf16.msra.mxu0 %v202_v2 }
   0x7   :  { %183 = vmatprep.subr.bf16.mxu0 %v210_v0 }
   0xa   :  { %184 = vmatpush3.bf16.msra.mxu0 %v203_v3 }
   0xb   :  { %185 = vmatprep.subr.bf16.mxu0 %v210_v0 }
   0xe   :  { %186 = vmatpush3.bf16.msra.mxu0 %v204_v4 }
   0xf   :  { %187 = vmatprep.subr.bf16.mxu0 %v210_v0 }
  0x12   :  { %188 = vmatpush3.bf16.msra.mxu0 %v205_v5 }
  0x13   :  { %189 = vmatprep.subr.bf16.mxu0 %v210_v0 }
  0x16   :  { %190 = vmatpush3.bf16.msra.mxu0 %v206_v6 }
  0x17   :  { %191 = vmatprep.subr.bf16.mxu0 %v210_v0 }
  0x1a   :  { %192 = vmatpush3.bf16.msra.mxu0 %v207_v7 }
  0x1b   :  { %193 = vmatprep.subr.bf16.mxu0 %v210_v0 }
  0x1e   :  { %194 = vmatpush3.bf16.msra.mxu0 %v208_v8 }
  0x21   :  { %196 = vmatmul.mubr.bf16.vlgmr.msra.gmra.mrb[0].mxu0 %v209_v9 }
  0xf4   :  { %v128_v11 = vpop.f32.mrb[0].mxu0 }
  0xf5   :  { %v129_v12 = vadd.f32 %v151_v10, %v128_v11  ;;  %v197_v13 = vpop.f32.mrb[1].mxu0 }
  0xf6   :  { %v131_v14 = vpop.f32.mrb[2].mxu0 }
  0xf7   :  { %v132_v15 = vadd.f32 %v151_v10, %v131_v14  ;;  %v198_v16 = vpop.f32.mrb[3].mxu0  ;;  %v135_v17 = vmax.f32 %v129_v12, 0.0 }
  0xf9   :  { %v136_v18 = vmax.f32 %v132_v15, 0.0 }
  0xfb   :  { %v168_v19 = vpack.c.bf16 %v136_v18, %v135_v17 }
  0xfd   :  { %169 = vst [vmem:[%s268_s3] sm:$0xff] %v168_v19  }

// kernel: faster_rcnn_forward.33
= control target key start
LH: loop header
LB: loop body
LE: loop exit
PB: predicated region body
PF: predicated region fallthrough
CT: control target
= control target key end

     0   :  { %vm1651_vm0 = vmmov 0   ;;  %s2029_s1 = inlined_call_operand.vmem [shape: bf16[1664,128], index: 1, kind: input, shape index: {}]   ;;  %s2030_s0 = inlined_call_operand.vmem [shape: bf16[16,1664], index: 0, kind: input, shape index: {}]   ;;  %s2031_s2 = inlined_call_operand.vmem [shape: f32[1,128], index: 2, kind: input, shape index: {}]   ;;  %s2032_s3 = inlined_call_operand.vmem [shape: bf16[16,128], index: 3, kind: output, shape index: {}]  }
   0x1   :  { %v1527_v0 = vld [vmem:[%s2029_s1 + $0x40] sm:$0xff]   ;;  %v1531_v4 = vld [vmem:[%s2029_s1 + $0x48] sm:$0xff]   ;;  %v1535_v8 = vld [vmem:[%s2029_s1 + $0x50] sm:$0xff]  }
   0x2   :  { %v1528_v1 = vld [vmem:[%s2029_s1] sm:$0xff]   ;;  %1364 = vmatprep.subr.bf16.mxu0 %v1527_v0  ;;  %v1532_v5 = vld [vmem:[%s2029_s1 + $0x8] sm:$0xff]   ;;  %v1536_v9 = vld [vmem:[%s2029_s1 + $0x10] sm:$0xff]  }
   0x3   :  { %v1529_v2 = vld [vmem:[%s2029_s1 + $0xc0] sm:$0xff]   ;;  %1365 = vmatpush3.bf16.msra.mxu0 %v1528_v1  ;;  %v1533_v6 = vld [vmem:[%s2029_s1 + $0xc8] sm:$0xff]   ;;  %v1537_v10 = vld [vmem:[%s2029_s1 + $0xd0] sm:$0xff]  }
   0x4   :  { %v1530_v3 = vld [vmem:[%s2029_s1 + $0x80] sm:$0xff]   ;;  %1386 = vmatprep.subr.bf16.mxu1 %v1529_v2  ;;  %1366 = vmatprep.subr.bf16.mxu0 %v1531_v4  ;;  %v1534_v7 = vld [vmem:[%s2029_s1 + $0x88] sm:$0xff]   ;;  %v1538_v11 = vld [vmem:[%s2029_s1 + $0x90] sm:$0xff]  }
   0x5   :  { %1387 = vmatpush3.bf16.msra.mxu1 %v1530_v3  ;;  %v1539_v12 = vld [vmem:[%s2029_s1 + $0x58] sm:$0xff]   ;;  %v1543_v16 = vld [vmem:[%s2029_s1 + $0x60] sm:$0xff]   ;;  %v1547_v20 = vld [vmem:[%s2029_s1 + $0x68] sm:$0xff]  }
   0x6   :  { %1388 = vmatprep.subr.bf16.mxu1 %v1533_v6  ;;  %v1540_v13 = vld [vmem:[%s2029_s1 + $0x18] sm:$0xff]   ;;  %v1544_v17 = vld [vmem:[%s2029_s1 + $0x20] sm:$0xff]   ;;  %v1548_v21 = vld [vmem:[%s2029_s1 + $0x28] sm:$0xff]  }
   0x7   :  { %1367 = vmatpush3.bf16.msra.mxu0 %v1532_v5  ;;  %v1541_v14 = vld [vmem:[%s2029_s1 + $0xd8] sm:$0xff]   ;;  %v1545_v18 = vld [vmem:[%s2029_s1 + $0xe0] sm:$0xff]   ;;  %v1549_v22 = vld [vmem:[%s2029_s1 + $0xe8] sm:$0xff]  }
   0x8   :  { %1368 = vmatprep.subr.bf16.mxu0 %v1535_v8  ;;  %v1542_v15 = vld [vmem:[%s2029_s1 + $0x98] sm:$0xff]   ;;  %v1546_v19 = vld [vmem:[%s2029_s1 + $0xa0] sm:$0xff]   ;;  %v1550_v23 = vld [vmem:[%s2029_s1 + $0xa8] sm:$0xff]  }
   0x9   :  { %1389 = vmatpush3.bf16.msra.mxu1 %v1534_v7  ;;  %v1551_v24 = vld [vmem:[%s2029_s1 + $0x70] sm:$0xff]   ;;  %v1555_v28 = vld [vmem:[%s2029_s1 + $0x78] sm:$0xff]   ;;  %v1562_v34 = vld [vmem:[%s2029_s1 + $0x140] sm:$0xff]  }
   0xa   :  { %1390 = vmatprep.subr.bf16.mxu1 %v1537_v10  ;;  %v1552_v25 = vld [vmem:[%s2029_s1 + $0x30] sm:$0xff]   ;;  %v1556_v29 = vld [vmem:[%s2029_s1 + $0x38] sm:$0xff]   ;;  %v1565_v36 = vld [vmem:[%s2030_s0 + $0xc] ss:$52 sps:$4 sm:$0xff]  }
   0xb   :  { %1369 = vmatpush3.bf16.msra.mxu0 %v1536_v9  ;;  %v1553_v26 = vld [vmem:[%s2029_s1 + $0xf0] sm:$0xff]   ;;  %v1557_v30 = vld [vmem:[%s2029_s1 + $0xf8] sm:$0xff]   ;;  %v1566_v37 = vld [vmem:[%s2029_s1 + $0x100] sm:$0xff]   ;;  %1007 = vmatprep.mubr.bf16.mxu1 %v1565_v36 }
   0xc   :  { %1370 = vmatprep.subr.bf16.mxu0 %v1539_v12  ;;  %v1554_v27 = vld [vmem:[%s2029_s1 + $0xb0] sm:$0xff]   ;;  %v1560_v32 = vld [vmem:[%s2030_s0 + $0x4] ss:$52 sps:$4 sm:$0xff]   ;;  %v1563_v35 = vld [vmem:[%s2030_s0 + $0x8] ss:$52 sps:$4 sm:$0xff]  }
   0xd   :  { %1391 = vmatpush3.bf16.msra.mxu1 %v1538_v11  ;;  %v1558_v31 = vld [vmem:[%s2030_s0] ss:$52 sps:$4 sm:$0xff]   ;;  %v1561_v33 = vld [vmem:[%s2029_s1 + $0xb8] sm:$0xff]   ;;  %966 = vmatprep.mubr.bf16.mxu0 %v1560_v32  ;;  %v1569_v40 = vld [vmem:[%s2029_s1 + $0x148] sm:$0xff]  }
   0xe   :  { %1392 = vmatprep.subr.bf16.mxu1 %v1541_v14  ;;  %v1567_v38 = vld [vmem:[%s2029_s1 + $0x1c0] sm:$0xff]   ;;  %v1570_v41 = vld [vmem:[%s2029_s1 + $0x108] sm:$0xff]   ;;  %v1573_v44 = vld [vmem:[%s2029_s1 + $0x150] sm:$0xff]  }
   0xf   :  { %1371 = vmatpush3.bf16.msra.mxu0 %v1540_v13  ;;  %v1568_v39 = vld [vmem:[%s2029_s1 + $0x180] sm:$0xff]   ;;  %v1571_v42 = vld [vmem:[%s2029_s1 + $0x1c8] sm:$0xff]   ;;  %v1574_v45 = vld [vmem:[%s2029_s1 + $0x110] sm:$0xff]  }
  0x10   :  { %1372 = vmatprep.subr.bf16.mxu0 %v1543_v16  ;;  %v1572_v43 = vld [vmem:[%s2029_s1 + $0x188] sm:$0xff]   ;;  %v1575_v46 = vld [vmem:[%s2029_s1 + $0x1d0] sm:$0xff]   ;;  %v1577_v48 = vld [vmem:[%s2029_s1 + $0x158] sm:$0xff]  }
  0x11   :  { %1393 = vmatpush3.bf16.msra.mxu1 %v1542_v15  ;;  %v1576_v47 = vld [vmem:[%s2029_s1 + $0x190] sm:$0xff]   ;;  %v1578_v49 = vld [vmem:[%s2029_s1 + $0x118] sm:$0xff]   ;;  %v1581_v52 = vld [vmem:[%s2029_s1 + $0x160] sm:$0xff]  }
  0x12   :  { %1394 = vmatprep.subr.bf16.mxu1 %v1545_v18  ;;  %v1579_v50 = vld [vmem:[%s2029_s1 + $0x1d8] sm:$0xff]   ;;  %v1582_v53 = vld [vmem:[%s2029_s1 + $0x120] sm:$0xff]   ;;  %v1585_v56 = vld [vmem:[%s2029_s1 + $0x168] sm:$0xff]  }
  0x13   :  { %1373 = vmatpush3.bf16.msra.mxu0 %v1544_v17  ;;  %v1580_v51 = vld [vmem:[%s2029_s1 + $0x198] sm:$0xff]   ;;  %v1583_v54 = vld [vmem:[%s2029_s1 + $0x1e0] sm:$0xff]   ;;  %v1586_v57 = vld [vmem:[%s2029_s1 + $0x128] sm:$0xff]  }
  0x14   :  { %1374 = vmatprep.subr.bf16.mxu0 %v1547_v20  ;;  %v1584_v55 = vld [vmem:[%s2029_s1 + $0x1a0] sm:$0xff]   ;;  %v1587_v58 = vld [vmem:[%s2029_s1 + $0x1e8] sm:$0xff]   ;;  %v1589_v60 = vld [vmem:[%s2029_s1 + $0x170] sm:$0xff]  }
  0x15   :  { %1395 = vmatpush3.bf16.msra.mxu1 %v1546_v19  ;;  %v1588_v59 = vld [vmem:[%s2029_s1 + $0x1a8] sm:$0xff]   ;;  %v1590_v61 = vld [vmem:[%s2029_s1 + $0x130] sm:$0xff]   ;;  %v1593_v0 = vld [vmem:[%s2029_s1 + $0x178] sm:$0xff]  }
  0x16   :  { %1396 = vmatprep.subr.bf16.mxu1 %v1549_v22  ;;  %v1591_v62 = vld [vmem:[%s2029_s1 + $0x1f0] sm:$0xff]   ;;  %v1594_v1 = vld [vmem:[%s2029_s1 + $0x138] sm:$0xff]   ;;  %v1600_v6 = vld [vmem:[%s2029_s1 + $0x240] sm:$0xff]  }
  0x17   :  { %1375 = vmatpush3.bf16.msra.mxu0 %v1548_v21  ;;  %v1592_v63 = vld [vmem:[%s2029_s1 + $0x1b0] sm:$0xff]   ;;  %v1595_v2 = vld [vmem:[%s2029_s1 + $0x1f8] sm:$0xff]   ;;  %v1604_v9 = vld [vmem:[%s2029_s1 + $0x200] sm:$0xff]  }
  0x18   :  { %1376 = vmatprep.subr.bf16.mxu0 %v1551_v24  ;;  %v1596_v3 = vld [vmem:[%s2030_s0 + $0x10] ss:$52 sps:$4 sm:$0xff]   ;;  %v1598_v4 = vld [vmem:[%s2030_s0 + $0x14] ss:$52 sps:$4 sm:$0xff]   ;;  %v1599_v5 = vld [vmem:[%s2029_s1 + $0x1b8] sm:$0xff]  }
  0x19   :  { %1397 = vmatpush3.bf16.msra.mxu1 %v1550_v23  ;;  %v1601_v7 = vld [vmem:[%s2030_s0 + $0x18] ss:$52 sps:$4 sm:$0xff]   ;;  %v1603_v8 = vld [vmem:[%s2030_s0 + $0x1c] ss:$52 sps:$4 sm:$0xff]   ;;  %v1605_v10 = vld [vmem:[%s2029_s1 + $0x2c0] sm:$0xff]  }
  0x1a   :  { %1398 = vmatprep.subr.bf16.mxu1 %v1553_v26  ;;  %v1606_v11 = vld [vmem:[%s2029_s1 + $0x280] sm:$0xff]   ;;  %v1607_v12 = vld [vmem:[%s2029_s1 + $0x248] sm:$0xff]   ;;  %v1611_v16 = vld [vmem:[%s2029_s1 + $0x250] sm:$0xff]  }
  0x1b   :  { %1377 = vmatpush3.bf16.msra.mxu0 %v1552_v25  ;;  %v1608_v13 = vld [vmem:[%s2029_s1 + $0x208] sm:$0xff]   ;;  %v1612_v17 = vld [vmem:[%s2029_s1 + $0x210] sm:$0xff]   ;;  %v1615_v20 = vld [vmem:[%s2029_s1 + $0x258] sm:$0xff]  }
  0x1c   :  { %1378 = vmatprep.subr.bf16.mxu0 %v1555_v28  ;;  %v1609_v14 = vld [vmem:[%s2029_s1 + $0x2c8] sm:$0xff]   ;;  %v1613_v18 = vld [vmem:[%s2029_s1 + $0x2d0] sm:$0xff]   ;;  %v1616_v21 = vld [vmem:[%s2029_s1 + $0x218] sm:$0xff]  }
  0x1d   :  { %1399 = vmatpush3.bf16.msra.mxu1 %v1554_v27  ;;  %v1610_v15 = vld [vmem:[%s2029_s1 + $0x288] sm:$0xff]   ;;  %v1614_v19 = vld [vmem:[%s2029_s1 + $0x290] sm:$0xff]   ;;  %v1617_v22 = vld [vmem:[%s2029_s1 + $0x2d8] sm:$0xff]  }
  0x1e   :  { %1400 = vmatprep.subr.bf16.mxu1 %v1557_v30  ;;  %v1618_v23 = vld [vmem:[%s2029_s1 + $0x298] sm:$0xff]   ;;  %v1619_v24 = vld [vmem:[%s2029_s1 + $0x260] sm:$0xff]   ;;  %v1623_v28 = vld [vmem:[%s2029_s1 + $0x268] sm:$0xff]  }
  0x1f   :  { %1379 = vmatpush3.bf16.msra.mxu0 %v1556_v29  ;;  %v1620_v25 = vld [vmem:[%s2029_s1 + $0x220] sm:$0xff]   ;;  %v1624_v29 = vld [vmem:[%s2029_s1 + $0x228] sm:$0xff]   ;;  %v1627_v32 = vld [vmem:[%s2029_s1 + $0x270] sm:$0xff]  }
  0x20   :  { %1408 = vmatprep.subr.bf16.mxu0 %v1562_v34  ;;  %v1621_v26 = vld [vmem:[%s2029_s1 + $0x2e0] sm:$0xff]   ;;  %v1625_v30 = vld [vmem:[%s2029_s1 + $0x2e8] sm:$0xff]   ;;  %v1629_v34 = vld [vmem:[%s2029_s1 + $0x2f0] sm:$0xff]  }
  0x21   :  { %1401 = vmatpush3.bf16.msra.mxu1 %v1561_v33  ;;  %v1622_v27 = vld [vmem:[%s2029_s1 + $0x2a0] sm:$0xff]   ;;  %v1628_v33 = vld [vmem:[%s2029_s1 + $0x230] sm:$0xff]   ;;  %v1631_v36 = vld [vmem:[%s2029_s1 + $0x278] sm:$0xff]  }
  0x22   :  { %967 = vmatmul.mubr.bf16.vlgmr.msra.gmra.mrb[0].mxu0 %v1558_v31  ;;  %1430 = vmatprep.subr.bf16.mxu1 %v1567_v38  ;;  %v1626_v31 = vld [vmem:[%s2029_s1 + $0x2a8] sm:$0xff]   ;;  %v1633_v38 = vld [vmem:[%s2029_s1 + $0x2f8] sm:$0xff]  }
  0x23   :  { %1409 = vmatpush3.bf16.msra.mxu0 %v1566_v37  ;;  %1048 = vmatprep.mubr.bf16.mxu0 %v1598_v4  ;;  %v1632_v37 = vld [vmem:[%s2029_s1 + $0x238] sm:$0xff]  }
  0x24   :  { %1008 = vmatmul.mubr.bf16.vlgmr.msra.gmra.mrb[0].mxu1 %v1563_v35  ;;  %1410 = vmatprep.subr.bf16.mxu0 %v1569_v40  ;;  %v1630_v35 = vld [vmem:[%s2029_s1 + $0x2b0] sm:$0xff]   ;;  %v1636_v40 = vld [vmem:[%s2030_s0 + $0x24] ss:$52 sps:$4 sm:$0xff]  }
  0x25   :  { %1431 = vmatpush3.bf16.msra.mxu1 %v1568_v39  ;;  %1089 = vmatprep.mubr.bf16.mxu1 %v1603_v8  ;;  %v1634_v39 = vld [vmem:[%s2030_s0 + $0x20] ss:$52 sps:$4 sm:$0xff]  }
  0x26   :  { %1432 = vmatprep.subr.bf16.mxu1 %v1571_v42  ;;  %v1650_v42 = vmov 0.0  }
  0x27   :  { %1411 = vmatpush3.bf16.msra.mxu0 %v1570_v41  ;;  %v1637_v41 = vld [vmem:[%s2029_s1 + $0x2b8] sm:$0xff]  }
  0x28   :  { %1412 = vmatprep.subr.bf16.mxu0 %v1573_v44  ;;  %v1640_v44 = vld [vmem:[%s2030_s0 + $0x2c] ss:$52 sps:$4 sm:$0xff]  }
  0x29   :  { %1433 = vmatpush3.bf16.msra.mxu1 %v1572_v43  ;;  %v1638_v43 = vld [vmem:[%s2030_s0 + $0x28] ss:$52 sps:$4 sm:$0xff]  }
  0x2a   :  { %1434 = vmatprep.subr.bf16.mxu1 %v1575_v46  ;;  %v1642_v46 = vld [vmem:[%s2029_s1 + $0x308] sm:$0xff]  }
  0x2b   :  { %1413 = vmatpush3.bf16.msra.mxu0 %v1574_v45  ;;  %v1641_v45 = vld [vmem:[%s2029_s1 + $0x300] sm:$0xff]  }
  0x2c   :  { %1414 = vmatprep.subr.bf16.mxu0 %v1577_v48  ;;  %v1644_v48 = vld [vmem:[%s2029_s1 + $0x318] sm:$0xff]  }
  0x2d   :  { %1435 = vmatpush3.bf16.msra.mxu1 %v1576_v47  ;;  %v1643_v47 = vld [vmem:[%s2029_s1 + $0x310] sm:$0xff]  }
  0x2e   :  { %1436 = vmatprep.subr.bf16.mxu1 %v1579_v50  ;;  %v1646_v50 = vld [vmem:[%s2029_s1 + $0x328] sm:$0xff]  }
  0x2f   :  { %1415 = vmatpush3.bf16.msra.mxu0 %v1578_v49  ;;  %v1645_v49 = vld [vmem:[%s2029_s1 + $0x320] sm:$0xff]  }
  0x30   :  { %1416 = vmatprep.subr.bf16.mxu0 %v1581_v52  ;;  %v1648_v52 = vld [vmem:[%s2029_s1 + $0x338] sm:$0xff]  }
  0x31   :  { %1437 = vmatpush3.bf16.msra.mxu1 %v1580_v51  ;;  %v1647_v51 = vld [vmem:[%s2029_s1 + $0x330] sm:$0xff]  }
  0x32   :  { %1438 = vmatprep.subr.bf16.mxu1 %v1583_v54 }
  0x33   :  { %1417 = vmatpush3.bf16.msra.mxu0 %v1582_v53  ;;  %v1649_v53 = vld [vmem:[%s2030_s0 + $0x30] ss:$52 sps:$4 sm:$0xff]  }
  0x34   :  { %1418 = vmatprep.subr.bf16.mxu0 %v1585_v56 }
  0x35   :  { %1439 = vmatpush3.bf16.msra.mxu1 %v1584_v55  ;;  %v1237_v55 = vld [vmem:[%s2031_s2] ss:$0 sm:$0xff] }
  0x36   :  { %1440 = vmatprep.subr.bf16.mxu1 %v1587_v58 }
  0x37   :  { %1419 = vmatpush3.bf16.msra.mxu0 %v1586_v57 }
  0x38   :  { %1420 = vmatprep.subr.bf16.mxu0 %v1589_v60 }
  0x39   :  { %1441 = vmatpush3.bf16.msra.mxu1 %v1588_v59 }
  0x3a   :  { %1442 = vmatprep.subr.bf16.mxu1 %v1591_v62 }
  0x3b   :  { %1421 = vmatpush3.bf16.msra.mxu0 %v1590_v61 }
  0x3c   :  { %1422 = vmatprep.subr.bf16.mxu0 %v1593_v0 }
  0x3d   :  { %1443 = vmatpush3.bf16.msra.mxu1 %v1592_v63 }
  0x3e   :  { %1444 = vmatprep.subr.bf16.mxu1 %v1595_v2 }
  0x3f   :  { %1423 = vmatpush3.bf16.msra.mxu0 %v1594_v1 }
  0x40   :  { %1452 = vmatprep.subr.bf16.mxu0 %v1600_v6 }
  0x41   :  { %1445 = vmatpush3.bf16.msra.mxu1 %v1599_v5 }
  0x42   :  { %1049 = vmatmul.mubr.bf16.vlgmr.msra.gmra.mrb[4].mxu0 %v1596_v3  ;;  %1474 = vmatprep.subr.bf16.mxu1 %v1605_v10 }
  0x43   :  { %1453 = vmatpush3.bf16.msra.mxu0 %v1604_v9  ;;  %1130 = vmatprep.mubr.bf16.mxu0 %v1636_v40 }
  0x44   :  { %1090 = vmatmul.mubr.bf16.vlgmr.msra.gmra.mrb[4].mxu1 %v1601_v7  ;;  %1454 = vmatprep.subr.bf16.mxu0 %v1607_v12 }
  0x45   :  { %1475 = vmatpush3.bf16.msra.mxu1 %v1606_v11  ;;  %1171 = vmatprep.mubr.bf16.mxu1 %v1640_v44 }
  0x46   :  { %1476 = vmatprep.subr.bf16.mxu1 %v1609_v14 }
  0x47   :  { %1455 = vmatpush3.bf16.msra.mxu0 %v1608_v13 }
  0x48   :  { %1456 = vmatprep.subr.bf16.mxu0 %v1611_v16 }
  0x49   :  { %1477 = vmatpush3.bf16.msra.mxu1 %v1610_v15 }
  0x4a   :  { %1478 = vmatprep.subr.bf16.mxu1 %v1613_v18 }
  0x4b   :  { %1457 = vmatpush3.bf16.msra.mxu0 %v1612_v17 }
  0x4c   :  { %1458 = vmatprep.subr.bf16.mxu0 %v1615_v20 }
  0x4d   :  { %1479 = vmatpush3.bf16.msra.mxu1 %v1614_v19 }
  0x4e   :  { %1480 = vmatprep.subr.bf16.mxu1 %v1617_v22 }
  0x4f   :  { %1459 = vmatpush3.bf16.msra.mxu0 %v1616_v21 }
  0x50   :  { %1460 = vmatprep.subr.bf16.mxu0 %v1619_v24 }
  0x51   :  { %1481 = vmatpush3.bf16.msra.mxu1 %v1618_v23 }
  0x52   :  { %1482 = vmatprep.subr.bf16.mxu1 %v1621_v26 }
  0x53   :  { %1461 = vmatpush3.bf16.msra.mxu0 %v1620_v25 }
  0x54   :  { %1462 = vmatprep.subr.bf16.mxu0 %v1623_v28 }
  0x55   :  { %1483 = vmatpush3.bf16.msra.mxu1 %v1622_v27 }
  0x56   :  { %1484 = vmatprep.subr.bf16.mxu1 %v1625_v30 }
  0x57   :  { %1463 = vmatpush3.bf16.msra.mxu0 %v1624_v29 }
  0x58   :  { %1464 = vmatprep.subr.bf16.mxu0 %v1627_v32 }
  0x59   :  { %1485 = vmatpush3.bf16.msra.mxu1 %v1626_v31 }
  0x5a   :  { %1486 = vmatprep.subr.bf16.mxu1 %v1629_v34 }
  0x5b   :  { %1465 = vmatpush3.bf16.msra.mxu0 %v1628_v33 }
  0x5c   :  { %1466 = vmatprep.subr.bf16.mxu0 %v1631_v36 }
  0x5d   :  { %1487 = vmatpush3.bf16.msra.mxu1 %v1630_v35 }
  0x5e   :  { %1488 = vmatprep.subr.bf16.mxu1 %v1633_v38 }
  0x5f   :  { %1467 = vmatpush3.bf16.msra.mxu0 %v1632_v37 }
  0x60   :  { %1505 = vmatprep.subr.bf16.mxu0 %v1650_v42 }
  0x61   :  { %1489 = vmatpush3.bf16.msra.mxu1 %v1637_v41 }
  0x62   :  { %1131 = vmatmul.mubr.bf16.vlgmr.msra.gmra.mrb[8].mxu0 %v1634_v39 }
  0x63   :  { %1521 = vmatprep.mubr.msk.bf16.mxu0 %vm1651_vm0, %v1650_v42  ;;  %1506 = vmatpush3.bf16.msra.mxu0 %v1641_v45 }
  0x64   :  { %1172 = vmatmul.mubr.bf16.vlgmr.msra.gmra.mrb[8].mxu1 %v1638_v43  ;;  %1507 = vmatprep.subr.bf16.mxu0 %v1650_v42 }
  0x67   :  { %1508 = vmatpush3.bf16.msra.mxu0 %v1642_v46 }
  0x68   :  { %1509 = vmatprep.subr.bf16.mxu0 %v1650_v42 }
  0x6b   :  { %1510 = vmatpush3.bf16.msra.mxu0 %v1643_v47 }
  0x6c   :  { %1511 = vmatprep.subr.bf16.mxu0 %v1650_v42 }
  0x6f   :  { %1512 = vmatpush3.bf16.msra.mxu0 %v1644_v48 }
  0x70   :  { %1513 = vmatprep.subr.bf16.mxu0 %v1650_v42 }
  0x73   :  { %1514 = vmatpush3.bf16.msra.mxu0 %v1645_v49 }
  0x74   :  { %1515 = vmatprep.subr.bf16.mxu0 %v1650_v42 }
  0x77   :  { %1516 = vmatpush3.bf16.msra.mxu0 %v1646_v50 }
  0x78   :  { %1517 = vmatprep.subr.bf16.mxu0 %v1650_v42 }
  0x7b   :  { %1518 = vmatpush3.bf16.msra.mxu0 %v1647_v51 }
  0x7c   :  { %1519 = vmatprep.subr.bf16.mxu0 %v1650_v42 }
  0x7f   :  { %1520 = vmatpush3.bf16.msra.mxu0 %v1648_v52 }
  0x82   :  { %1522 = vmatmul.mubr.bf16.vlgmr.msra.gmra.mrb[12].mxu0 %v1649_v53 }
  0xf5   :  { %v1380_v54 = vpop.f32.mrb[0].mxu0 }
  0xf6   :  { %v1381_v56 = vpop.f32.mrb[1].mxu0 }
  0xf7   :  { %v1382_v57 = vadd.f32 %v1381_v56, %v1380_v54  ;;  %v1383_v58 = vpop.f32.mrb[2].mxu0  ;;  %v1402_v59 = vpop.f32.mrb[0].mxu1 }
  0xf8   :  { %v1384_v60 = vpop.f32.mrb[3].mxu0  ;;  %v1403_v63 = vpop.f32.mrb[1].mxu1 }
  0xf9   :  { %v969_v61 = vadd.f32 %v1382_v57, %v1237_v55  ;;  %v1385_v62 = vadd.f32 %v1384_v60, %v1383_v58  ;;  %v1404_v0 = vadd.f32 %v1403_v63, %v1402_v59  ;;  %v1405_v1 = vpop.f32.mrb[2].mxu1 }
  0xfa   :  { %v1406_v3 = vpop.f32.mrb[3].mxu1 }
  0xfb   :  { %v972_v2 = vadd.f32 %v1385_v62, %v1237_v55  ;;  %v1010_v4 = vadd.f32 %v1404_v0, %v969_v61  ;;  %v1407_v5 = vadd.f32 %v1406_v3, %v1405_v1 }
  0xfd   :  { %v1013_v6 = vadd.f32 %v1407_v5, %v972_v2 }
 0x115   :  { %v1424_v7 = vpop.f32.mrb[4].mxu0 }
 0x116   :  { %v1425_v8 = vpop.f32.mrb[5].mxu0 }
 0x117   :  { %v1426_v9 = vadd.f32 %v1425_v8, %v1424_v7  ;;  %v1427_v10 = vpop.f32.mrb[6].mxu0  ;;  %v1446_v13 = vpop.f32.mrb[4].mxu1 }
 0x118   :  { %v1428_v11 = vpop.f32.mrb[7].mxu0  ;;  %v1447_v15 = vpop.f32.mrb[5].mxu1 }
 0x119   :  { %v1051_v12 = vadd.f32 %v1426_v9, %v1010_v4  ;;  %v1429_v14 = vadd.f32 %v1428_v11, %v1427_v10  ;;  %v1448_v17 = vadd.f32 %v1447_v15, %v1446_v13  ;;  %v1449_v18 = vpop.f32.mrb[6].mxu1 }
 0x11a   :  { %v1450_v19 = vpop.f32.mrb[7].mxu1 }
 0x11b   :  { %v1054_v16 = vadd.f32 %v1429_v14, %v1013_v6  ;;  %v1092_v20 = vadd.f32 %v1448_v17, %v1051_v12  ;;  %v1451_v21 = vadd.f32 %v1450_v19, %v1449_v18 }
 0x11d   :  { %v1095_v22 = vadd.f32 %v1451_v21, %v1054_v16 }
 0x135   :  { %v1468_v23 = vpop.f32.mrb[8].mxu0 }
 0x136   :  { %v1469_v24 = vpop.f32.mrb[9].mxu0 }
 0x137   :  { %v1470_v25 = vadd.f32 %v1469_v24, %v1468_v23  ;;  %v1471_v26 = vpop.f32.mrb[10].mxu0  ;;  %v1490_v27 = vpop.f32.mrb[8].mxu1 }
 0x138   :  { %v1472_v28 = vpop.f32.mrb[11].mxu0  ;;  %v1491_v31 = vpop.f32.mrb[9].mxu1 }
 0x139   :  { %v1133_v29 = vadd.f32 %v1470_v25, %v1092_v20  ;;  %v1473_v30 = vadd.f32 %v1472_v28, %v1471_v26  ;;  %v1492_v32 = vadd.f32 %v1491_v31, %v1490_v27  ;;  %v1493_v33 = vpop.f32.mrb[10].mxu1 }
 0x13a   :  { %v1494_v35 = vpop.f32.mrb[11].mxu1 }
 0x13b   :  { %v1136_v34 = vadd.f32 %v1473_v30, %v1095_v22  ;;  %v1495_v36 = vadd.f32 %v1494_v35, %v1493_v33  ;;  %v1174_v37 = vadd.f32 %v1492_v32, %v1133_v29 }
 0x13d   :  { %v1177_v38 = vadd.f32 %v1495_v36, %v1136_v34 }
 0x155   :  { %v1214_v39 = vpop.f32.mrb[12].mxu0 }
 0x156   :  { %v1215_v40 = vadd.f32 %v1214_v39, %v1174_v37  ;;  %v1523_v41 = vpop.f32.mrb[13].mxu0 }
 0x157   :  { %v1217_v42 = vpop.f32.mrb[14].mxu0 }
 0x158   :  { %v1218_v43 = vadd.f32 %v1217_v42, %v1177_v38  ;;  %v1524_v44 = vpop.f32.mrb[15].mxu0  ;;  %v1221_v45 = vmax.f32 %v1215_v40, 0.0 }
 0x15a   :  { %v1222_v46 = vmax.f32 %v1218_v43, 0.0 }
 0x15c   :  { %v1362_v47 = vpack.c.bf16 %v1222_v46, %v1221_v45 }
 0x15e   :  { %1363 = vst [vmem:[%s2032_s3] sm:$0xff] %v1362_v47  }

// kernel: faster_rcnn_forward.35
= control target key start
LH: loop header
LB: loop body
LE: loop exit
PB: predicated region body
PF: predicated region fallthrough
CT: control target
= control target key end

     0   :  { %v418_v1 = vmov 0   ;;  %v51_v34 = vlaneseq  ;;  %s565_s1 = inlined_call_operand.vmem [shape: bf16[128,512], index: 1, kind: input, shape index: {}]   ;;  %s566_s0 = inlined_call_operand.vmem [shape: bf16[16,128], index: 0, kind: input, shape index: {}]   ;;  %s567_s2 = inlined_call_operand.vmem [shape: f32[1,512], index: 2, kind: input, shape index: {}]   ;;  %s568_s3 = inlined_call_operand.vmem [shape: f32[16,512], index: 3, kind: output, shape index: {}]  }
   0x1   :  { %v369_v0 = vld [vmem:[%s565_s1 + $0x4] ss:$16 sps:$4 sm:$0xff]   ;;  %269 = vmatprep.mubr.bf16.mxu0 %v418_v1  ;;  %312 = vmatprep.mubr.bf16.mxu1 %v418_v1  ;;  %v371_v2 = vld [vmem:[%s565_s1 + $0xc] ss:$16 sps:$4 sm:$0xff]   ;;  %v373_v3 = vld [vmem:[%s565_s1] ss:$16 sps:$4 sm:$0xff]  }
   0x2   :  { %237 = vmatprep.subr.bf16.mxu0 %v369_v0  ;;  %v374_v4 = vld [vmem:[%s565_s1 + $0x8] ss:$16 sps:$4 sm:$0xff]   ;;  %280 = vmatprep.subr.bf16.mxu1 %v371_v2  ;;  %v375_v5 = vld [vmem:[%s565_s1 + $0x24] ss:$16 sps:$4 sm:$0xff]   ;;  %v377_v6 = vld [vmem:[%s565_s1 + $0x2c] ss:$16 sps:$4 sm:$0xff]  }
   0x3   :  { %238 = vmatpush1.bf16.msra.mxu0 %v373_v3  ;;  %281 = vmatpush1.bf16.msra.mxu1 %v374_v4  ;;  %v379_v7 = vld [vmem:[%s565_s1 + $0x20] ss:$16 sps:$4 sm:$0xff]   ;;  %v380_v8 = vld [vmem:[%s565_s1 + $0x28] ss:$16 sps:$4 sm:$0xff]   ;;  %v381_v9 = vld [vmem:[%s565_s1 + $0x44] ss:$16 sps:$4 sm:$0xff]  }
   0x4   :  { %239 = vmatprep.subr.bf16.mxu0 %v375_v5  ;;  %282 = vmatprep.subr.bf16.mxu1 %v377_v6  ;;  %v383_v10 = vld [vmem:[%s565_s1 + $0x4c] ss:$16 sps:$4 sm:$0xff]   ;;  %v385_v11 = vld [vmem:[%s565_s1 + $0x40] ss:$16 sps:$4 sm:$0xff]   ;;  %v386_v12 = vld [vmem:[%s565_s1 + $0x48] ss:$16 sps:$4 sm:$0xff]  }
   0x5   :  { %v387_v13 = vld [vmem:[%s565_s1 + $0x64] ss:$16 sps:$4 sm:$0xff]   ;;  %v389_v14 = vld [vmem:[%s565_s1 + $0x6c] ss:$16 sps:$4 sm:$0xff]   ;;  %v391_v15 = vld [vmem:[%s565_s1 + $0x60] ss:$16 sps:$4 sm:$0xff]  }
   0x6   :  { %v392_v16 = vld [vmem:[%s565_s1 + $0x68] ss:$16 sps:$4 sm:$0xff]   ;;  %v393_v17 = vld [vmem:[%s565_s1 + $0x84] ss:$16 sps:$4 sm:$0xff]   ;;  %v395_v18 = vld [vmem:[%s565_s1 + $0x8c] ss:$16 sps:$4 sm:$0xff]  }
   0x7   :  { %240 = vmatpush1.bf16.msra.mxu0 %v379_v7  ;;  %283 = vmatpush1.bf16.msra.mxu1 %v380_v8  ;;  %v397_v19 = vld [vmem:[%s565_s1 + $0x80] ss:$16 sps:$4 sm:$0xff]   ;;  %v398_v20 = vld [vmem:[%s565_s1 + $0x88] ss:$16 sps:$4 sm:$0xff]   ;;  %v399_v21 = vld [vmem:[%s565_s1 + $0xa4] ss:$16 sps:$4 sm:$0xff]  }
   0x8   :  { %241 = vmatprep.subr.bf16.mxu0 %v381_v9  ;;  %284 = vmatprep.subr.bf16.mxu1 %v383_v10  ;;  %v401_v22 = vld [vmem:[%s565_s1 + $0xac] ss:$16 sps:$4 sm:$0xff]   ;;  %v403_v23 = vld [vmem:[%s565_s1 + $0xa0] ss:$16 sps:$4 sm:$0xff]   ;;  %v404_v24 = vld [vmem:[%s565_s1 + $0xa8] ss:$16 sps:$4 sm:$0xff]  }
   0x9   :  { %v405_v25 = vld [vmem:[%s565_s1 + $0xc4] ss:$16 sps:$4 sm:$0xff]   ;;  %v407_v26 = vld [vmem:[%s565_s1 + $0xcc] ss:$16 sps:$4 sm:$0xff]   ;;  %v409_v27 = vld [vmem:[%s565_s1 + $0xc0] ss:$16 sps:$4 sm:$0xff]  }
   0xa   :  { %v410_v28 = vld [vmem:[%s565_s1 + $0xc8] ss:$16 sps:$4 sm:$0xff]   ;;  %v411_v29 = vld [vmem:[%s565_s1 + $0xe4] ss:$16 sps:$4 sm:$0xff]   ;;  %v413_v30 = vld [vmem:[%s565_s1 + $0xec] ss:$16 sps:$4 sm:$0xff]  }
   0xb   :  { %242 = vmatpush1.bf16.msra.mxu0 %v385_v11  ;;  %285 = vmatpush1.bf16.msra.mxu1 %v386_v12  ;;  %v415_v31 = vld [vmem:[%s565_s1 + $0xe0] ss:$16 sps:$4 sm:$0xff]   ;;  %v416_v32 = vld [vmem:[%s565_s1 + $0xe8] ss:$16 sps:$4 sm:$0xff]   ;;  %v52_v35 = vshrl.u32 %v51_v34, 7 }
   0xc   :  { %243 = vmatprep.subr.bf16.mxu0 %v387_v13  ;;  %286 = vmatprep.subr.bf16.mxu1 %v389_v14  ;;  %v417_v33 = vld [vmem:[%s566_s0] sm:$0xff]  }
   0xd   :  { %v53_v36 = vsub.s32 0, %v52_v35  ;;  %v61_v37 = vsub.s32 2, %v52_v35  ;;  %v49_v38 = vld [vmem:[%s567_s2] sm:$0xf]  ;;  %v57_v39 = vsub.s32 1, %v52_v35  ;;  %v65_v40 = vsub.s32 3, %v52_v35 }
   0xf   :  { %244 = vmatpush1.bf16.msra.mxu0 %v391_v15  ;;  %287 = vmatpush1.bf16.msra.mxu1 %v392_v16  ;;  %v54_v41 = vrot.slane %v49_v38, %v53_v36  ;;  %v62_v42 = vrot.slane %v49_v38, %v61_v37  ;;  %v58_v43 = vrot.slane %v49_v38, %v57_v39 }
  0x10   :  { %245 = vmatprep.subr.bf16.mxu0 %v393_v17  ;;  %288 = vmatprep.subr.bf16.mxu1 %v395_v18  ;;  %v66_v44 = vrot.slane %v49_v38, %v65_v40 }
  0x13   :  { %246 = vmatpush1.bf16.msra.mxu0 %v397_v19  ;;  %289 = vmatpush1.bf16.msra.mxu1 %v398_v20 }
  0x14   :  { %247 = vmatprep.subr.bf16.mxu0 %v399_v21  ;;  %290 = vmatprep.subr.bf16.mxu1 %v401_v22 }
  0x17   :  { %248 = vmatpush1.bf16.msra.mxu0 %v403_v23  ;;  %291 = vmatpush1.bf16.msra.mxu1 %v404_v24 }
  0x18   :  { %249 = vmatprep.subr.bf16.mxu0 %v405_v25  ;;  %292 = vmatprep.subr.bf16.mxu1 %v407_v26 }
  0x1b   :  { %250 = vmatpush1.bf16.msra.mxu0 %v409_v27  ;;  %293 = vmatpush1.bf16.msra.mxu1 %v410_v28 }
  0x1c   :  { %251 = vmatprep.subr.bf16.mxu0 %v411_v29  ;;  %294 = vmatprep.subr.bf16.mxu1 %v413_v30 }
  0x1f   :  { %252 = vmatpush1.bf16.msra.mxu0 %v415_v31  ;;  %295 = vmatpush1.bf16.msra.mxu1 %v416_v32 }
  0x22   :  { %270 = vmatmul.mubr.bf16.vlgmr.msra.gmra.mrb[0].mxu0 %v417_v33  ;;  %313 = vmatmul.mubr.bf16.vlgmr.msra.gmra.mrb[0].mxu1 %v417_v33 }
  0xf5   :  { %v271_v45 = vpop.f32.mrb[0].mxu0  ;;  %v314_v46 = vpop.f32.mrb[0].mxu1 }
  0xf6   :  { %v272_v47 = vadd.f32 %v271_v45, %v54_v41  ;;  %v315_v48 = vadd.f32 %v314_v46, %v62_v42  ;;  %v273_v49 = vpop.f32.mrb[1].mxu0  ;;  %v316_v50 = vpop.f32.mrb[1].mxu1 }
  0xf7   :  { %v274_v51 = vadd.f32 %v273_v49, %v58_v43  ;;  %v317_v52 = vadd.f32 %v316_v50, %v66_v44  ;;  %v275_v53 = vpop.f32.mrb[2].mxu0  ;;  %v318_v54 = vpop.f32.mrb[2].mxu1 }
  0xf8   :  { %323 = vst [vmem:[%s568_s3] sm:$0xff] %v272_v47  ;;  %325 = vst [vmem:[%s568_s3 + $0x10] sm:$0xff] %v315_v48  ;;  %v276_v55 = vadd.f32 %v275_v53, %v54_v41  ;;  %v319_v56 = vadd.f32 %v318_v54, %v62_v42  ;;  %v277_v57 = vpop.f32.mrb[3].mxu0  ;;  %v320_v58 = vpop.f32.mrb[3].mxu1 }
  0xf9   :  { %324 = vst [vmem:[%s568_s3 + $0x8] sm:$0xff] %v274_v51  ;;  %326 = vst [vmem:[%s568_s3 + $0x18] sm:$0xff] %v317_v52  ;;  %v278_v59 = vadd.f32 %v277_v57, %v58_v43  ;;  %v321_v60 = vadd.f32 %v320_v58, %v66_v44 }
  0xfa   :  { %327 = vst [vmem:[%s568_s3 + $0x20] sm:$0xff] %v276_v55  ;;  %329 = vst [vmem:[%s568_s3 + $0x30] sm:$0xff] %v319_v56 }
  0xfb   :  { %328 = vst [vmem:[%s568_s3 + $0x28] sm:$0xff] %v278_v59  ;;  %330 = vst [vmem:[%s568_s3 + $0x38] sm:$0xff] %v321_v60 }

</bundles_post_ra>
